<compile_context>
chip_gen: v7x
topology: tpu7x:2x2x1
jax: 0.10.0
libtpu: 0.0.40
codegen_flags: <defaults>
</compile_context>

<pallas_src>
import functools
import math

import jax
import jax.numpy as jnp
from jax.experimental import pallas as pl
from jax.experimental.pallas import tpu as pltpu


def _round_up(x, m):
    return (x + m - 1) // m * m


# ----------------------------- fused BasicBlock kernel -------------------------------
#
# Input layout ("planes"): the block input is pre-laid-out host-side (one-time, ~1x traffic) as
# flattened zero-padded grids of shape (P, Lg, Cpad) per image, where the padded output grid is
# (Hp1, Wp1) = (Ho+2, Wo+2), L = Hp1*Wp1, G = Wp1+1 zero guard rows on each end (Lg = L + 2G).
#   stride 1: P = 1 plane  == the zero-padded input grid itself.
#   stride 2: P = 4 stride-phase planes, so every conv tap is a contiguous flat slice.
# A 3x3 conv then becomes 9 shifted (L, Cpad) @ (Cpad, Npad) bf16 MXU matmuls accumulated in a
# f32 VMEM scratch.  Row-wrap contamination from the flat shifts only hits the border ring, which
# `mask` re-zeroes — and that zero ring is exactly the padding the next conv needs.

def _fused_block_kernel(*refs, stride, has_downsample, Wp1, L, G, npad):
    if has_downsample:
        (planes_ref, w1_ref, b1_ref, gate_ref, w2_ref, b2_ref,
         wsc_ref, bsc_ref, mask_ref, out_ref, acc_ref, o1_ref) = refs
    else:
        (planes_ref, w1_ref, b1_ref, gate_ref, w2_ref, b2_ref,
         mask_ref, out_ref, acc_ref, o1_ref) = refs
        wsc_ref = bsc_ref = None

    mask = mask_ref[...]                      # (L, 1) f32: 1 on interior, 0 on border ring

    # ---- conv1 (3x3, stride in {1, 2}) as 9 shifted matmuls, f32 accumulation in VMEM ----
    first = True
    for dy in range(3):
        for dx in range(3):
            t = dy * 3 + dx
            if stride == 1:
                p = 0
                off = (dy - 1) * Wp1 + (dx - 1)
            else:                             # stride 2: read from the 4 phase planes
                p = 2 * (dy % 2) + (dx % 2)
                off = (dy // 2 - 1) * Wp1 + (dx // 2 - 1)
            src = planes_ref[0, p, G + off:G + off + L, :]
            contrib = jnp.dot(src, w1_ref[t], preferred_element_type=jnp.float32)
            if first:
                acc_ref[...] = contrib
                first = False
            else:
                acc_ref[...] += contrib

    # BN1 bias + hard-concrete gate (applied in f32 in the epilogue) + ReLU + border re-zero.
    out1 = jnp.maximum((acc_ref[...] + b1_ref[...]) * gate_ref[...], 0.0) * mask
    o1_ref[G:G + L, :] = out1.astype(jnp.bfloat16)
    o1_ref[0:G, :] = jnp.zeros((G, npad), jnp.bfloat16)
    o1_ref[G + L:G + L + G, :] = jnp.zeros((G, npad), jnp.bfloat16)

    # ---- conv2 (3x3, stride 1) over the VMEM-resident out1 ----
    first = True
    for dy in range(3):
        for dx in range(3):
            t = dy * 3 + dx
            off = (dy - 1) * Wp1 + (dx - 1)
            src = o1_ref[G + off:G + off + L, :]
            contrib = jnp.dot(src, w2_ref[t], preferred_element_type=jnp.float32)
            if first:
                acc_ref[...] = contrib
                first = False
            else:
                acc_ref[...] += contrib

    # ---- shortcut (identity / 1x1 conv with matching stride) from the same VMEM planes ----
    if has_downsample:
        if stride == 1:
            sc_src = planes_ref[0, 0, G:G + L, :]
        else:                                 # stride 2 -> odd/odd phase plane, offset -(Wp1+1)
            sc_src = planes_ref[0, 3, G - Wp1 - 1:G - Wp1 - 1 + L, :]
        res = jnp.dot(sc_src, wsc_ref[...], preferred_element_type=jnp.float32) + bsc_ref[...]
    else:
        res = planes_ref[0, 0, G:G + L, :].astype(jnp.float32)

    out = jnp.maximum(acc_ref[...] + b2_ref[...] + res, 0.0) * mask
    out_ref[0, G:G + L, :] = out.astype(out_ref.dtype)
    out_ref[0, 0:G, :] = jnp.zeros((G, npad), out_ref.dtype)
    out_ref[0, G + L:G + L + G, :] = jnp.zeros((G, npad), out_ref.dtype)


def _fused_block_call(planes, bp, gate, mask, *, L, Wp1, G):
    """planes: (N, P, Lg, cpad) bf16 padded-grid layout.  Returns (N, Lg, npad) bf16 in the same
    layout (zero border ring + zero guard rows), ready to feed the next block directly."""
    N, P, Lg, cpad = planes.shape
    npad = bp["npad"]
    has_ds = bp["has_downsample"]
    stride = bp["stride"]

    kernel = functools.partial(
        _fused_block_kernel, stride=stride, has_downsample=has_ds,
        Wp1=Wp1, L=L, G=G, npad=npad)

    in_specs = [
        pl.BlockSpec((1, P, Lg, cpad), lambda b: (b, 0, 0, 0)),   # planes (per image)
        pl.BlockSpec((9, cpad, npad), lambda b: (0, 0, 0)),       # conv1 taps (BN folded)
        pl.BlockSpec((1, npad), lambda b: (0, 0)),                # conv1 bias
        pl.BlockSpec((1, npad), lambda b: (0, 0)),                # hard-concrete gate
        pl.BlockSpec((9, npad, npad), lambda b: (0, 0, 0)),       # conv2 taps (BN folded)
        pl.BlockSpec((1, npad), lambda b: (0, 0)),                # conv2 bias
    ]
    args = [planes, bp["w1"], bp["b1"], gate, bp["w2"], bp["b2"]]
    if has_ds:
        in_specs += [pl.BlockSpec((cpad, npad), lambda b: (0, 0)),
                     pl.BlockSpec((1, npad), lambda b: (0, 0))]
        args += [bp["wsc"], bp["bsc"]]
    in_specs.append(pl.BlockSpec((L, 1), lambda b: (0, 0)))       # border mask
    args.append(mask)

    flops = N * (18 * L * cpad * npad + 18 * L * npad * npad
                 + (2 * L * cpad * npad if has_ds else 0))
    bytes_accessed = sum(int(a.size) * a.dtype.itemsize for a in args) + N * Lg * npad * 2
    cost = pl.CostEstimate(flops=int(flops), transcendentals=0,
                           bytes_accessed=int(bytes_accessed))

    return pl.pallas_call(
        kernel,
        out_shape=jax.ShapeDtypeStruct((N, Lg, npad), jnp.bfloat16),
        grid=(N,),
        in_specs=in_specs,
        out_specs=pl.BlockSpec((1, Lg, npad), lambda b: (b, 0, 0)),
        scratch_shapes=[pltpu.VMEM((L, npad), jnp.float32),       # f32 accumulator
                        pltpu.VMEM((Lg, npad), jnp.bfloat16)],    # out1 (+ halo guards)
        compiler_params=pltpu.CompilerParams(
            dimension_semantics=("parallel",)),                   # >=2 images -> both v7x TCs
        cost_estimate=cost,
    )(*args)


# ----------------------------- host-side layout helpers ------------------------------


def _entry_planes(x_nhwc, stride, cpad):
    """Lay the container input out as the flattened padded plane(s) + guard rows (~1x traffic)."""
    N, H, W, C = x_nhwc.shape
    x = jnp.pad(x_nhwc, ((0, 0), (0, 0), (0, 0), (0, cpad - C))).astype(jnp.bfloat16)
    if stride == 1:
        Ho, Wo = H, W
    else:
        Ho, Wo = (H - 1) // 2 + 1, (W - 1) // 2 + 1
    Hp1, Wp1 = Ho + 2, Wo + 2
    L, G = Hp1 * Wp1, Wp1 + 1
    if stride == 1:
        xp = jnp.pad(x, ((0, 0), (1, 1), (1, 1), (0, 0)))
        planes = xp.reshape(N, 1, L, cpad)
    else:
        pb, pr = 2 * Hp1 - (H + 1), 2 * Wp1 - (W + 1)
        xp = jnp.pad(x, ((0, 0), (1, pb), (1, pr), (0, 0)))
        phases = [xp[:, a::2, b::2, :][:, :Hp1, :Wp1, :]
                  for a in range(2) for b in range(2)]
        planes = jnp.stack(phases, axis=1).reshape(N, 4, L, cpad)
    planes = jnp.pad(planes, ((0, 0), (0, 0), (G, G), (0, 0)))    # zero guard rows
    return planes, Hp1, Wp1, L, G


def _border_mask(Hp1, Wp1):
    idx = jnp.arange(Hp1 * Wp1)
    r, c = idx // Wp1, idx % Wp1
    inside = (r >= 1) & (r <= Hp1 - 2) & (c >= 1) & (c <= Wp1 - 2)
    return inside.astype(jnp.float32).reshape(Hp1 * Wp1, 1)


# ----------------------------- parameters, BN folding, prep --------------------------


def fold_bn(gamma, beta, mean, var, eps=1e-5):
    scale = gamma / jnp.sqrt(var + eps)
    bias = beta - mean * scale
    return scale, bias


def hard_concrete_gate(loga):
    limit_a, limit_b = -0.1, 1.1
    s = jax.nn.sigmoid(loga)
    return jnp.clip(s * (limit_b - limit_a) + limit_a, 0.0, 1.0)


def _conv_taps(w_pt, scale, cin_pad, npad):
    """PyTorch conv weight (Cout, Cin, KH, KW) -> (KH*KW, Cpad, Npad) bf16 per-tap matrices with
    the BN scale folded into the output-channel columns; padded channels are exactly zero."""
    cout, cin, kh, kw = w_pt.shape
    w = jnp.transpose(w_pt, (2, 3, 1, 0)) * scale[None, None, None, :]
    w = w.reshape(kh * kw, cin, cout)
    w = jnp.pad(w, ((0, 0), (0, cin_pad - cin), (0, npad - cout)))
    return w.astype(jnp.bfloat16)


def _pad_vec(v, npad):
    return jnp.pad(v, (0, npad - v.shape[0])).reshape(1, npad).astype(jnp.float32)


def init_conv(key, cin, cout, k):
    fan_in = cin * k * k
    std = math.sqrt(2.0 / fan_in)
    return std * jax.random.normal(key, (cout, cin, k, k), jnp.float32)


def init_bn(c):
    return dict(
        gamma=jnp.ones((c,), jnp.float32),
        beta=jnp.zeros((c,), jnp.float32),
        mean=jnp.zeros((c,), jnp.float32),
        var=jnp.ones((c,), jnp.float32),
    )


def init_basic_block(key, cin, cout, stride):
    k1, k2, k3, kgw, kgb = jax.random.split(key, 5)
    p = {
        "stride": stride,
        "conv1": init_conv(k1, cin, cout, 3),
        "bn1": init_bn(cout),
        "conv2": init_conv(k2, cout, cout, 3),
        "bn2": init_bn(cout),
        "has_downsample": (stride != 1 or cin != cout),
    }
    if p["has_downsample"]:
        p["conv_sc"] = init_conv(k3, cin, cout, 1)
        p["bn_sc"] = init_bn(cout)
    # generator nn.Linear(cin, cout): created in __init__ (bias ~ N(3, 0.01)) but NOT used in
    # BlocksContainer.forward — initialized only for fidelity.
    bound = 1.0 / math.sqrt(cin)
    p["gen_w"] = jax.random.uniform(kgw, (cout, cin), jnp.float32, -bound, bound)
    p["gen_b"] = 3.0 + 0.01 * jax.random.normal(kgb, (cout,), jnp.float32)
    return p


def init_blocks_container(key, in_channels, out_channels, num_blocks, stride):
    strides = [stride] + [1] * (num_blocks - 1)
    params = []
    cin = in_channels
    keys = jax.random.split(key, num_blocks)
    for k, s in zip(keys, strides):
        params.append(init_basic_block(k, cin, out_channels, s))
        cin = out_channels  # block.expansion == 1
    return params


def prepare_basic_block(p, cpad):
    cout = int(p["conv1"].shape[0])
    npad = _round_up(cout, 128)
    s1, b1 = fold_bn(**p["bn1"])
    s2, b2 = fold_bn(**p["bn2"])
    bp = dict(stride=int(p["stride"]), cout=cout, cpad=cpad, npad=npad,
              has_downsample=bool(p["has_downsample"]))
    bp["w1"] = _conv_taps(p["conv1"], s1, cpad, npad)             # (9, cpad, npad) bf16
    bp["b1"] = _pad_vec(b1, npad)
    bp["w2"] = _conv_taps(p["conv2"], s2, npad, npad)             # (9, npad, npad) bf16
    bp["b2"] = _pad_vec(b2, npad)
    if bp["has_downsample"]:
        ssc, bsc = fold_bn(**p["bn_sc"])
        bp["wsc"] = _conv_taps(p["conv_sc"], ssc, cpad, npad)[0]  # (cpad, npad) bf16
        bp["bsc"] = _pad_vec(bsc, npad)
    return bp


def prepare_container(params):
    prepped = []
    cpad = _round_up(int(params[0]["conv1"].shape[1]), 128)       # lane-dense channel padding
    for p in params:
        bp = prepare_basic_block(p, cpad)
        prepped.append(bp)
        cpad = bp["npad"]                                         # next block consumes Npad chans
    return prepped


# ----------------------------- forward (Pallas path) ---------------------------------


def blocks_container_forward(prepped, x_nchw, logas):
    """x_nchw: (N, Cin, H, W) f32; logas: (num_blocks, Cout).  Returns (N, Cout, Ho, Wo) f32."""
    x = jnp.transpose(x_nchw, (0, 2, 3, 1))
    N = x.shape[0]
    bp0 = prepped[0]
    assert bp0["stride"] in (1, 2)  # TODO(synk): strides > 2 not supported by the phase layout.

    planes, Hp1, Wp1, L, G = _entry_planes(x, bp0["stride"], bp0["cpad"])
    Lg = L + 2 * G
    mask = _border_mask(Hp1, Wp1)

    out = None
    for i, bp in enumerate(prepped):
        gate = hard_concrete_gate(logas[i].astype(jnp.float32))
        gate = jnp.pad(gate, (0, bp["npad"] - bp["cout"])).reshape(1, bp["npad"])
        out = _fused_block_call(planes, bp, gate, mask, L=L, Wp1=Wp1, G=G)
        # Block output is already in the padded-grid layout the next (stride-1) block consumes.
        planes = out.reshape(N, 1, Lg, bp["npad"])

    cout = prepped[-1]["cout"]
    y = out[:, G:G + L, :cout].reshape(N, Hp1, Wp1, cout)[:, 1:Hp1 - 1, 1:Wp1 - 1, :]
    return jnp.transpose(y, (0, 3, 1, 2)).astype(jnp.float32)


# ----------------------------- pure-JAX reference for validation ---------------------


def _ref_conv(x_nhwc, w_pt, stride, pad):
    w = jnp.transpose(w_pt, (2, 3, 1, 0))  # HWIO
    return jax.lax.conv_general_dilated(
        x_nhwc, w, (stride, stride), ((pad, pad), (pad, pad)),
        dimension_numbers=("NHWC", "HWIO", "NHWC"),
    )


def _ref_block(x, p, loga):
    s1, b1 = fold_bn(**p["bn1"])
    out = _ref_conv(x, p["conv1"], p["stride"], 1) * s1 + b1
    out = jax.nn.relu(out * hard_concrete_gate(loga))
    if p["has_downsample"]:
        ssc, bsc = fold_bn(**p["bn_sc"])
        sc = _ref_conv(x, p["conv_sc"], p["stride"], 0) * ssc + bsc
    else:
        sc = x
    s2, b2 = fold_bn(**p["bn2"])
    out = _ref_conv(out, p["conv2"], 1, 1) * s2 + b2
    return jax.nn.relu(out + sc)


def _ref_forward(params, x_nchw, logas):
    x = jnp.transpose(x_nchw, (0, 2, 3, 1))
    for p, loga in zip(params, logas):
        x = _ref_block(x, p, loga)
    return jnp.transpose(x, (0, 3, 1, 2))


# ----------------------------- main ---------------------------------------------------

if __name__ == "__main__":
    key = jax.random.PRNGKey(0)
    k_x1, k_l1, k_p1, k_x2, k_l2, k_p2 = jax.random.split(key, 6)

    # Container 1: stride-2 entry (4 phase planes + strided 1x1 shortcut) then identity block.
    N, Cin, H, W = 2, 8, 16, 16
    Cout, num_blocks, stride = 16, 2, 2
    x1 = jax.random.normal(k_x1, (N, Cin, H, W), jnp.float32)
    logas1 = 0.5 * jax.random.normal(k_l1, (num_blocks, Cout), jnp.float32)
    params1 = init_blocks_container(k_p1, Cin, Cout, num_blocks, stride)
    prepped1 = prepare_container(params1)   # one-time: BN fold, per-tap weights, channel padding

    fwd1 = jax.jit(lambda xx, ll: blocks_container_forward(prepped1, xx, ll))
    out1 = jax.block_until_ready(fwd1(x1, logas1))
    assert out1.shape == (N, Cout, H // stride, W // stride), out1.shape
    ref1 = _ref_forward(params1, x1, logas1)
    if not jnp.allclose(out1, ref1, atol=5e-2, rtol=5e-2):
        err = float(jnp.max(jnp.abs(out1 - ref1)))
        raise AssertionError(f"container-1 mismatch vs JAX reference (max abs err {err})")

    # Container 2: stride-1 entry with a 1x1 (stride-1) projection shortcut.
    N2, Cin2, H2, W2 = 2, 16, 8, 8
    Cout2, nb2, s2 = 32, 1, 1
    x2 = jax.random.normal(k_x2, (N2, Cin2, H2, W2), jnp.float32)
    logas2 = 0.5 * jax.random.normal(k_l2, (nb2, Cout2), jnp.float32)
    params2 = init_blocks_container(k_p2, Cin2, Cout2, nb2, s2)
    prepped2 = prepare_container(params2)
    fwd2 = jax.jit(lambda xx, ll: blocks_container_forward(prepped2, xx, ll))
    out2 = jax.block_until_ready(fwd2(x2, logas2))
    assert out2.shape == (N2, Cout2, H2, W2), out2.shape
    ref2 = _ref_forward(params2, x2, logas2)
    if not jnp.allclose(out2, ref2, atol=5e-2, rtol=5e-2):
        err = float(jnp.max(jnp.abs(out2 - ref2)))
        raise AssertionError(f"container-2 mismatch vs JAX reference (max abs err {err})")

    print("KERNEL_OK")
</pallas_src>

<mosaic_0001>
module attributes {stable_mosaic.version = 11 : i64} {
  func.func @_fused_block_kernel(%arg0: i32, %arg1: memref<1x4x122x128xbf16, #tpu.memory_space<vmem>>, %arg2: memref<9x128x128xbf16, #tpu.memory_space<vmem>>, %arg3: memref<1x128xf32, #tpu.memory_space<vmem>>, %arg4: memref<1x128xf32, #tpu.memory_space<vmem>>, %arg5: memref<9x128x128xbf16, #tpu.memory_space<vmem>>, %arg6: memref<1x128xf32, #tpu.memory_space<vmem>>, %arg7: memref<128x128xbf16, #tpu.memory_space<vmem>>, %arg8: memref<1x128xf32, #tpu.memory_space<vmem>>, %arg9: memref<100x1xf32, #tpu.memory_space<vmem>>, %arg10: memref<1x122x128xbf16, #tpu.memory_space<vmem>>, %arg11: memref<100x128xf32, #tpu.memory_space<vmem>>, %arg12: memref<122x128xbf16, #tpu.memory_space<vmem>>) attributes {dimension_semantics = [#tpu.dimension_semantics<parallel>], iteration_bounds = array<i64: 2>, scalar_prefetch = 0 : i64, scratch_operands = 2 : i64, tpu.core_type = #tpu.core_type<tc>, window_params = [{transform_indices = @transform_0, window_bounds = array<i64: 1, 4, 122, 128>}, {pipeline_mode = #tpu.pipeline_mode<synchronous>, transform_indices = @transform_1, window_bounds = array<i64: 9, 128, 128>}, {pipeline_mode = #tpu.pipeline_mode<synchronous>, transform_indices = @transform_2, window_bounds = array<i64: 1, 128>}, {pipeline_mode = #tpu.pipeline_mode<synchronous>, transform_indices = @transform_3, window_bounds = array<i64: 1, 128>}, {pipeline_mode = #tpu.pipeline_mode<synchronous>, transform_indices = @transform_4, window_bounds = array<i64: 9, 128, 128>}, {pipeline_mode = #tpu.pipeline_mode<synchronous>, transform_indices = @transform_5, window_bounds = array<i64: 1, 128>}, {pipeline_mode = #tpu.pipeline_mode<synchronous>, transform_indices = @transform_6, window_bounds = array<i64: 128, 128>}, {pipeline_mode = #tpu.pipeline_mode<synchronous>, transform_indices = @transform_7, window_bounds = array<i64: 1, 128>}, {pipeline_mode = #tpu.pipeline_mode<synchronous>, transform_indices = @transform_8, window_bounds = array<i64: 100, 1>}, {transform_indices = @transform_9, window_bounds = array<i64: 1, 122, 128>}]} {
    %c0 = arith.constant 0 : index
    %c0_0 = arith.constant 0 : index
    %0 = vector.load %arg9[%c0, %c0_0] : memref<100x1xf32, #tpu.memory_space<vmem>>, vector<100x1xf32>
    %c0_1 = arith.constant 0 : index
    %c0_2 = arith.constant 0 : index
    %c0_3 = arith.constant 0 : index
    %c0_4 = arith.constant 0 : index
    %1 = vector.load %arg1[%c0_1, %c0_2, %c0_3, %c0_4] : memref<1x4x122x128xbf16, #tpu.memory_space<vmem>>, vector<1x1x100x128xbf16>
    %2 = vector.shape_cast %1 : vector<1x1x100x128xbf16> to vector<100x128xbf16>
    %c0_5 = arith.constant 0 : index
    %c0_6 = arith.constant 0 : index
    %c0_7 = arith.constant 0 : index
    %3 = vector.load %arg2[%c0_5, %c0_6, %c0_7] : memref<9x128x128xbf16, #tpu.memory_space<vmem>>, vector<1x128x128xbf16>
    %4 = vector.shape_cast %3 : vector<1x128x128xbf16> to vector<128x128xbf16>
    %cst = arith.constant dense<0.000000e+00> : vector<100x128xf32>
    %5 = tpu.matmul %2, %4, %cst {dimension_numbers = #tpu.dot_dimension_numbers<[1], [0], [0], [1], [0, 0, 1, 1], [], []>} : vector<100x128xbf16>, vector<128x128xbf16>, vector<100x128xf32> -> vector<100x128xf32>
    %c0_8 = arith.constant 0 : index
    %c0_9 = arith.constant 0 : index
    %6 = vector.load %arg11[%c0_8, %c0_9] : memref<100x128xf32, #tpu.memory_space<vmem>>, vector<100x128xf32>
    tpu.vector_store %arg11[%c0_8, %c0_9], %5 {strides = array<i32>} : memref<100x128xf32, #tpu.memory_space<vmem>>, vector<100x128xf32>,
    %c0_10 = arith.constant 0 : index
    %c1 = arith.constant 1 : index
    %c0_11 = arith.constant 0 : index
    %c0_12 = arith.constant 0 : index
    %7 = vector.load %arg1[%c0_10, %c1, %c0_11, %c0_12] : memref<1x4x122x128xbf16, #tpu.memory_space<vmem>>, vector<1x1x100x128xbf16>
    %8 = vector.shape_cast %7 : vector<1x1x100x128xbf16> to vector<100x128xbf16>
    %c1_13 = arith.constant 1 : index
    %c0_14 = arith.constant 0 : index
    %c0_15 = arith.constant 0 : index
    %9 = vector.load %arg2[%c1_13, %c0_14, %c0_15] : memref<9x128x128xbf16, #tpu.memory_space<vmem>>, vector<1x128x128xbf16>
    %10 = vector.shape_cast %9 : vector<1x128x128xbf16> to vector<128x128xbf16>
    %cst_16 = arith.constant dense<0.000000e+00> : vector<100x128xf32>
    %11 = tpu.matmul %8, %10, %cst_16 {dimension_numbers = #tpu.dot_dimension_numbers<[1], [0], [0], [1], [0, 0, 1, 1], [], []>} : vector<100x128xbf16>, vector<128x128xbf16>, vector<100x128xf32> -> vector<100x128xf32>
    %c0_17 = arith.constant 0 : index
    %c0_18 = arith.constant 0 : index
    %12 = vector.load %arg11[%c0_17, %c0_18] : memref<100x128xf32, #tpu.memory_space<vmem>>, vector<100x128xf32>
    %13 = arith.addf %12, %11 : vector<100x128xf32>
    %c0_19 = arith.constant 0 : index
    %c0_20 = arith.constant 0 : index
    %14 = vector.load %arg11[%c0_19, %c0_20] : memref<100x128xf32, #tpu.memory_space<vmem>>, vector<100x128xf32>
    tpu.vector_store %arg11[%c0_19, %c0_20], %13 {strides = array<i32>} : memref<100x128xf32, #tpu.memory_space<vmem>>, vector<100x128xf32>,
    %c0_21 = arith.constant 0 : index
    %c0_22 = arith.constant 0 : index
    %c1_23 = arith.constant 1 : index
    %c0_24 = arith.constant 0 : index
    %15 = vector.load %arg1[%c0_21, %c0_22, %c1_23, %c0_24] : memref<1x4x122x128xbf16, #tpu.memory_space<vmem>>, vector<1x1x100x128xbf16>
    %16 = vector.shape_cast %15 : vector<1x1x100x128xbf16> to vector<100x128xbf16>
    %c2 = arith.constant 2 : index
    %c0_25 = arith.constant 0 : index
    %c0_26 = arith.constant 0 : index
    %17 = vector.load %arg2[%c2, %c0_25, %c0_26] : memref<9x128x128xbf16, #tpu.memory_space<vmem>>, vector<1x128x128xbf16>
    %18 = vector.shape_cast %17 : vector<1x128x128xbf16> to vector<128x128xbf16>
    %cst_27 = arith.constant dense<0.000000e+00> : vector<100x128xf32>
    %19 = tpu.matmul %16, %18, %cst_27 {dimension_numbers = #tpu.dot_dimension_numbers<[1], [0], [0], [1], [0, 0, 1, 1], [], []>} : vector<100x128xbf16>, vector<128x128xbf16>, vector<100x128xf32> -> vector<100x128xf32>
    %c0_28 = arith.constant 0 : index
    %c0_29 = arith.constant 0 : index
    %20 = vector.load %arg11[%c0_28, %c0_29] : memref<100x128xf32, #tpu.memory_space<vmem>>, vector<100x128xf32>
    %21 = arith.addf %20, %19 : vector<100x128xf32>
    %c0_30 = arith.constant 0 : index
    %c0_31 = arith.constant 0 : index
    %22 = vector.load %arg11[%c0_30, %c0_31] : memref<100x128xf32, #tpu.memory_space<vmem>>, vector<100x128xf32>
    tpu.vector_store %arg11[%c0_30, %c0_31], %21 {strides = array<i32>} : memref<100x128xf32, #tpu.memory_space<vmem>>, vector<100x128xf32>,
    %c0_32 = arith.constant 0 : index
    %c2_33 = arith.constant 2 : index
    %c0_34 = arith.constant 0 : index
    %c0_35 = arith.constant 0 : index
    %23 = vector.load %arg1[%c0_32, %c2_33, %c0_34, %c0_35] : memref<1x4x122x128xbf16, #tpu.memory_space<vmem>>, vector<1x1x100x128xbf16>
    %24 = vector.shape_cast %23 : vector<1x1x100x128xbf16> to vector<100x128xbf16>
    %c3 = arith.constant 3 : index
    %c0_36 = arith.constant 0 : index
    %c0_37 = arith.constant 0 : index
    %25 = vector.load %arg2[%c3, %c0_36, %c0_37] : memref<9x128x128xbf16, #tpu.memory_space<vmem>>, vector<1x128x128xbf16>
    %26 = vector.shape_cast %25 : vector<1x128x128xbf16> to vector<128x128xbf16>
    %cst_38 = arith.constant dense<0.000000e+00> : vector<100x128xf32>
    %27 = tpu.matmul %24, %26, %cst_38 {dimension_numbers = #tpu.dot_dimension_numbers<[1], [0], [0], [1], [0, 0, 1, 1], [], []>} : vector<100x128xbf16>, vector<128x128xbf16>, vector<100x128xf32> -> vector<100x128xf32>
    %c0_39 = arith.constant 0 : index
    %c0_40 = arith.constant 0 : index
    %28 = vector.load %arg11[%c0_39, %c0_40] : memref<100x128xf32, #tpu.memory_space<vmem>>, vector<100x128xf32>
    %29 = arith.addf %28, %27 : vector<100x128xf32>
    %c0_41 = arith.constant 0 : index
    %c0_42 = arith.constant 0 : index
    %30 = vector.load %arg11[%c0_41, %c0_42] : memref<100x128xf32, #tpu.memory_space<vmem>>, vector<100x128xf32>
    tpu.vector_store %arg11[%c0_41, %c0_42], %29 {strides = array<i32>} : memref<100x128xf32, #tpu.memory_space<vmem>>, vector<100x128xf32>,
    %c0_43 = arith.constant 0 : index
    %c3_44 = arith.constant 3 : index
    %c0_45 = arith.constant 0 : index
    %c0_46 = arith.constant 0 : index
    %31 = vector.load %arg1[%c0_43, %c3_44, %c0_45, %c0_46] : memref<1x4x122x128xbf16, #tpu.memory_space<vmem>>, vector<1x1x100x128xbf16>
    %32 = vector.shape_cast %31 : vector<1x1x100x128xbf16> to vector<100x128xbf16>
    %c4 = arith.constant 4 : index
    %c0_47 = arith.constant 0 : index
    %c0_48 = arith.constant 0 : index
    %33 = vector.load %arg2[%c4, %c0_47, %c0_48] : memref<9x128x128xbf16, #tpu.memory_space<vmem>>, vector<1x128x128xbf16>
    %34 = vector.shape_cast %33 : vector<1x128x128xbf16> to vector<128x128xbf16>
    %cst_49 = arith.constant dense<0.000000e+00> : vector<100x128xf32>
    %35 = tpu.matmul %32, %34, %cst_49 {dimension_numbers = #tpu.dot_dimension_numbers<[1], [0], [0], [1], [0, 0, 1, 1], [], []>} : vector<100x128xbf16>, vector<128x128xbf16>, vector<100x128xf32> -> vector<100x128xf32>
    %c0_50 = arith.constant 0 : index
    %c0_51 = arith.constant 0 : index
    %36 = vector.load %arg11[%c0_50, %c0_51] : memref<100x128xf32, #tpu.memory_space<vmem>>, vector<100x128xf32>
    %37 = arith.addf %36, %35 : vector<100x128xf32>
    %c0_52 = arith.constant 0 : index
    %c0_53 = arith.constant 0 : index
    %38 = vector.load %arg11[%c0_52, %c0_53] : memref<100x128xf32, #tpu.memory_space<vmem>>, vector<100x128xf32>
    tpu.vector_store %arg11[%c0_52, %c0_53], %37 {strides = array<i32>} : memref<100x128xf32, #tpu.memory_space<vmem>>, vector<100x128xf32>,
    %c0_54 = arith.constant 0 : index
    %c2_55 = arith.constant 2 : index
    %c1_56 = arith.constant 1 : index
    %c0_57 = arith.constant 0 : index
    %39 = vector.load %arg1[%c0_54, %c2_55, %c1_56, %c0_57] : memref<1x4x122x128xbf16, #tpu.memory_space<vmem>>, vector<1x1x100x128xbf16>
    %40 = vector.shape_cast %39 : vector<1x1x100x128xbf16> to vector<100x128xbf16>
    %c5 = arith.constant 5 : index
    %c0_58 = arith.constant 0 : index
    %c0_59 = arith.constant 0 : index
    %41 = vector.load %arg2[%c5, %c0_58, %c0_59] : memref<9x128x128xbf16, #tpu.memory_space<vmem>>, vector<1x128x128xbf16>
    %42 = vector.shape_cast %41 : vector<1x128x128xbf16> to vector<128x128xbf16>
    %cst_60 = arith.constant dense<0.000000e+00> : vector<100x128xf32>
    %43 = tpu.matmul %40, %42, %cst_60 {dimension_numbers = #tpu.dot_dimension_numbers<[1], [0], [0], [1], [0, 0, 1, 1], [], []>} : vector<100x128xbf16>, vector<128x128xbf16>, vector<100x128xf32> -> vector<100x128xf32>
    %c0_61 = arith.constant 0 : index
    %c0_62 = arith.constant 0 : index
    %44 = vector.load %arg11[%c0_61, %c0_62] : memref<100x128xf32, #tpu.memory_space<vmem>>, vector<100x128xf32>
    %45 = arith.addf %44, %43 : vector<100x128xf32>
    %c0_63 = arith.constant 0 : index
    %c0_64 = arith.constant 0 : index
    %46 = vector.load %arg11[%c0_63, %c0_64] : memref<100x128xf32, #tpu.memory_space<vmem>>, vector<100x128xf32>
    tpu.vector_store %arg11[%c0_63, %c0_64], %45 {strides = array<i32>} : memref<100x128xf32, #tpu.memory_space<vmem>>, vector<100x128xf32>,
    %c0_65 = arith.constant 0 : index
    %c0_66 = arith.constant 0 : index
    %c10 = arith.constant 10 : index
    %c0_67 = arith.constant 0 : index
    %47 = vector.load %arg1[%c0_65, %c0_66, %c10, %c0_67] : memref<1x4x122x128xbf16, #tpu.memory_space<vmem>>, vector<1x1x100x128xbf16>
    %48 = vector.shape_cast %47 : vector<1x1x100x128xbf16> to vector<100x128xbf16>
    %c6 = arith.constant 6 : index
    %c0_68 = arith.constant 0 : index
    %c0_69 = arith.constant 0 : index
    %49 = vector.load %arg2[%c6, %c0_68, %c0_69] : memref<9x128x128xbf16, #tpu.memory_space<vmem>>, vector<1x128x128xbf16>
    %50 = vector.shape_cast %49 : vector<1x128x128xbf16> to vector<128x128xbf16>
    %cst_70 = arith.constant dense<0.000000e+00> : vector<100x128xf32>
    %51 = tpu.matmul %48, %50, %cst_70 {dimension_numbers = #tpu.dot_dimension_numbers<[1], [0], [0], [1], [0, 0, 1, 1], [], []>} : vector<100x128xbf16>, vector<128x128xbf16>, vector<100x128xf32> -> vector<100x128xf32>
    %c0_71 = arith.constant 0 : index
    %c0_72 = arith.constant 0 : index
    %52 = vector.load %arg11[%c0_71, %c0_72] : memref<100x128xf32, #tpu.memory_space<vmem>>, vector<100x128xf32>
    %53 = arith.addf %52, %51 : vector<100x128xf32>
    %c0_73 = arith.constant 0 : index
    %c0_74 = arith.constant 0 : index
    %54 = vector.load %arg11[%c0_73, %c0_74] : memref<100x128xf32, #tpu.memory_space<vmem>>, vector<100x128xf32>
    tpu.vector_store %arg11[%c0_73, %c0_74], %53 {strides = array<i32>} : memref<100x128xf32, #tpu.memory_space<vmem>>, vector<100x128xf32>,
    %c0_75 = arith.constant 0 : index
    %c1_76 = arith.constant 1 : index
    %c10_77 = arith.constant 10 : index
    %c0_78 = arith.constant 0 : index
    %55 = vector.load %arg1[%c0_75, %c1_76, %c10_77, %c0_78] : memref<1x4x122x128xbf16, #tpu.memory_space<vmem>>, vector<1x1x100x128xbf16>
    %56 = vector.shape_cast %55 : vector<1x1x100x128xbf16> to vector<100x128xbf16>
    %c7 = arith.constant 7 : index
    %c0_79 = arith.constant 0 : index
    %c0_80 = arith.constant 0 : index
    %57 = vector.load %arg2[%c7, %c0_79, %c0_80] : memref<9x128x128xbf16, #tpu.memory_space<vmem>>, vector<1x128x128xbf16>
    %58 = vector.shape_cast %57 : vector<1x128x128xbf16> to vector<128x128xbf16>
    %cst_81 = arith.constant dense<0.000000e+00> : vector<100x128xf32>
    %59 = tpu.matmul %56, %58, %cst_81 {dimension_numbers = #tpu.dot_dimension_numbers<[1], [0], [0], [1], [0, 0, 1, 1], [], []>} : vector<100x128xbf16>, vector<128x128xbf16>, vector<100x128xf32> -> vector<100x128xf32>
    %c0_82 = arith.constant 0 : index
    %c0_83 = arith.constant 0 : index
    %60 = vector.load %arg11[%c0_82, %c0_83] : memref<100x128xf32, #tpu.memory_space<vmem>>, vector<100x128xf32>
    %61 = arith.addf %60, %59 : vector<100x128xf32>
    %c0_84 = arith.constant 0 : index
    %c0_85 = arith.constant 0 : index
    %62 = vector.load %arg11[%c0_84, %c0_85] : memref<100x128xf32, #tpu.memory_space<vmem>>, vector<100x128xf32>
    tpu.vector_store %arg11[%c0_84, %c0_85], %61 {strides = array<i32>} : memref<100x128xf32, #tpu.memory_space<vmem>>, vector<100x128xf32>,
    %c0_86 = arith.constant 0 : index
    %c0_87 = arith.constant 0 : index
    %c11 = arith.constant 11 : index
    %c0_88 = arith.constant 0 : index
    %63 = vector.load %arg1[%c0_86, %c0_87, %c11, %c0_88] : memref<1x4x122x128xbf16, #tpu.memory_space<vmem>>, vector<1x1x100x128xbf16>
    %64 = vector.shape_cast %63 : vector<1x1x100x128xbf16> to vector<100x128xbf16>
    %c8 = arith.constant 8 : index
    %c0_89 = arith.constant 0 : index
    %c0_90 = arith.constant 0 : index
    %65 = vector.load %arg2[%c8, %c0_89, %c0_90] : memref<9x128x128xbf16, #tpu.memory_space<vmem>>, vector<1x128x128xbf16>
    %66 = vector.shape_cast %65 : vector<1x128x128xbf16> to vector<128x128xbf16>
    %cst_91 = arith.constant dense<0.000000e+00> : vector<100x128xf32>
    %67 = tpu.matmul %64, %66, %cst_91 {dimension_numbers = #tpu.dot_dimension_numbers<[1], [0], [0], [1], [0, 0, 1, 1], [], []>} : vector<100x128xbf16>, vector<128x128xbf16>, vector<100x128xf32> -> vector<100x128xf32>
    %c0_92 = arith.constant 0 : index
    %c0_93 = arith.constant 0 : index
    %68 = vector.load %arg11[%c0_92, %c0_93] : memref<100x128xf32, #tpu.memory_space<vmem>>, vector<100x128xf32>
    %69 = arith.addf %68, %67 : vector<100x128xf32>
    %c0_94 = arith.constant 0 : index
    %c0_95 = arith.constant 0 : index
    %70 = vector.load %arg11[%c0_94, %c0_95] : memref<100x128xf32, #tpu.memory_space<vmem>>, vector<100x128xf32>
    tpu.vector_store %arg11[%c0_94, %c0_95], %69 {strides = array<i32>} : memref<100x128xf32, #tpu.memory_space<vmem>>, vector<100x128xf32>,
    %c0_96 = arith.constant 0 : index
    %c0_97 = arith.constant 0 : index
    %71 = vector.load %arg11[%c0_96, %c0_97] : memref<100x128xf32, #tpu.memory_space<vmem>>, vector<100x128xf32>
    %c0_98 = arith.constant 0 : index
    %c0_99 = arith.constant 0 : index
    %72 = vector.load %arg3[%c0_98, %c0_99] : memref<1x128xf32, #tpu.memory_space<vmem>>, vector<1x128xf32>
    %73 = vector.broadcast %72 : vector<1x128xf32> to vector<100x128xf32>
    %74 = arith.addf %71, %73 : vector<100x128xf32>
    %c0_100 = arith.constant 0 : index
    %c0_101 = arith.constant 0 : index
    %75 = vector.load %arg4[%c0_100, %c0_101] : memref<1x128xf32, #tpu.memory_space<vmem>>, vector<1x128xf32>
    %76 = vector.broadcast %75 : vector<1x128xf32> to vector<100x128xf32>
    %77 = arith.mulf %74, %76 : vector<100x128xf32>
    %cst_102 = arith.constant 0.000000e+00 : f32
    %78 = vector.broadcast %cst_102 : f32 to vector<100x128xf32>
    %79 = arith.maximumf %77, %78 : vector<100x128xf32>
    %80 = vector.broadcast %0 : vector<100x1xf32> to vector<100x128xf32>
    %81 = arith.mulf %79, %80 : vector<100x128xf32>
    %82 = arith.truncf %81 : vector<100x128xf32> to vector<100x128xbf16>
    %c11_103 = arith.constant 11 : index
    %c0_104 = arith.constant 0 : index
    %83 = vector.load %arg12[%c11_103, %c0_104] : memref<122x128xbf16, #tpu.memory_space<vmem>>, vector<100x128xbf16>
    tpu.vector_store %arg12[%c11_103, %c0_104], %82 {strides = array<i32>} : memref<122x128xbf16, #tpu.memory_space<vmem>>, vector<100x128xbf16>,
    %cst_105 = arith.constant 0.000000e+00 : bf16
    %84 = vector.broadcast %cst_105 : bf16 to vector<11x128xbf16>
    %c0_106 = arith.constant 0 : index
    %c0_107 = arith.constant 0 : index
    %85 = vector.load %arg12[%c0_106, %c0_107] : memref<122x128xbf16, #tpu.memory_space<vmem>>, vector<11x128xbf16>
    tpu.vector_store %arg12[%c0_106, %c0_107], %84 {strides = array<i32>} : memref<122x128xbf16, #tpu.memory_space<vmem>>, vector<11x128xbf16>,
    %cst_108 = arith.constant 0.000000e+00 : bf16
    %86 = vector.broadcast %cst_108 : bf16 to vector<11x128xbf16>
    %c111 = arith.constant 111 : index
    %c0_109 = arith.constant 0 : index
    %87 = vector.load %arg12[%c111, %c0_109] : memref<122x128xbf16, #tpu.memory_space<vmem>>, vector<11x128xbf16>
    tpu.vector_store %arg12[%c111, %c0_109], %86 {strides = array<i32>} : memref<122x128xbf16, #tpu.memory_space<vmem>>, vector<11x128xbf16>,
    %c0_110 = arith.constant 0 : index
    %c0_111 = arith.constant 0 : index
    %88 = vector.load %arg12[%c0_110, %c0_111] : memref<122x128xbf16, #tpu.memory_space<vmem>>, vector<100x128xbf16>
    %c0_112 = arith.constant 0 : index
    %c0_113 = arith.constant 0 : index
    %c0_114 = arith.constant 0 : index
    %89 = vector.load %arg5[%c0_112, %c0_113, %c0_114] : memref<9x128x128xbf16, #tpu.memory_space<vmem>>, vector<1x128x128xbf16>
    %90 = vector.shape_cast %89 : vector<1x128x128xbf16> to vector<128x128xbf16>
    %cst_115 = arith.constant dense<0.000000e+00> : vector<100x128xf32>
    %91 = tpu.matmul %88, %90, %cst_115 {dimension_numbers = #tpu.dot_dimension_numbers<[1], [0], [0], [1], [0, 0, 1, 1], [], []>} : vector<100x128xbf16>, vector<128x128xbf16>, vector<100x128xf32> -> vector<100x128xf32>
    %c0_116 = arith.constant 0 : index
    %c0_117 = arith.constant 0 : index
    %92 = vector.load %arg11[%c0_116, %c0_117] : memref<100x128xf32, #tpu.memory_space<vmem>>, vector<100x128xf32>
    tpu.vector_store %arg11[%c0_116, %c0_117], %91 {strides = array<i32>} : memref<100x128xf32, #tpu.memory_space<vmem>>, vector<100x128xf32>,
    %c1_118 = arith.constant 1 : index
    %c0_119 = arith.constant 0 : index
    %93 = vector.load %arg12[%c1_118, %c0_119] : memref<122x128xbf16, #tpu.memory_space<vmem>>, vector<100x128xbf16>
    %c1_120 = arith.constant 1 : index
    %c0_121 = arith.constant 0 : index
    %c0_122 = arith.constant 0 : index
    %94 = vector.load %arg5[%c1_120, %c0_121, %c0_122] : memref<9x128x128xbf16, #tpu.memory_space<vmem>>, vector<1x128x128xbf16>
    %95 = vector.shape_cast %94 : vector<1x128x128xbf16> to vector<128x128xbf16>
    %cst_123 = arith.constant dense<0.000000e+00> : vector<100x128xf32>
    %96 = tpu.matmul %93, %95, %cst_123 {dimension_numbers = #tpu.dot_dimension_numbers<[1], [0], [0], [1], [0, 0, 1, 1], [], []>} : vector<100x128xbf16>, vector<128x128xbf16>, vector<100x128xf32> -> vector<100x128xf32>
    %c0_124 = arith.constant 0 : index
    %c0_125 = arith.constant 0 : index
    %97 = vector.load %arg11[%c0_124, %c0_125] : memref<100x128xf32, #tpu.memory_space<vmem>>, vector<100x128xf32>
    %98 = arith.addf %97, %96 : vector<100x128xf32>
    %c0_126 = arith.constant 0 : index
    %c0_127 = arith.constant 0 : index
    %99 = vector.load %arg11[%c0_126, %c0_127] : memref<100x128xf32, #tpu.memory_space<vmem>>, vector<100x128xf32>
    tpu.vector_store %arg11[%c0_126, %c0_127], %98 {strides = array<i32>} : memref<100x128xf32, #tpu.memory_space<vmem>>, vector<100x128xf32>,
    %c2_128 = arith.constant 2 : index
    %c0_129 = arith.constant 0 : index
    %100 = vector.load %arg12[%c2_128, %c0_129] : memref<122x128xbf16, #tpu.memory_space<vmem>>, vector<100x128xbf16>
    %c2_130 = arith.constant 2 : index
    %c0_131 = arith.constant 0 : index
    %c0_132 = arith.constant 0 : index
    %101 = vector.load %arg5[%c2_130, %c0_131, %c0_132] : memref<9x128x128xbf16, #tpu.memory_space<vmem>>, vector<1x128x128xbf16>
    %102 = vector.shape_cast %101 : vector<1x128x128xbf16> to vector<128x128xbf16>
    %cst_133 = arith.constant dense<0.000000e+00> : vector<100x128xf32>
    %103 = tpu.matmul %100, %102, %cst_133 {dimension_numbers = #tpu.dot_dimension_numbers<[1], [0], [0], [1], [0, 0, 1, 1], [], []>} : vector<100x128xbf16>, vector<128x128xbf16>, vector<100x128xf32> -> vector<100x128xf32>
    %c0_134 = arith.constant 0 : index
    %c0_135 = arith.constant 0 : index
    %104 = vector.load %arg11[%c0_134, %c0_135] : memref<100x128xf32, #tpu.memory_space<vmem>>, vector<100x128xf32>
    %105 = arith.addf %104, %103 : vector<100x128xf32>
    %c0_136 = arith.constant 0 : index
    %c0_137 = arith.constant 0 : index
    %106 = vector.load %arg11[%c0_136, %c0_137] : memref<100x128xf32, #tpu.memory_space<vmem>>, vector<100x128xf32>
    tpu.vector_store %arg11[%c0_136, %c0_137], %105 {strides = array<i32>} : memref<100x128xf32, #tpu.memory_space<vmem>>, vector<100x128xf32>,
    %c10_138 = arith.constant 10 : index
    %c0_139 = arith.constant 0 : index
    %107 = vector.load %arg12[%c10_138, %c0_139] : memref<122x128xbf16, #tpu.memory_space<vmem>>, vector<100x128xbf16>
    %c3_140 = arith.constant 3 : index
    %c0_141 = arith.constant 0 : index
    %c0_142 = arith.constant 0 : index
    %108 = vector.load %arg5[%c3_140, %c0_141, %c0_142] : memref<9x128x128xbf16, #tpu.memory_space<vmem>>, vector<1x128x128xbf16>
    %109 = vector.shape_cast %108 : vector<1x128x128xbf16> to vector<128x128xbf16>
    %cst_143 = arith.constant dense<0.000000e+00> : vector<100x128xf32>
    %110 = tpu.matmul %107, %109, %cst_143 {dimension_numbers = #tpu.dot_dimension_numbers<[1], [0], [0], [1], [0, 0, 1, 1], [], []>} : vector<100x128xbf16>, vector<128x128xbf16>, vector<100x128xf32> -> vector<100x128xf32>
    %c0_144 = arith.constant 0 : index
    %c0_145 = arith.constant 0 : index
    %111 = vector.load %arg11[%c0_144, %c0_145] : memref<100x128xf32, #tpu.memory_space<vmem>>, vector<100x128xf32>
    %112 = arith.addf %111, %110 : vector<100x128xf32>
    %c0_146 = arith.constant 0 : index
    %c0_147 = arith.constant 0 : index
    %113 = vector.load %arg11[%c0_146, %c0_147] : memref<100x128xf32, #tpu.memory_space<vmem>>, vector<100x128xf32>
    tpu.vector_store %arg11[%c0_146, %c0_147], %112 {strides = array<i32>} : memref<100x128xf32, #tpu.memory_space<vmem>>, vector<100x128xf32>,
    %c11_148 = arith.constant 11 : index
    %c0_149 = arith.constant 0 : index
    %114 = vector.load %arg12[%c11_148, %c0_149] : memref<122x128xbf16, #tpu.memory_space<vmem>>, vector<100x128xbf16>
    %c4_150 = arith.constant 4 : index
    %c0_151 = arith.constant 0 : index
    %c0_152 = arith.constant 0 : index
    %115 = vector.load %arg5[%c4_150, %c0_151, %c0_152] : memref<9x128x128xbf16, #tpu.memory_space<vmem>>, vector<1x128x128xbf16>
    %116 = vector.shape_cast %115 : vector<1x128x128xbf16> to vector<128x128xbf16>
    %cst_153 = arith.constant dense<0.000000e+00> : vector<100x128xf32>
    %117 = tpu.matmul %114, %116, %cst_153 {dimension_numbers = #tpu.dot_dimension_numbers<[1], [0], [0], [1], [0, 0, 1, 1], [], []>} : vector<100x128xbf16>, vector<128x128xbf16>, vector<100x128xf32> -> vector<100x128xf32>
    %c0_154 = arith.constant 0 : index
    %c0_155 = arith.constant 0 : index
    %118 = vector.load %arg11[%c0_154, %c0_155] : memref<100x128xf32, #tpu.memory_space<vmem>>, vector<100x128xf32>
    %119 = arith.addf %118, %117 : vector<100x128xf32>
    %c0_156 = arith.constant 0 : index
    %c0_157 = arith.constant 0 : index
    %120 = vector.load %arg11[%c0_156, %c0_157] : memref<100x128xf32, #tpu.memory_space<vmem>>, vector<100x128xf32>
    tpu.vector_store %arg11[%c0_156, %c0_157], %119 {strides = array<i32>} : memref<100x128xf32, #tpu.memory_space<vmem>>, vector<100x128xf32>,
    %c12 = arith.constant 12 : index
    %c0_158 = arith.constant 0 : index
    %121 = vector.load %arg12[%c12, %c0_158] : memref<122x128xbf16, #tpu.memory_space<vmem>>, vector<100x128xbf16>
    %c5_159 = arith.constant 5 : index
    %c0_160 = arith.constant 0 : index
    %c0_161 = arith.constant 0 : index
    %122 = vector.load %arg5[%c5_159, %c0_160, %c0_161] : memref<9x128x128xbf16, #tpu.memory_space<vmem>>, vector<1x128x128xbf16>
    %123 = vector.shape_cast %122 : vector<1x128x128xbf16> to vector<128x128xbf16>
    %cst_162 = arith.constant dense<0.000000e+00> : vector<100x128xf32>
    %124 = tpu.matmul %121, %123, %cst_162 {dimension_numbers = #tpu.dot_dimension_numbers<[1], [0], [0], [1], [0, 0, 1, 1], [], []>} : vector<100x128xbf16>, vector<128x128xbf16>, vector<100x128xf32> -> vector<100x128xf32>
    %c0_163 = arith.constant 0 : index
    %c0_164 = arith.constant 0 : index
    %125 = vector.load %arg11[%c0_163, %c0_164] : memref<100x128xf32, #tpu.memory_space<vmem>>, vector<100x128xf32>
    %126 = arith.addf %125, %124 : vector<100x128xf32>
    %c0_165 = arith.constant 0 : index
    %c0_166 = arith.constant 0 : index
    %127 = vector.load %arg11[%c0_165, %c0_166] : memref<100x128xf32, #tpu.memory_space<vmem>>, vector<100x128xf32>
    tpu.vector_store %arg11[%c0_165, %c0_166], %126 {strides = array<i32>} : memref<100x128xf32, #tpu.memory_space<vmem>>, vector<100x128xf32>,
    %c20 = arith.constant 20 : index
    %c0_167 = arith.constant 0 : index
    %128 = vector.load %arg12[%c20, %c0_167] : memref<122x128xbf16, #tpu.memory_space<vmem>>, vector<100x128xbf16>
    %c6_168 = arith.constant 6 : index
    %c0_169 = arith.constant 0 : index
    %c0_170 = arith.constant 0 : index
    %129 = vector.load %arg5[%c6_168, %c0_169, %c0_170] : memref<9x128x128xbf16, #tpu.memory_space<vmem>>, vector<1x128x128xbf16>
    %130 = vector.shape_cast %129 : vector<1x128x128xbf16> to vector<128x128xbf16>
    %cst_171 = arith.constant dense<0.000000e+00> : vector<100x128xf32>
    %131 = tpu.matmul %128, %130, %cst_171 {dimension_numbers = #tpu.dot_dimension_numbers<[1], [0], [0], [1], [0, 0, 1, 1], [], []>} : vector<100x128xbf16>, vector<128x128xbf16>, vector<100x128xf32> -> vector<100x128xf32>
    %c0_172 = arith.constant 0 : index
    %c0_173 = arith.constant 0 : index
    %132 = vector.load %arg11[%c0_172, %c0_173] : memref<100x128xf32, #tpu.memory_space<vmem>>, vector<100x128xf32>
    %133 = arith.addf %132, %131 : vector<100x128xf32>
    %c0_174 = arith.constant 0 : index
    %c0_175 = arith.constant 0 : index
    %134 = vector.load %arg11[%c0_174, %c0_175] : memref<100x128xf32, #tpu.memory_space<vmem>>, vector<100x128xf32>
    tpu.vector_store %arg11[%c0_174, %c0_175], %133 {strides = array<i32>} : memref<100x128xf32, #tpu.memory_space<vmem>>, vector<100x128xf32>,
    %c21 = arith.constant 21 : index
    %c0_176 = arith.constant 0 : index
    %135 = vector.load %arg12[%c21, %c0_176] : memref<122x128xbf16, #tpu.memory_space<vmem>>, vector<100x128xbf16>
    %c7_177 = arith.constant 7 : index
    %c0_178 = arith.constant 0 : index
    %c0_179 = arith.constant 0 : index
    %136 = vector.load %arg5[%c7_177, %c0_178, %c0_179] : memref<9x128x128xbf16, #tpu.memory_space<vmem>>, vector<1x128x128xbf16>
    %137 = vector.shape_cast %136 : vector<1x128x128xbf16> to vector<128x128xbf16>
    %cst_180 = arith.constant dense<0.000000e+00> : vector<100x128xf32>
    %138 = tpu.matmul %135, %137, %cst_180 {dimension_numbers = #tpu.dot_dimension_numbers<[1], [0], [0], [1], [0, 0, 1, 1], [], []>} : vector<100x128xbf16>, vector<128x128xbf16>, vector<100x128xf32> -> vector<100x128xf32>
    %c0_181 = arith.constant 0 : index
    %c0_182 = arith.constant 0 : index
    %139 = vector.load %arg11[%c0_181, %c0_182] : memref<100x128xf32, #tpu.memory_space<vmem>>, vector<100x128xf32>
    %140 = arith.addf %139, %138 : vector<100x128xf32>
    %c0_183 = arith.constant 0 : index
    %c0_184 = arith.constant 0 : index
    %141 = vector.load %arg11[%c0_183, %c0_184] : memref<100x128xf32, #tpu.memory_space<vmem>>, vector<100x128xf32>
    tpu.vector_store %arg11[%c0_183, %c0_184], %140 {strides = array<i32>} : memref<100x128xf32, #tpu.memory_space<vmem>>, vector<100x128xf32>,
    %c22 = arith.constant 22 : index
    %c0_185 = arith.constant 0 : index
    %142 = vector.load %arg12[%c22, %c0_185] : memref<122x128xbf16, #tpu.memory_space<vmem>>, vector<100x128xbf16>
    %c8_186 = arith.constant 8 : index
    %c0_187 = arith.constant 0 : index
    %c0_188 = arith.constant 0 : index
    %143 = vector.load %arg5[%c8_186, %c0_187, %c0_188] : memref<9x128x128xbf16, #tpu.memory_space<vmem>>, vector<1x128x128xbf16>
    %144 = vector.shape_cast %143 : vector<1x128x128xbf16> to vector<128x128xbf16>
    %cst_189 = arith.constant dense<0.000000e+00> : vector<100x128xf32>
    %145 = tpu.matmul %142, %144, %cst_189 {dimension_numbers = #tpu.dot_dimension_numbers<[1], [0], [0], [1], [0, 0, 1, 1], [], []>} : vector<100x128xbf16>, vector<128x128xbf16>, vector<100x128xf32> -> vector<100x128xf32>
    %c0_190 = arith.constant 0 : index
    %c0_191 = arith.constant 0 : index
    %146 = vector.load %arg11[%c0_190, %c0_191] : memref<100x128xf32, #tpu.memory_space<vmem>>, vector<100x128xf32>
    %147 = arith.addf %146, %145 : vector<100x128xf32>
    %c0_192 = arith.constant 0 : index
    %c0_193 = arith.constant 0 : index
    %148 = vector.load %arg11[%c0_192, %c0_193] : memref<100x128xf32, #tpu.memory_space<vmem>>, vector<100x128xf32>
    tpu.vector_store %arg11[%c0_192, %c0_193], %147 {strides = array<i32>} : memref<100x128xf32, #tpu.memory_space<vmem>>, vector<100x128xf32>,
    %c0_194 = arith.constant 0 : index
    %c3_195 = arith.constant 3 : index
    %c0_196 = arith.constant 0 : index
    %c0_197 = arith.constant 0 : index
    %149 = vector.load %arg1[%c0_194, %c3_195, %c0_196, %c0_197] : memref<1x4x122x128xbf16, #tpu.memory_space<vmem>>, vector<1x1x100x128xbf16>
    %150 = vector.shape_cast %149 : vector<1x1x100x128xbf16> to vector<100x128xbf16>
    %c0_198 = arith.constant 0 : index
    %c0_199 = arith.constant 0 : index
    %151 = vector.load %arg7[%c0_198, %c0_199] : memref<128x128xbf16, #tpu.memory_space<vmem>>, vector<128x128xbf16>
    %cst_200 = arith.constant dense<0.000000e+00> : vector<100x128xf32>
    %152 = tpu.matmul %150, %151, %cst_200 {dimension_numbers = #tpu.dot_dimension_numbers<[1], [0], [0], [1], [0, 0, 1, 1], [], []>} : vector<100x128xbf16>, vector<128x128xbf16>, vector<100x128xf32> -> vector<100x128xf32>
    %c0_201 = arith.constant 0 : index
    %c0_202 = arith.constant 0 : index
    %153 = vector.load %arg8[%c0_201, %c0_202] : memref<1x128xf32, #tpu.memory_space<vmem>>, vector<1x128xf32>
    %154 = vector.broadcast %153 : vector<1x128xf32> to vector<100x128xf32>
    %155 = arith.addf %152, %154 : vector<100x128xf32>
    %c0_203 = arith.constant 0 : index
    %c0_204 = arith.constant 0 : index
    %156 = vector.load %arg11[%c0_203, %c0_204] : memref<100x128xf32, #tpu.memory_space<vmem>>, vector<100x128xf32>
    %c0_205 = arith.constant 0 : index
    %c0_206 = arith.constant 0 : index
    %157 = vector.load %arg6[%c0_205, %c0_206] : memref<1x128xf32, #tpu.memory_space<vmem>>, vector<1x128xf32>
    %158 = vector.broadcast %157 : vector<1x128xf32> to vector<100x128xf32>
    %159 = arith.addf %156, %158 : vector<100x128xf32>
    %160 = arith.addf %159, %155 : vector<100x128xf32>
    %cst_207 = arith.constant 0.000000e+00 : f32
    %161 = vector.broadcast %cst_207 : f32 to vector<100x128xf32>
    %162 = arith.maximumf %160, %161 : vector<100x128xf32>
    %163 = vector.broadcast %0 : vector<100x1xf32> to vector<100x128xf32>
    %164 = arith.mulf %162, %163 : vector<100x128xf32>
    %165 = arith.truncf %164 : vector<100x128xf32> to vector<100x128xbf16>
    %c0_208 = arith.constant 0 : index
    %c11_209 = arith.constant 11 : index
    %c0_210 = arith.constant 0 : index
    %166 = vector.load %arg10[%c0_208, %c11_209, %c0_210] : memref<1x122x128xbf16, #tpu.memory_space<vmem>>, vector<1x100x128xbf16>
    %167 = vector.shape_cast %166 : vector<1x100x128xbf16> to vector<100x128xbf16>
    %168 = vector.shape_cast %165 : vector<100x128xbf16> to vector<1x100x128xbf16>
    tpu.vector_store %arg10[%c0_208, %c11_209, %c0_210], %168 {strides = array<i32>} : memref<1x122x128xbf16, #tpu.memory_space<vmem>>, vector<1x100x128xbf16>,
    %cst_211 = arith.constant 0.000000e+00 : bf16
    %169 = vector.broadcast %cst_211 : bf16 to vector<11x128xbf16>
    %c0_212 = arith.constant 0 : index
    %c0_213 = arith.constant 0 : index
    %c0_214 = arith.constant 0 : index
    %170 = vector.load %arg10[%c0_212, %c0_213, %c0_214] : memref<1x122x128xbf16, #tpu.memory_space<vmem>>, vector<1x11x128xbf16>
    %171 = vector.shape_cast %170 : vector<1x11x128xbf16> to vector<11x128xbf16>
    %172 = vector.shape_cast %169 : vector<11x128xbf16> to vector<1x11x128xbf16>
    tpu.vector_store %arg10[%c0_212, %c0_213, %c0_214], %172 {strides = array<i32>} : memref<1x122x128xbf16, #tpu.memory_space<vmem>>, vector<1x11x128xbf16>,
    %cst_215 = arith.constant 0.000000e+00 : bf16
    %173 = vector.broadcast %cst_215 : bf16 to vector<11x128xbf16>
    %c0_216 = arith.constant 0 : index
    %c111_217 = arith.constant 111 : index
    %c0_218 = arith.constant 0 : index
    %174 = vector.load %arg10[%c0_216, %c111_217, %c0_218] : memref<1x122x128xbf16, #tpu.memory_space<vmem>>, vector<1x11x128xbf16>
    %175 = vector.shape_cast %174 : vector<1x11x128xbf16> to vector<11x128xbf16>
    %176 = vector.shape_cast %173 : vector<11x128xbf16> to vector<1x11x128xbf16>
    tpu.vector_store %arg10[%c0_216, %c111_217, %c0_218], %176 {strides = array<i32>} : memref<1x122x128xbf16, #tpu.memory_space<vmem>>, vector<1x11x128xbf16>,
    return
  }
  func.func @transform_0(%arg0: i32) -> (i32, i32, i32, i32) {
    %c0_i32 = arith.constant 0 : i32
    %c0_i32_0 = arith.constant 0 : i32
    %c0_i32_1 = arith.constant 0 : i32
    %c0_i32_2 = arith.constant 0 : i32
    return %arg0, %c0_i32, %c0_i32_0, %c0_i32_1 : i32, i32, i32, i32
  }
  func.func @transform_1(%arg0: i32) -> (i32, i32, i32) {
    %c0_i32 = arith.constant 0 : i32
    %c0_i32_0 = arith.constant 0 : i32
    %c0_i32_1 = arith.constant 0 : i32
    %c0_i32_2 = arith.constant 0 : i32
    return %c0_i32, %c0_i32_0, %c0_i32_1 : i32, i32, i32
  }
  func.func @transform_2(%arg0: i32) -> (i32, i32) {
    %c0_i32 = arith.constant 0 : i32
    %c0_i32_0 = arith.constant 0 : i32
    %c0_i32_1 = arith.constant 0 : i32
    return %c0_i32, %c0_i32_0 : i32, i32
  }
  func.func @transform_3(%arg0: i32) -> (i32, i32) {
    %c0_i32 = arith.constant 0 : i32
    %c0_i32_0 = arith.constant 0 : i32
    %c0_i32_1 = arith.constant 0 : i32
    return %c0_i32, %c0_i32_0 : i32, i32
  }
  func.func @transform_4(%arg0: i32) -> (i32, i32, i32) {
    %c0_i32 = arith.constant 0 : i32
    %c0_i32_0 = arith.constant 0 : i32
    %c0_i32_1 = arith.constant 0 : i32
    %c0_i32_2 = arith.constant 0 : i32
    return %c0_i32, %c0_i32_0, %c0_i32_1 : i32, i32, i32
  }
  func.func @transform_5(%arg0: i32) -> (i32, i32) {
    %c0_i32 = arith.constant 0 : i32
    %c0_i32_0 = arith.constant 0 : i32
    %c0_i32_1 = arith.constant 0 : i32
    return %c0_i32, %c0_i32_0 : i32, i32
  }
  func.func @transform_6(%arg0: i32) -> (i32, i32) {
    %c0_i32 = arith.constant 0 : i32
    %c0_i32_0 = arith.constant 0 : i32
    %c0_i32_1 = arith.constant 0 : i32
    return %c0_i32, %c0_i32_0 : i32, i32
  }
  func.func @transform_7(%arg0: i32) -> (i32, i32) {
    %c0_i32 = arith.constant 0 : i32
    %c0_i32_0 = arith.constant 0 : i32
    %c0_i32_1 = arith.constant 0 : i32
    return %c0_i32, %c0_i32_0 : i32, i32
  }
  func.func @transform_8(%arg0: i32) -> (i32, i32) {
    %c0_i32 = arith.constant 0 : i32
    %c0_i32_0 = arith.constant 0 : i32
    %c0_i32_1 = arith.constant 0 : i32
    return %c0_i32, %c0_i32_0 : i32, i32
  }
  func.func @transform_9(%arg0: i32) -> (i32, i32, i32) {
    %c0_i32 = arith.constant 0 : i32
    %c0_i32_0 = arith.constant 0 : i32
    %c0_i32_1 = arith.constant 0 : i32
    return %arg0, %c0_i32, %c0_i32_0 : i32, i32, i32
  }
}

module attributes {stable_mosaic.version = 11 : i64} {
  func.func @_fused_block_kernel(%arg0: i32, %arg1: memref<1x1x122x128xbf16, #tpu.memory_space<vmem>>, %arg2: memref<9x128x128xbf16, #tpu.memory_space<vmem>>, %arg3: memref<1x128xf32, #tpu.memory_space<vmem>>, %arg4: memref<1x128xf32, #tpu.memory_space<vmem>>, %arg5: memref<9x128x128xbf16, #tpu.memory_space<vmem>>, %arg6: memref<1x128xf32, #tpu.memory_space<vmem>>, %arg7: memref<100x1xf32, #tpu.memory_space<vmem>>, %arg8: memref<1x122x128xbf16, #tpu.memory_space<vmem>>, %arg9: memref<100x128xf32, #tpu.memory_space<vmem>>, %arg10: memref<122x128xbf16, #tpu.memory_space<vmem>>) attributes {dimension_semantics = [#tpu.dimension_semantics<parallel>], iteration_bounds = array<i64: 2>, scalar_prefetch = 0 : i64, scratch_operands = 2 : i64, tpu.core_type = #tpu.core_type<tc>, window_params = [{transform_indices = @transform_0, window_bounds = array<i64: 1, 1, 122, 128>}, {pipeline_mode = #tpu.pipeline_mode<synchronous>, transform_indices = @transform_1, window_bounds = array<i64: 9, 128, 128>}, {pipeline_mode = #tpu.pipeline_mode<synchronous>, transform_indices = @transform_2, window_bounds = array<i64: 1, 128>}, {pipeline_mode = #tpu.pipeline_mode<synchronous>, transform_indices = @transform_3, window_bounds = array<i64: 1, 128>}, {pipeline_mode = #tpu.pipeline_mode<synchronous>, transform_indices = @transform_4, window_bounds = array<i64: 9, 128, 128>}, {pipeline_mode = #tpu.pipeline_mode<synchronous>, transform_indices = @transform_5, window_bounds = array<i64: 1, 128>}, {pipeline_mode = #tpu.pipeline_mode<synchronous>, transform_indices = @transform_6, window_bounds = array<i64: 100, 1>}, {transform_indices = @transform_7, window_bounds = array<i64: 1, 122, 128>}]} {
    %c0 = arith.constant 0 : index
    %c0_0 = arith.constant 0 : index
    %0 = vector.load %arg7[%c0, %c0_0] : memref<100x1xf32, #tpu.memory_space<vmem>>, vector<100x1xf32>
    %c0_1 = arith.constant 0 : index
    %c0_2 = arith.constant 0 : index
    %c0_3 = arith.constant 0 : index
    %c0_4 = arith.constant 0 : index
    %1 = vector.load %arg1[%c0_1, %c0_2, %c0_3, %c0_4] : memref<1x1x122x128xbf16, #tpu.memory_space<vmem>>, vector<1x1x100x128xbf16>
    %2 = vector.shape_cast %1 : vector<1x1x100x128xbf16> to vector<100x128xbf16>
    %c0_5 = arith.constant 0 : index
    %c0_6 = arith.constant 0 : index
    %c0_7 = arith.constant 0 : index
    %3 = vector.load %arg2[%c0_5, %c0_6, %c0_7] : memref<9x128x128xbf16, #tpu.memory_space<vmem>>, vector<1x128x128xbf16>
    %4 = vector.shape_cast %3 : vector<1x128x128xbf16> to vector<128x128xbf16>
    %cst = arith.constant dense<0.000000e+00> : vector<100x128xf32>
    %5 = tpu.matmul %2, %4, %cst {dimension_numbers = #tpu.dot_dimension_numbers<[1], [0], [0], [1], [0, 0, 1, 1], [], []>} : vector<100x128xbf16>, vector<128x128xbf16>, vector<100x128xf32> -> vector<100x128xf32>
    %c0_8 = arith.constant 0 : index
    %c0_9 = arith.constant 0 : index
    %6 = vector.load %arg9[%c0_8, %c0_9] : memref<100x128xf32, #tpu.memory_space<vmem>>, vector<100x128xf32>
    tpu.vector_store %arg9[%c0_8, %c0_9], %5 {strides = array<i32>} : memref<100x128xf32, #tpu.memory_space<vmem>>, vector<100x128xf32>,
    %c0_10 = arith.constant 0 : index
    %c0_11 = arith.constant 0 : index
    %c1 = arith.constant 1 : index
    %c0_12 = arith.constant 0 : index
    %7 = vector.load %arg1[%c0_10, %c0_11, %c1, %c0_12] : memref<1x1x122x128xbf16, #tpu.memory_space<vmem>>, vector<1x1x100x128xbf16>
    %8 = vector.shape_cast %7 : vector<1x1x100x128xbf16> to vector<100x128xbf16>
    %c1_13 = arith.constant 1 : index
    %c0_14 = arith.constant 0 : index
    %c0_15 = arith.constant 0 : index
    %9 = vector.load %arg2[%c1_13, %c0_14, %c0_15] : memref<9x128x128xbf16, #tpu.memory_space<vmem>>, vector<1x128x128xbf16>
    %10 = vector.shape_cast %9 : vector<1x128x128xbf16> to vector<128x128xbf16>
    %cst_16 = arith.constant dense<0.000000e+00> : vector<100x128xf32>
    %11 = tpu.matmul %8, %10, %cst_16 {dimension_numbers = #tpu.dot_dimension_numbers<[1], [0], [0], [1], [0, 0, 1, 1], [], []>} : vector<100x128xbf16>, vector<128x128xbf16>, vector<100x128xf32> -> vector<100x128xf32>
    %c0_17 = arith.constant 0 : index
    %c0_18 = arith.constant 0 : index
    %12 = vector.load %arg9[%c0_17, %c0_18] : memref<100x128xf32, #tpu.memory_space<vmem>>, vector<100x128xf32>
    %13 = arith.addf %12, %11 : vector<100x128xf32>
    %c0_19 = arith.constant 0 : index
    %c0_20 = arith.constant 0 : index
    %14 = vector.load %arg9[%c0_19, %c0_20] : memref<100x128xf32, #tpu.memory_space<vmem>>, vector<100x128xf32>
    tpu.vector_store %arg9[%c0_19, %c0_20], %13 {strides = array<i32>} : memref<100x128xf32, #tpu.memory_space<vmem>>, vector<100x128xf32>,
    %c0_21 = arith.constant 0 : index
    %c0_22 = arith.constant 0 : index
    %c2 = arith.constant 2 : index
    %c0_23 = arith.constant 0 : index
    %15 = vector.load %arg1[%c0_21, %c0_22, %c2, %c0_23] : memref<1x1x122x128xbf16, #tpu.memory_space<vmem>>, vector<1x1x100x128xbf16>
    %16 = vector.shape_cast %15 : vector<1x1x100x128xbf16> to vector<100x128xbf16>
    %c2_24 = arith.constant 2 : index
    %c0_25 = arith.constant 0 : index
    %c0_26 = arith.constant 0 : index
    %17 = vector.load %arg2[%c2_24, %c0_25, %c0_26] : memref<9x128x128xbf16, #tpu.memory_space<vmem>>, vector<1x128x128xbf16>
    %18 = vector.shape_cast %17 : vector<1x128x128xbf16> to vector<128x128xbf16>
    %cst_27 = arith.constant dense<0.000000e+00> : vector<100x128xf32>
    %19 = tpu.matmul %16, %18, %cst_27 {dimension_numbers = #tpu.dot_dimension_numbers<[1], [0], [0], [1], [0, 0, 1, 1], [], []>} : vector<100x128xbf16>, vector<128x128xbf16>, vector<100x128xf32> -> vector<100x128xf32>
    %c0_28 = arith.constant 0 : index
    %c0_29 = arith.constant 0 : index
    %20 = vector.load %arg9[%c0_28, %c0_29] : memref<100x128xf32, #tpu.memory_space<vmem>>, vector<100x128xf32>
    %21 = arith.addf %20, %19 : vector<100x128xf32>
    %c0_30 = arith.constant 0 : index
    %c0_31 = arith.constant 0 : index
    %22 = vector.load %arg9[%c0_30, %c0_31] : memref<100x128xf32, #tpu.memory_space<vmem>>, vector<100x128xf32>
    tpu.vector_store %arg9[%c0_30, %c0_31], %21 {strides = array<i32>} : memref<100x128xf32, #tpu.memory_space<vmem>>, vector<100x128xf32>,
    %c0_32 = arith.constant 0 : index
    %c0_33 = arith.constant 0 : index
    %c10 = arith.constant 10 : index
    %c0_34 = arith.constant 0 : index
    %23 = vector.load %arg1[%c0_32, %c0_33, %c10, %c0_34] : memref<1x1x122x128xbf16, #tpu.memory_space<vmem>>, vector<1x1x100x128xbf16>
    %24 = vector.shape_cast %23 : vector<1x1x100x128xbf16> to vector<100x128xbf16>
    %c3 = arith.constant 3 : index
    %c0_35 = arith.constant 0 : index
    %c0_36 = arith.constant 0 : index
    %25 = vector.load %arg2[%c3, %c0_35, %c0_36] : memref<9x128x128xbf16, #tpu.memory_space<vmem>>, vector<1x128x128xbf16>
    %26 = vector.shape_cast %25 : vector<1x128x128xbf16> to vector<128x128xbf16>
    %cst_37 = arith.constant dense<0.000000e+00> : vector<100x128xf32>
    %27 = tpu.matmul %24, %26, %cst_37 {dimension_numbers = #tpu.dot_dimension_numbers<[1], [0], [0], [1], [0, 0, 1, 1], [], []>} : vector<100x128xbf16>, vector<128x128xbf16>, vector<100x128xf32> -> vector<100x128xf32>
    %c0_38 = arith.constant 0 : index
    %c0_39 = arith.constant 0 : index
    %28 = vector.load %arg9[%c0_38, %c0_39] : memref<100x128xf32, #tpu.memory_space<vmem>>, vector<100x128xf32>
    %29 = arith.addf %28, %27 : vector<100x128xf32>
    %c0_40 = arith.constant 0 : index
    %c0_41 = arith.constant 0 : index
    %30 = vector.load %arg9[%c0_40, %c0_41] : memref<100x128xf32, #tpu.memory_space<vmem>>, vector<100x128xf32>
    tpu.vector_store %arg9[%c0_40, %c0_41], %29 {strides = array<i32>} : memref<100x128xf32, #tpu.memory_space<vmem>>, vector<100x128xf32>,
    %c0_42 = arith.constant 0 : index
    %c0_43 = arith.constant 0 : index
    %c11 = arith.constant 11 : index
    %c0_44 = arith.constant 0 : index
    %31 = vector.load %arg1[%c0_42, %c0_43, %c11, %c0_44] : memref<1x1x122x128xbf16, #tpu.memory_space<vmem>>, vector<1x1x100x128xbf16>
    %32 = vector.shape_cast %31 : vector<1x1x100x128xbf16> to vector<100x128xbf16>
    %c4 = arith.constant 4 : index
    %c0_45 = arith.constant 0 : index
    %c0_46 = arith.constant 0 : index
    %33 = vector.load %arg2[%c4, %c0_45, %c0_46] : memref<9x128x128xbf16, #tpu.memory_space<vmem>>, vector<1x128x128xbf16>
    %34 = vector.shape_cast %33 : vector<1x128x128xbf16> to vector<128x128xbf16>
    %cst_47 = arith.constant dense<0.000000e+00> : vector<100x128xf32>
    %35 = tpu.matmul %32, %34, %cst_47 {dimension_numbers = #tpu.dot_dimension_numbers<[1], [0], [0], [1], [0, 0, 1, 1], [], []>} : vector<100x128xbf16>, vector<128x128xbf16>, vector<100x128xf32> -> vector<100x128xf32>
    %c0_48 = arith.constant 0 : index
    %c0_49 = arith.constant 0 : index
    %36 = vector.load %arg9[%c0_48, %c0_49] : memref<100x128xf32, #tpu.memory_space<vmem>>, vector<100x128xf32>
    %37 = arith.addf %36, %35 : vector<100x128xf32>
    %c0_50 = arith.constant 0 : index
    %c0_51 = arith.constant 0 : index
    %38 = vector.load %arg9[%c0_50, %c0_51] : memref<100x128xf32, #tpu.memory_space<vmem>>, vector<100x128xf32>
    tpu.vector_store %arg9[%c0_50, %c0_51], %37 {strides = array<i32>} : memref<100x128xf32, #tpu.memory_space<vmem>>, vector<100x128xf32>,
    %c0_52 = arith.constant 0 : index
    %c0_53 = arith.constant 0 : index
    %c12 = arith.constant 12 : index
    %c0_54 = arith.constant 0 : index
    %39 = vector.load %arg1[%c0_52, %c0_53, %c12, %c0_54] : memref<1x1x122x128xbf16, #tpu.memory_space<vmem>>, vector<1x1x100x128xbf16>
    %40 = vector.shape_cast %39 : vector<1x1x100x128xbf16> to vector<100x128xbf16>
    %c5 = arith.constant 5 : index
    %c0_55 = arith.constant 0 : index
    %c0_56 = arith.constant 0 : index
    %41 = vector.load %arg2[%c5, %c0_55, %c0_56] : memref<9x128x128xbf16, #tpu.memory_space<vmem>>, vector<1x128x128xbf16>
    %42 = vector.shape_cast %41 : vector<1x128x128xbf16> to vector<128x128xbf16>
    %cst_57 = arith.constant dense<0.000000e+00> : vector<100x128xf32>
    %43 = tpu.matmul %40, %42, %cst_57 {dimension_numbers = #tpu.dot_dimension_numbers<[1], [0], [0], [1], [0, 0, 1, 1], [], []>} : vector<100x128xbf16>, vector<128x128xbf16>, vector<100x128xf32> -> vector<100x128xf32>
    %c0_58 = arith.constant 0 : index
    %c0_59 = arith.constant 0 : index
    %44 = vector.load %arg9[%c0_58, %c0_59] : memref<100x128xf32, #tpu.memory_space<vmem>>, vector<100x128xf32>
    %45 = arith.addf %44, %43 : vector<100x128xf32>
    %c0_60 = arith.constant 0 : index
    %c0_61 = arith.constant 0 : index
    %46 = vector.load %arg9[%c0_60, %c0_61] : memref<100x128xf32, #tpu.memory_space<vmem>>, vector<100x128xf32>
    tpu.vector_store %arg9[%c0_60, %c0_61], %45 {strides = array<i32>} : memref<100x128xf32, #tpu.memory_space<vmem>>, vector<100x128xf32>,
    %c0_62 = arith.constant 0 : index
    %c0_63 = arith.constant 0 : index
    %c20 = arith.constant 20 : index
    %c0_64 = arith.constant 0 : index
    %47 = vector.load %arg1[%c0_62, %c0_63, %c20, %c0_64] : memref<1x1x122x128xbf16, #tpu.memory_space<vmem>>, vector<1x1x100x128xbf16>
    %48 = vector.shape_cast %47 : vector<1x1x100x128xbf16> to vector<100x128xbf16>
    %c6 = arith.constant 6 : index
    %c0_65 = arith.constant 0 : index
    %c0_66 = arith.constant 0 : index
    %49 = vector.load %arg2[%c6, %c0_65, %c0_66] : memref<9x128x128xbf16, #tpu.memory_space<vmem>>, vector<1x128x128xbf16>
    %50 = vector.shape_cast %49 : vector<1x128x128xbf16> to vector<128x128xbf16>
    %cst_67 = arith.constant dense<0.000000e+00> : vector<100x128xf32>
    %51 = tpu.matmul %48, %50, %cst_67 {dimension_numbers = #tpu.dot_dimension_numbers<[1], [0], [0], [1], [0, 0, 1, 1], [], []>} : vector<100x128xbf16>, vector<128x128xbf16>, vector<100x128xf32> -> vector<100x128xf32>
    %c0_68 = arith.constant 0 : index
    %c0_69 = arith.constant 0 : index
    %52 = vector.load %arg9[%c0_68, %c0_69] : memref<100x128xf32, #tpu.memory_space<vmem>>, vector<100x128xf32>
    %53 = arith.addf %52, %51 : vector<100x128xf32>
    %c0_70 = arith.constant 0 : index
    %c0_71 = arith.constant 0 : index
    %54 = vector.load %arg9[%c0_70, %c0_71] : memref<100x128xf32, #tpu.memory_space<vmem>>, vector<100x128xf32>
    tpu.vector_store %arg9[%c0_70, %c0_71], %53 {strides = array<i32>} : memref<100x128xf32, #tpu.memory_space<vmem>>, vector<100x128xf32>,
    %c0_72 = arith.constant 0 : index
    %c0_73 = arith.constant 0 : index
    %c21 = arith.constant 21 : index
    %c0_74 = arith.constant 0 : index
    %55 = vector.load %arg1[%c0_72, %c0_73, %c21, %c0_74] : memref<1x1x122x128xbf16, #tpu.memory_space<vmem>>, vector<1x1x100x128xbf16>
    %56 = vector.shape_cast %55 : vector<1x1x100x128xbf16> to vector<100x128xbf16>
    %c7 = arith.constant 7 : index
    %c0_75 = arith.constant 0 : index
    %c0_76 = arith.constant 0 : index
    %57 = vector.load %arg2[%c7, %c0_75, %c0_76] : memref<9x128x128xbf16, #tpu.memory_space<vmem>>, vector<1x128x128xbf16>
    %58 = vector.shape_cast %57 : vector<1x128x128xbf16> to vector<128x128xbf16>
    %cst_77 = arith.constant dense<0.000000e+00> : vector<100x128xf32>
    %59 = tpu.matmul %56, %58, %cst_77 {dimension_numbers = #tpu.dot_dimension_numbers<[1], [0], [0], [1], [0, 0, 1, 1], [], []>} : vector<100x128xbf16>, vector<128x128xbf16>, vector<100x128xf32> -> vector<100x128xf32>
    %c0_78 = arith.constant 0 : index
    %c0_79 = arith.constant 0 : index
    %60 = vector.load %arg9[%c0_78, %c0_79] : memref<100x128xf32, #tpu.memory_space<vmem>>, vector<100x128xf32>
    %61 = arith.addf %60, %59 : vector<100x128xf32>
    %c0_80 = arith.constant 0 : index
    %c0_81 = arith.constant 0 : index
    %62 = vector.load %arg9[%c0_80, %c0_81] : memref<100x128xf32, #tpu.memory_space<vmem>>, vector<100x128xf32>
    tpu.vector_store %arg9[%c0_80, %c0_81], %61 {strides = array<i32>} : memref<100x128xf32, #tpu.memory_space<vmem>>, vector<100x128xf32>,
    %c0_82 = arith.constant 0 : index
    %c0_83 = arith.constant 0 : index
    %c22 = arith.constant 22 : index
    %c0_84 = arith.constant 0 : index
    %63 = vector.load %arg1[%c0_82, %c0_83, %c22, %c0_84] : memref<1x1x122x128xbf16, #tpu.memory_space<vmem>>, vector<1x1x100x128xbf16>
    %64 = vector.shape_cast %63 : vector<1x1x100x128xbf16> to vector<100x128xbf16>
    %c8 = arith.constant 8 : index
    %c0_85 = arith.constant 0 : index
    %c0_86 = arith.constant 0 : index
    %65 = vector.load %arg2[%c8, %c0_85, %c0_86] : memref<9x128x128xbf16, #tpu.memory_space<vmem>>, vector<1x128x128xbf16>
    %66 = vector.shape_cast %65 : vector<1x128x128xbf16> to vector<128x128xbf16>
    %cst_87 = arith.constant dense<0.000000e+00> : vector<100x128xf32>
    %67 = tpu.matmul %64, %66, %cst_87 {dimension_numbers = #tpu.dot_dimension_numbers<[1], [0], [0], [1], [0, 0, 1, 1], [], []>} : vector<100x128xbf16>, vector<128x128xbf16>, vector<100x128xf32> -> vector<100x128xf32>
    %c0_88 = arith.constant 0 : index
    %c0_89 = arith.constant 0 : index
    %68 = vector.load %arg9[%c0_88, %c0_89] : memref<100x128xf32, #tpu.memory_space<vmem>>, vector<100x128xf32>
    %69 = arith.addf %68, %67 : vector<100x128xf32>
    %c0_90 = arith.constant 0 : index
    %c0_91 = arith.constant 0 : index
    %70 = vector.load %arg9[%c0_90, %c0_91] : memref<100x128xf32, #tpu.memory_space<vmem>>, vector<100x128xf32>
    tpu.vector_store %arg9[%c0_90, %c0_91], %69 {strides = array<i32>} : memref<100x128xf32, #tpu.memory_space<vmem>>, vector<100x128xf32>,
    %c0_92 = arith.constant 0 : index
    %c0_93 = arith.constant 0 : index
    %71 = vector.load %arg9[%c0_92, %c0_93] : memref<100x128xf32, #tpu.memory_space<vmem>>, vector<100x128xf32>
    %c0_94 = arith.constant 0 : index
    %c0_95 = arith.constant 0 : index
    %72 = vector.load %arg3[%c0_94, %c0_95] : memref<1x128xf32, #tpu.memory_space<vmem>>, vector<1x128xf32>
    %73 = vector.broadcast %72 : vector<1x128xf32> to vector<100x128xf32>
    %74 = arith.addf %71, %73 : vector<100x128xf32>
    %c0_96 = arith.constant 0 : index
    %c0_97 = arith.constant 0 : index
    %75 = vector.load %arg4[%c0_96, %c0_97] : memref<1x128xf32, #tpu.memory_space<vmem>>, vector<1x128xf32>
    %76 = vector.broadcast %75 : vector<1x128xf32> to vector<100x128xf32>
    %77 = arith.mulf %74, %76 : vector<100x128xf32>
    %cst_98 = arith.constant 0.000000e+00 : f32
    %78 = vector.broadcast %cst_98 : f32 to vector<100x128xf32>
    %79 = arith.maximumf %77, %78 : vector<100x128xf32>
    %80 = vector.broadcast %0 : vector<100x1xf32> to vector<100x128xf32>
    %81 = arith.mulf %79, %80 : vector<100x128xf32>
    %82 = arith.truncf %81 : vector<100x128xf32> to vector<100x128xbf16>
    %c11_99 = arith.constant 11 : index
    %c0_100 = arith.constant 0 : index
    %83 = vector.load %arg10[%c11_99, %c0_100] : memref<122x128xbf16, #tpu.memory_space<vmem>>, vector<100x128xbf16>
    tpu.vector_store %arg10[%c11_99, %c0_100], %82 {strides = array<i32>} : memref<122x128xbf16, #tpu.memory_space<vmem>>, vector<100x128xbf16>,
    %cst_101 = arith.constant 0.000000e+00 : bf16
    %84 = vector.broadcast %cst_101 : bf16 to vector<11x128xbf16>
    %c0_102 = arith.constant 0 : index
    %c0_103 = arith.constant 0 : index
    %85 = vector.load %arg10[%c0_102, %c0_103] : memref<122x128xbf16, #tpu.memory_space<vmem>>, vector<11x128xbf16>
    tpu.vector_store %arg10[%c0_102, %c0_103], %84 {strides = array<i32>} : memref<122x128xbf16, #tpu.memory_space<vmem>>, vector<11x128xbf16>,
    %cst_104 = arith.constant 0.000000e+00 : bf16
    %86 = vector.broadcast %cst_104 : bf16 to vector<11x128xbf16>
    %c111 = arith.constant 111 : index
    %c0_105 = arith.constant 0 : index
    %87 = vector.load %arg10[%c111, %c0_105] : memref<122x128xbf16, #tpu.memory_space<vmem>>, vector<11x128xbf16>
    tpu.vector_store %arg10[%c111, %c0_105], %86 {strides = array<i32>} : memref<122x128xbf16, #tpu.memory_space<vmem>>, vector<11x128xbf16>,
    %c0_106 = arith.constant 0 : index
    %c0_107 = arith.constant 0 : index
    %88 = vector.load %arg10[%c0_106, %c0_107] : memref<122x128xbf16, #tpu.memory_space<vmem>>, vector<100x128xbf16>
    %c0_108 = arith.constant 0 : index
    %c0_109 = arith.constant 0 : index
    %c0_110 = arith.constant 0 : index
    %89 = vector.load %arg5[%c0_108, %c0_109, %c0_110] : memref<9x128x128xbf16, #tpu.memory_space<vmem>>, vector<1x128x128xbf16>
    %90 = vector.shape_cast %89 : vector<1x128x128xbf16> to vector<128x128xbf16>
    %cst_111 = arith.constant dense<0.000000e+00> : vector<100x128xf32>
    %91 = tpu.matmul %88, %90, %cst_111 {dimension_numbers = #tpu.dot_dimension_numbers<[1], [0], [0], [1], [0, 0, 1, 1], [], []>} : vector<100x128xbf16>, vector<128x128xbf16>, vector<100x128xf32> -> vector<100x128xf32>
    %c0_112 = arith.constant 0 : index
    %c0_113 = arith.constant 0 : index
    %92 = vector.load %arg9[%c0_112, %c0_113] : memref<100x128xf32, #tpu.memory_space<vmem>>, vector<100x128xf32>
    tpu.vector_store %arg9[%c0_112, %c0_113], %91 {strides = array<i32>} : memref<100x128xf32, #tpu.memory_space<vmem>>, vector<100x128xf32>,
    %c1_114 = arith.constant 1 : index
    %c0_115 = arith.constant 0 : index
    %93 = vector.load %arg10[%c1_114, %c0_115] : memref<122x128xbf16, #tpu.memory_space<vmem>>, vector<100x128xbf16>
    %c1_116 = arith.constant 1 : index
    %c0_117 = arith.constant 0 : index
    %c0_118 = arith.constant 0 : index
    %94 = vector.load %arg5[%c1_116, %c0_117, %c0_118] : memref<9x128x128xbf16, #tpu.memory_space<vmem>>, vector<1x128x128xbf16>
    %95 = vector.shape_cast %94 : vector<1x128x128xbf16> to vector<128x128xbf16>
    %cst_119 = arith.constant dense<0.000000e+00> : vector<100x128xf32>
    %96 = tpu.matmul %93, %95, %cst_119 {dimension_numbers = #tpu.dot_dimension_numbers<[1], [0], [0], [1], [0, 0, 1, 1], [], []>} : vector<100x128xbf16>, vector<128x128xbf16>, vector<100x128xf32> -> vector<100x128xf32>
    %c0_120 = arith.constant 0 : index
    %c0_121 = arith.constant 0 : index
    %97 = vector.load %arg9[%c0_120, %c0_121] : memref<100x128xf32, #tpu.memory_space<vmem>>, vector<100x128xf32>
    %98 = arith.addf %97, %96 : vector<100x128xf32>
    %c0_122 = arith.constant 0 : index
    %c0_123 = arith.constant 0 : index
    %99 = vector.load %arg9[%c0_122, %c0_123] : memref<100x128xf32, #tpu.memory_space<vmem>>, vector<100x128xf32>
    tpu.vector_store %arg9[%c0_122, %c0_123], %98 {strides = array<i32>} : memref<100x128xf32, #tpu.memory_space<vmem>>, vector<100x128xf32>,
    %c2_124 = arith.constant 2 : index
    %c0_125 = arith.constant 0 : index
    %100 = vector.load %arg10[%c2_124, %c0_125] : memref<122x128xbf16, #tpu.memory_space<vmem>>, vector<100x128xbf16>
    %c2_126 = arith.constant 2 : index
    %c0_127 = arith.constant 0 : index
    %c0_128 = arith.constant 0 : index
    %101 = vector.load %arg5[%c2_126, %c0_127, %c0_128] : memref<9x128x128xbf16, #tpu.memory_space<vmem>>, vector<1x128x128xbf16>
    %102 = vector.shape_cast %101 : vector<1x128x128xbf16> to vector<128x128xbf16>
    %cst_129 = arith.constant dense<0.000000e+00> : vector<100x128xf32>
    %103 = tpu.matmul %100, %102, %cst_129 {dimension_numbers = #tpu.dot_dimension_numbers<[1], [0], [0], [1], [0, 0, 1, 1], [], []>} : vector<100x128xbf16>, vector<128x128xbf16>, vector<100x128xf32> -> vector<100x128xf32>
    %c0_130 = arith.constant 0 : index
    %c0_131 = arith.constant 0 : index
    %104 = vector.load %arg9[%c0_130, %c0_131] : memref<100x128xf32, #tpu.memory_space<vmem>>, vector<100x128xf32>
    %105 = arith.addf %104, %103 : vector<100x128xf32>
    %c0_132 = arith.constant 0 : index
    %c0_133 = arith.constant 0 : index
    %106 = vector.load %arg9[%c0_132, %c0_133] : memref<100x128xf32, #tpu.memory_space<vmem>>, vector<100x128xf32>
    tpu.vector_store %arg9[%c0_132, %c0_133], %105 {strides = array<i32>} : memref<100x128xf32, #tpu.memory_space<vmem>>, vector<100x128xf32>,
    %c10_134 = arith.constant 10 : index
    %c0_135 = arith.constant 0 : index
    %107 = vector.load %arg10[%c10_134, %c0_135] : memref<122x128xbf16, #tpu.memory_space<vmem>>, vector<100x128xbf16>
    %c3_136 = arith.constant 3 : index
    %c0_137 = arith.constant 0 : index
    %c0_138 = arith.constant 0 : index
    %108 = vector.load %arg5[%c3_136, %c0_137, %c0_138] : memref<9x128x128xbf16, #tpu.memory_space<vmem>>, vector<1x128x128xbf16>
    %109 = vector.shape_cast %108 : vector<1x128x128xbf16> to vector<128x128xbf16>
    %cst_139 = arith.constant dense<0.000000e+00> : vector<100x128xf32>
    %110 = tpu.matmul %107, %109, %cst_139 {dimension_numbers = #tpu.dot_dimension_numbers<[1], [0], [0], [1], [0, 0, 1, 1], [], []>} : vector<100x128xbf16>, vector<128x128xbf16>, vector<100x128xf32> -> vector<100x128xf32>
    %c0_140 = arith.constant 0 : index
    %c0_141 = arith.constant 0 : index
    %111 = vector.load %arg9[%c0_140, %c0_141] : memref<100x128xf32, #tpu.memory_space<vmem>>, vector<100x128xf32>
    %112 = arith.addf %111, %110 : vector<100x128xf32>
    %c0_142 = arith.constant 0 : index
    %c0_143 = arith.constant 0 : index
    %113 = vector.load %arg9[%c0_142, %c0_143] : memref<100x128xf32, #tpu.memory_space<vmem>>, vector<100x128xf32>
    tpu.vector_store %arg9[%c0_142, %c0_143], %112 {strides = array<i32>} : memref<100x128xf32, #tpu.memory_space<vmem>>, vector<100x128xf32>,
    %c11_144 = arith.constant 11 : index
    %c0_145 = arith.constant 0 : index
    %114 = vector.load %arg10[%c11_144, %c0_145] : memref<122x128xbf16, #tpu.memory_space<vmem>>, vector<100x128xbf16>
    %c4_146 = arith.constant 4 : index
    %c0_147 = arith.constant 0 : index
    %c0_148 = arith.constant 0 : index
    %115 = vector.load %arg5[%c4_146, %c0_147, %c0_148] : memref<9x128x128xbf16, #tpu.memory_space<vmem>>, vector<1x128x128xbf16>
    %116 = vector.shape_cast %115 : vector<1x128x128xbf16> to vector<128x128xbf16>
    %cst_149 = arith.constant dense<0.000000e+00> : vector<100x128xf32>
    %117 = tpu.matmul %114, %116, %cst_149 {dimension_numbers = #tpu.dot_dimension_numbers<[1], [0], [0], [1], [0, 0, 1, 1], [], []>} : vector<100x128xbf16>, vector<128x128xbf16>, vector<100x128xf32> -> vector<100x128xf32>
    %c0_150 = arith.constant 0 : index
    %c0_151 = arith.constant 0 : index
    %118 = vector.load %arg9[%c0_150, %c0_151] : memref<100x128xf32, #tpu.memory_space<vmem>>, vector<100x128xf32>
    %119 = arith.addf %118, %117 : vector<100x128xf32>
    %c0_152 = arith.constant 0 : index
    %c0_153 = arith.constant 0 : index
    %120 = vector.load %arg9[%c0_152, %c0_153] : memref<100x128xf32, #tpu.memory_space<vmem>>, vector<100x128xf32>
    tpu.vector_store %arg9[%c0_152, %c0_153], %119 {strides = array<i32>} : memref<100x128xf32, #tpu.memory_space<vmem>>, vector<100x128xf32>,
    %c12_154 = arith.constant 12 : index
    %c0_155 = arith.constant 0 : index
    %121 = vector.load %arg10[%c12_154, %c0_155] : memref<122x128xbf16, #tpu.memory_space<vmem>>, vector<100x128xbf16>
    %c5_156 = arith.constant 5 : index
    %c0_157 = arith.constant 0 : index
    %c0_158 = arith.constant 0 : index
    %122 = vector.load %arg5[%c5_156, %c0_157, %c0_158] : memref<9x128x128xbf16, #tpu.memory_space<vmem>>, vector<1x128x128xbf16>
    %123 = vector.shape_cast %122 : vector<1x128x128xbf16> to vector<128x128xbf16>
    %cst_159 = arith.constant dense<0.000000e+00> : vector<100x128xf32>
    %124 = tpu.matmul %121, %123, %cst_159 {dimension_numbers = #tpu.dot_dimension_numbers<[1], [0], [0], [1], [0, 0, 1, 1], [], []>} : vector<100x128xbf16>, vector<128x128xbf16>, vector<100x128xf32> -> vector<100x128xf32>
    %c0_160 = arith.constant 0 : index
    %c0_161 = arith.constant 0 : index
    %125 = vector.load %arg9[%c0_160, %c0_161] : memref<100x128xf32, #tpu.memory_space<vmem>>, vector<100x128xf32>
    %126 = arith.addf %125, %124 : vector<100x128xf32>
    %c0_162 = arith.constant 0 : index
    %c0_163 = arith.constant 0 : index
    %127 = vector.load %arg9[%c0_162, %c0_163] : memref<100x128xf32, #tpu.memory_space<vmem>>, vector<100x128xf32>
    tpu.vector_store %arg9[%c0_162, %c0_163], %126 {strides = array<i32>} : memref<100x128xf32, #tpu.memory_space<vmem>>, vector<100x128xf32>,
    %c20_164 = arith.constant 20 : index
    %c0_165 = arith.constant 0 : index
    %128 = vector.load %arg10[%c20_164, %c0_165] : memref<122x128xbf16, #tpu.memory_space<vmem>>, vector<100x128xbf16>
    %c6_166 = arith.constant 6 : index
    %c0_167 = arith.constant 0 : index
    %c0_168 = arith.constant 0 : index
    %129 = vector.load %arg5[%c6_166, %c0_167, %c0_168] : memref<9x128x128xbf16, #tpu.memory_space<vmem>>, vector<1x128x128xbf16>
    %130 = vector.shape_cast %129 : vector<1x128x128xbf16> to vector<128x128xbf16>
    %cst_169 = arith.constant dense<0.000000e+00> : vector<100x128xf32>
    %131 = tpu.matmul %128, %130, %cst_169 {dimension_numbers = #tpu.dot_dimension_numbers<[1], [0], [0], [1], [0, 0, 1, 1], [], []>} : vector<100x128xbf16>, vector<128x128xbf16>, vector<100x128xf32> -> vector<100x128xf32>
    %c0_170 = arith.constant 0 : index
    %c0_171 = arith.constant 0 : index
    %132 = vector.load %arg9[%c0_170, %c0_171] : memref<100x128xf32, #tpu.memory_space<vmem>>, vector<100x128xf32>
    %133 = arith.addf %132, %131 : vector<100x128xf32>
    %c0_172 = arith.constant 0 : index
    %c0_173 = arith.constant 0 : index
    %134 = vector.load %arg9[%c0_172, %c0_173] : memref<100x128xf32, #tpu.memory_space<vmem>>, vector<100x128xf32>
    tpu.vector_store %arg9[%c0_172, %c0_173], %133 {strides = array<i32>} : memref<100x128xf32, #tpu.memory_space<vmem>>, vector<100x128xf32>,
    %c21_174 = arith.constant 21 : index
    %c0_175 = arith.constant 0 : index
    %135 = vector.load %arg10[%c21_174, %c0_175] : memref<122x128xbf16, #tpu.memory_space<vmem>>, vector<100x128xbf16>
    %c7_176 = arith.constant 7 : index
    %c0_177 = arith.constant 0 : index
    %c0_178 = arith.constant 0 : index
    %136 = vector.load %arg5[%c7_176, %c0_177, %c0_178] : memref<9x128x128xbf16, #tpu.memory_space<vmem>>, vector<1x128x128xbf16>
    %137 = vector.shape_cast %136 : vector<1x128x128xbf16> to vector<128x128xbf16>
    %cst_179 = arith.constant dense<0.000000e+00> : vector<100x128xf32>
    %138 = tpu.matmul %135, %137, %cst_179 {dimension_numbers = #tpu.dot_dimension_numbers<[1], [0], [0], [1], [0, 0, 1, 1], [], []>} : vector<100x128xbf16>, vector<128x128xbf16>, vector<100x128xf32> -> vector<100x128xf32>
    %c0_180 = arith.constant 0 : index
    %c0_181 = arith.constant 0 : index
    %139 = vector.load %arg9[%c0_180, %c0_181] : memref<100x128xf32, #tpu.memory_space<vmem>>, vector<100x128xf32>
    %140 = arith.addf %139, %138 : vector<100x128xf32>
    %c0_182 = arith.constant 0 : index
    %c0_183 = arith.constant 0 : index
    %141 = vector.load %arg9[%c0_182, %c0_183] : memref<100x128xf32, #tpu.memory_space<vmem>>, vector<100x128xf32>
    tpu.vector_store %arg9[%c0_182, %c0_183], %140 {strides = array<i32>} : memref<100x128xf32, #tpu.memory_space<vmem>>, vector<100x128xf32>,
    %c22_184 = arith.constant 22 : index
    %c0_185 = arith.constant 0 : index
    %142 = vector.load %arg10[%c22_184, %c0_185] : memref<122x128xbf16, #tpu.memory_space<vmem>>, vector<100x128xbf16>
    %c8_186 = arith.constant 8 : index
    %c0_187 = arith.constant 0 : index
    %c0_188 = arith.constant 0 : index
    %143 = vector.load %arg5[%c8_186, %c0_187, %c0_188] : memref<9x128x128xbf16, #tpu.memory_space<vmem>>, vector<1x128x128xbf16>
    %144 = vector.shape_cast %143 : vector<1x128x128xbf16> to vector<128x128xbf16>
    %cst_189 = arith.constant dense<0.000000e+00> : vector<100x128xf32>
    %145 = tpu.matmul %142, %144, %cst_189 {dimension_numbers = #tpu.dot_dimension_numbers<[1], [0], [0], [1], [0, 0, 1, 1], [], []>} : vector<100x128xbf16>, vector<128x128xbf16>, vector<100x128xf32> -> vector<100x128xf32>
    %c0_190 = arith.constant 0 : index
    %c0_191 = arith.constant 0 : index
    %146 = vector.load %arg9[%c0_190, %c0_191] : memref<100x128xf32, #tpu.memory_space<vmem>>, vector<100x128xf32>
    %147 = arith.addf %146, %145 : vector<100x128xf32>
    %c0_192 = arith.constant 0 : index
    %c0_193 = arith.constant 0 : index
    %148 = vector.load %arg9[%c0_192, %c0_193] : memref<100x128xf32, #tpu.memory_space<vmem>>, vector<100x128xf32>
    tpu.vector_store %arg9[%c0_192, %c0_193], %147 {strides = array<i32>} : memref<100x128xf32, #tpu.memory_space<vmem>>, vector<100x128xf32>,
    %c0_194 = arith.constant 0 : index
    %c0_195 = arith.constant 0 : index
    %c11_196 = arith.constant 11 : index
    %c0_197 = arith.constant 0 : index
    %149 = vector.load %arg1[%c0_194, %c0_195, %c11_196, %c0_197] : memref<1x1x122x128xbf16, #tpu.memory_space<vmem>>, vector<1x1x100x128xbf16>
    %150 = vector.shape_cast %149 : vector<1x1x100x128xbf16> to vector<100x128xbf16>
    %151 = arith.extf %150 : vector<100x128xbf16> to vector<100x128xf32>
    %c0_198 = arith.constant 0 : index
    %c0_199 = arith.constant 0 : index
    %152 = vector.load %arg9[%c0_198, %c0_199] : memref<100x128xf32, #tpu.memory_space<vmem>>, vector<100x128xf32>
    %c0_200 = arith.constant 0 : index
    %c0_201 = arith.constant 0 : index
    %153 = vector.load %arg6[%c0_200, %c0_201] : memref<1x128xf32, #tpu.memory_space<vmem>>, vector<1x128xf32>
    %154 = vector.broadcast %153 : vector<1x128xf32> to vector<100x128xf32>
    %155 = arith.addf %152, %154 : vector<100x128xf32>
    %156 = arith.addf %155, %151 : vector<100x128xf32>
    %cst_202 = arith.constant 0.000000e+00 : f32
    %157 = vector.broadcast %cst_202 : f32 to vector<100x128xf32>
    %158 = arith.maximumf %156, %157 : vector<100x128xf32>
    %159 = vector.broadcast %0 : vector<100x1xf32> to vector<100x128xf32>
    %160 = arith.mulf %158, %159 : vector<100x128xf32>
    %161 = arith.truncf %160 : vector<100x128xf32> to vector<100x128xbf16>
    %c0_203 = arith.constant 0 : index
    %c11_204 = arith.constant 11 : index
    %c0_205 = arith.constant 0 : index
    %162 = vector.load %arg8[%c0_203, %c11_204, %c0_205] : memref<1x122x128xbf16, #tpu.memory_space<vmem>>, vector<1x100x128xbf16>
    %163 = vector.shape_cast %162 : vector<1x100x128xbf16> to vector<100x128xbf16>
    %164 = vector.shape_cast %161 : vector<100x128xbf16> to vector<1x100x128xbf16>
    tpu.vector_store %arg8[%c0_203, %c11_204, %c0_205], %164 {strides = array<i32>} : memref<1x122x128xbf16, #tpu.memory_space<vmem>>, vector<1x100x128xbf16>,
    %cst_206 = arith.constant 0.000000e+00 : bf16
    %165 = vector.broadcast %cst_206 : bf16 to vector<11x128xbf16>
    %c0_207 = arith.constant 0 : index
    %c0_208 = arith.constant 0 : index
    %c0_209 = arith.constant 0 : index
    %166 = vector.load %arg8[%c0_207, %c0_208, %c0_209] : memref<1x122x128xbf16, #tpu.memory_space<vmem>>, vector<1x11x128xbf16>
    %167 = vector.shape_cast %166 : vector<1x11x128xbf16> to vector<11x128xbf16>
    %168 = vector.shape_cast %165 : vector<11x128xbf16> to vector<1x11x128xbf16>
    tpu.vector_store %arg8[%c0_207, %c0_208, %c0_209], %168 {strides = array<i32>} : memref<1x122x128xbf16, #tpu.memory_space<vmem>>, vector<1x11x128xbf16>,
    %cst_210 = arith.constant 0.000000e+00 : bf16
    %169 = vector.broadcast %cst_210 : bf16 to vector<11x128xbf16>
    %c0_211 = arith.constant 0 : index
    %c111_212 = arith.constant 111 : index
    %c0_213 = arith.constant 0 : index
    %170 = vector.load %arg8[%c0_211, %c111_212, %c0_213] : memref<1x122x128xbf16, #tpu.memory_space<vmem>>, vector<1x11x128xbf16>
    %171 = vector.shape_cast %170 : vector<1x11x128xbf16> to vector<11x128xbf16>
    %172 = vector.shape_cast %169 : vector<11x128xbf16> to vector<1x11x128xbf16>
    tpu.vector_store %arg8[%c0_211, %c111_212, %c0_213], %172 {strides = array<i32>} : memref<1x122x128xbf16, #tpu.memory_space<vmem>>, vector<1x11x128xbf16>,
    return
  }
  func.func @transform_0(%arg0: i32) -> (i32, i32, i32, i32) {
    %c0_i32 = arith.constant 0 : i32
    %c0_i32_0 = arith.constant 0 : i32
    %c0_i32_1 = arith.constant 0 : i32
    %c0_i32_2 = arith.constant 0 : i32
    return %arg0, %c0_i32, %c0_i32_0, %c0_i32_1 : i32, i32, i32, i32
  }
  func.func @transform_1(%arg0: i32) -> (i32, i32, i32) {
    %c0_i32 = arith.constant 0 : i32
    %c0_i32_0 = arith.constant 0 : i32
    %c0_i32_1 = arith.constant 0 : i32
    %c0_i32_2 = arith.constant 0 : i32
    return %c0_i32, %c0_i32_0, %c0_i32_1 : i32, i32, i32
  }
  func.func @transform_2(%arg0: i32) -> (i32, i32) {
    %c0_i32 = arith.constant 0 : i32
    %c0_i32_0 = arith.constant 0 : i32
    %c0_i32_1 = arith.constant 0 : i32
    return %c0_i32, %c0_i32_0 : i32, i32
  }
  func.func @transform_3(%arg0: i32) -> (i32, i32) {
    %c0_i32 = arith.constant 0 : i32
    %c0_i32_0 = arith.constant 0 : i32
    %c0_i32_1 = arith.constant 0 : i32
    return %c0_i32, %c0_i32_0 : i32, i32
  }
  func.func @transform_4(%arg0: i32) -> (i32, i32, i32) {
    %c0_i32 = arith.constant 0 : i32
    %c0_i32_0 = arith.constant 0 : i32
    %c0_i32_1 = arith.constant 0 : i32
    %c0_i32_2 = arith.constant 0 : i32
    return %c0_i32, %c0_i32_0, %c0_i32_1 : i32, i32, i32
  }
  func.func @transform_5(%arg0: i32) -> (i32, i32) {
    %c0_i32 = arith.constant 0 : i32
    %c0_i32_0 = arith.constant 0 : i32
    %c0_i32_1 = arith.constant 0 : i32
    return %c0_i32, %c0_i32_0 : i32, i32
  }
  func.func @transform_6(%arg0: i32) -> (i32, i32) {
    %c0_i32 = arith.constant 0 : i32
    %c0_i32_0 = arith.constant 0 : i32
    %c0_i32_1 = arith.constant 0 : i32
    return %c0_i32, %c0_i32_0 : i32, i32
  }
  func.func @transform_7(%arg0: i32) -> (i32, i32, i32) {
    %c0_i32 = arith.constant 0 : i32
    %c0_i32_0 = arith.constant 0 : i32
    %c0_i32_1 = arith.constant 0 : i32
    return %arg0, %c0_i32, %c0_i32_0 : i32, i32, i32
  }
}

</mosaic_0001>

<bundles_post_ra>
// kernel: _lambda_.3
= control target key start
LH: loop header
LB: loop body
LE: loop exit
PB: predicated region body
PF: predicated region fallthrough
CT: control target
= control target key end

     0   :  { %s7952_s24 = smov 0   ;;  %s9605_s0 = inlined_call_operand.vmem [shape: bf16[2,1,122,128], index: 0, kind: input, shape index: {}]   ;;  %s9606_s1 = inlined_call_operand.vmem [shape: bf16[9,128,128], index: 1, kind: input, shape index: {}]   ;;  %s9607_s2 = inlined_call_operand.vmem [shape: f32[1,128], index: 2, kind: input, shape index: {}, may-alias: {2,5}]   ;;  %s9608_s3 = inlined_call_operand.vmem [shape: f32[1,128], index: 3, kind: input, shape index: {}]   ;;  %s9609_s4 = inlined_call_operand.vmem [shape: bf16[9,128,128], index: 4, kind: input, shape index: {}]   ;;  %s9610_s5 = inlined_call_operand.vmem [shape: f32[1,128], index: 5, kind: input, shape index: {}, may-alias: {2,5}]   ;;  %s9611_s6 = inlined_call_operand.vmem [shape: f32[100,1], index: 6, kind: input, shape index: {}]   ;;  %s9612_s7 = inlined_call_operand.vmem [shape: bf16[2,122,128], index: 7, kind: output, shape index: {}]  }
   0x1 LB: > { %s5932_s25 = sadd.s32 4294967295, %s7907_s24   ;;  %p5936_p0 = scmp.ge.s32.totalorder %s7907_s24, 1  ;;  %s7907_s24 = sphi %s7952_s24, %s17_s24  }
   0x2   : > { %p237_p1 = scmp.lt.s32.totalorder %s7907_s24, 3 }
   0x4   : > { %p238_p2 = pnand %p5936_p0, %p237_p1 }
   0x5   : > { %v7631_v0 = vld [vmem:[%s9606_s1] sm:$0xff] (!%p238_p2)   ;;  %v7909_v1 = vmov (!%p238_p2), 0.0   ;;  %v7632_v2 = vld [vmem:[%s9606_s1 + $0x8] sm:$0xff] (!%p238_p2)   ;;  %vm7910_vm0 = vmmov (!%p238_p2), 0   ;;  %p269_p3 = scmp.lt.s32.totalorder (!%p238_p2), %s5932_s25, 1  ;;  %v7633_v5 = vld [vmem:[%s9606_s1 + $0x10] sm:$0xff] (!%p238_p2)  }
   0x6   : > { %241 = sbr.rel (%p238_p2) target bundleno = 1033 (0x409), region = 48  ;;  %6826 = vmatprep.subr.bf16.mxu0 (!%p238_p2), %v7909_v1  ;;  %6870 = vmatprep.subr.bf16.mxu1 (!%p238_p2), %v7909_v1  ;;  %v7634_v3 = vld [vmem:[%s9606_s1 + $0x40] sm:$0xff] (!%p238_p2)   ;;  %v7636_v4 = vld [vmem:[%s9606_s1 + $0x48] sm:$0xff] (!%p238_p2)   ;;  %v7638_v6 = vld [vmem:[%s9606_s1 + $0x50] sm:$0xff] (!%p238_p2)   ;;  %vm574_vm1 = vsmask.f32 (!%p238_p2), 7424 }
   0x7   : > { %6827 = vmatpush3.bf16.msra.mxu0 (!%p238_p2), %v7631_v0  ;;  %6842 = vmatprep.mubr.msk.bf16.mxu0 (!%p238_p2), %vm7910_vm0, %v7909_v1  ;;  %v7635_v7 = vld [vmem:[%s9606_s1 + $0x18] sm:$0xff] (!%p238_p2)   ;;  %v7637_v9 = vld [vmem:[%s9606_s1 + $0x20] sm:$0xff] (!%p238_p2)   ;;  %v7639_v11 = vld [vmem:[%s9606_s1 + $0x28] sm:$0xff] (!%p238_p2)   ;;  %vm875_vm2 = vcmask (!%p238_p2), 1046528   ;;  %vm1392_vm3 = vsmask.f32 (!%p238_p2), 6400 }
   0x8   : > { %6828 = vmatprep.subr.bf16.mxu0 (!%p238_p2), %v7909_v1  ;;  %6886 = vmatprep.mubr.msk.bf16.mxu1 (!%p238_p2), %vm7910_vm0, %v7909_v1  ;;  %v7640_v8 = vld [vmem:[%s9606_s1 + $0x58] sm:$0xff] (!%p238_p2)   ;;  %v7642_v10 = vld [vmem:[%s9606_s1 + $0x60] sm:$0xff] (!%p238_p2)   ;;  %v7644_v14 = vld [vmem:[%s9606_s1 + $0x68] sm:$0xff] (!%p238_p2)   ;;  %vm1700_vm4 = vcmask (!%p238_p2), 1045504   ;;  %vm2220_vm5 = vsmask.f32 (!%p238_p2), 5376 }
   0x9   : > { %6871 = vmatpush3.bf16.msra.mxu1 (!%p238_p2), %v7634_v3  ;;  %v7641_v15 = vld [vmem:[%s9606_s1 + $0x30] sm:$0xff] (!%p238_p2)   ;;  %v7643_v21 = vld [vmem:[%s9606_s1 + $0x38] sm:$0xff] (!%p238_p2)   ;;  %v7647_v23 = vld [vmem:[%s9606_s1 + $0x80] sm:$0xff] (!%p238_p2)   ;;  %vm2531_vm6 = vcmask (!%p238_p2), 1044480   ;;  %vm3055_vm7 = vcmask (!%p238_p2), 1043457   ;;  %vm3079_vm13 = vcmask (!%p238_p2), 1041408  }
   0xa   : > { %6872 = vmatprep.subr.bf16.mxu1 (!%p238_p2), %v7909_v1  ;;  %v7646_v17 = vld [vmem:[%s9606_s1 + $0x70] sm:$0xff] (!%p238_p2)   ;;  %v7648_v24 = vld [vmem:[%s9606_s1 + $0x78] sm:$0xff] (!%p238_p2)   ;;  %v7662_v31 = vld [vmem:[%s9606_s1 + $0xc0] sm:$0xff] (!%p238_p2)   ;;  %vm3056_vm8 = vsmask.f32 (!%p238_p2), 7942  ;;  %vm3072_vm15 = vcmask (!%p238_p2), 1043456  }
   0xb   : > { %6829 = vmatpush3.bf16.msra.mxu0 (!%p238_p2), %v7632_v2  ;;  %v7652_v32 = vld [vmem:[%s9606_s1 + $0x88] sm:$0xff] (!%p238_p2)   ;;  %v7653_v38 = vld [vmem:[%s9606_s1 + $0x90] sm:$0xff] (!%p238_p2)   ;;  %v7656_v43 = vld [vmem:[%s9606_s1 + $0x98] sm:$0xff] (!%p238_p2)   ;;  %vm2911_vm9 = vsmask.f32 (!%p238_p2), 1280 }
   0xc   : > { %6830 = vmatprep.subr.bf16.mxu0 (!%p238_p2), %v7909_v1  ;;  %v7664_v37 = vld [vmem:[%s9606_s1 + $0xc8] sm:$0xff] (!%p238_p2)   ;;  %v7668_v42 = vld [vmem:[%s9606_s1 + $0xd0] sm:$0xff] (!%p238_p2)   ;;  %v7669_v48 = vld [vmem:[%s9606_s1 + $0xd8] sm:$0xff] (!%p238_p2)   ;;  %vm2912_vm10 = vsmask.f32 (!%p238_p2), 5392 }
   0xd   : > { %s9624_s25 = smov (!%p269_p3, %s5932_s25), 1  ;;  %6873 = vmatpush3.bf16.msra.mxu1 %v7636_v4  ;;  %v7659_v49 = vld [vmem:[%s9606_s1 + $0xa0] sm:$0xff]   ;;  %v7663_v54 = vld [vmem:[%s9606_s1 + $0xa8] sm:$0xff]   ;;  %v7667_v60 = vld [vmem:[%s9606_s1 + $0xb0] sm:$0xff]  }
   0xe   : > { %6874 = vmatprep.subr.bf16.mxu1 %v7909_v1  ;;  %s6498_s17 = sshll.u32 %s9624_s25, 6  ;;  %v7673_v53 = vld [vmem:[%s9606_s1 + $0xe0] sm:$0xff]   ;;  %v7674_v59 = vld [vmem:[%s9606_s1 + $0xe8] sm:$0xff]   ;;  %v7678_v0 = vld [vmem:[%s9606_s1 + $0xf0] sm:$0xff]  }
   0xf   : > { %6831 = vmatpush3.bf16.msra.mxu0 %v7633_v5  ;;  %s8003_s22 = scalar_lea.vmem %s9605_s0, %s6498_s17  ;;  %v7672_v2 = vld [vmem:[%s9606_s1 + $0xb8] sm:$0xff]   ;;  %s8473_s12 = scalar_lea.vmem %s9612_s7, %s6498_s17  ;;  %vm8825_vm11 = vmand %vm3055_vm7, %vm3056_vm8  ;;  %vm3073_vm7 = vsmask.f32 3328 }
  0x10   : > { %6832 = vmatprep.subr.bf16.mxu0 %v7909_v1  ;;  %v7650_v12 = vld [vmem:[%s8003_s22] sm:$0xff]   ;;  %v7651_v13 = vld [vmem:[%s8003_s22 + $0x8] sm:$0xff]   ;;  %v7655_v26 = vld [vmem:[%s8003_s22 + $0x10] sm:$0xff]  }
  0x11   : > { %6875 = vmatpush3.bf16.msra.mxu1 %v7638_v6  ;;  %v578_v16 = vshll.u32 %v7650_v12, 16  ;;  %v583_v18 = vshll.u32 %v7651_v13, 16  ;;  %v576_v19 = vshrl.u32 %v7650_v12, 16  ;;  %v7645_v22 = vld [vmem:[%s8003_s22] sm:$0xff]   ;;  %v587_v28 = vshrl.u32 %v7651_v13, 16  ;;  %v7649_v33 = vld [vmem:[%s8003_s22 + $0x8] sm:$0xff]   ;;  %vm8833_vm12 = vmor %vm2911_vm9, %vm2912_vm10 }
  0x12   : > { %6876 = vmatprep.subr.bf16.mxu1 %v7909_v1  ;;  %v591_v30 = vshll.u32 %v7655_v26, 16  ;;  %v7658_v34 = vld [vmem:[%s8003_s22 + $0x18] sm:$0xff]   ;;  %v595_v39 = vshrl.u32 %v7655_v26, 16  ;;  %v7654_v44 = vld [vmem:[%s8003_s22 + $0x10] sm:$0xff]   ;;  %v7661_v45 = vld [vmem:[%s8003_s22 + $0x20] sm:$0xff]  }
  0x13   : > { %6833 = vmatpush3.bf16.msra.mxu0 %v7635_v7  ;;  %v580_v20 = vrot.slane %v578_v16, 1  ;;  %v585_v25 = vrot.slane %v583_v18, 1  ;;  %v599_v41 = vshll.u32 %v7658_v34, 16  ;;  %v603_v50 = vshrl.u32 %v7658_v34, 16  ;;  %v7657_v55 = vld [vmem:[%s8003_s22 + $0x18] sm:$0xff]   ;;  %v7666_v56 = vld [vmem:[%s8003_s22 + $0x28] sm:$0xff]   ;;  %vm8852_vm14 = vmand %vm3079_vm13, %vm2911_vm9 }
  0x14   : > { %6834 = vmatprep.subr.bf16.mxu0 %v7909_v1  ;;  %v593_v36 = vrot.slane %v591_v30, 1  ;;  %v607_v52 = vshll.u32 %v7661_v45, 16  ;;  %v611_v61 = vshrl.u32 %v7661_v45, 16  ;;  %v615_v63 = vshll.u32 %v7666_v56, 16  ;;  %v7660_v4 = vld [vmem:[%s8003_s22 + $0x20] sm:$0xff]   ;;  %v7679_v7 = vld [vmem:[%s9606_s1 + $0xf8] sm:$0xff]   ;;  %vm9030_vm8 = vmand %vm3072_vm15, %vm3073_vm7 }
  0x15   : > { %6877 = vmatpush3.bf16.msra.mxu1 %v7640_v8  ;;  %v581_v27 = vor.u32 %v580_v20, %v576_v19  ;;  %v589_v35 = vor.u32 %v587_v28, %v585_v25  ;;  %v601_v47 = vrot.slane %v599_v41, 1  ;;  %v7671_v3 = vld [vmem:[%s8003_s22 + $0x30] ss:$0 sps:$4 sm:$0x77]   ;;  %v7675_v18 = vld [vmem:[%s8003_s22] sm:$0xfe]  }
  0x16   : > { %6878 = vmatprep.subr.bf16.mxu1 %v7909_v1  ;;  %v597_v46 = vor.u32 %v595_v39, %v593_v36  ;;  %v609_v58 = vrot.slane %v607_v52, 1  ;;  %v617_v6 = vrot.slane %v615_v63, 1  ;;  %v7670_v16 = vld [vmem:[%s8003_s22 + $0x30] ss:$0 sps:$4 sm:$0x33]   ;;  %v7702_v63 = vld [vmem:[%s9606_s1 + $0x138] sm:$0xff]  }
  0x17   : > { %6835 = vmatpush3.bf16.msra.mxu0 %v7637_v9  ;;  %v586_v29 = vsel %vm574_vm1, %v581_v27, %v585_v25  ;;  %v594_v40 = vsel %vm574_vm1, %v589_v35, %v593_v36  ;;  %v605_v57 = vor.u32 %v603_v50, %v601_v47  ;;  %v619_v9 = vshrl.u32 %v7666_v56, 16  ;;  %v7683_v20 = vld [vmem:[%s8003_s22 + $0xc] sm:$0xff]  }
  0x18   : > { %6836 = vmatprep.subr.bf16.mxu0 %v7909_v1  ;;  %v602_v51 = vsel %vm574_vm1, %v597_v46, %v601_v47  ;;  %v613_v5 = vor.u32 %v611_v61, %v609_v58  ;;  %v1135_v26 = vrot.slane %v7683_v20, 1  ;;  %v7680_v28 = vld [vmem:[%s8003_s22 + $0x10] sm:$0xff]   ;;  %v7695_v35 = vld [vmem:[%s9606_s1 + $0x148] sm:$0xff]   ;;  %v7700_v46 = vld [vmem:[%s9606_s1 + $0x158] sm:$0xff]   ;;  %vm3084_vm9 = vcmask 1043459  }
  0x19   : > { %6879 = vmatpush3.bf16.msra.mxu1 %v7642_v10  ;;  %v610_v62 = vsel %vm574_vm1, %v605_v57, %v609_v58  ;;  %v623_v10 = vshll.u32 %v7671_v3, 16  ;;  %v621_v12 = vor.u32 %v619_v9, %v617_v6  ;;  %v7699_v41 = vld [vmem:[%s9606_s1 + $0x150] sm:$0xff]   ;;  %v7694_v50 = vld [vmem:[%s9606_s1 + $0x128] sm:$0xff]   ;;  %vm3085_vm10 = vsmask.f32 7950 }
  0x1a   : > { %6880 = vmatprep.subr.bf16.mxu1 %v7909_v1  ;;  %v618_v8 = vsel %vm574_vm1, %v613_v5, %v617_v6  ;;  %v7704_v56 = vld [vmem:[%s9606_s1 + $0x168] sm:$0xff]   ;;  %v7698_v58 = vld [vmem:[%s9606_s1 + $0x130] sm:$0xff]   ;;  %vm9047_vm13 = vmand %vm3084_vm9, %vm3085_vm10 }
  0x1b   : > { %6837 = vmatpush3.bf16.msra.mxu0 %v7639_v11  ;;  %v7665_v11 = vld [vmem:[%s8003_s22 + $0x28] sm:$0xff]   ;;  %v625_v13 = vrot.slane %v623_v10, 1  ;;  %v7708_v61 = vld [vmem:[%s9606_s1 + $0x170] sm:$0xff]  }
  0x1c   : > { %6838 = vmatprep.subr.bf16.mxu0 %v7909_v1  ;;  %v7705_v5 = vld [vmem:[%s8003_s22 + $0x4] sm:$0xfe]   ;;  %v7701_v6 = vld [vmem:[%s8003_s22 + $0x34] ss:$0 sps:$4 sm:$0x77]  }
  0x1d   : > { %6881 = vmatpush3.bf16.msra.mxu1 %v7644_v14  ;;  %v626_v14 = vsel %vm574_vm1, %v621_v12, %v625_v13  ;;  %v1394_v10 = vshrl.u32 %v7705_v5, 16 }
  0x1e   : > { %6882 = vmatprep.subr.bf16.mxu1 %v7909_v1 }
  0x1f   : > { %6839 = vmatpush3.bf16.msra.mxu0 %v7641_v15  ;;  %v627_v15 = vshrl.u32 %v7671_v3, 16 }
  0x20   : > { %6840 = vmatprep.subr.bf16.mxu0 %v7909_v1 }
  0x21   : > { %6883 = vmatpush3.bf16.msra.mxu1 %v7646_v17  ;;  %v7676_v17 = vld [vmem:[%s8003_s22 + $0x8] sm:$0xff]   ;;  %v629_v19 = vor.u32 %v627_v15, %v625_v13  ;;  %v7710_v15 = vld [vmem:[%s8003_s22 + $0x14] sm:$0xff]  }
  0x22   : > { %6884 = vmatprep.subr.bf16.mxu1 %v7909_v1 }
  0x23   : > { %6841 = vmatpush3.bf16.msra.mxu0 %v7643_v21  ;;  %v7682_v21 = vld [vmem:[%s8003_s22 + $0x4] sm:$0xfe]  }
  0x24   : > { %6914 = vmatprep.subr.bf16.mxu0 %v7909_v1  ;;  %v1134_v25 = vrot.slane %v7682_v21, 1 }
  0x25   : > { %6885 = vmatpush3.bf16.msra.mxu1 %v7648_v24  ;;  %v7677_v24 = vld [vmem:[%s9606_s1 + $0x100] sm:$0xff]  }
  0x26   : > { %6843 = vmatmul.mubr.bf16.vlgmr.msra.gmra.mrb[0].mxu0 %v7645_v22  ;;  %6958 = vmatprep.subr.bf16.mxu1 %v7909_v1  ;;  %v876_v22 = vrot.slane %v7675_v18, 1  ;;  %v1136_v30 = vsel %vm875_vm2, %v1134_v25, %v1135_v26  ;;  %v1396_v18 = vrot.slane %v1394_v10, 1  ;;  %v1414_v25 = vshll.u32 %v7710_v15, 16  ;;  %v8347_v10 = vld [vmem:[%s8003_s22 + $0x34] ss:$0 sps:$4 sm:$0xff]  }
  0x27   : > { %6915 = vmatpush3.bf16.msra.mxu0 %v7647_v23  ;;  %6846 = vmatprep.mubr.msk.bf16.mxu0 %vm7910_vm0, %v7909_v1  ;;  %v877_v23 = vrot.slane %v7676_v17, 1  ;;  %v7715_v17 = vld [vmem:[%s8003_s22 + $0x1c] sm:$0xff]  }
  0x28   : > { %6916 = vmatprep.subr.bf16.mxu0 %v7909_v1  ;;  %6887 = vmatmul.mubr.bf16.vlgmr.msra.gmra.mrb[0].mxu1 %v586_v29  ;;  %v7686_v29 = vld [vmem:[%s8003_s22 + $0x14] sm:$0xff]  }
  0x29   : > { %6890 = vmatprep.mubr.msk.bf16.mxu1 %vm7910_vm0, %v7909_v1  ;;  %6959 = vmatpush3.bf16.msra.mxu1 %v7662_v31  ;;  %v878_v27 = vsel %vm875_vm2, %v876_v22, %v877_v23  ;;  %v7693_v31 = vld [vmem:[%s9606_s1 + $0x140] sm:$0xff]   ;;  %v1137_v34 = vrot.slane %v7686_v29, 1  ;;  %v1423_v29 = vshll.u32 %v7715_v17, 16 }
  0x2a   : > { %6960 = vmatprep.subr.bf16.mxu1 %v7909_v1  ;;  %v7718_v22 = vld [vmem:[%s8003_s22 + $0x24] sm:$0xff]  }
  0x2b   : > { %6917 = vmatpush3.bf16.msra.mxu0 %v7652_v32  ;;  %v879_v32 = vrot.slane %v7680_v28, 1  ;;  %v1138_v39 = vsel %vm875_vm2, %v1135_v26, %v1137_v34  ;;  %v7712_v26 = vld [vmem:[%s8003_s22 + $0x4] sm:$0xfc]   ;;  %v1420_v28 = vshrl.u32 %v7715_v17, 16  ;;  %v1712_v17 = vrot.slane %v8347_v10, 2 }
  0x2c   : > { %6918 = vmatprep.subr.bf16.mxu0 %v7909_v1  ;;  %v7752_v10 = vld [vmem:[%s8003_s22 + $0x28] sm:$0xff]  }
  0x2d   : > { %6961 = vmatpush3.bf16.msra.mxu1 %v7664_v37  ;;  %v880_v36 = vsel %vm875_vm2, %v877_v23, %v879_v32  ;;  %v7684_v37 = vld [vmem:[%s9606_s1 + $0x110] sm:$0xff]  }
  0x2e   : > { %6847 = vmatmul.mubr.bf16.gmra.mrb[4].mxu0 %v7649_v33  ;;  %6962 = vmatprep.subr.bf16.mxu1 %v7909_v1  ;;  %v7681_v33 = vld [vmem:[%s9606_s1 + $0x108] sm:$0xff]  }
  0x2f   : > { %6850 = vmatprep.mubr.msk.bf16.mxu0 %vm7910_vm0, %v7909_v1  ;;  %6919 = vmatpush3.bf16.msra.mxu0 %v7653_v38  ;;  %v7685_v38 = vld [vmem:[%s8003_s22 + $0x18] sm:$0xff]  }
  0x30   : > { %6920 = vmatprep.subr.bf16.mxu0 %v7909_v1  ;;  %6891 = vmatmul.mubr.bf16.gmra.mrb[4].mxu1 %v594_v40  ;;  %v7689_v40 = vld [vmem:[%s8003_s22 + $0x1c] sm:$0xff]  }
  0x31   : > { %6894 = vmatprep.mubr.msk.bf16.mxu1 %vm7910_vm0, %v7909_v1  ;;  %6963 = vmatpush3.bf16.msra.mxu1 %v7668_v42  ;;  %v881_v42 = vrot.slane %v7685_v38, 1  ;;  %v1139_v45 = vrot.slane %v7689_v40, 1  ;;  %v1701_v38 = vrot.slane %v7712_v26, 2  ;;  %v1422_v40 = vrot.slane %v1420_v28, 1 }
  0x32   : > { %6964 = vmatprep.subr.bf16.mxu1 %v7909_v1 }
  0x33   : > { %6921 = vmatpush3.bf16.msra.mxu0 %v7656_v43  ;;  %v7687_v43 = vld [vmem:[%s9606_s1 + $0x118] sm:$0xff]   ;;  %v882_v47 = vsel %vm875_vm2, %v879_v32, %v881_v42  ;;  %v1140_v52 = vsel %vm875_vm2, %v1137_v34, %v1139_v45  ;;  %v7721_v34 = vld [vmem:[%s8003_s22 + $0x2c] sm:$0xff]  }
  0x34   : > { %6922 = vmatprep.subr.bf16.mxu0 %v7909_v1  ;;  %v8275_v32 = vld [vmem:[%s8003_s22 + $0x1c] sm:$0xff]  }
  0x35   : > { %6965 = vmatpush3.bf16.msra.mxu1 %v7669_v48  ;;  %v7690_v48 = vld [vmem:[%s9606_s1 + $0x120] sm:$0xff]  }
  0x36   : > { %6851 = vmatmul.mubr.bf16.gmra.mrb[8].mxu0 %v7654_v44  ;;  %6966 = vmatprep.subr.bf16.mxu1 %v7909_v1  ;;  %v7688_v44 = vld [vmem:[%s8003_s22 + $0x20] sm:$0xff]  }
  0x37   : > { %6854 = vmatprep.mubr.msk.bf16.mxu0 %vm7910_vm0, %v7909_v1  ;;  %6923 = vmatpush3.bf16.msra.mxu0 %v7659_v49  ;;  %v7692_v49 = vld [vmem:[%s8003_s22 + $0x24] sm:$0xff]  }
  0x38   : > { %6924 = vmatprep.subr.bf16.mxu0 %v7909_v1  ;;  %6895 = vmatmul.mubr.bf16.gmra.mrb[8].mxu1 %v602_v51  ;;  %v883_v51 = vrot.slane %v7688_v44, 1  ;;  %v1706_v44 = vrot.slane %v8275_v32, 2  ;;  %v7739_v32 = vld [vmem:[%s9606_s1 + $0x1f8] sm:$0xff]  }
  0x39   : > { %6898 = vmatprep.mubr.msk.bf16.mxu1 %vm7910_vm0, %v7909_v1  ;;  %6967 = vmatpush3.bf16.msra.mxu1 %v7673_v53  ;;  %v7703_v53 = vld [vmem:[%s9606_s1 + $0x160] sm:$0xff]  }
  0x3a   : > { %6968 = vmatprep.subr.bf16.mxu1 %v7909_v1  ;;  %v884_v57 = vsel %vm875_vm2, %v881_v42, %v883_v51 }
  0x3b   : > { %6925 = vmatpush3.bf16.msra.mxu0 %v7663_v54  ;;  %v7691_v54 = vld [vmem:[%s8003_s22 + $0x28] sm:$0xff]  }
  0x3c   : > { %6926 = vmatprep.subr.bf16.mxu0 %v7909_v1 }
  0x3d   : > { %6969 = vmatpush3.bf16.msra.mxu1 %v7674_v59  ;;  %v7697_v59 = vld [vmem:[%s8003_s22 + $0x2c] sm:$0xff]  }
  0x3e   : > { %6855 = vmatmul.mubr.bf16.gmra.mrb[12].mxu0 %v7657_v55  ;;  %6970 = vmatprep.subr.bf16.mxu1 %v7909_v1  ;;  %v1141_v55 = vrot.slane %v7692_v49, 1  ;;  %v1441_v49 = vshll.u32 %v7721_v34, 16 }
  0x3f   : > { %6858 = vmatprep.mubr.msk.bf16.mxu0 %vm7910_vm0, %v7909_v1  ;;  %6927 = vmatpush3.bf16.msra.mxu0 %v7667_v60 }
  0x40   : > { %6928 = vmatprep.subr.bf16.mxu0 %v7909_v1  ;;  %6899 = vmatmul.mubr.bf16.gmra.mrb[12].mxu1 %v610_v62  ;;  %v1142_v60 = vsel %vm875_vm2, %v1139_v45, %v1141_v55  ;;  %v885_v62 = vrot.slane %v7691_v54, 1 }
  0x41   : > { %6902 = vmatprep.mubr.msk.bf16.mxu1 %vm7910_vm0, %v7909_v1  ;;  %6971 = vmatpush3.bf16.msra.mxu1 %v7678_v0  ;;  %v1143_v0 = vrot.slane %v7697_v59, 1 }
  0x42   : > { %6972 = vmatprep.subr.bf16.mxu1 %v7909_v1  ;;  %v886_v3 = vsel %vm875_vm2, %v883_v51, %v885_v62  ;;  %v7726_v51 = vld [vmem:[%s8003_s22 + $0x34] ss:$0 sps:$4 sm:$0xff]  }
  0x43   : > { %6929 = vmatpush3.bf16.msra.mxu0 %v7672_v2  ;;  %v7709_v2 = vld [vmem:[%s9606_s1 + $0x178] sm:$0xff]   ;;  %v1447_v59 = vshrl.u32 %v7726_v51, 16 }
  0x44   : > { %7002 = vmatprep.subr.bf16.mxu0 %v7909_v1 }
  0x45   : > { %6973 = vmatpush3.bf16.msra.mxu1 %v7679_v7  ;;  %v7706_v7 = vld [vmem:[%s8003_s22 + $0xc] sm:$0xff]  }
  0x46   : > { %6859 = vmatmul.mubr.bf16.gmra.mrb[16].mxu0 %v7660_v4  ;;  %7046 = vmatprep.subr.bf16.mxu1 %v7909_v1  ;;  %v7696_v4 = vld [vmem:[%s8003_s22 + $0x30] ss:$0 sps:$4 sm:$0x77]   ;;  %v1402_v12 = vshrl.u32 %v7706_v7, 16  ;;  %v1405_v13 = vshll.u32 %v7706_v7, 16 }
  0x47   : > { %6862 = vmatprep.mubr.msk.bf16.mxu0 %vm7910_vm0, %v7909_v1  ;;  %v887_v9 = vrot.slane %v7696_v4, 1  ;;  %v7717_v4 = vld [vmem:[%s9606_s1 + $0x198] sm:$0xff]   ;;  %v7729_v7 = vld [vmem:[%s9606_s1 + $0x1d0] sm:$0xff]  }
  0x48   : > { %6903 = vmatmul.mubr.bf16.gmra.mrb[16].mxu1 %v618_v8  ;;  %v1144_v8 = vsel %vm875_vm2, %v1141_v55, %v1143_v0  ;;  %v1404_v20 = vrot.slane %v1402_v12, 1  ;;  %v1407_v21 = vrot.slane %v1405_v13, 2  ;;  %v8301_v55 = vrot.slane %v1441_v49, 2 }
  0x49   : > { %6906 = vmatprep.mubr.msk.bf16.mxu1 %vm7910_vm0, %v7909_v1 }
  0x4e   : > { %6863 = vmatmul.mubr.bf16.gmra.mrb[20].mxu0 %v7665_v11  ;;  %v1397_v11 = vshll.u32 %v7705_v5, 16 }
  0x4f   : > { %6866 = vmatprep.mubr.msk.bf16.mxu0 %vm7910_vm0, %v7909_v1 }
  0x50   : > { %6907 = vmatmul.mubr.bf16.gmra.mrb[20].mxu1 %v626_v14  ;;  %v1145_v14 = vrot.slane %v7701_v6, 1  ;;  %v8334_v6 = vrot.slane %v1447_v59, 1  ;;  %v7749_v59 = vld [vmem:[%s8003_s22 + $0x20] sm:$0xff]  }
  0x51   : > { %6910 = vmatprep.mubr.msk.bf16.mxu1 %vm7910_vm0, %v7909_v1 }
  0x52   : > { %v1146_v23 = vsel %vm875_vm2, %v1143_v0, %v1145_v14 }
  0x56   : > { %6867 = vmatmul.mubr.bf16.gmra.mrb[24].mxu0 %v7670_v16  ;;  %v888_v16 = vsel %vm875_vm2, %v885_v62, %v887_v9  ;;  %v7725_v62 = vld [vmem:[%s9606_s1 + $0x1c8] sm:$0xff]  }
  0x57   : > { %6930 = vmatprep.mubr.msk.bf16.mxu0 %vm7910_vm0, %v7909_v1 }
  0x58   : > { %6911 = vmatmul.mubr.bf16.gmra.mrb[24].mxu1 %v629_v19  ;;  %v1399_v19 = vrot.slane %v1397_v11, 2  ;;  %v7720_v11 = vld [vmem:[%s9606_s1 + $0x1a0] sm:$0xff]  }
  0x59   : > { %6974 = vmatprep.mubr.msk.bf16.mxu1 %vm7910_vm0, %v7909_v1 }
  0x5e   : > { %6931 = vmatmul.mubr.bf16.vlgmr.msra.gmra.mrb[28].mxu0 %v878_v27  ;;  %v7713_v27 = vld [vmem:[%s8003_s22 + $0xc] sm:$0xff]  }
  0x5f   : > { %7003 = vmatpush3.bf16.msra.mxu0 %v7677_v24  ;;  %6934 = vmatprep.mubr.msk.bf16.mxu0 %vm7910_vm0, %v7909_v1  ;;  %v1411_v24 = vshrl.u32 %v7710_v15, 16  ;;  %v7724_v15 = vld [vmem:[%s9606_s1 + $0x1a8] sm:$0xff]  }
  0x60   : > { %7004 = vmatprep.subr.bf16.mxu0 %v7909_v1  ;;  %6975 = vmatmul.mubr.bf16.vlgmr.msra.gmra.mrb[28].mxu1 %v1136_v30  ;;  %v8272_v30 = vld [vmem:[%s8003_s22 + $0x14] sm:$0xff]  }
  0x61   : > { %6978 = vmatprep.mubr.msk.bf16.mxu1 %vm7910_vm0, %v7909_v1  ;;  %7047 = vmatpush3.bf16.msra.mxu1 %v7693_v31  ;;  %v1429_v31 = vshrl.u32 %v7718_v22, 16  ;;  %v1704_v42 = vrot.slane %v8272_v30, 2 }
  0x62   : > { %7048 = vmatprep.subr.bf16.mxu1 %v7909_v1 }
  0x63   : > { %7005 = vmatpush3.bf16.msra.mxu0 %v7681_v33  ;;  %v1432_v33 = vshll.u32 %v7718_v22, 16  ;;  %v7728_v22 = vld [vmem:[%s9606_s1 + $0x1b0] sm:$0xff]  }
  0x64   : > { %7006 = vmatprep.subr.bf16.mxu0 %v7909_v1 }
  0x65   : > { %7049 = vmatpush3.bf16.msra.mxu1 %v7695_v35  ;;  %v1413_v35 = vrot.slane %v1411_v24, 1  ;;  %v8287_v45 = vrot.slane %v1432_v33, 2  ;;  %v7738_v24 = vld [vmem:[%s9606_s1 + $0x1f0] sm:$0xff]  }
  0x66   : > { %6935 = vmatmul.mubr.bf16.gmra.mrb[32].mxu0 %v880_v36  ;;  %7050 = vmatprep.subr.bf16.mxu1 %v7909_v1  ;;  %v8281_v36 = vld [vmem:[%s8003_s22 + $0x24] sm:$0xff]  }
  0x67   : > { %6938 = vmatprep.mubr.msk.bf16.mxu0 %vm7910_vm0, %v7909_v1  ;;  %7007 = vmatpush3.bf16.msra.mxu0 %v7684_v37  ;;  %v1416_v37 = vrot.slane %v1414_v25, 2 }
  0x68   : > { %7008 = vmatprep.subr.bf16.mxu0 %v7909_v1  ;;  %6979 = vmatmul.mubr.bf16.gmra.mrb[32].mxu1 %v1138_v39  ;;  %v1702_v39 = vrot.slane %v7713_v27, 2  ;;  %v7732_v27 = vld [vmem:[%s9606_s1 + $0x1b8] sm:$0xff]  }
  0x69   : > { %6982 = vmatprep.mubr.msk.bf16.mxu1 %vm7910_vm0, %v7909_v1  ;;  %7051 = vmatpush3.bf16.msra.mxu1 %v7699_v41  ;;  %v1425_v41 = vrot.slane %v1423_v29, 2 }
  0x6a   : > { %7052 = vmatprep.subr.bf16.mxu1 %v7909_v1  ;;  %v1705_v5 = vsel %vm1700_vm4, %v1702_v39, %v1704_v42 }
  0x6b   : > { %7009 = vmatpush3.bf16.msra.mxu0 %v7687_v43  ;;  %v8284_v43 = vrot.slane %v1429_v31, 1 }
  0x6c   : > { %7010 = vmatprep.subr.bf16.mxu0 %v7909_v1 }
  0x6d   : > { %7053 = vmatpush3.bf16.msra.mxu1 %v7700_v46  ;;  %v1438_v46 = vshrl.u32 %v7721_v34, 16 }
  0x6e   : > { %6939 = vmatmul.mubr.bf16.gmra.mrb[36].mxu0 %v882_v47  ;;  %7054 = vmatprep.subr.bf16.mxu1 %v7909_v1  ;;  %v1400_v47 = vor.u32 %v1399_v19, %v1396_v18  ;;  %v7743_v18 = vld [vmem:[%s8003_s22 + $0x10] sm:$0xff]   ;;  %v1435_v19 = vor.u32 %v8287_v45, %v8284_v43 }
  0x6f   : > { %6942 = vmatprep.mubr.msk.bf16.mxu0 %vm7910_vm0, %v7909_v1  ;;  %7011 = vmatpush3.bf16.msra.mxu0 %v7690_v48  ;;  %v1408_v48 = vor.u32 %v1407_v21, %v1404_v20  ;;  %v8299_v54 = vrot.slane %v1438_v46, 1  ;;  %v7734_v20 = vld [vmem:[%s9606_s1 + $0x1e8] sm:$0xff]   ;;  %v2230_v25 = vshrl.u32 %v7743_v18, 16  ;;  %v2233_v26 = vshll.u32 %v7743_v18, 16 }
  0x70   : > { %7012 = vmatprep.subr.bf16.mxu0 %v7909_v1  ;;  %6983 = vmatmul.mubr.bf16.gmra.mrb[36].mxu1 %v1140_v52  ;;  %v7707_v52 = vld [vmem:[%s9606_s1 + $0x180] sm:$0xff]   ;;  %v7742_v21 = vld [vmem:[%s8003_s22 + $0x8] sm:$0xfc]  }
  0x71   : > { %6986 = vmatprep.mubr.msk.bf16.mxu1 %vm7910_vm0, %v7909_v1  ;;  %7055 = vmatpush3.bf16.msra.mxu1 %v7703_v53  ;;  %v1409_v53 = vsel %vm1392_vm3, %v1400_v47, %v1408_v48  ;;  %v2222_v29 = vshrl.u32 %v7742_v21, 16  ;;  %v2225_v30 = vshll.u32 %v7742_v21, 16  ;;  %v1444_v31 = vor.u32 %v8301_v55, %v8299_v54  ;;  %v280_v55 = vld [vmem:[%s9611_s6] sm:$0xff]  ;;  %v7748_v18 = vld [vmem:[%s8003_s22 + $0x28] sm:$0xff]  }
  0x72   : > { %7056 = vmatprep.subr.bf16.mxu1 %v7909_v1  ;;  %v2235_v43 = vrot.slane %v2233_v26, 3  ;;  %v7911_v54 = vmov 0   ;;  %v7753_v26 = vld [vmem:[%s9606_s1 + $0x228] sm:$0xff]  }
  0x73   : > { %7013 = vmatpush3.bf16.msra.mxu0 %v7694_v50  ;;  %v1708_v50 = vrot.slane %v8281_v36, 2  ;;  %v1445_v33 = vsel %vm1392_vm3, %v1435_v19, %v1444_v31  ;;  %7629 = vset.pattern.permute.xlu0 %v7911_v54  ;;  %3078 = vst [vmem:[#allocation3] sm:$0xf] %v7911_v54  ;;  %3090 = vst [vmem:[#allocation3 + $0x38] sm:$0xf] %v7911_v54 }
  0x74   : > { %7014 = vmatprep.subr.bf16.mxu0 %v7909_v1  ;;  %3091 = vst [vmem:[#allocation3 + $0x3c] sm:$0x1] %v7911_v54  ;;  %7630 = vset.pattern.permute.xlu1 %v7911_v54  ;;  %5868 = vst [vmem:[%s8473_s12] sm:$0xf] %v7911_v54 }
  0x75   : > { %7057 = vmatpush3.bf16.msra.mxu1 %v7704_v56  ;;  %v7723_v56 = vld [vmem:[%s9606_s1 + $0x1c0] sm:$0xff]   ;;  %v1709_v28 = vsel %vm1700_vm4, %v1706_v44, %v1708_v50  ;;  %2795 = vperm.xlu0 %7629, %v280_v55   ;;  %5875 = vst [vmem:[%s8473_s12 + $0x38] sm:$0xf] %v7911_v54  ;;  %5876 = vst [vmem:[%s8473_s12 + $0x3c] sm:$0x1] %v7911_v54  ;;  %v289_v54 = vld [vmem:[%s9611_s6 + $0x48] sm:$0xff] }
  0x76   : > { %6943 = vmatmul.mubr.bf16.gmra.mrb[40].mxu0 %v884_v57  ;;  %7058 = vmatprep.subr.bf16.mxu1 %v7909_v1  ;;  %v7711_v57 = vld [vmem:[%s9606_s1 + $0x188] sm:$0xff]  }
  0x77   : > { %6946 = vmatprep.mubr.msk.bf16.mxu0 %vm7910_vm0, %v7909_v1  ;;  %7015 = vmatpush3.bf16.msra.mxu0 %v7698_v58  ;;  %v1703_v58 = vsel %vm1700_vm4, %v1701_v38, %v1702_v39  ;;  %v7735_v38 = vld [vmem:[%s8003_s22 + $0x8] sm:$0xfc]   ;;  %v7736_v39 = vld [vmem:[%s8003_s22 + $0x10] sm:$0xff]  }
  0x78   : > { %7016 = vmatprep.subr.bf16.mxu0 %v7909_v1  ;;  %6987 = vmatmul.mubr.bf16.gmra.mrb[40].mxu1 %v1142_v60  ;;  %v8311_v60 = vld [vmem:[%s8003_s22 + $0x2c] sm:$0xff]   ;;  %v1959_v45 = vrot.slane %v7735_v38, 2  ;;  %v1960_v46 = vrot.slane %v7736_v39, 2 }
  0x79   : > { %6990 = vmatprep.mubr.msk.bf16.mxu1 %vm7910_vm0, %v7909_v1  ;;  %7059 = vmatpush3.bf16.msra.mxu1 %v7708_v61  ;;  %v1417_v61 = vor.u32 %v1416_v37, %v1413_v35 }
  0x7a   : > { %7060 = vmatprep.subr.bf16.mxu1 %v7909_v1 }
  0x7b   : > { %7017 = vmatpush3.bf16.msra.mxu0 %v7702_v63  ;;  %v7714_v63 = vld [vmem:[%s9606_s1 + $0x190] sm:$0xff]   ;;  %v1418_v0 = vsel %vm1392_vm3, %v1408_v48, %v1417_v61 }
  0x7c   : > { %7090 = vmatprep.subr.bf16.mxu0 %v7909_v1 }
  0x7d   : > { %7061 = vmatpush3.bf16.msra.mxu1 %v7709_v2  ;;  %v1450_v2 = vshll.u32 %v7726_v51, 16  ;;  %v1961_v51 = vsel %vm1700_vm4, %v1959_v45, %v1960_v46 }
  0x7e   : > { %6947 = vmatmul.mubr.bf16.gmra.mrb[44].mxu0 %v886_v3  ;;  %7134 = vmatprep.subr.bf16.mxu1 %v7909_v1  ;;  %v1710_v3 = vrot.slane %v8311_v60, 2 }
  0x7f   : > { %6950 = vmatprep.mubr.msk.bf16.mxu0 %vm7910_vm0, %v7909_v1  ;;  %v1452_v13 = vrot.slane %v1450_v2, 2 }
  0x80   : > { %6991 = vmatmul.mubr.bf16.gmra.mrb[44].mxu1 %v1144_v8  ;;  %v1426_v8 = vor.u32 %v1425_v41, %v1422_v40  ;;  %v1711_v34 = vsel %vm1700_vm4, %v1708_v50, %v1710_v3  ;;  %v1713_v36 = vsel %vm1700_vm4, %v1710_v3, %v1712_v17  ;;  %v2224_v40 = vrot.slane %v2222_v29, 2 }
  0x81   : > { %6994 = vmatprep.mubr.msk.bf16.mxu1 %vm7910_vm0, %v7909_v1  ;;  %v1453_v35 = vor.u32 %v1452_v13, %v8334_v6  ;;  %v2227_v41 = vrot.slane %v2225_v30, 3  ;;  %v2248_v3 = vshrl.u32 %v7749_v59, 16  ;;  %v284_v6 = vld [vmem:[%s9611_s6 + $0x20] sm:$0xff]  ;;  %v286_v13 = vld [vmem:[%s9611_s6 + $0x30] sm:$0xff] }
  0x82   : > { %v1427_v12 = vsel %vm1392_vm3, %v1417_v61, %v1426_v8  ;;  %v7741_v61 = vld [vmem:[%s9606_s1 + $0x208] sm:$0xff]  }
  0x83   : > { %v1454_v37 = vsel %vm1392_vm3, %v1444_v31, %v1453_v35  ;;  %v2228_v47 = vor.u32 %v2227_v41, %v2224_v40  ;;  %v7757_v40 = vld [vmem:[%s8003_s22 + $0x38] sm:$0x1f]  }
  0x84   : > { %v2275_v45 = vshrl.u32 %v7757_v40, 16 }
  0x86   : > { %6951 = vmatmul.mubr.bf16.gmra.mrb[48].mxu0 %v888_v16  ;;  %v1707_v16 = vsel %vm1700_vm4, %v1704_v42, %v1706_v44  ;;  %v2232_v42 = vrot.slane %v2230_v25, 2  ;;  %v7746_v44 = vld [vmem:[%s8003_s22 + $0x18] sm:$0xff]   ;;  %v1966_v25 = vrot.slane %v7748_v18, 2 }
  0x87   : > { %6954 = vmatprep.mubr.msk.bf16.mxu0 %vm7910_vm0, %v7909_v1  ;;  %v2239_v49 = vshrl.u32 %v7746_v44, 16  ;;  %v2242_v50 = vshll.u32 %v7746_v44, 16 }
  0x88   : > { %6995 = vmatmul.mubr.bf16.gmra.mrb[48].mxu1 %v1146_v23  ;;  %v1436_v23 = vsel %vm1392_vm3, %v1426_v8, %v1435_v19  ;;  %v2236_v48 = vor.u32 %v2235_v43, %v2232_v42  ;;  %v2250_v8 = vrot.slane %v2248_v3, 2  ;;  %v7750_v19 = vld [vmem:[%s9606_s1 + $0x220] sm:$0xff]   ;;  %v7758_v42 = vld [vmem:[%s9606_s1 + $0x238] sm:$0xff]   ;;  %v285_v43 = vld [vmem:[%s9611_s6 + $0x28] sm:$0xff] }
  0x89   : > { %6998 = vmatprep.mubr.msk.bf16.mxu1 %vm7910_vm0, %v7909_v1 }
  0x8e   : > { %6955 = vmatmul.mubr.bf16.gmra.mrb[52].mxu0 %v887_v9  ;;  %v7730_v9 = vld [vmem:[%s9606_s1 + $0x1d8] sm:$0xff]  }
  0x8f   : > { %7018 = vmatprep.mubr.msk.bf16.mxu0 %vm7910_vm0, %v7909_v1 }
  0x90   : > { %6999 = vmatmul.mubr.bf16.gmra.mrb[52].mxu1 %v1145_v14  ;;  %v7733_v14 = vld [vmem:[%s9606_s1 + $0x1e0] sm:$0xff]  }
  0x91   : > { %7062 = vmatprep.mubr.msk.bf16.mxu1 %vm7910_vm0, %v7909_v1 }
  0x96   : > { %7019 = vmatmul.mubr.bf16.vlgmr.msra.gmra.mrb[56].mxu0 %v1409_v53  ;;  %v7740_v53 = vld [vmem:[%s8003_s22 + $0x18] sm:$0xff]  }
  0x97   : > { %7091 = vmatpush3.bf16.msra.mxu0 %v7707_v52  ;;  %7022 = vmatprep.mubr.msk.bf16.mxu0 %vm7910_vm0, %v7909_v1  ;;  %v7737_v52 = vld [vmem:[%s9606_s1 + $0x200] sm:$0xff]   ;;  %v1962_v60 = vrot.slane %v7740_v53, 2 }
  0x98   : > { %7092 = vmatprep.subr.bf16.mxu0 %v7909_v1  ;;  %7063 = vmatmul.mubr.bf16.vlgmr.msra.gmra.mrb[56].mxu1 %v1703_v58  ;;  %v2244_v58 = vrot.slane %v2242_v50, 3 }
  0x99   : > { %7066 = vmatprep.mubr.msk.bf16.mxu1 %vm7910_vm0, %v7909_v1  ;;  %7135 = vmatpush3.bf16.msra.mxu1 %v7723_v56  ;;  %v2237_v56 = vsel %vm2220_vm5, %v2228_v47, %v2236_v48 }
  0x9a   : > { %7136 = vmatprep.subr.bf16.mxu1 %v7909_v1 }
  0x9b   : > { %7093 = vmatpush3.bf16.msra.mxu0 %v7711_v57  ;;  %v2241_v57 = vrot.slane %v2239_v49, 2  ;;  %v287_v49 = vld [vmem:[%s9611_s6 + $0x38] sm:$0xff] }
  0x9c   : > { %7094 = vmatprep.subr.bf16.mxu0 %v7909_v1 }
  0x9d   : > { %7137 = vmatpush3.bf16.msra.mxu1 %v7725_v62  ;;  %v281_v62 = vld [vmem:[%s9611_s6 + $0x8] sm:$0xff]  ;;  %v2245_v2 = vor.u32 %v2244_v58, %v2241_v57  ;;  %v291_v57 = vld [vmem:[%s9611_s6 + $0x58] sm:$0xff] }
  0x9e   : > { %7023 = vmatmul.mubr.bf16.gmra.mrb[60].mxu0 %v1418_v0  ;;  %7138 = vmatprep.subr.bf16.mxu1 %v7909_v1  ;;  %v7745_v0 = vld [vmem:[%s8003_s22 + $0x20] sm:$0xff]  }
  0x9f   : > { %7026 = vmatprep.mubr.msk.bf16.mxu0 %vm7910_vm0, %v7909_v1  ;;  %7095 = vmatpush3.bf16.msra.mxu0 %v7714_v63  ;;  %v7744_v63 = vld [vmem:[%s9606_s1 + $0x210] sm:$0xff]  }
  0xa0   : > { %7096 = vmatprep.subr.bf16.mxu0 %v7909_v1  ;;  %7067 = vmatmul.mubr.bf16.gmra.mrb[60].mxu1 %v1705_v5  ;;  %v1963_v5 = vsel %vm1700_vm4, %v1960_v46, %v1962_v60  ;;  %v2278_v46 = vshll.u32 %v7757_v40, 16  ;;  %v7763_v40 = vld [vmem:[%s8003_s22 + $0x28] sm:$0xff]  }
  0xa1   : > { %7070 = vmatprep.mubr.msk.bf16.mxu1 %vm7910_vm0, %v7909_v1  ;;  %7139 = vmatpush3.bf16.msra.mxu1 %v7729_v7  ;;  %v2246_v7 = vsel %vm2220_vm5, %v2236_v48, %v2245_v2  ;;  %v7754_v48 = vld [vmem:[%s8003_s22 + $0x38] ss:$0 sps:$4 sm:$0xff]  }
  0xa2   : > { %7140 = vmatprep.subr.bf16.mxu1 %v7909_v1  ;;  %2800 = vperm.xlu0 %7629, %v281_v62   ;;  %v1970_v53 = vrot.slane %v7754_v48, 2  ;;  %v7759_v62 = vld [vmem:[%s8003_s22 + $0x8] sm:$0xf8]  }
  0xa3   : > { %7097 = vmatpush3.bf16.msra.mxu0 %v7717_v4  ;;  %v2251_v4 = vshll.u32 %v7749_v59, 16 }
  0xa4   : > { %7098 = vmatprep.subr.bf16.mxu0 %v7909_v1 }
  0xa5   : > { %7141 = vmatpush3.bf16.msra.mxu1 %v7730_v9  ;;  %v2253_v9 = vrot.slane %v2251_v4, 3 }
  0xa6   : > { %7027 = vmatmul.mubr.bf16.gmra.mrb[64].mxu0 %v1427_v12  ;;  %7142 = vmatprep.subr.bf16.mxu1 %v7909_v1  ;;  %v7747_v12 = vld [vmem:[%s9606_s1 + $0x218] sm:$0xff]  }
  0xa7   : > { %7030 = vmatprep.mubr.msk.bf16.mxu0 %vm7910_vm0, %v7909_v1  ;;  %7099 = vmatpush3.bf16.msra.mxu0 %v7720_v11  ;;  %v1964_v11 = vrot.slane %v7745_v0, 2 }
  0xa8   : > { %7100 = vmatprep.subr.bf16.mxu0 %v7909_v1  ;;  %7071 = vmatmul.mubr.bf16.gmra.mrb[64].mxu1 %v1707_v16  ;;  %v2260_v16 = vshll.u32 %v7752_v10, 16 }
  0xa9   : > { %7074 = vmatprep.mubr.msk.bf16.mxu1 %vm7910_vm0, %v7909_v1  ;;  %7143 = vmatpush3.bf16.msra.mxu1 %v7733_v14  ;;  %v2254_v14 = vor.u32 %v2253_v9, %v2250_v8 }
  0xaa   : > { %7144 = vmatprep.subr.bf16.mxu1 %v7909_v1  ;;  %2815 = vperm.xlu0 %7629, %v284_v6  }
  0xab   : > { %7101 = vmatpush3.bf16.msra.mxu0 %v7724_v15  ;;  %v2257_v15 = vshrl.u32 %v7752_v10, 16  ;;  %v2255_v21 = vsel %vm2220_vm5, %v2245_v2, %v2254_v14 }
  0xac   : > { %7102 = vmatprep.subr.bf16.mxu0 %v7909_v1 }
  0xad   : > { %7145 = vmatpush3.bf16.msra.mxu1 %v7734_v20  ;;  %v288_v20 = vld [vmem:[%s9611_s6 + $0x40] sm:$0xff] }
  0xae   : > { %7031 = vmatmul.mubr.bf16.gmra.mrb[68].mxu0 %v1436_v23  ;;  %7146 = vmatprep.subr.bf16.mxu1 %v7909_v1  ;;  %v2262_v23 = vrot.slane %v2260_v16, 3 }
  0xaf   : > { %7034 = vmatprep.mubr.msk.bf16.mxu0 %vm7910_vm0, %v7909_v1  ;;  %7103 = vmatpush3.bf16.msra.mxu0 %v7728_v22  ;;  %v2259_v22 = vrot.slane %v2257_v15, 2 }
  0xb0   : > { %7104 = vmatprep.subr.bf16.mxu0 %v7909_v1  ;;  %7075 = vmatmul.mubr.bf16.gmra.mrb[68].mxu1 %v1709_v28  ;;  %v282_v28 = vld [vmem:[%s9611_s6 + $0x10] sm:$0xff] }
  0xb1   : > { %7078 = vmatprep.mubr.msk.bf16.mxu1 %vm7910_vm0, %v7909_v1  ;;  %7147 = vmatpush3.bf16.msra.mxu1 %v7738_v24  ;;  %v7755_v24 = vld [vmem:[%s8003_s22 + $0x30] sm:$0xff]   ;;  %v2263_v29 = vor.u32 %v2262_v23, %v2259_v22 }
  0xb2   : > { %7148 = vmatprep.subr.bf16.mxu1 %v7909_v1  ;;  %2825 = vperm.xlu0 %7629, %v286_v13   ;;  %v2266_v30 = vshrl.u32 %v7755_v24, 16  ;;  %v2269_v31 = vshll.u32 %v7755_v24, 16 }
  0xb3   : > { %7105 = vmatpush3.bf16.msra.mxu0 %v7732_v27  ;;  %v290_v27 = vld [vmem:[%s9611_s6 + $0x50] sm:$0xff]  ;;  %2805 = vperm.xlu1 %7630, %v282_v28  }
  0xb4   : > { %7178 = vmatprep.subr.bf16.mxu0 %v7909_v1  ;;  %v2268_v38 = vrot.slane %v2266_v30, 2  ;;  %v2271_v39 = vrot.slane %v2269_v31, 3 }
  0xb5   : > { %7149 = vmatpush3.bf16.msra.mxu1 %v7739_v32  ;;  %v1967_v32 = vsel %vm1700_vm4, %v1964_v11, %v1966_v25 }
  0xb6   : > { %7035 = vmatmul.mubr.bf16.gmra.mrb[72].mxu0 %v1445_v33  ;;  %7222 = vmatprep.subr.bf16.mxu1 %v7909_v1  ;;  %v7751_v33 = vld [vmem:[%s8003_s22 + $0x30] sm:$0xff]   ;;  %v2272_v44 = vor.u32 %v2271_v39, %v2268_v38 }
  0xb7   : > { %7038 = vmatprep.mubr.msk.bf16.mxu0 %vm7910_vm0, %v7909_v1  ;;  %2835 = vperm.xlu0 %7629, %v288_v20   ;;  %v1968_v41 = vrot.slane %v7751_v33, 2 }
  0xb8   : > { %7079 = vmatmul.mubr.bf16.gmra.mrb[72].mxu1 %v1711_v34  ;;  %v7756_v34 = vld [vmem:[%s9606_s1 + $0x230] sm:$0xff]   ;;  %v2273_v50 = vsel %vm2220_vm5, %v2263_v29, %v2272_v44 }
  0xb9   : > { %7082 = vmatprep.mubr.msk.bf16.mxu1 %vm7910_vm0, %v7909_v1  ;;  %v1969_v47 = vsel %vm1700_vm4, %v1966_v25, %v1968_v41 }
  0xbb   : > { %2845 = vperm.xlu0 %7629, %v290_v27   ;;  %v7762_v27 = vld [vmem:[%s8003_s22 + $0x20] sm:$0xff]  }
  0xbe   : > { %7039 = vmatmul.mubr.bf16.gmra.mrb[76].mxu0 %v1454_v37  ;;  %v283_v37 = vld [vmem:[%s9611_s6 + $0x18] sm:$0xff] }
  0xbf   : > { %7042 = vmatprep.mubr.msk.bf16.mxu0 %vm7910_vm0, %v7909_v1  ;;  %2810 = vperm.xlu1 %7630, %v283_v37  }
  0xc0   : > { %7083 = vmatmul.mubr.bf16.gmra.mrb[76].mxu1 %v1713_v36  ;;  %v2264_v36 = vsel %vm2220_vm5, %v2254_v14, %v2263_v29  ;;  %v7761_v14 = vld [vmem:[%s8003_s22 + $0x18] sm:$0xff]  }
  0xc1   : > { %7086 = vmatprep.mubr.msk.bf16.mxu1 %vm7910_vm0, %v7909_v1 }
  0xc3   : > { %2820 = vperm.xlu1 %7630, %v285_v43  }
  0xc6   : > { %7043 = vmatmul.mubr.bf16.gmra.mrb[80].mxu0 %v1453_v35  ;;  %v292_v35 = vld [vmem:[%s9611_s6 + $0x60] sm:$0xf] }
  0xc7   : > { %7106 = vmatprep.mubr.msk.bf16.mxu0 %vm7910_vm0, %v7909_v1  ;;  %2855 = vperm.xlu0 %7629, %v292_v35  }
  0xc8   : > { %7087 = vmatmul.mubr.bf16.gmra.mrb[80].mxu1 %v1712_v17  ;;  %v1965_v17 = vsel %vm1700_vm4, %v1962_v60, %v1964_v11  ;;  %2830 = vperm.xlu1 %7630, %v287_v49  }
  0xc9   : > { %7150 = vmatprep.mubr.msk.bf16.mxu1 %vm7910_vm0, %v7909_v1 }
  0xcc   : > { %2840 = vperm.xlu1 %7630, %v289_v54  }
  0xce   : > { %7107 = vmatmul.mubr.bf16.vlgmr.msra.gmra.mrb[84].mxu0 %v1961_v51  ;;  %v2277_v51 = vrot.slane %v2275_v45, 2 }
  0xcf   : > { %7179 = vmatpush3.bf16.msra.mxu0 %v7737_v52  ;;  %7110 = vmatprep.mubr.msk.bf16.mxu0 %vm7910_vm0, %v7909_v1  ;;  %v2280_v52 = vrot.slane %v2278_v46, 3 }
  0xd0   : > { %7180 = vmatprep.subr.bf16.mxu0 %v7909_v1  ;;  %7151 = vmatmul.mubr.bf16.vlgmr.msra.gmra.mrb[84].mxu1 %v2237_v56  ;;  %v1971_v56 = vsel %vm1700_vm4, %v1968_v41, %v1970_v53 }
  0xd1   : > { %7154 = vmatprep.mubr.msk.bf16.mxu1 %vm7910_vm0, %v7909_v1  ;;  %v2281_v55 = vor.u32 %v2280_v52, %v2277_v51  ;;  %2850 = vperm.xlu1 %7630, %v291_v57  }
  0xd3   : > { %7181 = vmatpush3.bf16.msra.mxu0 %v7741_v61  ;;  %v2282_v58 = vsel %vm2220_vm5, %v2272_v44, %v2281_v55 }
  0xd4   : > { %7182 = vmatprep.subr.bf16.mxu0 %v7909_v1 }
  0xd6   : > { %7111 = vmatmul.mubr.bf16.gmra.mrb[88].mxu0 %v1963_v5 }
  0xd7   : > { %7114 = vmatprep.mubr.msk.bf16.mxu0 %vm7910_vm0, %v7909_v1  ;;  %7183 = vmatpush3.bf16.msra.mxu0 %v7744_v63  ;;  %v7760_v63 = vld [vmem:[%s8003_s22 + $0x10] sm:$0xff]  }
  0xd8   : > { %7184 = vmatprep.subr.bf16.mxu0 %v7909_v1  ;;  %7155 = vmatmul.mubr.bf16.gmra.mrb[88].mxu1 %v2246_v7  ;;  %v2532_v7 = vrot.slane %v7759_v62, 3  ;;  %v2533_v8 = vrot.slane %v7760_v63, 3 }
  0xd9   : > { %7158 = vmatprep.mubr.msk.bf16.mxu1 %vm7910_vm0, %v7909_v1 }
  0xda   : > { %v2534_v13 = vsel %vm2531_vm6, %v2532_v7, %v2533_v8 }
  0xdb   : > { %7185 = vmatpush3.bf16.msra.mxu0 %v7747_v12 }
  0xdc   : > { %7186 = vmatprep.subr.bf16.mxu0 %v7909_v1 }
  0xde   : > { %7115 = vmatmul.mubr.bf16.gmra.mrb[92].mxu0 %v1965_v17 }
  0xdf   : > { %7118 = vmatprep.mubr.msk.bf16.mxu0 %vm7910_vm0, %v7909_v1  ;;  %7187 = vmatpush3.bf16.msra.mxu0 %v7750_v19 }
  0xe0   : > { %7188 = vmatprep.subr.bf16.mxu0 %v7909_v1  ;;  %7159 = vmatmul.mubr.bf16.gmra.mrb[92].mxu1 %v2255_v21  ;;  %v2535_v21 = vrot.slane %v7761_v14, 3 }
  0xe1   : > { %7162 = vmatprep.mubr.msk.bf16.mxu1 %vm7910_vm0, %v7909_v1 }
  0xe3   : > { %7189 = vmatpush3.bf16.msra.mxu0 %v7753_v26  ;;  %v2536_v26 = vsel %vm2531_vm6, %v2533_v8, %v2535_v21 }
  0xe4   : > { %7190 = vmatprep.subr.bf16.mxu0 %v7909_v1 }
  0xe6   : > { %7119 = vmatmul.mubr.bf16.gmra.mrb[96].mxu0 %v1967_v32 }
  0xe7   : > { %7122 = vmatprep.mubr.msk.bf16.mxu0 %vm7910_vm0, %v7909_v1  ;;  %7191 = vmatpush3.bf16.msra.mxu0 %v7756_v34  ;;  %v2537_v34 = vrot.slane %v7762_v27, 3 }
  0xe8   : > { %7192 = vmatprep.subr.bf16.mxu0 %v7909_v1  ;;  %7163 = vmatmul.mubr.bf16.gmra.mrb[96].mxu1 %v2264_v36 }
  0xe9   : > { %7166 = vmatprep.mubr.msk.bf16.mxu1 %vm7910_vm0, %v7909_v1  ;;  %v2538_v39 = vsel %vm2531_vm6, %v2535_v21, %v2537_v34 }
  0xeb   : > { %7193 = vmatpush3.bf16.msra.mxu0 %v7758_v42 }
  0xec   : > { %7266 = vmatprep.subr.bf16.mxu0 %v7909_v1 }
  0xee   : > { %7123 = vmatmul.mubr.bf16.gmra.mrb[100].mxu0 %v1969_v47  ;;  %v2539_v47 = vrot.slane %v7763_v40, 3 }
  0xef   : > { %7126 = vmatprep.mubr.msk.bf16.mxu0 %vm7910_vm0, %v7909_v1 }
  0xf0   : > { %7167 = vmatmul.mubr.bf16.gmra.mrb[100].mxu1 %v2273_v50  ;;  %v2540_v52 = vsel %vm2531_vm6, %v2537_v34, %v2539_v47 }
  0xf1   : > { %7170 = vmatprep.mubr.msk.bf16.mxu1 %vm7910_vm0, %v7909_v1 }
  0xf6   : > { %7127 = vmatmul.mubr.bf16.gmra.mrb[104].mxu0 %v1971_v56 }
  0xf7   : > { %7130 = vmatprep.mubr.msk.bf16.mxu0 %vm7910_vm0, %v7909_v1 }
  0xf8   : > { %7171 = vmatmul.mubr.bf16.gmra.mrb[104].mxu1 %v2282_v58 }
  0xf9   : > { %v444_v59 = vpop.f32.mrb[0].mxu0  ;;  %7174 = vmatprep.mubr.msk.bf16.mxu1 %vm7910_vm0, %v7909_v1 }
  0xfa   : > { %v6844_v60 = vpop.f32.mrb[1].mxu0 }
  0xfb   : > { %v447_v61 = vpop.f32.mrb[2].mxu0  ;;  %v719_v2 = vpop.f32.mrb[0].mxu1 }
  0xfc   : > { %v6845_v0 = vpop.f32.mrb[3].mxu0  ;;  %v8571_v3 = vadd.f32 %v719_v2, %v444_v59  ;;  %v6888_v4 = vpop.f32.mrb[1].mxu1 }
  0xfd   : > { %v722_v5 = vpop.f32.mrb[2].mxu1  ;;  %v7765_v4 = vld [vmem:[%s8003_s22 + $0x38] sm:$0x1f]  }
  0xfe   : > { %7131 = vmatmul.mubr.bf16.gmra.mrb[108].mxu0 %v1970_v53  ;;  %v8573_v6 = vadd.f32 %v722_v5, %v447_v61  ;;  %v6889_v9 = vpop.f32.mrb[3].mxu1  ;;  %v7764_v53 = vld [vmem:[%s8003_s22 + $0x30] sm:$0xff]  }
  0xff   : > { %7194 = vmatprep.mubr.msk.bf16.mxu0 %vm7910_vm0, %v7909_v1  ;;  %v2541_v60 = vrot.slane %v7764_v53, 3 }
 0x100   : > { %7175 = vmatmul.mubr.bf16.gmra.mrb[108].mxu1 %v2281_v55 }
 0x101   : > { %v452_v10 = vpop.f32.mrb[4].mxu0  ;;  %7238 = vmatprep.mubr.msk.bf16.mxu1 %vm7910_vm0, %v7909_v1  ;;  %v2542_v2 = vsel %vm2531_vm6, %v2539_v47, %v2541_v60 }
 0x102   : > { %v6848_v11 = vpop.f32.mrb[5].mxu0 }
 0x103   : > { %v455_v12 = vpop.f32.mrb[6].mxu0  ;;  %v727_v16 = vpop.f32.mrb[4].mxu1 }
 0x104   : > { %v6849_v15 = vpop.f32.mrb[7].mxu0  ;;  %v8581_v17 = vadd.f32 %v727_v16, %v452_v10  ;;  %v6892_v18 = vpop.f32.mrb[5].mxu1 }
 0x105   : > { %v730_v19 = vpop.f32.mrb[6].mxu1 }
 0x106   : > { %7195 = vmatmul.mubr.bf16.vlgmr.msra.gmra.mrb[112].mxu0 %v2534_v13  ;;  %v8583_v20 = vadd.f32 %v730_v19, %v455_v12  ;;  %v6893_v22 = vpop.f32.mrb[7].mxu1  ;;  %v2543_v12 = vrot.slane %v7765_v4, 3 }
 0x107   : > { %7198 = vmatprep.mubr.msk.bf16.mxu0 %vm7910_vm0, %v7909_v1 }
 0x108   : > { %v2544_v18 = vsel %vm2531_vm6, %v2541_v60, %v2543_v12 }
 0x109   : > { %v460_v23 = vpop.f32.mrb[8].mxu0 }
 0x10a   : > { %v6852_v24 = vpop.f32.mrb[9].mxu0 }
 0x10b   : > { %v463_v25 = vpop.f32.mrb[10].mxu0  ;;  %v735_v29 = vpop.f32.mrb[8].mxu1 }
 0x10c   : > { %v6853_v28 = vpop.f32.mrb[11].mxu0  ;;  %v8589_v30 = vadd.f32 %v735_v29, %v460_v23  ;;  %v6896_v31 = vpop.f32.mrb[9].mxu1 }
 0x10d   : > { %v738_v32 = vpop.f32.mrb[10].mxu1 }
 0x10e   : > { %7199 = vmatmul.mubr.bf16.gmra.mrb[116].mxu0 %v2536_v26  ;;  %v8591_v33 = vadd.f32 %v738_v32, %v463_v25  ;;  %v6897_v35 = vpop.f32.mrb[11].mxu1 }
 0x10f   : > { %7202 = vmatprep.mubr.msk.bf16.mxu0 %vm7910_vm0, %v7909_v1 }
 0x111   : > { %v468_v37 = vpop.f32.mrb[12].mxu0 }
 0x112   : > { %v6856_v36 = vpop.f32.mrb[13].mxu0 }
 0x113   : > { %v471_v38 = vpop.f32.mrb[14].mxu0  ;;  %v743_v42 = vpop.f32.mrb[12].mxu1 }
 0x114   : > { %v6857_v41 = vpop.f32.mrb[15].mxu0  ;;  %v8597_v43 = vadd.f32 %v743_v42, %v468_v37  ;;  %v6900_v44 = vpop.f32.mrb[13].mxu1 }
 0x115   : > { %v746_v45 = vpop.f32.mrb[14].mxu1 }
 0x116   : > { %7203 = vmatmul.mubr.bf16.gmra.mrb[120].mxu0 %v2538_v39  ;;  %v8599_v46 = vadd.f32 %v746_v45, %v471_v38  ;;  %v6901_v48 = vpop.f32.mrb[15].mxu1 }
 0x117   : > { %7206 = vmatprep.mubr.msk.bf16.mxu0 %vm7910_vm0, %v7909_v1 }
 0x119   : > { %v476_v49 = vpop.f32.mrb[16].mxu0 }
 0x11a   : > { %v6860_v50 = vpop.f32.mrb[17].mxu0 }
 0x11b   : > { %v479_v51 = vpop.f32.mrb[18].mxu0  ;;  %v751_v55 = vpop.f32.mrb[16].mxu1 }
 0x11c   : > { %v6861_v54 = vpop.f32.mrb[19].mxu0  ;;  %v8605_v56 = vadd.f32 %v751_v55, %v476_v49  ;;  %v6904_v57 = vpop.f32.mrb[17].mxu1 }
 0x11d   : > { %v754_v58 = vpop.f32.mrb[18].mxu1 }
 0x11e   : > { %7207 = vmatmul.mubr.bf16.gmra.mrb[124].mxu0 %v2540_v52  ;;  %v8607_v59 = vadd.f32 %v754_v58, %v479_v51  ;;  %v6905_v61 = vpop.f32.mrb[19].mxu1 }
 0x11f   : > { %7210 = vmatprep.mubr.msk.bf16.mxu0 %vm7910_vm0, %v7909_v1 }
 0x121   : > { %v484_v62 = vpop.f32.mrb[20].mxu0 }
 0x122   : > { %v6864_v63 = vpop.f32.mrb[21].mxu0 }
 0x123   : > { %v487_v0 = vpop.f32.mrb[22].mxu0  ;;  %v759_v7 = vpop.f32.mrb[20].mxu1 }
 0x124   : > { %v6865_v5 = vpop.f32.mrb[23].mxu0  ;;  %v8613_v8 = vadd.f32 %v759_v7, %v484_v62  ;;  %v6908_v9 = vpop.f32.mrb[21].mxu1 }
 0x125   : > { %v762_v10 = vpop.f32.mrb[22].mxu1 }
 0x126   : > { %7211 = vmatmul.mubr.bf16.gmra.mrb[128].mxu0 %v2542_v2  ;;  %v8615_v11 = vadd.f32 %v762_v10, %v487_v0  ;;  %v6909_v13 = vpop.f32.mrb[23].mxu1 }
 0x127   : > { %7214 = vmatprep.mubr.msk.bf16.mxu0 %vm7910_vm0, %v7909_v1 }
 0x129   : > { %v492_v14 = vpop.f32.mrb[24].mxu0 }
 0x12a   : > { %510 = vst [vmem:[#allocation2 + $0x60] sm:$0xf] %v492_v14  ;;  %v6868_v15 = vpop.f32.mrb[25].mxu0 }
 0x12b   : > { %v495_v16 = vpop.f32.mrb[26].mxu0  ;;  %v767_v21 = vpop.f32.mrb[24].mxu1 }
 0x12c   : > { %v6869_v19 = vpop.f32.mrb[27].mxu0  ;;  %v6912_v22 = vpop.f32.mrb[25].mxu1 }
 0x12d   : > { %v770_v23 = vpop.f32.mrb[26].mxu1 }
 0x12e   : > { %7215 = vmatmul.mubr.bf16.gmra.mrb[132].mxu0 %v2544_v18  ;;  %v6913_v24 = vpop.f32.mrb[27].mxu1 }
 0x12f   : > { %7218 = vmatprep.mubr.msk.bf16.mxu0 %vm7910_vm0, %v7909_v1 }
 0x131   : > { %v785_v25 = vld [vmem:[#allocation2 + $0x60] sm:$0xf]  ;;  %v978_v26 = vpop.f32.mrb[28].mxu0 }
 0x132   : > { %v1045_v27 = vadd.f32 %v978_v26, %v8571_v3  ;;  %v798_v28 = vadd.f32 %v785_v25, %v767_v21  ;;  %v6932_v29 = vpop.f32.mrb[29].mxu0 }
 0x133   : > { %v981_v31 = vpop.f32.mrb[30].mxu0  ;;  %v1236_v35 = vpop.f32.mrb[28].mxu1 }
 0x134   : > { %811 = vst [vmem:[#allocation2 + $0x60] sm:$0xf] %v798_v28  ;;  %v1046_v32 = vadd.f32 %v981_v31, %v8573_v6  ;;  %v6933_v34 = vpop.f32.mrb[31].mxu0  ;;  %v8624_v37 = vadd.f32 %v1236_v35, %v1045_v27  ;;  %v6976_v36 = vpop.f32.mrb[29].mxu1  ;;  %v7767_v27 = vld [vmem:[%s9609_s4 + $0x8] sm:$0xff]  }
 0x135   : > { %v1239_v38 = vpop.f32.mrb[30].mxu1 }
 0x136   : > { %7219 = vmatmul.mubr.bf16.gmra.mrb[136].mxu0 %v2543_v12  ;;  %v8626_v39 = vadd.f32 %v1239_v38, %v1046_v32  ;;  %v6977_v40 = vpop.f32.mrb[31].mxu1 }
 0x137   : > { %7282 = vmatprep.mubr.msk.bf16.mxu0 %vm7910_vm0, %v7909_v1 }
 0x139   : > { %v986_v3 = vpop.f32.mrb[32].mxu0 }
 0x13a   : > { %v1047_v41 = vadd.f32 %v986_v3, %v8581_v17  ;;  %v6936_v42 = vpop.f32.mrb[33].mxu0 }
 0x13b   : > { %v989_v44 = vpop.f32.mrb[34].mxu0  ;;  %v1244_v47 = vpop.f32.mrb[32].mxu1 }
 0x13c   : > { %v1048_v6 = vadd.f32 %v989_v44, %v8583_v20  ;;  %v6937_v45 = vpop.f32.mrb[35].mxu0  ;;  %v8632_v48 = vadd.f32 %v1244_v47, %v1047_v41  ;;  %v6980_v49 = vpop.f32.mrb[33].mxu1  ;;  %v7768_v41 = vld [vmem:[%s9609_s4 + $0x10] sm:$0xff]   ;;  %v1044_v44 = vld [vmem:[#allocation2 + $0x60] sm:$0xf] }
 0x13d   : > { %v1247_v50 = vpop.f32.mrb[34].mxu1 }
 0x13e   : > { %v8634_v51 = vadd.f32 %v1247_v50, %v1048_v6  ;;  %v6981_v52 = vpop.f32.mrb[35].mxu1 }
 0x13f   : > { %v7769_v52 = vld [vmem:[%s9609_s4 + $0x18] sm:$0xff]  }
 0x141   : > { %v994_v53 = vpop.f32.mrb[36].mxu0 }
 0x142   : > { %v1049_v54 = vadd.f32 %v994_v53, %v8589_v30  ;;  %v6940_v55 = vpop.f32.mrb[37].mxu0 }
 0x143   : > { %v997_v57 = vpop.f32.mrb[38].mxu0  ;;  %v1252_v60 = vpop.f32.mrb[36].mxu1 }
 0x144   : > { %v1050_v17 = vadd.f32 %v997_v57, %v8591_v33  ;;  %v6941_v58 = vpop.f32.mrb[39].mxu0  ;;  %v8638_v61 = vadd.f32 %v1252_v60, %v1049_v54  ;;  %v6984_v20 = vpop.f32.mrb[37].mxu1  ;;  %v7771_v57 = vld [vmem:[%s9609_s4 + $0x40] sm:$0xff]  }
 0x145   : > { %v1255_v62 = vpop.f32.mrb[38].mxu1  ;;  %7267 = vmatpush3.bf16.msra.mxu0 %v7771_v57 }
 0x146   : > { %v8640_v63 = vadd.f32 %v1255_v62, %v1050_v17  ;;  %v6985_v0 = vpop.f32.mrb[39].mxu1  ;;  %7268 = vmatprep.subr.bf16.mxu0 %v7909_v1 }
 0x149   : > { %v1002_v2 = vpop.f32.mrb[40].mxu0 }
 0x14a   : > { %v1051_v4 = vadd.f32 %v1002_v2, %v8597_v43  ;;  %v6944_v5 = vpop.f32.mrb[41].mxu0 }
 0x14b   : > { %v1005_v7 = vpop.f32.mrb[42].mxu0  ;;  %v1260_v10 = vpop.f32.mrb[40].mxu1 }
 0x14c   : > { %v1052_v30 = vadd.f32 %v1005_v7, %v8599_v46  ;;  %v6945_v9 = vpop.f32.mrb[43].mxu0  ;;  %v8644_v12 = vadd.f32 %v1260_v10, %v1051_v4  ;;  %v6988_v33 = vpop.f32.mrb[41].mxu1  ;;  %v7766_v46 = vld [vmem:[%s9609_s4] sm:$0xff]   ;;  %v7773_v7 = vld [vmem:[%s9609_s4 + $0x48] sm:$0xff]  }
 0x14d   : > { %v1263_v13 = vpop.f32.mrb[42].mxu1  ;;  %7223 = vmatpush3.bf16.msra.mxu1 %v7766_v46  ;;  %7269 = vmatpush3.bf16.msra.mxu0 %v7773_v7 }
 0x14e   : > { %v8646_v14 = vadd.f32 %v1263_v13, %v1052_v30  ;;  %v6989_v15 = vpop.f32.mrb[43].mxu1  ;;  %7224 = vmatprep.subr.bf16.mxu1 %v7909_v1  ;;  %7270 = vmatprep.subr.bf16.mxu0 %v7909_v1 }
 0x14f   : > { %v7770_v15 = vld [vmem:[%s9609_s4 + $0x20] sm:$0xff]  }
 0x151   : > { %v1010_v16 = vpop.f32.mrb[44].mxu0  ;;  %7225 = vmatpush3.bf16.msra.mxu1 %v7767_v27 }
 0x152   : > { %v1053_v18 = vadd.f32 %v1010_v16, %v8605_v56  ;;  %v6948_v19 = vpop.f32.mrb[45].mxu0  ;;  %7226 = vmatprep.subr.bf16.mxu1 %v7909_v1 }
 0x153   : > { %v1013_v21 = vpop.f32.mrb[46].mxu0  ;;  %v1268_v23 = vpop.f32.mrb[44].mxu1 }
 0x154   : > { %v1054_v43 = vadd.f32 %v1013_v21, %v8607_v59  ;;  %v6949_v22 = vpop.f32.mrb[47].mxu0  ;;  %v8653_v24 = vadd.f32 %v1268_v23, %v1053_v18  ;;  %v6992_v25 = vpop.f32.mrb[45].mxu1  ;;  %v7776_v23 = vld [vmem:[%s9609_s4 + $0x58] sm:$0xff]  }
 0x155   : > { %v1271_v26 = vpop.f32.mrb[46].mxu1  ;;  %7227 = vmatpush3.bf16.msra.mxu1 %v7768_v41 }
 0x156   : > { %v8658_v56 = vadd.f32 %v1271_v26, %v1054_v43  ;;  %v6993_v28 = vpop.f32.mrb[47].mxu1  ;;  %7228 = vmatprep.subr.bf16.mxu1 %v7909_v1 }
 0x157   : > { %v7777_v28 = vld [vmem:[%s9609_s4 + $0x60] sm:$0xff]  }
 0x159   : > { %v1018_v59 = vpop.f32.mrb[48].mxu0  ;;  %7229 = vmatpush3.bf16.msra.mxu1 %v7769_v52 }
 0x15a   : > { %v1055_v29 = vadd.f32 %v1018_v59, %v8613_v8  ;;  %v6952_v31 = vpop.f32.mrb[49].mxu0  ;;  %7230 = vmatprep.subr.bf16.mxu1 %v7909_v1 }
 0x15b   : > { %v1021_v32 = vpop.f32.mrb[50].mxu0  ;;  %v1276_v36 = vpop.f32.mrb[48].mxu1 }
 0x15c   : > { %v1056_v34 = vadd.f32 %v1021_v32, %v8615_v11  ;;  %v6953_v35 = vpop.f32.mrb[51].mxu0  ;;  %v8664_v38 = vadd.f32 %v1276_v36, %v1055_v29  ;;  %v6996_v40 = vpop.f32.mrb[49].mxu1  ;;  %v7775_v29 = vld [vmem:[%s9609_s4 + $0x30] sm:$0xff]  }
 0x15d   : > { %v1279_v3 = vpop.f32.mrb[50].mxu1  ;;  %7231 = vmatpush3.bf16.msra.mxu1 %v7770_v15 }
 0x15e   : > { %v8669_v42 = vadd.f32 %v1279_v3, %v1056_v34  ;;  %v6997_v8 = vpop.f32.mrb[51].mxu1  ;;  %7232 = vmatprep.subr.bf16.mxu1 %v7909_v1  ;;  %v7779_v3 = vld [vmem:[%s9609_s4 + $0x68] sm:$0xff]  }
 0x161   : > { %v1026_v6 = vpop.f32.mrb[52].mxu0 }
 0x162   : > { %v1057_v45 = vadd.f32 %v1044_v44, %v1026_v6  ;;  %v6956_v11 = vpop.f32.mrb[53].mxu0 }
 0x163   : > { %v1029_v47 = vpop.f32.mrb[54].mxu0  ;;  %v1284_v50 = vpop.f32.mrb[52].mxu1 }
 0x164   : > { %1070 = vst [vmem:[#allocation2 + $0x60] sm:$0xf] %v1057_v45  ;;  %v6957_v49 = vpop.f32.mrb[55].mxu0  ;;  %v7000_v53 = vpop.f32.mrb[53].mxu1  ;;  %v7781_v45 = vld [vmem:[%s9609_s4 + $0x70] sm:$0xff]  }
 0x165   : > { %v1287_v54 = vpop.f32.mrb[54].mxu1 }
 0x166   : > { %v7001_v55 = vpop.f32.mrb[55].mxu1 }
 0x167   : > { %v7783_v55 = vld [vmem:[%s9609_s4 + $0x78] sm:$0xff]  }
 0x169   : > { %v1544_v17 = vpop.f32.mrb[56].mxu0 }
 0x16a   : > { %v1611_v58 = vadd.f32 %v1544_v17, %v8624_v37  ;;  %v7020_v60 = vpop.f32.mrb[57].mxu0 }
 0x16b   : > { %v1302_v20 = vld [vmem:[#allocation2 + $0x60] sm:$0xf]  ;;  %v1547_v62 = vpop.f32.mrb[58].mxu0  ;;  %v1803_v5 = vpop.f32.mrb[56].mxu1 }
 0x16c   : > { %v1315_v0 = vadd.f32 %v1302_v20, %v1284_v50  ;;  %v1612_v2 = vadd.f32 %v1547_v62, %v8626_v39  ;;  %v7021_v4 = vpop.f32.mrb[59].mxu0  ;;  %v8685_v30 = vadd.f32 %v1803_v5, %v1611_v58  ;;  %v7064_v9 = vpop.f32.mrb[57].mxu1  ;;  %v7774_v39 = vld [vmem:[%s9609_s4 + $0x50] sm:$0xff]  }
 0x16d   : > { %v1806_v37 = vpop.f32.mrb[58].mxu1  ;;  %7271 = vmatpush3.bf16.msra.mxu0 %v7774_v39 }
 0x16e   : > { %1328 = vst [vmem:[#allocation2 + $0x60] sm:$0xf] %v1315_v0  ;;  %v8687_v10 = vadd.f32 %v1806_v37, %v1612_v2  ;;  %v7065_v33 = vpop.f32.mrb[59].mxu1  ;;  %7272 = vmatprep.subr.bf16.mxu0 %v7909_v1 }
 0x171   : > { %v1552_v13 = vpop.f32.mrb[60].mxu0  ;;  %7273 = vmatpush3.bf16.msra.mxu0 %v7776_v23 }
 0x172   : > { %v1613_v16 = vadd.f32 %v1552_v13, %v8632_v48  ;;  %v7024_v18 = vpop.f32.mrb[61].mxu0  ;;  %v7772_v48 = vld [vmem:[%s9609_s4 + $0x28] sm:$0xff]   ;;  %7274 = vmatprep.subr.bf16.mxu0 %v7909_v1 }
 0x173   : > { %v1555_v19 = vpop.f32.mrb[62].mxu0  ;;  %v1811_v22 = vpop.f32.mrb[60].mxu1  ;;  %7233 = vmatpush3.bf16.msra.mxu1 %v7772_v48 }
 0x174   : > { %v1614_v21 = vadd.f32 %v1555_v19, %v8634_v51  ;;  %v7025_v43 = vpop.f32.mrb[63].mxu0  ;;  %v8703_v46 = vadd.f32 %v1811_v22, %v1613_v16  ;;  %v7068_v25 = vpop.f32.mrb[61].mxu1  ;;  %7234 = vmatprep.subr.bf16.mxu1 %v7909_v1 }
 0x175   : > { %v1814_v26 = vpop.f32.mrb[62].mxu1  ;;  %7275 = vmatpush3.bf16.msra.mxu0 %v7777_v28  ;;  %v1610_v48 = vld [vmem:[#allocation2 + $0x60] sm:$0xf] }
 0x176   : > { %v8708_v27 = vadd.f32 %v1814_v26, %v1614_v21  ;;  %v7069_v51 = vpop.f32.mrb[63].mxu1  ;;  %7276 = vmatprep.subr.bf16.mxu0 %v7909_v1 }
 0x177   : > { %7235 = vmatpush3.bf16.msra.mxu1 %v7775_v29 }
 0x178   : > { %7236 = vmatprep.subr.bf16.mxu1 %v7909_v1 }
 0x179   : > { %v1560_v59 = vpop.f32.mrb[64].mxu0  ;;  %7277 = vmatpush3.bf16.msra.mxu0 %v7779_v3 }
 0x17a   : > { %v1615_v31 = vadd.f32 %v1560_v59, %v8638_v61  ;;  %v7028_v32 = vpop.f32.mrb[65].mxu0  ;;  %v7778_v61 = vld [vmem:[%s9609_s4 + $0x38] sm:$0xff]   ;;  %7278 = vmatprep.subr.bf16.mxu0 %v7909_v1 }
 0x17b   : > { %v1563_v34 = vpop.f32.mrb[66].mxu0  ;;  %v1819_v40 = vpop.f32.mrb[64].mxu1  ;;  %7237 = vmatpush3.bf16.msra.mxu1 %v7778_v61 }
 0x17c   : > { %v1616_v35 = vadd.f32 %v1563_v34, %v8640_v63  ;;  %v7029_v36 = vpop.f32.mrb[67].mxu0  ;;  %v8725_v41 = vadd.f32 %v1819_v40, %v1615_v31  ;;  %v7072_v8 = vpop.f32.mrb[65].mxu1  ;;  %7310 = vmatprep.subr.bf16.mxu1 %v7909_v1 }
 0x17d   : > { %v1822_v44 = vpop.f32.mrb[66].mxu1  ;;  %7279 = vmatpush3.bf16.msra.mxu0 %v7781_v45 }
 0x17e   : > { %v8730_v6 = vadd.f32 %v1822_v44, %v1616_v35  ;;  %v7073_v63 = vpop.f32.mrb[67].mxu1  ;;  %7280 = vmatprep.subr.bf16.mxu0 %v7909_v1 }
 0x181   : > { %v1568_v11 = vpop.f32.mrb[68].mxu0  ;;  %7281 = vmatpush3.bf16.msra.mxu0 %v7783_v55 }
 0x182   : > { %v1617_v47 = vadd.f32 %v1568_v11, %v8644_v12  ;;  %v7032_v49 = vpop.f32.mrb[69].mxu0  ;;  %7354 = vmatprep.subr.bf16.mxu0 %v7909_v1 }
 0x183   : > { %v1571_v50 = vpop.f32.mrb[70].mxu0  ;;  %v1827_v54 = vpop.f32.mrb[68].mxu1 }
 0x184   : > { %v1618_v52 = vadd.f32 %v1571_v50, %v8646_v14  ;;  %v7033_v53 = vpop.f32.mrb[71].mxu0  ;;  %v8743_v57 = vadd.f32 %v1827_v54, %v1617_v47  ;;  %v7076_v17 = vpop.f32.mrb[69].mxu1 }
 0x185   : > { %v1830_v58 = vpop.f32.mrb[70].mxu1 }
 0x186   : > { %v8745_v60 = vadd.f32 %v1830_v58, %v1618_v52  ;;  %v7077_v12 = vpop.f32.mrb[71].mxu1 }
 0x189   : > { %v1576_v20 = vpop.f32.mrb[72].mxu0 }
 0x18a   : > { %v1619_v62 = vadd.f32 %v1576_v20, %v8653_v24  ;;  %v7036_v14 = vpop.f32.mrb[73].mxu0 }
 0x18b   : > { %v1579_v0 = vpop.f32.mrb[74].mxu0  ;;  %v1835_v5 = vpop.f32.mrb[72].mxu1 }
 0x18c   : > { %v1620_v2 = vadd.f32 %v1579_v0, %v8658_v56  ;;  %v7037_v4 = vpop.f32.mrb[75].mxu0  ;;  %v8750_v7 = vadd.f32 %v1835_v5, %v1619_v62  ;;  %v7080_v9 = vpop.f32.mrb[73].mxu1 }
 0x18d   : > { %v1838_v37 = vpop.f32.mrb[74].mxu1 }
 0x18e   : > { %v8752_v33 = vadd.f32 %v1838_v37, %v1620_v2  ;;  %v7081_v39 = vpop.f32.mrb[75].mxu1 }
 0x191   : > { %v1584_v13 = vpop.f32.mrb[76].mxu0 }
 0x192   : > { %v1621_v15 = vadd.f32 %v1584_v13, %v8664_v38  ;;  %v7040_v16 = vpop.f32.mrb[77].mxu0 }
 0x193   : > { %v1587_v18 = vpop.f32.mrb[78].mxu0  ;;  %v1843_v21 = vpop.f32.mrb[76].mxu1 }
 0x194   : > { %v1622_v24 = vadd.f32 %v1587_v18, %v8669_v42  ;;  %v7041_v19 = vpop.f32.mrb[79].mxu0  ;;  %v8756_v43 = vadd.f32 %v1843_v21, %v1621_v15  ;;  %v7084_v56 = vpop.f32.mrb[77].mxu1 }
 0x195   : > { %v1846_v22 = vpop.f32.mrb[78].mxu1 }
 0x196   : > { %v8758_v23 = vadd.f32 %v1846_v22, %v1622_v24  ;;  %v7085_v25 = vpop.f32.mrb[79].mxu1 }
 0x199   : > { %v1592_v26 = vpop.f32.mrb[80].mxu0 }
 0x19a   : > { %v1623_v51 = vadd.f32 %v1610_v48, %v1592_v26  ;;  %v7044_v28 = vpop.f32.mrb[81].mxu0 }
 0x19b   : > { %v1595_v59 = vpop.f32.mrb[82].mxu0  ;;  %v1851_v29 = vpop.f32.mrb[80].mxu1 }
 0x19c   : > { %1636 = vst [vmem:[#allocation2 + $0x60] sm:$0xf] %v1623_v51  ;;  %v7045_v38 = vpop.f32.mrb[83].mxu0  ;;  %v7088_v31 = vpop.f32.mrb[81].mxu1 }
 0x19d   : > { %v1854_v32 = vpop.f32.mrb[82].mxu1 }
 0x19e   : > { %v7089_v42 = vpop.f32.mrb[83].mxu1 }
 0x1a1   : > { %v2061_v34 = vpop.f32.mrb[84].mxu0 }
 0x1a2   : > { %v2128_v35 = vadd.f32 %v2061_v34, %v8685_v30  ;;  %v7108_v36 = vpop.f32.mrb[85].mxu0 }
 0x1a3   : > { %v1869_v40 = vld [vmem:[#allocation2 + $0x60] sm:$0xf]  ;;  %v2064_v3 = vpop.f32.mrb[86].mxu0  ;;  %v2372_v63 = vpop.f32.mrb[84].mxu1 }
 0x1a4   : > { %v1882_v8 = vadd.f32 %v1869_v40, %v1851_v29  ;;  %v2129_v61 = vadd.f32 %v2064_v3, %v8687_v10  ;;  %v7109_v44 = vpop.f32.mrb[87].mxu0  ;;  %v8762_v45 = vadd.f32 %v2372_v63, %v2128_v35  ;;  %v7152_v11 = vpop.f32.mrb[85].mxu1 }
 0x1a5   : > { %v2375_v47 = vpop.f32.mrb[86].mxu1 }
 0x1a6   : > { %1895 = vst [vmem:[#allocation2 + $0x60] sm:$0xf] %v1882_v8  ;;  %v8764_v49 = vadd.f32 %v2375_v47, %v2129_v61  ;;  %v7153_v50 = vpop.f32.mrb[87].mxu1 }
 0x1a9   : > { %v2069_v52 = vpop.f32.mrb[88].mxu0 }
 0x1aa   : > { %v2130_v53 = vadd.f32 %v2069_v52, %v8703_v46  ;;  %v7112_v30 = vpop.f32.mrb[89].mxu0 }
 0x1ab   : > { %v2072_v54 = vpop.f32.mrb[90].mxu0  ;;  %v2380_v58 = vpop.f32.mrb[88].mxu1 }
 0x1ac   : > { %v2131_v55 = vadd.f32 %v2072_v54, %v8708_v27  ;;  %v7113_v17 = vpop.f32.mrb[91].mxu0  ;;  %v8768_v10 = vadd.f32 %v2380_v58, %v2130_v53  ;;  %v7156_v12 = vpop.f32.mrb[89].mxu1 }
 0x1ad   : > { %v2383_v20 = vpop.f32.mrb[90].mxu1  ;;  %v2127_v30 = vld [vmem:[#allocation2 + $0x60] sm:$0xf] }
 0x1ae   : > { %v8770_v62 = vadd.f32 %v2383_v20, %v2131_v55  ;;  %v7157_v14 = vpop.f32.mrb[91].mxu1 }
 0x1b1   : > { %v2077_v0 = vpop.f32.mrb[92].mxu0 }
 0x1b2   : > { %v2132_v2 = vadd.f32 %v2077_v0, %v8725_v41  ;;  %v7116_v4 = vpop.f32.mrb[93].mxu0  ;;  %v8799_v0 = vld [vmem:[%s9607_s2] ss:$0 sm:$0xff] }
 0x1b3   : > { %v2080_v5 = vpop.f32.mrb[94].mxu0  ;;  %v2388_v37 = vpop.f32.mrb[92].mxu1 }
 0x1b4   : > { %v2133_v46 = vadd.f32 %v2080_v5, %v8730_v6  ;;  %v7117_v9 = vpop.f32.mrb[95].mxu0  ;;  %v8774_v39 = vadd.f32 %v2388_v37, %v2132_v2  ;;  %v7160_v27 = vpop.f32.mrb[93].mxu1 }
 0x1b5   : > { %v2391_v13 = vpop.f32.mrb[94].mxu1  ;;  %v8805_v9 = vld [vmem:[%s9608_s3] ss:$0 sm:$0xff] }
 0x1b6   : > { %v8776_v15 = vadd.f32 %v2391_v13, %v2133_v46  ;;  %v7161_v16 = vpop.f32.mrb[95].mxu1 }
 0x1b9   : > { %v2085_v18 = vpop.f32.mrb[96].mxu0 }
 0x1ba   : > { %v2134_v24 = vadd.f32 %v2085_v18, %v8743_v57  ;;  %v7120_v19 = vpop.f32.mrb[97].mxu0  ;;  %v8809_v18 = vpop.permute.xlu0 %2795 }
 0x1bb   : > { %v2088_v21 = vpop.f32.mrb[98].mxu0  ;;  %v2396_v22 = vpop.f32.mrb[96].mxu1 }
 0x1bc   : > { %v2135_v41 = vadd.f32 %v2088_v21, %v8745_v60  ;;  %v7121_v56 = vpop.f32.mrb[99].mxu0  ;;  %v8780_v25 = vadd.f32 %v2396_v22, %v2134_v24  ;;  %v7164_v6 = vpop.f32.mrb[97].mxu1 }
 0x1bd   : > { %v2399_v48 = vpop.f32.mrb[98].mxu1 }
 0x1be   : > { %v8782_v26 = vadd.f32 %v2399_v48, %v2135_v41  ;;  %v7165_v51 = vpop.f32.mrb[99].mxu1 }
 0x1bf   : > { %v8816_v51 = vpop.permute.xlu0 %2800 }
 0x1c1   : > { %v2093_v28 = vpop.f32.mrb[100].mxu0 }
 0x1c2   : > { %v2136_v59 = vadd.f32 %v2093_v28, %v8750_v7  ;;  %v7124_v38 = vpop.f32.mrb[101].mxu0 }
 0x1c3   : > { %v2096_v29 = vpop.f32.mrb[102].mxu0  ;;  %v2404_v32 = vpop.f32.mrb[100].mxu1 }
 0x1c4   : > { %v2137_v57 = vadd.f32 %v2096_v29, %v8752_v33  ;;  %v7125_v31 = vpop.f32.mrb[103].mxu0  ;;  %v8786_v42 = vadd.f32 %v2404_v32, %v2136_v59  ;;  %v7168_v60 = vpop.f32.mrb[101].mxu1 }
 0x1c5   : > { %v2407_v34 = vpop.f32.mrb[102].mxu1  ;;  %v8821_v31 = vpop.permute.xlu1 %2805 }
 0x1c6   : > { %v8788_v35 = vadd.f32 %v2407_v34, %v2137_v57  ;;  %v7169_v36 = vpop.f32.mrb[103].mxu1 }
 0x1c9   : > { %v2101_v40 = vpop.f32.mrb[104].mxu0 }
 0x1ca   : > { %v2138_v3 = vadd.f32 %v2101_v40, %v8756_v43  ;;  %v7128_v8 = vpop.f32.mrb[105].mxu0 }
 0x1cb   : > { %v2104_v61 = vpop.f32.mrb[106].mxu0  ;;  %v2412_v63 = vpop.f32.mrb[104].mxu1 }
 0x1cc   : > { %v2139_v7 = vadd.f32 %v2104_v61, %v8758_v23  ;;  %v7129_v44 = vpop.f32.mrb[107].mxu0  ;;  %v8792_v11 = vadd.f32 %v2412_v63, %v2138_v3  ;;  %v7172_v33 = vpop.f32.mrb[105].mxu1 }
 0x1cd   : > { %v2415_v47 = vpop.f32.mrb[106].mxu1 }
 0x1ce   : > { %v8794_v50 = vadd.f32 %v2415_v47, %v2139_v7  ;;  %v7173_v52 = vpop.f32.mrb[107].mxu1  ;;  %v3058_v7 = vld [vmem:[#allocation3 + $0x4] sm:$0xe] }
 0x1d1   : > { %v2109_v53 = vpop.f32.mrb[108].mxu0 }
 0x1d2   : > { %v2140_v54 = vadd.f32 %v2127_v30, %v2109_v53  ;;  %v7132_v55 = vpop.f32.mrb[109].mxu0 }
 0x1d3   : > { %v2112_v17 = vpop.f32.mrb[110].mxu0  ;;  %v2420_v58 = vpop.f32.mrb[108].mxu1 }
 0x1d4   : > { %2153 = vst [vmem:[#allocation2 + $0x60] sm:$0xf] %v2140_v54  ;;  %v7133_v43 = vpop.f32.mrb[111].mxu0  ;;  %v7176_v12 = vpop.f32.mrb[109].mxu1 }
 0x1d5   : > { %v2423_v20 = vpop.f32.mrb[110].mxu1 }
 0x1d6   : > { %v7177_v23 = vpop.f32.mrb[111].mxu1 }
 0x1d9   : > { %v2634_v14 = vpop.f32.mrb[112].mxu0 }
 0x1da   : > { %v2701_v2 = vadd.f32 %v2634_v14, %v8762_v45  ;;  %v7196_v4 = vpop.f32.mrb[113].mxu0  ;;  %v8839_v14 = vpop.permute.xlu1 %2810 }
 0x1db   : > { %v2438_v5 = vld [vmem:[#allocation2 + $0x60] sm:$0xf]  ;;  %v2637_v46 = vpop.f32.mrb[114].mxu0 }
 0x1dc   : > { %v2747_v37 = vadd.f32 %v8799_v0, %v2701_v2  ;;  %v2451_v27 = vadd.f32 %v2438_v5, %v2420_v58  ;;  %v2702_v13 = vadd.f32 %v2637_v46, %v8764_v49  ;;  %v7197_v16 = vpop.f32.mrb[115].mxu0 }
 0x1de   : > { %2464 = vst [vmem:[#allocation2 + $0x60] sm:$0xf] %v2451_v27  ;;  %v2748_v24 = vadd.f32 %v8799_v0, %v2702_v13  ;;  %v2767_v45 = vmul.f32 %v8805_v9, %v2747_v37 }
 0x1e0   : > { %v2768_v19 = vmul.f32 %v8805_v9, %v2748_v24  ;;  %v2780_v21 = vmax.f32 %v2767_v45, 0.0 }
 0x1e1   : > { %v2642_v41 = vpop.f32.mrb[116].mxu0 }
 0x1e2   : > { %v2703_v56 = vadd.f32 %v2642_v41, %v8768_v10  ;;  %v7200_v22 = vpop.f32.mrb[117].mxu0  ;;  %v2781_v6 = vmax.f32 %v2768_v19, 0.0  ;;  %v2858_v48 = vmul.f32 %v8809_v18, %v2780_v21 }
 0x1e3   : > { %v2645_v49 = vpop.f32.mrb[118].mxu0 }
 0x1e4   : > { %v2704_v28 = vadd.f32 %v2645_v49, %v8770_v62  ;;  %v2749_v59 = vadd.f32 %v8799_v0, %v2703_v56  ;;  %v2859_v38 = vmul.f32 %v8816_v51, %v2781_v6  ;;  %v6500_v29 = vpack.c.bf16 %v2858_v48, %v2858_v48  ;;  %v7201_v57 = vpop.f32.mrb[119].mxu0  ;;  %v8848_v56 = vpop.permute.xlu0 %2815 }
 0x1e6   : > { %v2769_v10 = vmul.f32 %v8805_v9, %v2749_v59  ;;  %v6501_v32 = vpack.c.bf16 %v2859_v38, %v2859_v38  ;;  %v2915_v60 = vshrl.u32 %v6500_v29, 16  ;;  %v2918_v34 = vshll.u32 %v6500_v29, 16 }
 0x1e7   : > { %v2750_v36 = vadd.f32 %v8799_v0, %v2704_v28 }
 0x1e8   : > { %v2782_v40 = vmax.f32 %v2769_v10, 0.0  ;;  %v2917_v62 = vrot.slane %v2915_v60, 6  ;;  %v2920_v3 = vrot.slane %v2918_v34, 7  ;;  %v2924_v8 = vshrl.u32 %v6501_v32, 16 }
 0x1e9   : > { %v2927_v44 = vshll.u32 %v6501_v32, 16  ;;  %v2650_v63 = vpop.f32.mrb[120].mxu0  ;;  %v2770_v33 = vmul.f32 %v8805_v9, %v2750_v36 }
 0x1ea   : > { %v2860_v47 = vmul.f32 %v8821_v31, %v2782_v40  ;;  %v2921_v52 = vor.u32 %v2920_v3, %v2917_v62  ;;  %v2926_v53 = vrot.slane %v2924_v8, 6  ;;  %v2705_v30 = vadd.f32 %v2650_v63, %v8774_v39  ;;  %v7204_v54 = vpop.f32.mrb[121].mxu0  ;;  %v8860_v8 = vpop.permute.xlu1 %2820 }
 0x1eb   : > { %v2929_v55 = vrot.slane %v2927_v44, 7  ;;  %v2783_v17 = vmax.f32 %v2770_v33, 0.0  ;;  %v2653_v43 = vpop.f32.mrb[122].mxu0 }
 0x1ec   : > { %v6502_v12 = vpack.c.bf16 %v2860_v47, %v2860_v47  ;;  %v2922_v20 = vrot.slane %v2921_v52, 4  ;;  %v3059_v23 = vsel %vm8825_vm11, %v2921_v52, %v3058_v7  ;;  %v2751_v2 = vadd.f32 %v8799_v0, %v2705_v30  ;;  %v7205_v4 = vpop.f32.mrb[123].mxu0 }
 0x1ed   : > { %v2930_v39 = vor.u32 %v2929_v55, %v2926_v53  ;;  %3060 = vst [vmem:[#allocation3 + $0x4] sm:$0xe] %v3059_v23  ;;  %v2861_v5 = vmul.f32 %v8839_v14, %v2783_v17  ;;  %v2706_v46 = vadd.f32 %v2653_v43, %v8776_v15  ;;  %v8871_v23 = vpop.permute.xlu0 %2825 }
 0x1ee   : > { %v2934_v37 = vshrl.u32 %v6502_v12, 16  ;;  %v2937_v27 = vshll.u32 %v6502_v12, 16  ;;  %v2771_v13 = vmul.f32 %v8805_v9, %v2751_v2 }
 0x1ef   : > { %v2931_v16 = vsel %vm8833_vm12, %v2922_v20, %v2930_v39  ;;  %v6503_v24 = vpack.c.bf16 %v2861_v5, %v2861_v5  ;;  %v2752_v45 = vadd.f32 %v8799_v0, %v2706_v46  ;;  %v2932_v28 = vrot.slane %v2930_v39, 4 }
 0x1f0   : > { %v2936_v19 = vrot.slane %v2934_v37, 6  ;;  %v2939_v21 = vrot.slane %v2937_v27, 7  ;;  %3061 = vst [vmem:[#allocation3 + $0x8] sm:$0xf] %v2931_v16  ;;  %v2784_v41 = vmax.f32 %v2771_v13, 0.0 }
 0x1f1   : > { %v2944_v22 = vshrl.u32 %v6503_v24, 16  ;;  %v2947_v6 = vshll.u32 %v6503_v24, 16  ;;  %v2772_v15 = vmul.f32 %v8805_v9, %v2752_v45  ;;  %v2658_v48 = vpop.f32.mrb[124].mxu0 }
 0x1f2   : > { %v2940_v59 = vor.u32 %v2939_v21, %v2936_v19  ;;  %v2862_v38 = vmul.f32 %v8848_v56, %v2784_v41  ;;  %v2707_v29 = vadd.f32 %v2658_v48, %v8780_v25  ;;  %v7208_v57 = vpop.f32.mrb[125].mxu0 }
 0x1f3   : > { %v2946_v10 = vrot.slane %v2944_v22, 6  ;;  %v2949_v32 = vrot.slane %v2947_v6, 7  ;;  %v2785_v60 = vmax.f32 %v2772_v15, 0.0  ;;  %v2661_v34 = vpop.f32.mrb[126].mxu0  ;;  %v8878_v6 = vpop.permute.xlu1 %2830 }
 0x1f4   : > { %v2941_v36 = vsel %vm8833_vm12, %v2932_v28, %v2940_v59  ;;  %v2942_v40 = vrot.slane %v2940_v59, 4  ;;  %v3081_v62 = vld [vmem:[#allocation3 + $0x4] sm:$0x3]  ;;  %v6504_v3 = vpack.c.bf16 %v2862_v38, %v2862_v38  ;;  %v2753_v7 = vadd.f32 %v8799_v0, %v2707_v29  ;;  %v7209_v44 = vpop.f32.mrb[127].mxu0  ;;  %v7782_v28 = vld [vmem:[%s9609_s4 + $0x80] sm:$0xff]  }
 0x1f5   : > { %3062 = vst [vmem:[#allocation3 + $0xc] sm:$0xf] %v2941_v36  ;;  %v3082_v25 = vsel %vm8852_vm14, 0, %v3081_v62  ;;  %v2950_v63 = vor.u32 %v2949_v32, %v2946_v10  ;;  %v2863_v33 = vmul.f32 %v8860_v8, %v2785_v60  ;;  %v2708_v47 = vadd.f32 %v2661_v34, %v8782_v26 }
 0x1f6   : > { %3083 = vst [vmem:[#allocation3 + $0x4] sm:$0x3] %v3082_v25  ;;  %v2954_v52 = vshrl.u32 %v6504_v3, 16  ;;  %v2957_v53 = vshll.u32 %v6504_v3, 16  ;;  %v2773_v30 = vmul.f32 %v8805_v9, %v2753_v7  ;;  %v7787_v7 = vld [vmem:[%s9609_s4 + $0x88] sm:$0xff]  }
 0x1f7   : > { %v2951_v54 = vsel %vm8833_vm12, %v2942_v40, %v2950_v63  ;;  %v6505_v55 = vpack.c.bf16 %v2863_v33, %v2863_v33  ;;  %v2754_v17 = vadd.f32 %v8799_v0, %v2708_v47  ;;  %v2952_v5 = vrot.slane %v2950_v63, 4  ;;  %v8898_v33 = vpop.permute.xlu0 %2835 }
 0x1f8   : > { %v2956_v43 = vrot.slane %v2954_v52, 6  ;;  %v2959_v12 = vrot.slane %v2957_v53, 7  ;;  %3063 = vst [vmem:[#allocation3 + $0x10] sm:$0xf] %v2951_v54  ;;  %v2786_v20 = vmax.f32 %v2773_v30, 0.0 }
 0x1f9   : > { %v2964_v2 = vshrl.u32 %v6505_v55, 16  ;;  %v2967_v4 = vshll.u32 %v6505_v55, 16  ;;  %v2774_v26 = vmul.f32 %v8805_v9, %v2754_v17  ;;  %v2666_v39 = vpop.f32.mrb[128].mxu0 }
 0x1fa   : > { %v2960_v46 = vor.u32 %v2959_v12, %v2956_v43  ;;  %v2864_v37 = vmul.f32 %v8871_v23, %v2786_v20  ;;  %v2709_v27 = vadd.f32 %v2666_v39, %v8786_v42  ;;  %v7212_v13 = vpop.f32.mrb[129].mxu0 }
 0x1fb   : > { %v2966_v16 = vrot.slane %v2964_v2, 6  ;;  %v2969_v24 = vrot.slane %v2967_v4, 7  ;;  %v2787_v45 = vmax.f32 %v2774_v26, 0.0  ;;  %v2669_v19 = vpop.f32.mrb[130].mxu0 }
 0x1fc   : > { %v2961_v21 = vsel %vm8833_vm12, %v2952_v5, %v2960_v46  ;;  %v2962_v41 = vrot.slane %v2960_v46, 4  ;;  %v6506_v22 = vpack.c.bf16 %v2864_v37, %v2864_v37  ;;  %v2755_v15 = vadd.f32 %v8799_v0, %v2709_v27  ;;  %v7213_v48 = vpop.f32.mrb[131].mxu0  ;;  %v8884_v42 = vld [vmem:[#allocation3 + $0x8] sm:$0xff]   ;;  %v8909_v37 = vpop.permute.xlu1 %2840 }
 0x1fd   : > { %3064 = vst [vmem:[#allocation3 + $0x14] sm:$0xf] %v2961_v21  ;;  %v2970_v59 = vor.u32 %v2969_v24, %v2966_v16  ;;  %v2865_v38 = vmul.f32 %v8878_v6, %v2787_v45  ;;  %v2710_v29 = vadd.f32 %v2669_v19, %v8788_v35  ;;  %v7780_v57 = vld [vmem:[#allocation3] sm:$0xff]   ;;  %v3381_v3 = vshll.u32 %v8884_v42, 16  ;;  %v7789_v46 = vld [vmem:[%s9609_s4 + $0x90] sm:$0xff]  }
 0x1fe   : > { %v2974_v10 = vshrl.u32 %v6506_v22, 16  ;;  %v2977_v32 = vshll.u32 %v6506_v22, 16  ;;  %v2775_v60 = vmul.f32 %v8805_v9, %v2755_v15  ;;  %v7784_v34 = vld [vmem:[#allocation3] sm:$0xff]   ;;  %7239 = vmatmul.mubr.bf16.vlgmr.msra.gmra.mrb[112].mxu1 %v7780_v57  ;;  %v7786_v45 = vld [vmem:[#allocation3 + $0x8] sm:$0xff]  }
 0x1ff   : > { %v2971_v36 = vsel %vm8833_vm12, %v2962_v41, %v2970_v59  ;;  %v6507_v40 = vpack.c.bf16 %v2865_v38, %v2865_v38  ;;  %v2756_v62 = vadd.f32 %v8799_v0, %v2710_v29  ;;  %v2972_v35 = vrot.slane %v2970_v59, 4  ;;  %7311 = vmatpush3.bf16.msra.mxu1 %v7782_v28  ;;  %7242 = vmatprep.mubr.msk.bf16.mxu1 %vm7910_vm0, %v7909_v1  ;;  %v7797_v59 = vld [vmem:[%s9609_s4 + $0xc0] sm:$0xff]  }
 0x200   : > { %3065 = vst [vmem:[#allocation3 + $0x18] sm:$0xf] %v2971_v36  ;;  %v2976_v44 = vrot.slane %v2974_v10, 6  ;;  %v2979_v25 = vrot.slane %v2977_v32, 7  ;;  %v2788_v63 = vmax.f32 %v2775_v60, 0.0  ;;  %v3376_v54 = vshll.u32 %v7784_v34, 16  ;;  %7312 = vmatprep.subr.bf16.mxu1 %v7909_v1 }
 0x201   : > { %v2984_v47 = vshrl.u32 %v6507_v40, 16  ;;  %v2987_v52 = vshll.u32 %v6507_v40, 16  ;;  %v2776_v53 = vmul.f32 %v8805_v9, %v2756_v62  ;;  %v2674_v30 = vpop.f32.mrb[132].mxu0  ;;  %v3374_v20 = vshrl.u32 %v7784_v34, 16  ;;  %v7791_v32 = vld [vmem:[%s9609_s4 + $0x98] sm:$0xff]   ;;  %v7799_v62 = vld [vmem:[%s9609_s4 + $0xc8] sm:$0xff]  }
 0x202   : > { %v8902_v55 = vor.u32 %v2979_v25, %v2976_v44  ;;  %v2866_v17 = vmul.f32 %v8898_v33, %v2788_v63  ;;  %v2711_v43 = vadd.f32 %v2674_v30, %v8792_v11  ;;  %v7216_v12 = vpop.f32.mrb[133].mxu0  ;;  %v3378_v5 = vrot.slane %v3376_v54, 1  ;;  %v2700_v25 = vld [vmem:[#allocation2 + $0x60] sm:$0xf] }
 0x203   : > { %v2986_v2 = vrot.slane %v2984_v47, 6  ;;  %v2989_v4 = vrot.slane %v2987_v52, 7  ;;  %v2789_v26 = vmax.f32 %v2776_v53, 0.0  ;;  %v2677_v39 = vpop.f32.mrb[134].mxu0  ;;  %v3383_v11 = vrot.slane %v3381_v3, 1  ;;  %7313 = vmatpush3.bf16.msra.mxu1 %v7787_v7  ;;  %v8936_v3 = vpop.permute.xlu0 %2845 }
 0x204   : > { %v6508_v27 = vpack.c.bf16 %v2866_v17, %v2866_v17  ;;  %v2757_v13 = vadd.f32 %v8799_v0, %v2711_v43  ;;  %v2712_v16 = vadd.f32 %v2677_v39, %v8794_v50  ;;  %v7217_v24 = vpop.f32.mrb[135].mxu0  ;;  %v8913_v19 = vld [vmem:[#allocation3 + $0x10] sm:$0xff]   ;;  %v3379_v41 = vor.u32 %v3378_v5, %v3374_v20  ;;  %7314 = vmatprep.subr.bf16.mxu1 %v7909_v1  ;;  %v8943_v17 = vpop.permute.xlu1 %2850 }
 0x205   : > { %v2867_v21 = vmul.f32 %v8909_v37, %v2789_v26  ;;  %v2981_v22 = vsel %vm8833_vm12, %v2972_v35, %v8902_v55  ;;  %v2990_v38 = vor.u32 %v2989_v4, %v2986_v2  ;;  %v3389_v10 = vshll.u32 %v8913_v19, 16  ;;  %v7794_v2 = vld [vmem:[%s9609_s4 + $0xa0] sm:$0xff]   ;;  %v7790_v39 = vld [vmem:[#allocation3 + $0x10] sm:$0xff]  }
 0x206   : > { %v2994_v15 = vshrl.u32 %v6508_v27, 16  ;;  %v2997_v48 = vshll.u32 %v6508_v27, 16  ;;  %v2777_v28 = vmul.f32 %v8805_v9, %v2757_v13  ;;  %v2758_v50 = vadd.f32 %v8799_v0, %v2712_v16  ;;  %3066 = vst [vmem:[#allocation3 + $0x1c] sm:$0xf] %v2981_v22  ;;  %7243 = vmatmul.mubr.bf16.gmra.mrb[116].mxu1 %v7786_v45 }
 0x207   : > { %v6509_v29 = vpack.c.bf16 %v2867_v21, %v2867_v21  ;;  %v3384_v57 = vsel %vm574_vm1, %v3379_v41, %v3383_v11  ;;  %7246 = vmatprep.mubr.msk.bf16.mxu1 %vm7910_vm0, %v7909_v1  ;;  %v3385_v63 = vshrl.u32 %v8884_v42, 16  ;;  %7315 = vmatpush3.bf16.msra.mxu1 %v7789_v46  ;;  %v3391_v20 = vrot.slane %v3389_v10, 1  ;;  %v7798_v10 = vld [vmem:[%s9609_s4 + $0xa8] sm:$0xff]  }
 0x208   : > { %v2996_v60 = vrot.slane %v2994_v15, 6  ;;  %v2999_v34 = vrot.slane %v2997_v48, 7  ;;  %v2790_v36 = vmax.f32 %v2777_v28, 0.0  ;;  %v2778_v40 = vmul.f32 %v8805_v9, %v2758_v50  ;;  %7283 = vmatmul.mubr.bf16.vlgmr.msra.gmra.mrb[140].mxu0 %v3384_v57  ;;  %7316 = vmatprep.subr.bf16.mxu1 %v7909_v1 }
 0x209   : > { %v3004_v7 = vshrl.u32 %v6509_v29, 16  ;;  %v3007_v35 = vshll.u32 %v6509_v29, 16  ;;  %v2682_v44 = vpop.f32.mrb[136].mxu0  ;;  %7286 = vmatprep.mubr.msk.bf16.mxu0 %vm7910_vm0, %v7909_v1  ;;  %7355 = vmatpush3.bf16.msra.mxu0 %v7797_v59  ;;  %v2982_v5 = vrot.slane %v8902_v55, 4  ;;  %v2992_v46 = vrot.slane %v2990_v38, 4  ;;  %v7802_v55 = vld [vmem:[%s9609_s4 + $0xd0] sm:$0xff]  }
 0x20a   : > { %v3000_v47 = vor.u32 %v2999_v34, %v2996_v60  ;;  %v2868_v52 = vmul.f32 %v8936_v3, %v2790_v36  ;;  %v2791_v53 = vmax.f32 %v2778_v40, 0.0  ;;  %v2713_v30 = vadd.f32 %v2700_v25, %v2682_v44  ;;  %v7220_v54 = vpop.f32.mrb[137].mxu0  ;;  %7356 = vmatprep.subr.bf16.mxu0 %v7909_v1  ;;  %v7804_v40 = vld [vmem:[%s9609_s4 + $0xd8] sm:$0xff]  }
 0x20b   : > { %v3006_v43 = vrot.slane %v3004_v7, 6  ;;  %v3009_v12 = vrot.slane %v3007_v35, 7  ;;  %v2685_v42 = vpop.f32.mrb[138].mxu0  ;;  %v3387_v16 = vor.u32 %v3385_v63, %v3383_v11  ;;  %7317 = vmatpush3.bf16.msra.mxu1 %v7791_v32  ;;  %v2991_v15 = vsel %vm8833_vm12, %v2982_v5, %v2990_v38  ;;  %v7803_v35 = vld [vmem:[%s9609_s4 + $0xb0] sm:$0xff]   ;;  %v9010_v5 = vpop.permute.xlu0 %2855 }
 0x20c   : > { %v6510_v4 = vpack.c.bf16 %v2868_v52, %v2868_v52  ;;  %v2869_v26 = vmul.f32 %v8943_v17, %v2791_v53  ;;  %2726 = vst [vmem:[#allocation2 + $0x60] sm:$0xf] %v2713_v30  ;;  %v7221_v27 = vpop.f32.mrb[139].mxu0  ;;  %v3002_v45 = vrot.slane %v3000_v47, 4  ;;  %7318 = vmatprep.subr.bf16.mxu1 %v7909_v1  ;;  %v3001_v28 = vsel %vm8833_vm12, %v2992_v46, %v3000_v47  ;;  %v7807_v52 = vld [vmem:[%s9609_s4 + $0xe0] sm:$0xff]   ;;  %v7809_v42 = vld [vmem:[%s9609_s4 + $0xe8] sm:$0xff]  }
 0x20d   : > { %v3010_v13 = vor.u32 %v3009_v12, %v3006_v43  ;;  %v8951_v24 = vld [vmem:[#allocation3 + $0x18] sm:$0xff]   ;;  %7357 = vmatpush3.bf16.msra.mxu0 %v7799_v62  ;;  %v3392_v48 = vsel %vm574_vm1, %v3387_v16, %v3391_v20  ;;  %3067 = vst [vmem:[#allocation3 + $0x20] sm:$0xf] %v2991_v15  ;;  %3068 = vst [vmem:[#allocation3 + $0x24] sm:$0xf] %v3001_v28  ;;  %v3393_v62 = vshrl.u32 %v8913_v19, 16 }
 0x20e   : > { %v3014_v21 = vshrl.u32 %v6510_v4, 16  ;;  %v3017_v41 = vshll.u32 %v6510_v4, 16  ;;  %v6511_v22 = vpack.c.bf16 %v2869_v26, %v2869_v26  ;;  %7247 = vmatmul.mubr.bf16.gmra.mrb[120].mxu1 %v7790_v39  ;;  %v3397_v11 = vshll.u32 %v8951_v24, 16  ;;  %7358 = vmatprep.subr.bf16.mxu0 %v7909_v1  ;;  %v7793_v19 = vld [vmem:[#allocation3 + $0x18] sm:$0xff]  }
 0x20f   : > { %v3011_v50 = vsel %vm8833_vm12, %v3002_v45, %v3010_v13  ;;  %7250 = vmatprep.mubr.msk.bf16.mxu1 %vm7910_vm0, %v7909_v1  ;;  %7319 = vmatpush3.bf16.msra.mxu1 %v7794_v2  ;;  %v3012_v36 = vrot.slane %v3010_v13, 4  ;;  %v3395_v53 = vor.u32 %v3393_v62, %v3391_v20  ;;  %v7808_v2 = vld [vmem:[%s9609_s4 + $0xb8] sm:$0xff]   ;;  %v3401_v4 = vshrl.u32 %v8951_v24, 16  ;;  %v7812_v13 = vld [vmem:[%s9609_s4 + $0xf0] sm:$0xff]  }
 0x210   : > { %v3016_v59 = vrot.slane %v3014_v21, 6  ;;  %v3019_v38 = vrot.slane %v3017_v41, 7  ;;  %v3024_v29 = vshrl.u32 %v6511_v22, 16  ;;  %v3027_v57 = vshll.u32 %v6511_v22, 16  ;;  %7287 = vmatmul.mubr.bf16.gmra.mrb[144].mxu0 %v3392_v48  ;;  %3069 = vst [vmem:[#allocation3 + $0x28] sm:$0xf] %v3011_v50  ;;  %7320 = vmatprep.subr.bf16.mxu1 %v7909_v1 }
 0x211   : > { %7290 = vmatprep.mubr.msk.bf16.mxu0 %vm7910_vm0, %v7909_v1  ;;  %7359 = vmatpush3.bf16.msra.mxu0 %v7802_v55  ;;  %v3399_v7 = vrot.slane %v3397_v11, 1  ;;  %v7814_v22 = vld [vmem:[%s9609_s4 + $0xf8] sm:$0xff]  }
 0x212   : > { %v3020_v32 = vor.u32 %v3019_v38, %v3016_v59  ;;  %v3026_v60 = vrot.slane %v3024_v29, 6  ;;  %v3029_v34 = vrot.slane %v3027_v57, 7  ;;  %7360 = vmatprep.subr.bf16.mxu0 %v7909_v1 }
 0x213   : > { %v2739_v44 = vld [vmem:[#allocation2 + $0x60] sm:$0xf]  ;;  %7321 = vmatpush3.bf16.msra.mxu1 %v7798_v10  ;;  %v3400_v43 = vsel %vm574_vm1, %v3395_v53, %v3399_v7  ;;  %v3403_v46 = vor.u32 %v3401_v4, %v3399_v7  ;;  %v7816_v4 = vld [vmem:[#allocation3 + $0xc] sm:$0xff]  }
 0x214   : > { %v3021_v25 = vsel %vm8833_vm12, %v3012_v36, %v3020_v32  ;;  %v3022_v63 = vrot.slane %v3020_v32, 4  ;;  %v8984_v47 = vor.u32 %v3029_v34, %v3026_v60  ;;  %v2759_v30 = vadd.f32 %v8799_v0, %v2739_v44  ;;  %7322 = vmatprep.subr.bf16.mxu1 %v7909_v1  ;;  %v7795_v12 = vld [vmem:[#allocation3 + $0x20] sm:$0xff]   ;;  %v3075_v34 = vld [vmem:[#allocation3 + $0x34] sm:$0xf] }
 0x215   : > { %3070 = vst [vmem:[#allocation3 + $0x2c] sm:$0xf] %v3021_v25  ;;  %7361 = vmatpush3.bf16.msra.mxu0 %v7804_v40  ;;  %v3405_v20 = vshll.u32 %v7795_v12, 16  ;;  %v7796_v27 = vld [vmem:[#allocation3 + $0x20] sm:$0xff]   ;;  %v3409_v15 = vshrl.u32 %v7795_v12, 16 }
 0x216   : > { %v3031_v54 = vsel %vm8833_vm12, %v3022_v63, %v8984_v47  ;;  %7251 = vmatmul.mubr.bf16.gmra.mrb[124].mxu1 %v7793_v19  ;;  %7362 = vmatprep.subr.bf16.mxu0 %v7909_v1  ;;  %v2779_v0 = vmul.f32 %v8805_v9, %v2759_v30  ;;  %v3032_v10 = vrot.slane %v8984_v47, 4  ;;  %v7810_v25 = vld [vmem:[#allocation3] sm:$0xfe]   ;;  %v7811_v63 = vld [vmem:[#allocation3 + $0x8] sm:$0xff]   ;;  %v7813_v30 = vld [vmem:[%s9609_s4 + $0x100] sm:$0xff]  }
 0x217   : > { %3071 = vst [vmem:[#allocation3 + $0x30] sm:$0xf] %v3031_v54  ;;  %7254 = vmatprep.mubr.msk.bf16.mxu1 %vm7910_vm0, %v7909_v1  ;;  %7323 = vmatpush3.bf16.msra.mxu1 %v7803_v35  ;;  %v3407_v26 = vrot.slane %v3405_v20, 1  ;;  %v3673_v53 = vrot.slane %v7810_v25, 1  ;;  %v3674_v19 = vrot.slane %v7811_v63, 1  ;;  %v7839_v63 = vld [vmem:[%s9609_s4 + $0x168] sm:$0xff]  }
 0x218   : > { %7291 = vmatmul.mubr.bf16.gmra.mrb[148].mxu0 %v3400_v43  ;;  %7324 = vmatprep.subr.bf16.mxu1 %v7909_v1  ;;  %v2792_v39 = vmax.f32 %v2779_v0, 0.0 }
 0x219   : > { %7294 = vmatprep.mubr.msk.bf16.mxu0 %vm7910_vm0, %v7909_v1  ;;  %7363 = vmatpush3.bf16.msra.mxu0 %v7807_v52  ;;  %v3408_v24 = vsel %vm574_vm1, %v3403_v46, %v3407_v26  ;;  %v3411_v28 = vor.u32 %v3409_v15, %v3407_v26  ;;  %v3675_v20 = vsel %vm875_vm2, %v3673_v53, %v3674_v19  ;;  %v7818_v26 = vld [vmem:[%s9609_s4 + $0x108] sm:$0xff]   ;;  %v3932_v46 = vrot.slane %v7816_v4, 1  ;;  %v7841_v4 = vld [vmem:[#allocation3 + $0xc] sm:$0xff]  }
 0x21a   : > { %7364 = vmatprep.subr.bf16.mxu0 %v7909_v1  ;;  %v2870_v16 = vmul.f32 %v9010_v5, %v2792_v39  ;;  %v7830_v15 = vld [vmem:[%s9609_s4 + $0x148] sm:$0xff]  }
 0x21b   : > { %7325 = vmatpush3.bf16.msra.mxu1 %v7808_v2  ;;  %v7817_v2 = vld [vmem:[#allocation3 + $0x10] sm:$0xff]  }
 0x21c   : > { %v7800_v9 = vld [vmem:[#allocation3 + $0x28] sm:$0xff]   ;;  %7398 = vmatprep.subr.bf16.mxu1 %v7909_v1  ;;  %v6512_v21 = vpack.c.bf16 %v2870_v16, %v2870_v16  ;;  %v7821_v16 = vld [vmem:[#allocation3 + $0x18] sm:$0xff]  }
 0x21d   : > { %7365 = vmatpush3.bf16.msra.mxu0 %v7809_v42  ;;  %v3413_v45 = vshll.u32 %v7800_v9, 16  ;;  %v7801_v50 = vld [vmem:[#allocation3 + $0x28] sm:$0xff]   ;;  %v3417_v36 = vshrl.u32 %v7800_v9, 16  ;;  %v3676_v9 = vrot.slane %v7817_v2, 1 }
 0x21e   : > { %7255 = vmatmul.mubr.bf16.gmra.mrb[128].mxu1 %v7796_v27  ;;  %7366 = vmatprep.subr.bf16.mxu0 %v7909_v1  ;;  %v7805_v41 = vld [vmem:[#allocation3 + $0x30] ss:$0 sps:$4 sm:$0x77]   ;;  %v3034_v48 = vshrl.u32 %v6512_v21, 16  ;;  %v3037_v11 = vshll.u32 %v6512_v21, 16  ;;  %v7820_v27 = vld [vmem:[%s9609_s4 + $0x110] sm:$0xff]  }
 0x21f   : > { %7258 = vmatprep.mubr.msk.bf16.mxu1 %vm7910_vm0, %v7909_v1  ;;  %v3415_v55 = vrot.slane %v3413_v45, 1  ;;  %v3421_v57 = vshll.u32 %v7805_v41, 16  ;;  %v7806_v44 = vld [vmem:[#allocation3 + $0x30] ss:$0 sps:$4 sm:$0x33]   ;;  %v3425_v43 = vshrl.u32 %v7805_v41, 16 }
 0x220   : > { %7295 = vmatmul.mubr.bf16.gmra.mrb[152].mxu0 %v3408_v24  ;;  %v3036_v59 = vrot.slane %v3034_v48, 6  ;;  %v3039_v38 = vrot.slane %v3037_v11, 7  ;;  %v7815_v42 = vld [vmem:[#allocation3 + $0x4] sm:$0xfe]   ;;  %v7828_v24 = vld [vmem:[%s9609_s4 + $0x140] sm:$0xff]   ;;  %v7822_v41 = vld [vmem:[%s9609_s4 + $0x118] sm:$0xff]  }
 0x221   : > { %7298 = vmatprep.mubr.msk.bf16.mxu0 %vm7910_vm0, %v7909_v1  ;;  %7367 = vmatpush3.bf16.msra.mxu0 %v7812_v13  ;;  %v3416_v29 = vsel %vm574_vm1, %v3411_v28, %v3415_v55  ;;  %v3419_v7 = vor.u32 %v3417_v36, %v3415_v55  ;;  %v3423_v35 = vrot.slane %v3421_v57, 1  ;;  %v3931_v39 = vrot.slane %v7815_v42, 1  ;;  %v7819_v21 = vld [vmem:[#allocation3 + $0x14] sm:$0xff]   ;;  %v7833_v11 = vld [vmem:[%s9609_s4 + $0x150] sm:$0xff]  }
 0x222   : > { %7368 = vmatprep.subr.bf16.mxu0 %v7909_v1  ;;  %v3040_v32 = vor.u32 %v3039_v38, %v3036_v59  ;;  %v3677_v13 = vsel %vm875_vm2, %v3674_v19, %v3676_v9  ;;  %v3934_v55 = vrot.slane %v7819_v21, 1  ;;  %v7825_v48 = vld [vmem:[%s9609_s4 + $0x120] sm:$0xff]   ;;  %v7832_v19 = vld [vmem:[#allocation3 + $0x30] ss:$0 sps:$4 sm:$0x77]  }
 0x223   : > { %v3424_v47 = vsel %vm574_vm1, %v3419_v7, %v3423_v35  ;;  %v3427_v0 = vor.u32 %v3425_v43, %v3423_v35  ;;  %v3933_v45 = vsel %vm875_vm2, %v3931_v39, %v3932_v46  ;;  %v7823_v38 = vld [vmem:[#allocation3 + $0x1c] sm:$0xff]   ;;  %v7826_v35 = vld [vmem:[#allocation3 + $0x24] sm:$0xff]   ;;  %v7831_v43 = vld [vmem:[#allocation3 + $0x2c] sm:$0xff]  }
 0x224   : > { %v3041_v40 = vsel %vm8833_vm12, %v3032_v10, %v3040_v32  ;;  %v3935_v59 = vsel %vm875_vm2, %v3932_v46, %v3934_v55  ;;  %v7835_v10 = vld [vmem:[%s9609_s4 + $0x158] sm:$0xff]   ;;  %v3936_v32 = vrot.slane %v7823_v38, 1  ;;  %v7840_v42 = vld [vmem:[#allocation3 + $0x4] sm:$0xfe]  }
 0x225   : > { %7369 = vmatpush3.bf16.msra.mxu0 %v7814_v22  ;;  %v3076_v62 = vsel %vm9030_vm8, %v3041_v40, %v3075_v34  ;;  %v3678_v22 = vrot.slane %v7821_v16, 1  ;;  %v7834_v34 = vld [vmem:[%s9609_s4 + $0x130] sm:$0xff]   ;;  %v4190_v39 = vshrl.u32 %v7840_v42, 16  ;;  %v4193_v46 = vshll.u32 %v7840_v42, 16 }
 0x226   : > { %7259 = vmatmul.mubr.bf16.gmra.mrb[132].mxu1 %v7801_v50  ;;  %7442 = vmatprep.subr.bf16.mxu0 %v7909_v1  ;;  %3077 = vst [vmem:[#allocation3 + $0x34] sm:$0xf] %v3076_v62  ;;  %v7824_v50 = vld [vmem:[#allocation3 + $0x20] sm:$0xff]   ;;  %v7827_v40 = vld [vmem:[#allocation3 + $0x28] sm:$0xff]   ;;  %v7837_v62 = vld [vmem:[%s9609_s4 + $0x160] sm:$0xff]   ;;  %v3937_v7 = vsel %vm875_vm2, %v3934_v55, %v3936_v32 }
 0x227   : > { %7262 = vmatprep.mubr.msk.bf16.mxu1 %vm7910_vm0, %v7909_v1  ;;  %v3679_v28 = vsel %vm875_vm2, %v3676_v9, %v3678_v22  ;;  %v3680_v57 = vrot.slane %v7824_v50, 1  ;;  %v3682_v25 = vrot.slane %v7827_v40, 1  ;;  %v7843_v50 = vld [vmem:[%s9609_s4 + $0x180] sm:$0xff]  }
 0x228   : > { %7299 = vmatmul.mubr.bf16.gmra.mrb[156].mxu0 %v3416_v29  ;;  %v7829_v29 = vld [vmem:[%s9609_s4 + $0x128] sm:$0xff]  }
 0x229   : > { %7302 = vmatprep.mubr.msk.bf16.mxu0 %vm7910_vm0, %v7909_v1  ;;  %v3681_v36 = vsel %vm875_vm2, %v3678_v22, %v3680_v57  ;;  %v3683_v53 = vsel %vm875_vm2, %v3680_v57, %v3682_v25  ;;  %v7847_v22 = vld [vmem:[#allocation3 + $0x14] sm:$0xff]   ;;  %v7851_v57 = vld [vmem:[#allocation3 + $0x1c] sm:$0xff]  }
 0x22a   : > { %v4216_v40 = vshrl.u32 %v7851_v57, 16 }
 0x22d   : > { %v3087_v54 = vld [vmem:[#allocation3 + $0x34] sm:$0x8]  ;;  %v7836_v9 = vld [vmem:[#allocation3 + $0x34] ss:$0 sps:$4 sm:$0x77]  }
 0x22e   : > { %7263 = vmatmul.mubr.bf16.gmra.mrb[136].mxu1 %v7806_v44  ;;  %v3088_v12 = vsel %vm9047_vm13, 0, %v3087_v54  ;;  %v7838_v44 = vld [vmem:[%s9609_s4 + $0x138] sm:$0xff]   ;;  %v3942_v16 = vrot.slane %v7836_v9, 1 }
 0x22f   : > { %7326 = vmatprep.mubr.msk.bf16.mxu1 %vm7910_vm0, %v7909_v1  ;;  %3089 = vst [vmem:[#allocation3 + $0x34] sm:$0x8] %v3088_v12  ;;  %v3684_v12 = vrot.slane %v7832_v19, 1  ;;  %v7858_v19 = vld [vmem:[%s9609_s4 + $0x1c0] sm:$0xff]  }
 0x230   : > { %7303 = vmatmul.mubr.bf16.gmra.mrb[160].mxu0 %v3424_v47  ;;  %v3938_v47 = vrot.slane %v7826_v35, 1 }
 0x231   : > { %7306 = vmatprep.mubr.msk.bf16.mxu0 %vm7910_vm0, %v7909_v1  ;;  %v3685_v2 = vsel %vm875_vm2, %v3682_v25, %v3684_v12 }
 0x232   : > { %v3939_v54 = vsel %vm875_vm2, %v3936_v32, %v3938_v47  ;;  %v7848_v32 = vld [vmem:[%s9609_s4 + $0x188] sm:$0xff]  }
 0x236   : > { %7327 = vmatmul.mubr.bf16.vlgmr.msra.gmra.mrb[140].mxu1 %v3675_v20  ;;  %v3940_v20 = vrot.slane %v7831_v43, 1  ;;  %v7852_v43 = vld [vmem:[%s9609_s4 + $0x198] sm:$0xff]  }
 0x237   : > { %7399 = vmatpush3.bf16.msra.mxu1 %v7813_v30  ;;  %7330 = vmatprep.mubr.msk.bf16.mxu1 %vm7910_vm0, %v7909_v1  ;;  %v7842_v30 = vld [vmem:[%s9609_s4 + $0x170] sm:$0xff]  }
 0x238   : > { %7307 = vmatmul.mubr.bf16.gmra.mrb[164].mxu0 %v3427_v0  ;;  %7400 = vmatprep.subr.bf16.mxu1 %v7909_v1  ;;  %v7844_v0 = vld [vmem:[%s9609_s4 + $0x178] sm:$0xff]  }
 0x239   : > { %7370 = vmatprep.mubr.msk.bf16.mxu0 %vm7910_vm0, %v7909_v1 }
 0x23b   : > { %7401 = vmatpush3.bf16.msra.mxu1 %v7818_v26  ;;  %v3941_v26 = vsel %vm875_vm2, %v3938_v47, %v3940_v20 }
 0x23c   : > { %7402 = vmatprep.subr.bf16.mxu1 %v7909_v1 }
 0x23e   : > { %7331 = vmatmul.mubr.bf16.gmra.mrb[144].mxu1 %v3677_v13  ;;  %v4201_v13 = vshll.u32 %v7841_v4, 16 }
 0x23f   : > { %7334 = vmatprep.mubr.msk.bf16.mxu1 %vm7910_vm0, %v7909_v1  ;;  %7403 = vmatpush3.bf16.msra.mxu1 %v7820_v27  ;;  %v4198_v27 = vshrl.u32 %v7841_v4, 16  ;;  %v7855_v4 = vld [vmem:[%s9609_s4 + $0x1a0] sm:$0xff]  }
 0x240   : > { %7371 = vmatmul.mubr.bf16.vlgmr.msra.gmra.mrb[168].mxu0 %v3933_v45  ;;  %7404 = vmatprep.subr.bf16.mxu1 %v7909_v1  ;;  %v4195_v45 = vrot.slane %v4193_v46, 2  ;;  %v7857_v46 = vld [vmem:[#allocation3 + $0x2c] sm:$0xff]  }
 0x241   : > { %7374 = vmatprep.mubr.msk.bf16.mxu0 %vm7910_vm0, %v7909_v1  ;;  %7443 = vmatpush3.bf16.msra.mxu0 %v7828_v24  ;;  %v4192_v24 = vrot.slane %v4190_v39, 1  ;;  %v4200_v21 = vrot.slane %v4198_v27, 1  ;;  %v7863_v27 = vld [vmem:[%s9609_s4 + $0x1d0] sm:$0xff]  }
 0x242   : > { %7444 = vmatprep.subr.bf16.mxu0 %v7909_v1 }
 0x243   : > { %7405 = vmatpush3.bf16.msra.mxu1 %v7822_v41  ;;  %v4203_v41 = vrot.slane %v4201_v13, 2  ;;  %v4196_v55 = vor.u32 %v4195_v45, %v4192_v24  ;;  %v7859_v24 = vld [vmem:[%s9609_s4 + $0x1a8] sm:$0xff]  }
 0x244   : > { %7406 = vmatprep.subr.bf16.mxu1 %v7909_v1 }
 0x245   : > { %7445 = vmatpush3.bf16.msra.mxu0 %v7830_v15  ;;  %v3943_v15 = vsel %vm875_vm2, %v3940_v20, %v3942_v16 }
 0x246   : > { %7335 = vmatmul.mubr.bf16.gmra.mrb[148].mxu1 %v3679_v28  ;;  %7446 = vmatprep.subr.bf16.mxu0 %v7909_v1  ;;  %v4210_v28 = vshll.u32 %v7847_v22, 16 }
 0x247   : > { %7338 = vmatprep.mubr.msk.bf16.mxu1 %vm7910_vm0, %v7909_v1  ;;  %7407 = vmatpush3.bf16.msra.mxu1 %v7825_v48  ;;  %v4204_v48 = vor.u32 %v4203_v41, %v4200_v21  ;;  %v4234_v21 = vshrl.u32 %v7857_v46, 16  ;;  %v4237_v41 = vshll.u32 %v7857_v46, 16 }
 0x248   : > { %7375 = vmatmul.mubr.bf16.gmra.mrb[172].mxu0 %v3935_v59  ;;  %7408 = vmatprep.subr.bf16.mxu1 %v7909_v1 }
 0x249   : > { %7378 = vmatprep.mubr.msk.bf16.mxu0 %vm7910_vm0, %v7909_v1  ;;  %7447 = vmatpush3.bf16.msra.mxu0 %v7833_v11  ;;  %v4207_v11 = vshrl.u32 %v7847_v22, 16  ;;  %v4205_v59 = vsel %vm1392_vm3, %v4196_v55, %v4204_v48  ;;  %v7865_v22 = vld [vmem:[%s9609_s4 + $0x1d8] sm:$0xff]   ;;  %v7864_v55 = vld [vmem:[%s9609_s4 + $0x1b0] sm:$0xff]  }
 0x24a   : > { %7448 = vmatprep.subr.bf16.mxu0 %v7909_v1 }
 0x24b   : > { %7409 = vmatpush3.bf16.msra.mxu1 %v7829_v29  ;;  %v4209_v38 = vrot.slane %v4207_v11, 1  ;;  %v4212_v29 = vrot.slane %v4210_v28, 2  ;;  %v4236_v11 = vrot.slane %v4234_v21, 1  ;;  %v4239_v28 = vrot.slane %v4237_v41, 2 }
 0x24c   : > { %7410 = vmatprep.subr.bf16.mxu1 %v7909_v1 }
 0x24d   : > { %7449 = vmatpush3.bf16.msra.mxu0 %v7835_v10  ;;  %v7846_v10 = vld [vmem:[#allocation3 + $0xc] sm:$0xff]  }
 0x24e   : > { %7339 = vmatmul.mubr.bf16.gmra.mrb[152].mxu1 %v3681_v36  ;;  %7450 = vmatprep.subr.bf16.mxu0 %v7909_v1  ;;  %v4213_v36 = vor.u32 %v4212_v29, %v4209_v38  ;;  %v7856_v29 = vld [vmem:[#allocation3 + $0x24] sm:$0xff]  }
 0x24f   : > { %7342 = vmatprep.mubr.msk.bf16.mxu1 %vm7910_vm0, %v7909_v1  ;;  %7411 = vmatpush3.bf16.msra.mxu1 %v7834_v34  ;;  %v7845_v34 = vld [vmem:[#allocation3 + $0x4] sm:$0xfc]  }
 0x250   : > { %7379 = vmatmul.mubr.bf16.gmra.mrb[176].mxu0 %v3937_v7  ;;  %7412 = vmatprep.subr.bf16.mxu1 %v7909_v1  ;;  %v4497_v7 = vrot.slane %v7846_v10, 2  ;;  %v4496_v35 = vrot.slane %v7845_v34, 2  ;;  %v4214_v25 = vsel %vm1392_vm3, %v4204_v48, %v4213_v36  ;;  %v4240_v10 = vor.u32 %v4239_v28, %v4236_v11 }
 0x251   : > { %7382 = vmatprep.mubr.msk.bf16.mxu0 %vm7910_vm0, %v7909_v1  ;;  %7451 = vmatpush3.bf16.msra.mxu0 %v7837_v62  ;;  %v4219_v62 = vshll.u32 %v7851_v57, 16  ;;  %v7868_v57 = vld [vmem:[%s9609_s4 + $0x1b8] sm:$0xff]  }
 0x252   : > { %7452 = vmatprep.subr.bf16.mxu0 %v7909_v1 }
 0x253   : > { %7413 = vmatpush3.bf16.msra.mxu1 %v7838_v44  ;;  %v7850_v44 = vld [vmem:[%s9609_s4 + $0x190] sm:$0xff]   ;;  %v4221_v47 = vrot.slane %v4219_v62, 2 }
 0x254   : > { %7486 = vmatprep.subr.bf16.mxu1 %v7909_v1 }
 0x255   : > { %7453 = vmatpush3.bf16.msra.mxu0 %v7839_v63  ;;  %v4218_v63 = vrot.slane %v4216_v40, 1  ;;  %v4503_v40 = vrot.slane %v7856_v29, 2  ;;  %v7880_v29 = vld [vmem:[%s9609_s4 + $0x210] sm:$0xff]  }
 0x256   : > { %7343 = vmatmul.mubr.bf16.gmra.mrb[156].mxu1 %v3683_v53  ;;  %7454 = vmatprep.subr.bf16.mxu0 %v7909_v1  ;;  %v7854_v53 = vld [vmem:[#allocation3 + $0x24] sm:$0xff]  }
 0x257   : > { %7346 = vmatprep.mubr.msk.bf16.mxu1 %vm7910_vm0, %v7909_v1  ;;  %v4228_v20 = vshll.u32 %v7854_v53, 16 }
 0x258   : > { %7383 = vmatmul.mubr.bf16.gmra.mrb[180].mxu0 %v3939_v54  ;;  %v7849_v54 = vld [vmem:[#allocation3 + $0x14] sm:$0xff]  }
 0x259   : > { %7386 = vmatprep.mubr.msk.bf16.mxu0 %vm7910_vm0, %v7909_v1  ;;  %7455 = vmatpush3.bf16.msra.mxu0 %v7842_v30  ;;  %v4498_v30 = vsel %vm1700_vm4, %v4496_v35, %v4497_v7  ;;  %v4499_v42 = vrot.slane %v7849_v54, 2  ;;  %v4230_v39 = vrot.slane %v4228_v20, 2 }
 0x25a   : > { %7456 = vmatprep.subr.bf16.mxu0 %v7909_v1 }
 0x25b   : > { %v4500_v13 = vsel %vm1700_vm4, %v4497_v7, %v4499_v42 }
 0x25d   : > { %7457 = vmatpush3.bf16.msra.mxu0 %v7844_v0  ;;  %v4225_v0 = vshrl.u32 %v7854_v53, 16  ;;  %v7874_v53 = vld [vmem:[%s9609_s4 + $0x1f8] sm:$0xff]  }
 0x25e   : > { %7347 = vmatmul.mubr.bf16.gmra.mrb[160].mxu1 %v3685_v2  ;;  %7530 = vmatprep.subr.bf16.mxu0 %v7909_v1  ;;  %v7860_v2 = vld [vmem:[%s9609_s4 + $0x1c8] sm:$0xff]  }
 0x25f   : > { %7350 = vmatprep.mubr.msk.bf16.mxu1 %vm7910_vm0, %v7909_v1  ;;  %v4227_v9 = vrot.slane %v4225_v0, 1  ;;  %v7871_v0 = vld [vmem:[#allocation3 + $0x10] sm:$0xff]  }
 0x260   : > { %7387 = vmatmul.mubr.bf16.gmra.mrb[184].mxu0 %v3941_v26 }
 0x261   : > { %7390 = vmatprep.mubr.msk.bf16.mxu0 %vm7910_vm0, %v7909_v1  ;;  %v4231_v45 = vor.u32 %v4230_v39, %v4227_v9 }
 0x263   : > { %v4241_v62 = vsel %vm1392_vm3, %v4231_v45, %v4240_v10 }
 0x266   : > { %7351 = vmatmul.mubr.bf16.gmra.mrb[164].mxu1 %v3684_v12  ;;  %v4222_v12 = vor.u32 %v4221_v47, %v4218_v63  ;;  %v7861_v63 = vld [vmem:[#allocation3 + $0x2c] sm:$0xff]  }
 0x267   : > { %7414 = vmatprep.mubr.msk.bf16.mxu1 %vm7910_vm0, %v7909_v1 }
 0x268   : > { %7391 = vmatmul.mubr.bf16.gmra.mrb[188].mxu0 %v3943_v15  ;;  %v4223_v26 = vsel %vm1392_vm3, %v4213_v36, %v4222_v12  ;;  %v4232_v48 = vsel %vm1392_vm3, %v4222_v12, %v4231_v45  ;;  %v7869_v36 = vld [vmem:[%s9609_s4 + $0x1e8] sm:$0xff]   ;;  %v7877_v45 = vld [vmem:[#allocation3 + $0x18] sm:$0xff]  }
 0x269   : > { %7394 = vmatprep.mubr.msk.bf16.mxu0 %vm7910_vm0, %v7909_v1  ;;  %v4757_v11 = vrot.slane %v7877_v45, 2 }
 0x26e   : > { %7415 = vmatmul.mubr.bf16.vlgmr.msra.gmra.mrb[168].mxu1 %v4205_v59  ;;  %v7867_v59 = vld [vmem:[%s9609_s4 + $0x1e0] sm:$0xff]  }
 0x26f   : > { %7487 = vmatpush3.bf16.msra.mxu1 %v7843_v50  ;;  %7418 = vmatprep.mubr.msk.bf16.mxu1 %vm7910_vm0, %v7909_v1  ;;  %v7862_v50 = vld [vmem:[#allocation3 + $0x34] ss:$0 sps:$4 sm:$0xff]  }
 0x270   : > { %7395 = vmatmul.mubr.bf16.gmra.mrb[192].mxu0 %v3942_v16  ;;  %7488 = vmatprep.subr.bf16.mxu1 %v7909_v1  ;;  %v7853_v16 = vld [vmem:[#allocation3 + $0x1c] sm:$0xff]   ;;  %v4246_v34 = vshll.u32 %v7862_v50, 16 }
 0x271   : > { %7458 = vmatprep.mubr.msk.bf16.mxu0 %vm7910_vm0, %v7909_v1  ;;  %v4501_v15 = vrot.slane %v7853_v16, 2 }
 0x272   : > { %v4248_v35 = vrot.slane %v4246_v34, 2 }
 0x273   : > { %7489 = vmatpush3.bf16.msra.mxu1 %v7848_v32  ;;  %v4502_v38 = vsel %vm1700_vm4, %v4499_v42, %v4501_v15  ;;  %v4243_v32 = vshrl.u32 %v7862_v50, 16  ;;  %v7870_v42 = vld [vmem:[#allocation3 + $0x8] sm:$0xfc]  }
 0x274   : > { %7490 = vmatprep.subr.bf16.mxu1 %v7909_v1  ;;  %v4754_v46 = vrot.slane %v7870_v42, 2 }
 0x275   : > { %v4245_v7 = vrot.slane %v4243_v32, 1 }
 0x276   : > { %7419 = vmatmul.mubr.bf16.gmra.mrb[172].mxu1 %v4214_v25  ;;  %v4504_v25 = vsel %vm1700_vm4, %v4501_v15, %v4503_v40  ;;  %v7878_v15 = vld [vmem:[%s9609_s4 + $0x208] sm:$0xff]  }
 0x277   : > { %7422 = vmatprep.mubr.msk.bf16.mxu1 %vm7910_vm0, %v7909_v1  ;;  %7491 = vmatpush3.bf16.msra.mxu1 %v7850_v44  ;;  %v7872_v44 = vld [vmem:[%s9609_s4 + $0x1f0] sm:$0xff]   ;;  %v4249_v47 = vor.u32 %v4248_v35, %v4245_v7 }
 0x278   : > { %7459 = vmatmul.mubr.bf16.vlgmr.msra.gmra.mrb[196].mxu0 %v4498_v30  ;;  %7492 = vmatprep.subr.bf16.mxu1 %v7909_v1 }
 0x279   : > { %7462 = vmatprep.mubr.msk.bf16.mxu0 %vm7910_vm0, %v7909_v1  ;;  %7531 = vmatpush3.bf16.msra.mxu0 %v7858_v19  ;;  %v4505_v19 = vrot.slane %v7861_v63, 2  ;;  %v4250_v30 = vsel %vm1392_vm3, %v4240_v10, %v4249_v47  ;;  %v7881_v10 = vld [vmem:[#allocation3 + $0x20] sm:$0xff]   ;;  %v7885_v63 = vld [vmem:[%s9609_s4 + $0x220] sm:$0xff]  }
 0x27a   : > { %7532 = vmatprep.subr.bf16.mxu0 %v7909_v1  ;;  %v4759_v7 = vrot.slane %v7881_v10, 2 }
 0x27b   : > { %7493 = vmatpush3.bf16.msra.mxu1 %v7852_v43  ;;  %v4506_v54 = vsel %vm1700_vm4, %v4503_v40, %v4505_v19  ;;  %v7866_v43 = vld [vmem:[#allocation3 + $0x34] ss:$0 sps:$4 sm:$0xff]   ;;  %v7883_v40 = vld [vmem:[#allocation3 + $0x20] sm:$0xff]  }
 0x27c   : > { %7494 = vmatprep.subr.bf16.mxu1 %v7909_v1  ;;  %v4507_v12 = vrot.slane %v7866_v43, 2  ;;  %v7886_v43 = vld [vmem:[#allocation3 + $0x28] sm:$0xff]  }
 0x27d   : > { %7533 = vmatpush3.bf16.msra.mxu0 %v7860_v2  ;;  %v7876_v2 = vld [vmem:[#allocation3 + $0x10] sm:$0xff]   ;;  %v5054_v42 = vshll.u32 %v7886_v43, 16 }
 0x27e   : > { %7423 = vmatmul.mubr.bf16.gmra.mrb[176].mxu1 %v4223_v26  ;;  %7534 = vmatprep.subr.bf16.mxu0 %v7909_v1  ;;  %v4508_v20 = vsel %vm1700_vm4, %v4505_v19, %v4507_v12  ;;  %v4755_v26 = vrot.slane %v7871_v0, 2  ;;  %v5024_v9 = vshrl.u32 %v7876_v2, 16  ;;  %v5027_v39 = vshll.u32 %v7876_v2, 16 }
 0x27f   : > { %7426 = vmatprep.mubr.msk.bf16.mxu1 %vm7910_vm0, %v7909_v1  ;;  %7495 = vmatpush3.bf16.msra.mxu1 %v7855_v4  ;;  %v7875_v4 = vld [vmem:[#allocation3 + $0x8] sm:$0xfc]   ;;  %v5051_v2 = vshrl.u32 %v7886_v43, 16 }
 0x280   : > { %7463 = vmatmul.mubr.bf16.gmra.mrb[200].mxu0 %v4500_v13  ;;  %7496 = vmatprep.subr.bf16.mxu1 %v7909_v1  ;;  %v5016_v13 = vshrl.u32 %v7875_v4, 16  ;;  %v5019_v16 = vshll.u32 %v7875_v4, 16  ;;  %v5026_v21 = vrot.slane %v5024_v9, 2  ;;  %v5029_v41 = vrot.slane %v5027_v39, 3  ;;  %v7891_v4 = vld [vmem:[%s9609_s4 + $0x230] sm:$0xff]   ;;  %v7887_v9 = vld [vmem:[#allocation3 + $0x30] sm:$0xff]  }
 0x281   : > { %7466 = vmatprep.mubr.msk.bf16.mxu0 %vm7910_vm0, %v7909_v1  ;;  %7535 = vmatpush3.bf16.msra.mxu0 %v7863_v27  ;;  %v7873_v27 = vld [vmem:[%s9609_s4 + $0x200] sm:$0xff]  }
 0x282   : > { %7536 = vmatprep.subr.bf16.mxu0 %v7909_v1  ;;  %v5030_v28 = vor.u32 %v5029_v41, %v5026_v21 }
 0x283   : > { %7497 = vmatpush3.bf16.msra.mxu1 %v7859_v24  ;;  %v4756_v24 = vsel %vm1700_vm4, %v4754_v46, %v4755_v26  ;;  %v5053_v46 = vrot.slane %v5051_v2, 2 }
 0x284   : > { %7498 = vmatprep.subr.bf16.mxu1 %v7909_v1 }
 0x285   : > { %7537 = vmatpush3.bf16.msra.mxu0 %v7865_v22  ;;  %v7879_v22 = vld [vmem:[#allocation3 + $0x18] sm:$0xff]  }
 0x286   : > { %7427 = vmatmul.mubr.bf16.gmra.mrb[180].mxu1 %v4232_v48  ;;  %7538 = vmatprep.subr.bf16.mxu0 %v7909_v1  ;;  %v5021_v48 = vrot.slane %v5019_v16, 3  ;;  %v5033_v50 = vshrl.u32 %v7879_v22, 16  ;;  %v7893_v16 = vld [vmem:[%s9609_s4 + $0x238] sm:$0xff]  }
 0x287   : > { %7430 = vmatprep.mubr.msk.bf16.mxu1 %vm7910_vm0, %v7909_v1  ;;  %7499 = vmatpush3.bf16.msra.mxu1 %v7864_v55  ;;  %v5018_v55 = vrot.slane %v5016_v13, 2  ;;  %v7889_v13 = vld [vmem:[#allocation3 + $0x30] sm:$0xff]  }
 0x288   : > { %7467 = vmatmul.mubr.bf16.gmra.mrb[204].mxu0 %v4502_v38  ;;  %7500 = vmatprep.subr.bf16.mxu1 %v7909_v1  ;;  %v5035_v34 = vrot.slane %v5033_v50, 2  ;;  %v5060_v21 = vshrl.u32 %v7889_v13, 16  ;;  %v5063_v41 = vshll.u32 %v7889_v13, 16 }
 0x289   : > { %7470 = vmatprep.mubr.msk.bf16.mxu0 %vm7910_vm0, %v7909_v1  ;;  %7539 = vmatpush3.bf16.msra.mxu0 %v7867_v59  ;;  %v5036_v59 = vshll.u32 %v7879_v22, 16  ;;  %v5022_v38 = vor.u32 %v5021_v48, %v5018_v55 }
 0x28a   : > { %7540 = vmatprep.subr.bf16.mxu0 %v7909_v1  ;;  %v5062_v48 = vrot.slane %v5060_v21, 2 }
 0x28b   : > { %7501 = vmatpush3.bf16.msra.mxu1 %v7868_v57  ;;  %v4758_v57 = vsel %vm1700_vm4, %v4755_v26, %v4757_v11  ;;  %v5031_v32 = vsel %vm2220_vm5, %v5022_v38, %v5030_v28 }
 0x28c   : > { %7574 = vmatprep.subr.bf16.mxu1 %v7909_v1 }
 0x28d   : > { %7541 = vmatpush3.bf16.msra.mxu0 %v7869_v36  ;;  %v5038_v36 = vrot.slane %v5036_v59, 3 }
 0x28e   : > { %7431 = vmatmul.mubr.bf16.gmra.mrb[184].mxu1 %v4241_v62  ;;  %7542 = vmatprep.subr.bf16.mxu0 %v7909_v1  ;;  %v7882_v62 = vld [vmem:[%s9609_s4 + $0x218] sm:$0xff]  }
 0x28f   : > { %7434 = vmatprep.mubr.msk.bf16.mxu1 %vm7910_vm0, %v7909_v1  ;;  %v5039_v35 = vor.u32 %v5038_v36, %v5035_v34 }
 0x290   : > { %7471 = vmatmul.mubr.bf16.gmra.mrb[208].mxu0 %v4504_v25  ;;  %v5045_v25 = vshll.u32 %v7883_v40, 16 }
 0x291   : > { %7474 = vmatprep.mubr.msk.bf16.mxu0 %vm7910_vm0, %v7909_v1  ;;  %7543 = vmatpush3.bf16.msra.mxu0 %v7872_v44  ;;  %v5042_v44 = vshrl.u32 %v7883_v40, 16  ;;  %v5040_v19 = vsel %vm2220_vm5, %v5030_v28, %v5039_v35  ;;  %v7892_v28 = vld [vmem:[#allocation3 + $0x38] sm:$0x1f]  }
 0x292   : > { %7544 = vmatprep.subr.bf16.mxu0 %v7909_v1  ;;  %v5069_v38 = vshrl.u32 %v7892_v28, 16 }
 0x295   : > { %7545 = vmatpush3.bf16.msra.mxu0 %v7874_v53  ;;  %v7884_v53 = vld [vmem:[#allocation3 + $0x28] sm:$0xff]  }
 0x296   : > { %7435 = vmatmul.mubr.bf16.gmra.mrb[188].mxu1 %v4250_v30  ;;  %v5044_v30 = vrot.slane %v5042_v44, 2  ;;  %v4761_v0 = vrot.slane %v7884_v53, 2  ;;  %v7895_v44 = vld [vmem:[#allocation3 + $0x10] sm:$0xff]  }
 0x297   : > { %7438 = vmatprep.mubr.msk.bf16.mxu1 %vm7910_vm0, %v7909_v1  ;;  %v5326_v53 = vrot.slane %v7895_v44, 3 }
 0x298   : > { %7475 = vmatmul.mubr.bf16.gmra.mrb[212].mxu0 %v4506_v54  ;;  %v5047_v54 = vrot.slane %v5045_v25, 3  ;;  %v4762_v26 = vsel %vm1700_vm4, %v4759_v7, %v4761_v0 }
 0x299   : > { %7478 = vmatprep.mubr.msk.bf16.mxu0 %vm7910_vm0, %v7909_v1 }
 0x29e   : > { %7439 = vmatmul.mubr.bf16.gmra.mrb[192].mxu1 %v4249_v47  ;;  %v4760_v47 = vsel %vm1700_vm4, %v4757_v11, %v4759_v7  ;;  %v5065_v11 = vrot.slane %v5063_v41, 3 }
 0x29f   : > { %7502 = vmatprep.mubr.msk.bf16.mxu1 %vm7910_vm0, %v7909_v1 }
 0x2a0   : > { %7479 = vmatmul.mubr.bf16.gmra.mrb[216].mxu0 %v4508_v20  ;;  %v5048_v20 = vor.u32 %v5047_v54, %v5044_v30  ;;  %v5066_v59 = vor.u32 %v5065_v11, %v5062_v48  ;;  %v7897_v48 = vld [vmem:[#allocation3 + $0x20] sm:$0xff]  }
 0x2a1   : > { %7482 = vmatprep.mubr.msk.bf16.mxu0 %vm7910_vm0, %v7909_v1 }
 0x2a2   : > { %v5049_v39 = vsel %vm2220_vm5, %v5039_v35, %v5048_v20 }
 0x2a6   : > { %7503 = vmatmul.mubr.bf16.vlgmr.msra.gmra.mrb[196].mxu1 %v4756_v24  ;;  %v4763_v24 = vrot.slane %v7887_v9, 2  ;;  %v7896_v9 = vld [vmem:[#allocation3 + $0x18] sm:$0xff]  }
 0x2a7   : > { %7575 = vmatpush3.bf16.msra.mxu1 %v7873_v27  ;;  %7506 = vmatprep.mubr.msk.bf16.mxu1 %vm7910_vm0, %v7909_v1  ;;  %v5056_v27 = vrot.slane %v5054_v42, 3 }
 0x2a8   : > { %7483 = vmatmul.mubr.bf16.gmra.mrb[220].mxu0 %v4507_v12  ;;  %7576 = vmatprep.subr.bf16.mxu1 %v7909_v1  ;;  %v7888_v12 = vld [vmem:[%s9609_s4 + $0x228] sm:$0xff]   ;;  %v4764_v22 = vsel %vm1700_vm4, %v4761_v0, %v4763_v24 }
 0x2a9   : > { %7546 = vmatprep.mubr.msk.bf16.mxu0 %vm7910_vm0, %v7909_v1  ;;  %v5057_v45 = vor.u32 %v5056_v27, %v5053_v46  ;;  %v5328_v46 = vrot.slane %v7896_v9, 3 }
 0x2ab   : > { %7577 = vmatpush3.bf16.msra.mxu1 %v7878_v15  ;;  %v7890_v15 = vld [vmem:[#allocation3 + $0x38] ss:$0 sps:$4 sm:$0xff]   ;;  %v5058_v55 = vsel %vm2220_vm5, %v5048_v20, %v5057_v45  ;;  %v5067_v10 = vsel %vm2220_vm5, %v5057_v45, %v5066_v59 }
 0x2ac   : > { %7578 = vmatprep.subr.bf16.mxu1 %v7909_v1  ;;  %v4765_v50 = vrot.slane %v7890_v15, 2 }
 0x2ae   : > { %7507 = vmatmul.mubr.bf16.gmra.mrb[200].mxu1 %v4758_v57  ;;  %v4766_v57 = vsel %vm1700_vm4, %v4763_v24, %v4765_v50 }
 0x2af   : > { %7510 = vmatprep.mubr.msk.bf16.mxu1 %vm7910_vm0, %v7909_v1  ;;  %7579 = vmatpush3.bf16.msra.mxu1 %v7880_v29  ;;  %v5072_v29 = vshll.u32 %v7892_v28, 16  ;;  %v5330_v28 = vrot.slane %v7897_v48, 3 }
 0x2b0   : > { %7547 = vmatmul.mubr.bf16.vlgmr.msra.gmra.mrb[224].mxu0 %v5031_v32  ;;  %7580 = vmatprep.subr.bf16.mxu1 %v7909_v1  ;;  %v5071_v32 = vrot.slane %v5069_v38, 2 }
 0x2b1   : > { %7550 = vmatprep.mubr.msk.bf16.mxu0 %vm7910_vm0, %v7909_v1  ;;  %v5074_v34 = vrot.slane %v5072_v29, 3 }
 0x2b3   : > { %7581 = vmatpush3.bf16.msra.mxu1 %v7882_v62  ;;  %v5075_v62 = vor.u32 %v5074_v34, %v5071_v32 }
 0x2b4   : > { %7582 = vmatprep.subr.bf16.mxu1 %v7909_v1 }
 0x2b5   : > { %v5076_v25 = vsel %vm2220_vm5, %v5066_v59, %v5075_v62 }
 0x2b6   : > { %7511 = vmatmul.mubr.bf16.gmra.mrb[204].mxu1 %v4760_v47 }
 0x2b7   : > { %7514 = vmatprep.mubr.msk.bf16.mxu1 %vm7910_vm0, %v7909_v1  ;;  %7583 = vmatpush3.bf16.msra.mxu1 %v7885_v63  ;;  %v7894_v63 = vld [vmem:[#allocation3 + $0x8] sm:$0xf8]  }
 0x2b8   : > { %7551 = vmatmul.mubr.bf16.gmra.mrb[228].mxu0 %v5040_v19  ;;  %7584 = vmatprep.subr.bf16.mxu1 %v7909_v1  ;;  %v5325_v0 = vrot.slane %v7894_v63, 3 }
 0x2b9   : > { %7554 = vmatprep.mubr.msk.bf16.mxu0 %vm7910_vm0, %v7909_v1 }
 0x2bb   : > { %7585 = vmatpush3.bf16.msra.mxu1 %v7888_v12 }
 0x2bc   : > { %7586 = vmatprep.subr.bf16.mxu1 %v7909_v1 }
 0x2be   : > { %7515 = vmatmul.mubr.bf16.gmra.mrb[208].mxu1 %v4762_v26  ;;  %v5327_v26 = vsel %vm2531_vm6, %v5325_v0, %v5326_v53 }
 0x2bf   : > { %7518 = vmatprep.mubr.msk.bf16.mxu1 %vm7910_vm0, %v7909_v1  ;;  %7587 = vmatpush3.bf16.msra.mxu1 %v7891_v4 }
 0x2c0   : > { %7555 = vmatmul.mubr.bf16.gmra.mrb[232].mxu0 %v5049_v39  ;;  %7588 = vmatprep.subr.bf16.mxu1 %v7909_v1 }
 0x2c1   : > { %7558 = vmatprep.mubr.msk.bf16.mxu0 %vm7910_vm0, %v7909_v1 }
 0x2c3   : > { %7589 = vmatpush3.bf16.msra.mxu1 %v7893_v16 }
 0x2c6   : > { %7519 = vmatmul.mubr.bf16.gmra.mrb[212].mxu1 %v4764_v22 }
 0x2c7   : > { %7522 = vmatprep.mubr.msk.bf16.mxu1 %vm7910_vm0, %v7909_v1 }
 0x2c8   : > { %7559 = vmatmul.mubr.bf16.gmra.mrb[236].mxu0 %v5058_v55  ;;  %v5329_v55 = vsel %vm2531_vm6, %v5326_v53, %v5328_v46 }
 0x2c9   : > { %7562 = vmatprep.mubr.msk.bf16.mxu0 %vm7910_vm0, %v7909_v1 }
 0x2ce   : > { %7523 = vmatmul.mubr.bf16.gmra.mrb[216].mxu1 %v4766_v57 }
 0x2cf   : > { %7526 = vmatprep.mubr.msk.bf16.mxu1 %vm7910_vm0, %v7909_v1 }
 0x2d0   : > { %7563 = vmatmul.mubr.bf16.gmra.mrb[240].mxu0 %v5067_v10 }
 0x2d1   : > { %7566 = vmatprep.mubr.msk.bf16.mxu0 %vm7910_vm0, %v7909_v1  ;;  %v3243_v36 = vpop.f32.mrb[112].mxu1 }
 0x2d2   : > { %v7240_v40 = vpop.f32.mrb[113].mxu1 }
 0x2d3   : > { %v3246_v7 = vpop.f32.mrb[114].mxu1  ;;  %v5331_v40 = vsel %vm2531_vm6, %v5328_v46, %v5330_v28 }
 0x2d4   : > { %v7241_v35 = vpop.f32.mrb[115].mxu1 }
 0x2d6   : > { %7527 = vmatmul.mubr.bf16.gmra.mrb[220].mxu1 %v4765_v50 }
 0x2d7   : > { %7590 = vmatprep.mubr.msk.bf16.mxu1 %vm7910_vm0, %v7909_v1 }
 0x2d8   : > { %7567 = vmatmul.mubr.bf16.gmra.mrb[244].mxu0 %v5076_v25 }
 0x2d9   : > { %7570 = vmatprep.mubr.msk.bf16.mxu0 %vm7910_vm0, %v7909_v1  ;;  %v3251_v47 = vpop.f32.mrb[116].mxu1 }
 0x2da   : > { %v7244_v30 = vpop.f32.mrb[117].mxu1 }
 0x2db   : > { %v3517_v19 = vpop.f32.mrb[140].mxu0  ;;  %v3254_v12 = vpop.f32.mrb[118].mxu1 }
 0x2dc   : > { %v9331_v54 = vadd.f32 %v3517_v19, %v3243_v36  ;;  %v7284_v43 = vpop.f32.mrb[141].mxu0  ;;  %v7245_v2 = vpop.f32.mrb[119].mxu1 }
 0x2dd   : > { %v3520_v20 = vpop.f32.mrb[142].mxu0 }
 0x2de   : > { %v9333_v42 = vadd.f32 %v3520_v20, %v3246_v7  ;;  %v7285_v4 = vpop.f32.mrb[143].mxu0  ;;  %7591 = vmatmul.mubr.bf16.vlgmr.msra.gmra.mrb[224].mxu1 %v5327_v26  ;;  %v7899_v20 = vld [vmem:[#allocation3 + $0x30] sm:$0xff]  }
 0x2df   : > { %7594 = vmatprep.mubr.msk.bf16.mxu1 %vm7910_vm0, %v7909_v1  ;;  %v5334_v4 = vrot.slane %v7899_v20, 3 }
 0x2e0   : > { %7571 = vmatmul.mubr.bf16.gmra.mrb[248].mxu0 %v5075_v62  ;;  %v7898_v62 = vld [vmem:[#allocation3 + $0x28] sm:$0xff]  }
 0x2e1   : > { %v3259_v39 = vpop.f32.mrb[120].mxu1  ;;  %v5332_v35 = vrot.slane %v7898_v62, 3 }
 0x2e2   : > { %v7248_v13 = vpop.f32.mrb[121].mxu1 }
 0x2e3   : > { %v3525_v27 = vpop.f32.mrb[144].mxu0  ;;  %v3262_v45 = vpop.f32.mrb[122].mxu1  ;;  %v5333_v0 = vsel %vm2531_vm6, %v5330_v28, %v5332_v35 }
 0x2e4   : > { %v9338_v16 = vadd.f32 %v3525_v27, %v3251_v47  ;;  %v7288_v24 = vpop.f32.mrb[145].mxu0  ;;  %v7249_v41 = vpop.f32.mrb[123].mxu1 }
 0x2e5   : > { %v3528_v21 = vpop.f32.mrb[146].mxu0  ;;  %v5335_v41 = vsel %vm2531_vm6, %v5332_v35, %v5334_v4 }
 0x2e6   : > { %v9340_v22 = vadd.f32 %v3528_v21, %v3254_v12  ;;  %v7289_v15 = vpop.f32.mrb[147].mxu0  ;;  %7595 = vmatmul.mubr.bf16.gmra.mrb[228].mxu1 %v5329_v55 }
 0x2e7   : > { %7598 = vmatprep.mubr.msk.bf16.mxu1 %vm7910_vm0, %v7909_v1  ;;  %v7900_v15 = vld [vmem:[#allocation3 + $0x38] sm:$0x1f]  }
 0x2e8   : > { %v5336_v48 = vrot.slane %v7900_v15, 3 }
 0x2e9   : > { %v3267_v11 = vpop.f32.mrb[124].mxu1 }
 0x2ea   : > { %v7252_v59 = vpop.f32.mrb[125].mxu1 }
 0x2eb   : > { %v3533_v50 = vpop.f32.mrb[148].mxu0  ;;  %v3270_v57 = vpop.f32.mrb[126].mxu1 }
 0x2ec   : > { %v9345_v38 = vadd.f32 %v3533_v50, %v3259_v39  ;;  %v7292_v29 = vpop.f32.mrb[149].mxu0  ;;  %v7253_v32 = vpop.f32.mrb[127].mxu1 }
 0x2ed   : > { %v3536_v10 = vpop.f32.mrb[150].mxu0 }
 0x2ee   : > { %v9347_v34 = vadd.f32 %v3536_v10, %v3262_v45  ;;  %v7293_v36 = vpop.f32.mrb[151].mxu0  ;;  %7599 = vmatmul.mubr.bf16.gmra.mrb[232].mxu1 %v5331_v40  ;;  %v5337_v40 = vsel %vm2531_vm6, %v5334_v4, %v5336_v48 }
 0x2ef   : > { %7602 = vmatprep.mubr.msk.bf16.mxu1 %vm7910_vm0, %v7909_v1 }
 0x2f1   : > { %v3275_v7 = vpop.f32.mrb[128].mxu1 }
 0x2f2   : > { %v7256_v25 = vpop.f32.mrb[129].mxu1 }
 0x2f3   : > { %v3541_v44 = vpop.f32.mrb[152].mxu0  ;;  %v3278_v53 = vpop.f32.mrb[130].mxu1 }
 0x2f4   : > { %v9352_v63 = vadd.f32 %v3541_v44, %v3267_v11  ;;  %v7296_v47 = vpop.f32.mrb[153].mxu0  ;;  %v7257_v30 = vpop.f32.mrb[131].mxu1 }
 0x2f5   : > { %v3544_v19 = vpop.f32.mrb[154].mxu0 }
 0x2f6   : > { %v9354_v43 = vadd.f32 %v3544_v19, %v3270_v57  ;;  %v7297_v12 = vpop.f32.mrb[155].mxu0  ;;  %7603 = vmatmul.mubr.bf16.gmra.mrb[236].mxu1 %v5333_v0 }
 0x2f7   : > { %7606 = vmatprep.mubr.msk.bf16.mxu1 %vm7910_vm0, %v7909_v1 }
 0x2f9   : > { %v3283_v2 = vpop.f32.mrb[132].mxu1 }
 0x2fa   : > { %v7260_v9 = vpop.f32.mrb[133].mxu1 }
 0x2fb   : > { %v3549_v26 = vpop.f32.mrb[156].mxu0  ;;  %v3286_v27 = vpop.f32.mrb[134].mxu1 }
 0x2fc   : > { %v9359_v39 = vadd.f32 %v3549_v26, %v3275_v7  ;;  %v7300_v46 = vpop.f32.mrb[157].mxu0  ;;  %v7261_v24 = vpop.f32.mrb[135].mxu1 }
 0x2fd   : > { %v3552_v13 = vpop.f32.mrb[158].mxu0 }
 0x2fe   : > { %v9361_v45 = vadd.f32 %v3552_v13, %v3278_v53  ;;  %v7301_v21 = vpop.f32.mrb[159].mxu0  ;;  %7607 = vmatmul.mubr.bf16.gmra.mrb[240].mxu1 %v5335_v41 }
 0x2ff   : > { %7610 = vmatprep.mubr.msk.bf16.mxu1 %vm7910_vm0, %v7909_v1 }
 0x301   : > { %v3291_v55 = vpop.f32.mrb[136].mxu1 }
 0x302   : > { %3309 = vst [vmem:[#allocation2 + $0x60] sm:$0xf] %v3291_v55  ;;  %v7264_v28 = vpop.f32.mrb[137].mxu1 }
 0x303   : > { %v3557_v11 = vpop.f32.mrb[160].mxu0  ;;  %v3294_v29 = vpop.f32.mrb[138].mxu1 }
 0x304   : > { %v9366_v50 = vadd.f32 %v3557_v11, %v3283_v2  ;;  %v7304_v59 = vpop.f32.mrb[161].mxu0  ;;  %v7265_v10 = vpop.f32.mrb[139].mxu1 }
 0x305   : > { %v3560_v57 = vpop.f32.mrb[162].mxu0 }
 0x306   : > { %v9368_v32 = vadd.f32 %v3560_v57, %v3286_v27  ;;  %v7305_v36 = vpop.f32.mrb[163].mxu0  ;;  %7611 = vmatmul.mubr.bf16.gmra.mrb[244].mxu1 %v5337_v40 }
 0x307   : > { %7614 = vmatprep.mubr.msk.bf16.mxu1 %vm7910_vm0, %v7909_v1 }
 0x309   : > { %v3583_v62 = vld [vmem:[#allocation2 + $0x60] sm:$0xf]  ;;  %v3775_v7 = vpop.f32.mrb[140].mxu1 }
 0x30a   : > { %v3842_v44 = vadd.f32 %v3775_v7, %v9331_v54  ;;  %v7328_v25 = vpop.f32.mrb[141].mxu1 }
 0x30b   : > { %v3565_v35 = vpop.f32.mrb[164].mxu0  ;;  %v3778_v19 = vpop.f32.mrb[142].mxu1 }
 0x30c   : > { %v3596_v47 = vadd.f32 %v3583_v62, %v3565_v35  ;;  %v7308_v53 = vpop.f32.mrb[165].mxu0  ;;  %v3843_v12 = vadd.f32 %v3778_v19, %v9333_v42  ;;  %v7329_v0 = vpop.f32.mrb[143].mxu1 }
 0x30d   : > { %v3568_v30 = vpop.f32.mrb[166].mxu0 }
 0x30e   : > { %3609 = vst [vmem:[#allocation2 + $0x60] sm:$0xf] %v3596_v47  ;;  %v7309_v20 = vpop.f32.mrb[167].mxu0  ;;  %7615 = vmatmul.mubr.bf16.gmra.mrb[248].mxu1 %v5336_v48 }
 0x311   : > { %v3783_v2 = vpop.f32.mrb[144].mxu1 }
 0x312   : > { %v3844_v1 = vadd.f32 %v3783_v2, %v9338_v16  ;;  %v7332_v26 = vpop.f32.mrb[145].mxu1 }
 0x313   : > { %v4033_v4 = vpop.f32.mrb[168].mxu0  ;;  %v3786_v54 = vpop.f32.mrb[146].mxu1 }
 0x314   : > { %v9376_v9 = vadd.f32 %v4033_v4, %v3842_v44  ;;  %v7372_v46 = vpop.f32.mrb[169].mxu0  ;;  %v3845_v13 = vadd.f32 %v3786_v54, %v9340_v22  ;;  %v7333_v24 = vpop.f32.mrb[147].mxu1 }
 0x315   : > { %v4036_v27 = vpop.f32.mrb[170].mxu0 }
 0x316   : > { %v9379_v21 = vadd.f32 %v4036_v27, %v3843_v12  ;;  %v7373_v42 = vpop.f32.mrb[171].mxu0 }
 0x319   : > { %v3791_v41 = vpop.f32.mrb[148].mxu1 }
 0x31a   : > { %v3846_v55 = vadd.f32 %v3791_v41, %v9345_v38  ;;  %v7336_v48 = vpop.f32.mrb[149].mxu1 }
 0x31b   : > { %v4041_v15 = vpop.f32.mrb[172].mxu0  ;;  %v3794_v28 = vpop.f32.mrb[150].mxu1 }
 0x31c   : > { %v9382_v11 = vadd.f32 %v4041_v15, %v3844_v1  ;;  %v7376_v16 = vpop.f32.mrb[173].mxu0  ;;  %v3847_v29 = vadd.f32 %v3794_v28, %v9347_v34  ;;  %v7337_v57 = vpop.f32.mrb[151].mxu1 }
 0x31d   : > { %v4044_v59 = vpop.f32.mrb[174].mxu0 }
 0x31e   : > { %v9385_v10 = vadd.f32 %v4044_v59, %v3845_v13  ;;  %v7377_v22 = vpop.f32.mrb[175].mxu0 }
 0x321   : > { %v3799_v36 = vpop.f32.mrb[152].mxu1 }
 0x322   : > { %v3848_v62 = vadd.f32 %v3799_v36, %v9352_v63  ;;  %v7340_v7 = vpop.f32.mrb[153].mxu1 }
 0x323   : > { %v4049_v40 = vpop.f32.mrb[176].mxu0  ;;  %v3802_v44 = vpop.f32.mrb[154].mxu1 }
 0x324   : > { %v9388_v35 = vadd.f32 %v4049_v40, %v3846_v55  ;;  %v7380_v38 = vpop.f32.mrb[177].mxu0  ;;  %v3849_v47 = vadd.f32 %v3802_v44, %v9354_v43  ;;  %v7341_v53 = vpop.f32.mrb[155].mxu1 }
 0x325   : > { %v4052_v25 = vpop.f32.mrb[178].mxu0 }
 0x326   : > { %v9391_v19 = vadd.f32 %v4052_v25, %v3847_v29  ;;  %v7381_v34 = vpop.f32.mrb[179].mxu0  ;;  %v3841_v29 = vld [vmem:[#allocation2 + $0x60] sm:$0xf] }
 0x329   : > { %v3807_v30 = vpop.f32.mrb[156].mxu1 }
 0x32a   : > { %v3850_v0 = vadd.f32 %v3807_v30, %v9359_v39  ;;  %v7344_v20 = vpop.f32.mrb[157].mxu1 }
 0x32b   : > { %v4057_v12 = vpop.f32.mrb[180].mxu0  ;;  %v3810_v4 = vpop.f32.mrb[158].mxu1 }
 0x32c   : > { %v9394_v2 = vadd.f32 %v4057_v12, %v3848_v62  ;;  %v7384_v63 = vpop.f32.mrb[181].mxu0  ;;  %v3851_v26 = vadd.f32 %v3810_v4, %v9361_v45  ;;  %v7345_v46 = vpop.f32.mrb[159].mxu1 }
 0x32d   : > { %v4060_v1 = vpop.f32.mrb[182].mxu0 }
 0x32e   : > { %v9397_v54 = vadd.f32 %v4060_v1, %v3849_v47  ;;  %v7385_v43 = vpop.f32.mrb[183].mxu0 }
 0x331   : > { %v3815_v27 = vpop.f32.mrb[160].mxu1 }
 0x332   : > { %v3852_v24 = vadd.f32 %v3815_v27, %v9366_v50  ;;  %v7348_v42 = vpop.f32.mrb[161].mxu1 }
 0x333   : > { %v4065_v13 = vpop.f32.mrb[184].mxu0  ;;  %v3818_v15 = vpop.f32.mrb[162].mxu1 }
 0x334   : > { %v9400_v41 = vadd.f32 %v4065_v13, %v3850_v0  ;;  %v7388_v39 = vpop.f32.mrb[185].mxu0  ;;  %v3853_v48 = vadd.f32 %v3818_v15, %v9368_v32  ;;  %v7349_v16 = vpop.f32.mrb[163].mxu1 }
 0x335   : > { %v4068_v55 = vpop.f32.mrb[186].mxu0 }
 0x336   : > { %v9403_v28 = vadd.f32 %v4068_v55, %v3851_v26  ;;  %v7389_v45 = vpop.f32.mrb[187].mxu0 }
 0x339   : > { %v3823_v59 = vpop.f32.mrb[164].mxu1 }
 0x33a   : > { %v3854_v22 = vadd.f32 %v3841_v29, %v3823_v59  ;;  %v7352_v36 = vpop.f32.mrb[165].mxu1 }
 0x33b   : > { %v4073_v57 = vpop.f32.mrb[188].mxu0  ;;  %v3826_v62 = vpop.f32.mrb[166].mxu1 }
 0x33c   : > { %v9405_v40 = vadd.f32 %v4073_v57, %v3852_v24  ;;  %v7392_v50 = vpop.f32.mrb[189].mxu0  ;;  %3867 = vst [vmem:[#allocation2 + $0x60] sm:$0xf] %v3854_v22  ;;  %v7353_v38 = vpop.f32.mrb[167].mxu1 }
 0x33d   : > { %v4076_v7 = vpop.f32.mrb[190].mxu0 }
 0x33e   : > { %v9407_v44 = vadd.f32 %v4076_v7, %v3853_v48  ;;  %v7393_v25 = vpop.f32.mrb[191].mxu0 }
 0x341   : > { %v4340_v32 = vpop.f32.mrb[168].mxu1 }
 0x342   : > { %v4407_v53 = vadd.f32 %v4340_v32, %v9376_v9  ;;  %v7416_v34 = vpop.f32.mrb[169].mxu1 }
 0x343   : > { %v4081_v47 = vpop.f32.mrb[192].mxu0  ;;  %v4099_v30 = vld [vmem:[#allocation2 + $0x60] sm:$0xf]  ;;  %v4343_v0 = vpop.f32.mrb[170].mxu1 }
 0x344   : > { %v7396_v12 = vpop.f32.mrb[193].mxu0  ;;  %v4112_v20 = vadd.f32 %v4099_v30, %v4081_v47  ;;  %v4408_v4 = vadd.f32 %v4343_v0, %v9379_v21  ;;  %v7417_v1 = vpop.f32.mrb[171].mxu1 }
 0x345   : > { %v4084_v63 = vpop.f32.mrb[194].mxu0 }
 0x346   : > { %v7397_v26 = vpop.f32.mrb[195].mxu0  ;;  %4125 = vst [vmem:[#allocation2 + $0x60] sm:$0xf] %v4112_v20 }
 0x349   : > { %v4348_v46 = vpop.f32.mrb[172].mxu1 }
 0x34a   : > { %v4409_v27 = vadd.f32 %v4348_v46, %v9382_v11  ;;  %v7420_v13 = vpop.f32.mrb[173].mxu1 }
 0x34b   : > { %v4598_v43 = vpop.f32.mrb[196].mxu0  ;;  %v4351_v9 = vpop.f32.mrb[174].mxu1 }
 0x34c   : > { %v9412_v24 = vadd.f32 %v4598_v43, %v4407_v53  ;;  %v7460_v42 = vpop.f32.mrb[197].mxu0  ;;  %v4410_v15 = vadd.f32 %v4351_v9, %v9385_v10  ;;  %v7421_v55 = vpop.f32.mrb[175].mxu1 }
 0x34d   : > { %v4601_v39 = vpop.f32.mrb[198].mxu0 }
 0x34e   : > { %v9415_v48 = vadd.f32 %v4601_v39, %v4408_v4  ;;  %v7461_v16 = vpop.f32.mrb[199].mxu0 }
 0x351   : > { %v4356_v21 = vpop.f32.mrb[176].mxu1 }
 0x352   : > { %v4411_v59 = vadd.f32 %v4356_v21, %v9388_v35  ;;  %v7424_v29 = vpop.f32.mrb[177].mxu1 }
 0x353   : > { %v4606_v45 = vpop.f32.mrb[200].mxu0  ;;  %v4359_v22 = vpop.f32.mrb[178].mxu1 }
 0x354   : > { %v9418_v57 = vadd.f32 %v4606_v45, %v4409_v27  ;;  %v7464_v11 = vpop.f32.mrb[201].mxu0  ;;  %v4412_v50 = vadd.f32 %v4359_v22, %v9391_v19  ;;  %v7425_v62 = vpop.f32.mrb[179].mxu1 }
 0x355   : > { %v4609_v36 = vpop.f32.mrb[202].mxu0 }
 0x356   : > { %v9421_v7 = vadd.f32 %v4609_v36, %v4410_v15  ;;  %v7465_v10 = vpop.f32.mrb[203].mxu0 }
 0x359   : > { %v4364_v38 = vpop.f32.mrb[180].mxu1 }
 0x35a   : > { %v4413_v32 = vadd.f32 %v4364_v38, %v9394_v2  ;;  %v7428_v47 = vpop.f32.mrb[181].mxu1 }
 0x35b   : > { %v4614_v25 = vpop.f32.mrb[204].mxu0  ;;  %v4367_v34 = vpop.f32.mrb[182].mxu1 }
 0x35c   : > { %v9424_v53 = vadd.f32 %v4614_v25, %v4411_v59  ;;  %v7468_v35 = vpop.f32.mrb[205].mxu0  ;;  %v4414_v12 = vadd.f32 %v4367_v34, %v9397_v54  ;;  %v7429_v0 = vpop.f32.mrb[183].mxu1 }
 0x35d   : > { %v4617_v30 = vpop.f32.mrb[206].mxu0 }
 0x35e   : > { %v9427_v20 = vadd.f32 %v4617_v30, %v4412_v50  ;;  %v7469_v19 = vpop.f32.mrb[207].mxu0  ;;  %v4406_v50 = vld [vmem:[#allocation2 + $0x60] sm:$0xf] }
 0x361   : > { %v4372_v63 = vpop.f32.mrb[184].mxu1 }
 0x362   : > { %v4415_v1 = vadd.f32 %v4372_v63, %v9400_v41  ;;  %v7432_v26 = vpop.f32.mrb[185].mxu1 }
 0x363   : > { %v4622_v4 = vpop.f32.mrb[208].mxu0  ;;  %v4375_v43 = vpop.f32.mrb[186].mxu1 }
 0x364   : > { %v9430_v46 = vadd.f32 %v4622_v4, %v4413_v32  ;;  %v7472_v2 = vpop.f32.mrb[209].mxu0  ;;  %v4416_v13 = vadd.f32 %v4375_v43, %v9403_v28  ;;  %v7433_v42 = vpop.f32.mrb[187].mxu1 }
 0x365   : > { %v4625_v27 = vpop.f32.mrb[210].mxu0 }
 0x366   : > { %v9433_v9 = vadd.f32 %v4625_v27, %v4414_v12  ;;  %v7473_v54 = vpop.f32.mrb[211].mxu0 }
 0x369   : > { %v4380_v39 = vpop.f32.mrb[188].mxu1 }
 0x36a   : > { %v4417_v55 = vadd.f32 %v4380_v39, %v9405_v40  ;;  %v7436_v16 = vpop.f32.mrb[189].mxu1 }
 0x36b   : > { %v4630_v15 = vpop.f32.mrb[212].mxu0  ;;  %v4383_v45 = vpop.f32.mrb[190].mxu1 }
 0x36c   : > { %v9436_v21 = vadd.f32 %v4630_v15, %v4415_v1  ;;  %v7476_v41 = vpop.f32.mrb[213].mxu0  ;;  %v4418_v29 = vadd.f32 %v4383_v45, %v9407_v44  ;;  %v7437_v11 = vpop.f32.mrb[191].mxu1 }
 0x36d   : > { %v4633_v59 = vpop.f32.mrb[214].mxu0 }
 0x36e   : > { %v9439_v22 = vadd.f32 %v4633_v59, %v4416_v13  ;;  %v7477_v28 = vpop.f32.mrb[215].mxu0 }
 0x371   : > { %v4388_v36 = vpop.f32.mrb[192].mxu1 }
 0x372   : > { %v4419_v10 = vadd.f32 %v4406_v50, %v4388_v36  ;;  %v7440_v38 = vpop.f32.mrb[193].mxu1 }
 0x373   : > { %v4638_v62 = vpop.f32.mrb[216].mxu0  ;;  %v4391_v32 = vpop.f32.mrb[194].mxu1 }
 0x374   : > { %v9441_v25 = vadd.f32 %v4638_v62, %v4417_v55  ;;  %v7480_v40 = vpop.f32.mrb[217].mxu0  ;;  %4432 = vst [vmem:[#allocation2 + $0x60] sm:$0xf] %v4419_v10  ;;  %v7441_v35 = vpop.f32.mrb[195].mxu1 }
 0x375   : > { %v4641_v47 = vpop.f32.mrb[218].mxu0 }
 0x376   : > { %v9443_v34 = vadd.f32 %v4641_v47, %v4418_v29  ;;  %v7481_v30 = vpop.f32.mrb[219].mxu0 }
 0x379   : > { %v4856_v44 = vpop.f32.mrb[196].mxu1 }
 0x37a   : > { %v4923_v0 = vadd.f32 %v4856_v44, %v9412_v24  ;;  %v7504_v19 = vpop.f32.mrb[197].mxu1 }
 0x37b   : > { %v4646_v12 = vpop.f32.mrb[220].mxu0  ;;  %v4664_v63 = vld [vmem:[#allocation2 + $0x60] sm:$0xf]  ;;  %v4859_v1 = vpop.f32.mrb[198].mxu1 }
 0x37c   : > { %v7484_v4 = vpop.f32.mrb[221].mxu0  ;;  %v4677_v26 = vadd.f32 %v4664_v63, %v4646_v12  ;;  %v4924_v43 = vadd.f32 %v4859_v1, %v9415_v48  ;;  %v7505_v27 = vpop.f32.mrb[199].mxu1 }
 0x37d   : > { %v4649_v2 = vpop.f32.mrb[222].mxu0 }
 0x37e   : > { %v7485_v13 = vpop.f32.mrb[223].mxu0  ;;  %4690 = vst [vmem:[#allocation2 + $0x60] sm:$0xf] %v4677_v26 }
 0x381   : > { %v4864_v42 = vpop.f32.mrb[200].mxu1 }
 0x382   : > { %v4925_v39 = vadd.f32 %v4864_v42, %v9418_v57  ;;  %v7508_v15 = vpop.f32.mrb[201].mxu1 }
 0x383   : > { %v5166_v54 = vpop.f32.mrb[224].mxu0  ;;  %v4867_v24 = vpop.f32.mrb[202].mxu1 }
 0x384   : > { %v9448_v55 = vadd.f32 %v5166_v54, %v4923_v0  ;;  %v7548_v16 = vpop.f32.mrb[225].mxu0  ;;  %v4926_v45 = vadd.f32 %v4867_v24, %v9421_v7  ;;  %v7509_v59 = vpop.f32.mrb[203].mxu1 }
 0x385   : > { %v5169_v41 = vpop.f32.mrb[226].mxu0 }
 0x386   : > { %v9451_v29 = vadd.f32 %v5169_v41, %v4924_v43  ;;  %v7549_v11 = vpop.f32.mrb[227].mxu0 }
 0x389   : > { %v4872_v48 = vpop.f32.mrb[204].mxu1 }
 0x38a   : > { %v4927_v36 = vadd.f32 %v4872_v48, %v9424_v53  ;;  %v7512_v50 = vpop.f32.mrb[205].mxu1 }
 0x38b   : > { %v5174_v28 = vpop.f32.mrb[228].mxu0  ;;  %v4875_v10 = vpop.f32.mrb[206].mxu1 }
 0x38c   : > { %v9454_v62 = vadd.f32 %v5174_v28, %v4925_v39  ;;  %v7552_v57 = vpop.f32.mrb[229].mxu0  ;;  %v4928_v40 = vadd.f32 %v4875_v10, %v9427_v20  ;;  %v7513_v32 = vpop.f32.mrb[207].mxu1 }
 0x38d   : > { %v5177_v38 = vpop.f32.mrb[230].mxu0 }
 0x38e   : > { %v9457_v47 = vadd.f32 %v5177_v38, %v4926_v45  ;;  %v7553_v7 = vpop.f32.mrb[231].mxu0  ;;  %v5520_v38 = vld [vmem:[%s8003_s22 + $0x4] sm:$0xe] }
 0x38f   : > { %v4922_v7 = vld [vmem:[#allocation2 + $0x60] sm:$0xf] }
 0x391   : > { %v4880_v35 = vpop.f32.mrb[208].mxu1 }
 0x392   : > { %v4929_v44 = vadd.f32 %v4880_v35, %v9430_v46  ;;  %v7516_v12 = vpop.f32.mrb[209].mxu1 }
 0x393   : > { %v5182_v30 = vpop.f32.mrb[232].mxu0  ;;  %v4883_v19 = vpop.f32.mrb[210].mxu1 }
 0x394   : > { %v9460_v0 = vadd.f32 %v5182_v30, %v4927_v36  ;;  %v7556_v53 = vpop.f32.mrb[233].mxu0  ;;  %v4930_v4 = vadd.f32 %v4883_v19, %v9433_v9  ;;  %v7517_v1 = vpop.f32.mrb[211].mxu1 }
 0x395   : > { %v5185_v63 = vpop.f32.mrb[234].mxu0 }
 0x396   : > { %v9463_v26 = vadd.f32 %v5185_v63, %v4928_v40  ;;  %v7557_v20 = vpop.f32.mrb[235].mxu0  ;;  %v6550_v40 = vld [vmem:[%s8003_s22 + $0x8] sm:$0xff]   ;;  %v5533_v63 = vunpack.c.l.bf16 %v5520_v38 }
 0x397   : > { %v6528_v19 = vunpack.c.l.bf16 %v6550_v40 }
 0x399   : > { %v4888_v2 = vpop.f32.mrb[212].mxu1 }
 0x39a   : > { %v4931_v27 = vadd.f32 %v4888_v2, %v9436_v21  ;;  %v7520_v13 = vpop.f32.mrb[213].mxu1  ;;  %v6529_v2 = vunpack.c.h.bf16 %v6550_v40 }
 0x39b   : > { %v5190_v43 = vpop.f32.mrb[236].mxu0  ;;  %v4891_v54 = vpop.f32.mrb[214].mxu1  ;;  %v6551_v13 = vld [vmem:[%s8003_s22 + $0x10] sm:$0xff]  }
 0x39c   : > { %v9466_v42 = vadd.f32 %v5190_v43, %v4929_v44  ;;  %v7560_v46 = vpop.f32.mrb[237].mxu0  ;;  %v4932_v15 = vadd.f32 %v4891_v54, %v9439_v22  ;;  %v7521_v16 = vpop.f32.mrb[215].mxu1  ;;  %v5593_v43 = vrot.slane %v5533_v63, 3  ;;  %v9487_v54 = vld [vmem:[%s9610_s5] ss:$0 sm:$0xff]  ;;  %v6533_v40 = vunpack.c.h.bf16 %v6551_v13 }
 0x39d   : > { %v5193_v39 = vpop.f32.mrb[238].mxu0 }
 0x39e   : > { %v9469_v9 = vadd.f32 %v5193_v39, %v4930_v4  ;;  %v7561_v24 = vpop.f32.mrb[239].mxu0  ;;  %v5596_v39 = vrot.slane %v6529_v2, 3 }
 0x3a1   : > { %v4896_v41 = vpop.f32.mrb[216].mxu1 }
 0x3a2   : > { %v4933_v59 = vadd.f32 %v4896_v41, %v9441_v25  ;;  %v7524_v11 = vpop.f32.mrb[217].mxu1 }
 0x3a3   : > { %v5198_v45 = vpop.f32.mrb[240].mxu0  ;;  %v4899_v28 = vpop.f32.mrb[218].mxu1  ;;  %v6532_v11 = vunpack.c.l.bf16 %v6551_v13 }
 0x3a4   : > { %v9472_v21 = vadd.f32 %v5198_v45, %v4931_v27  ;;  %v7564_v48 = vpop.f32.mrb[241].mxu0  ;;  %v4934_v50 = vadd.f32 %v4899_v28, %v9443_v34  ;;  %v7525_v57 = vpop.f32.mrb[219].mxu1  ;;  %v5594_v27 = vrot.slane %v6528_v19, 3  ;;  %v5600_v19 = vrot.slane %v6533_v40, 3 }
 0x3a5   : > { %v5201_v36 = vpop.f32.mrb[242].mxu0 }
 0x3a6   : > { %v9475_v22 = vadd.f32 %v5201_v36, %v4932_v15  ;;  %v7565_v10 = vpop.f32.mrb[243].mxu0  ;;  %v5595_v41 = vsel %vm2531_vm6, %v5593_v43, %v5594_v27  ;;  %v5597_v38 = vsel %vm2531_vm6, %v5594_v27, %v5596_v39 }
 0x3a9   : > { %v4904_v32 = vpop.f32.mrb[220].mxu1 }
 0x3aa   : > { %v4935_v30 = vadd.f32 %v4922_v7, %v4904_v32  ;;  %v7528_v25 = vpop.f32.mrb[221].mxu1 }
 0x3ab   : > { %v5206_v35 = vpop.f32.mrb[244].mxu0  ;;  %v4907_v53 = vpop.f32.mrb[222].mxu1 }
 0x3ac   : > { %v9479_v44 = vadd.f32 %v5206_v35, %v4933_v59  ;;  %v7568_v12 = vpop.f32.mrb[245].mxu0  ;;  %4948 = vst [vmem:[#allocation2 + $0x60] sm:$0xf] %v4935_v30  ;;  %v7529_v4 = vpop.f32.mrb[223].mxu1  ;;  %v6552_v35 = vld [vmem:[%s8003_s22 + $0x18] sm:$0xff]   ;;  %v5598_v30 = vrot.slane %v6532_v11, 3 }
 0x3ad   : > { %v5209_v34 = vpop.f32.mrb[246].mxu0  ;;  %v6536_v63 = vunpack.c.l.bf16 %v6552_v35 }
 0x3ae   : > { %v9481_v1 = vadd.f32 %v5209_v34, %v4934_v50  ;;  %v7569_v20 = vpop.f32.mrb[247].mxu0  ;;  %v5599_v2 = vsel %vm2531_vm6, %v5596_v39, %v5598_v30 }
 0x3b1   : > { %v5427_v46 = vpop.f32.mrb[224].mxu1 }
 0x3b2   : > { %v5494_v15 = vadd.f32 %v5427_v46, %v9448_v55  ;;  %v7592_v16 = vpop.f32.mrb[225].mxu1 }
 0x3b3   : > { %v5214_v24 = vpop.f32.mrb[248].mxu0  ;;  %v5232_v45 = vld [vmem:[#allocation2 + $0x60] sm:$0xf]  ;;  %v5430_v59 = vpop.f32.mrb[226].mxu1 }
 0x3b4   : > { %v7572_v48 = vpop.f32.mrb[249].mxu0  ;;  %v5566_v28 = vadd.f32 %v9487_v54, %v5494_v15  ;;  %v5245_v36 = vadd.f32 %v5232_v45, %v5214_v24  ;;  %v5495_v50 = vadd.f32 %v5430_v59, %v9451_v29  ;;  %v7593_v57 = vpop.f32.mrb[227].mxu1  ;;  %v6553_v24 = vld [vmem:[%s8003_s22 + $0x20] sm:$0xff]   ;;  %v6537_v45 = vunpack.c.h.bf16 %v6552_v35 }
 0x3b5   : > { %v5217_v10 = vpop.f32.mrb[250].mxu0 }
 0x3b6   : > { %v7573_v55 = vpop.f32.mrb[251].mxu0  ;;  %v5631_v32 = vadd.f32 %v5595_v41, %v5566_v28  ;;  %5258 = vst [vmem:[#allocation2 + $0x60] sm:$0xf] %v5245_v36  ;;  %v5567_v7 = vadd.f32 %v9487_v54, %v5495_v50  ;;  %v5601_v41 = vsel %vm2531_vm6, %v5598_v30, %v5600_v19  ;;  %v6540_v28 = vunpack.c.l.bf16 %v6553_v24 }
 0x3b7   : > { %v6541_v36 = vunpack.c.h.bf16 %v6553_v24 }
 0x3b8   : > { %v5644_v25 = vmax.f32 %v5631_v32, 0.0  ;;  %v5632_v12 = vadd.f32 %v5597_v38, %v5567_v7  ;;  %v5604_v7 = vrot.slane %v6537_v45, 3 }
 0x3b9   : > { %v5435_v53 = vpop.f32.mrb[228].mxu1 }
 0x3ba   : > { %v5657_v29 = vmul.f32 %v5644_v25, %v8809_v18  ;;  %v5645_v34 = vmax.f32 %v5632_v12, 0.0  ;;  %v5496_v4 = vadd.f32 %v5435_v53, %v9454_v62  ;;  %v7596_v20 = vpop.f32.mrb[229].mxu1  ;;  %v5602_v18 = vrot.slane %v6536_v63, 3 }
 0x3bb   : > { %v5438_v43 = vpop.f32.mrb[230].mxu1  ;;  %v9509_v20 = vrot.slane %v6541_v36, 3 }
 0x3bc   : > { %v6513_v27 = vpack.c.bf16 %v5657_v29, %v5657_v29  ;;  %v5658_v13 = vmul.f32 %v5645_v34, %v8816_v51  ;;  %v5568_v46 = vadd.f32 %v9487_v54, %v5496_v4  ;;  %v5497_v15 = vadd.f32 %v5438_v43, %v9457_v47  ;;  %v7597_v16 = vpop.f32.mrb[231].mxu1  ;;  %v5851_v47 = vld [vmem:[%s8473_s12 + $0x4] sm:$0xe] }
 0x3bd   : > { %v5603_v32 = vsel %vm2531_vm6, %v5600_v19, %v5602_v18  ;;  %v5606_v4 = vrot.slane %v6540_v28, 3 }
 0x3be   : > { %v5711_v59 = vshrl.u32 %v6513_v27, 16  ;;  %v5714_v62 = vshll.u32 %v6513_v27, 16  ;;  %v6514_v11 = vpack.c.bf16 %v5658_v13, %v5658_v13  ;;  %v5633_v48 = vadd.f32 %v5599_v2, %v5568_v46 }
 0x3bf   : > { %v5569_v39 = vadd.f32 %v9487_v54, %v5497_v15  ;;  %v6554_v15 = vld [vmem:[%s8003_s22 + $0x28] sm:$0xff]  }
 0x3c0   : > { %v5713_v51 = vrot.slane %v5711_v59, 6  ;;  %v5716_v50 = vrot.slane %v5714_v62, 7  ;;  %v5720_v57 = vshrl.u32 %v6514_v11, 16  ;;  %v5723_v10 = vshll.u32 %v6514_v11, 16 }
 0x3c1   : > { %v5646_v38 = vmax.f32 %v5633_v48, 0.0  ;;  %v5634_v40 = vadd.f32 %v5601_v41, %v5569_v39  ;;  %v5443_v55 = vpop.f32.mrb[232].mxu1  ;;  %v5605_v41 = vsel %vm2531_vm6, %v5602_v18, %v5604_v7  ;;  %v5607_v48 = vsel %vm2531_vm6, %v5604_v7, %v5606_v4 }
 0x3c2   : > { %v5717_v35 = vor.u32 %v5716_v50, %v5713_v51  ;;  %v5722_v30 = vrot.slane %v5720_v57, 6  ;;  %v5725_v25 = vrot.slane %v5723_v10, 7  ;;  %v5498_v12 = vadd.f32 %v5443_v55, %v9460_v0  ;;  %v7600_v53 = vpop.f32.mrb[233].mxu1 }
 0x3c3   : > { %v5659_v63 = vmul.f32 %v5646_v38, %v8821_v31  ;;  %v5647_v29 = vmax.f32 %v5634_v40, 0.0  ;;  %v5446_v34 = vpop.f32.mrb[234].mxu1  ;;  %v6545_v38 = vunpack.c.h.bf16 %v6554_v15 }
 0x3c4   : > { %v5718_v2 = vrot.slane %v5717_v35, 4  ;;  %v5852_v19 = vsel %vm8825_vm11, %v5717_v35, %v5851_v47  ;;  %v5726_v43 = vor.u32 %v5725_v25, %v5722_v30  ;;  %v5570_v27 = vadd.f32 %v9487_v54, %v5498_v12  ;;  %v7601_v13 = vpop.f32.mrb[235].mxu1 }
 0x3c5   : > { %5853 = vst [vmem:[%s8473_s12 + $0x4] sm:$0xe] %v5852_v19  ;;  %v6515_v0 = vpack.c.bf16 %v5659_v63, %v5659_v63  ;;  %v5660_v46 = vmul.f32 %v5647_v29, %v8839_v14  ;;  %v5499_v31 = vadd.f32 %v5446_v34, %v9463_v26  ;;  %v5609_v14 = vsel %vm2531_vm6, %v5606_v4, %v9509_v20  ;;  %v6555_v13 = vld [vmem:[%s8003_s22 + $0x30] sm:$0xff]  }
 0x3c6   : > { %v5727_v16 = vsel %vm8833_vm12, %v5718_v2, %v5726_v43  ;;  %v5635_v24 = vadd.f32 %v5603_v32, %v5570_v27  ;;  %v6544_v26 = vunpack.c.l.bf16 %v6554_v15  ;;  %v5728_v40 = vrot.slane %v5726_v43, 4 }
 0x3c7   : > { %5854 = vst [vmem:[%s8473_s12 + $0x8] sm:$0xf] %v5727_v16  ;;  %v5730_v61 = vshrl.u32 %v6515_v0, 16  ;;  %v5733_v45 = vshll.u32 %v6515_v0, 16  ;;  %v6516_v59 = vpack.c.bf16 %v5660_v46, %v5660_v46  ;;  %v5571_v62 = vadd.f32 %v9487_v54, %v5499_v31 }
 0x3c8   : > { %v5648_v11 = vmax.f32 %v5635_v24, 0.0  ;;  %v5610_v49 = vrot.slane %v6544_v26, 3 }
 0x3c9   : > { %v5732_v39 = vrot.slane %v5730_v61, 6  ;;  %v5735_v28 = vrot.slane %v5733_v45, 7  ;;  %v5740_v36 = vshrl.u32 %v6516_v59, 16  ;;  %v5743_v51 = vshll.u32 %v6516_v59, 16  ;;  %v5451_v50 = vpop.f32.mrb[236].mxu1 }
 0x3ca   : > { %v5661_v18 = vmul.f32 %v5648_v11, %v8848_v56  ;;  %v5636_v57 = vadd.f32 %v5605_v41, %v5571_v62  ;;  %v5500_v10 = vadd.f32 %v5451_v50, %v9466_v42  ;;  %v7604_v47 = vpop.f32.mrb[237].mxu1  ;;  %v5612_v45 = vrot.slane %v6545_v38, 3 }
 0x3cb   : > { %v5736_v55 = vor.u32 %v5735_v28, %v5732_v39  ;;  %v5742_v32 = vrot.slane %v5740_v36, 6  ;;  %v5745_v7 = vrot.slane %v5743_v51, 7  ;;  %v5454_v35 = vpop.f32.mrb[238].mxu1  ;;  %v6548_v59 = vunpack.c.l.bf16 %v6555_v13 }
 0x3cc   : > { %v5869_v30 = vld [vmem:[%s8473_s12 + $0x4] sm:$0x3]  ;;  %v6517_v25 = vpack.c.bf16 %v5661_v18, %v5661_v18  ;;  %v5649_v12 = vmax.f32 %v5636_v57, 0.0  ;;  %v5572_v53 = vadd.f32 %v9487_v54, %v5500_v10  ;;  %v5501_v56 = vadd.f32 %v5454_v35, %v9469_v9  ;;  %v7605_v63 = vpop.f32.mrb[239].mxu1 }
 0x3cd   : > { %v5870_v42 = vsel %vm8852_vm14, 0, %v5869_v30  ;;  %v5737_v29 = vsel %vm8833_vm12, %v5728_v40, %v5736_v55  ;;  %v5738_v34 = vrot.slane %v5736_v55, 4  ;;  %v5746_v4 = vor.u32 %v5745_v7, %v5742_v32 }
 0x3ce   : > { %5871 = vst [vmem:[%s8473_s12 + $0x4] sm:$0x3] %v5870_v42  ;;  %5855 = vst [vmem:[%s8473_s12 + $0xc] sm:$0xf] %v5737_v29  ;;  %v5750_v2 = vshrl.u32 %v6517_v25, 16  ;;  %v5753_v19 = vshll.u32 %v6517_v25, 16  ;;  %v5662_v43 = vmul.f32 %v5649_v12, %v8860_v8  ;;  %v5637_v27 = vadd.f32 %v5607_v48, %v5572_v53 }
 0x3cf   : > { %v5747_v9 = vsel %vm8833_vm12, %v5738_v34, %v5746_v4  ;;  %v5573_v0 = vadd.f32 %v9487_v54, %v5501_v56  ;;  %v5748_v24 = vrot.slane %v5746_v4, 4  ;;  %v5611_v36 = vsel %vm2531_vm6, %v9509_v20, %v5610_v49 }
 0x3d0   : > { %5856 = vst [vmem:[%s8473_s12 + $0x10] sm:$0xf] %v5747_v9  ;;  %v5752_v46 = vrot.slane %v5750_v2, 6  ;;  %v5755_v31 = vrot.slane %v5753_v19, 7  ;;  %v6518_v15 = vpack.c.bf16 %v5662_v43, %v5662_v43  ;;  %v5650_v16 = vmax.f32 %v5637_v27, 0.0 }
 0x3d1   : > { %v5638_v41 = vadd.f32 %v5609_v14, %v5573_v0  ;;  %v5459_v61 = vpop.f32.mrb[240].mxu1  ;;  %v6549_v50 = vunpack.c.h.bf16 %v6555_v13  ;;  %v5613_v20 = vsel %vm2531_vm6, %v5610_v49, %v5612_v45  ;;  %v5614_v32 = vrot.slane %v6548_v59, 3 }
 0x3d2   : > { %v5756_v8 = vor.u32 %v5755_v31, %v5752_v46  ;;  %v5760_v62 = vshrl.u32 %v6518_v15, 16  ;;  %v5763_v11 = vshll.u32 %v6518_v15, 16  ;;  %v5663_v48 = vmul.f32 %v5650_v16, %v8871_v23  ;;  %v7608_v39 = vpop.f32.mrb[241].mxu1 }
 0x3d3   : > { %v5651_v28 = vmax.f32 %v5638_v41, 0.0  ;;  %v5502_v26 = vadd.f32 %v5459_v61, %v9472_v21  ;;  %v5462_v51 = vpop.f32.mrb[242].mxu1  ;;  %v9557_v56 = vrot.slane %v6549_v50, 3  ;;  %v5615_v19 = vsel %vm2531_vm6, %v5612_v45, %v5614_v32 }
 0x3d4   : > { %v5757_v14 = vsel %vm8833_vm12, %v5748_v24, %v5756_v8  ;;  %v5758_v18 = vrot.slane %v5756_v8, 4  ;;  %v5762_v57 = vrot.slane %v5760_v62, 6  ;;  %v5765_v10 = vrot.slane %v5763_v11, 7  ;;  %v7609_v47 = vpop.f32.mrb[243].mxu1 }
 0x3d5   : > { %5857 = vst [vmem:[%s8473_s12 + $0x14] sm:$0xf] %v5757_v14  ;;  %v6519_v38 = vpack.c.bf16 %v5663_v48, %v5663_v48  ;;  %v5664_v23 = vmul.f32 %v5651_v28, %v8878_v6  ;;  %v5574_v40 = vadd.f32 %v9487_v54, %v5502_v26  ;;  %v5503_v21 = vadd.f32 %v5462_v51, %v9475_v22  ;;  %v5493_v51 = vld [vmem:[#allocation2 + $0x60] sm:$0xf] }
 0x3d6   : > { %v5766_v55 = vor.u32 %v5765_v10, %v5762_v57  ;;  %v5617_v45 = vsel %vm2531_vm6, %v5614_v32, %v9557_v56 }
 0x3d7   : > { %v5770_v7 = vshrl.u32 %v6519_v38, 16  ;;  %v5773_v35 = vshll.u32 %v6519_v38, 16  ;;  %v6520_v30 = vpack.c.bf16 %v5664_v23, %v5664_v23  ;;  %v5639_v25 = vadd.f32 %v5611_v36, %v5574_v40 }
 0x3d8   : > { %v5767_v12 = vsel %vm8833_vm12, %v5758_v18, %v5766_v55  ;;  %v5575_v53 = vadd.f32 %v9487_v54, %v5503_v21  ;;  %v5768_v27 = vrot.slane %v5766_v55, 4 }
 0x3d9   : > { %5858 = vst [vmem:[%s8473_s12 + $0x18] sm:$0xf] %v5767_v12  ;;  %v5772_v6 = vrot.slane %v5770_v7, 6  ;;  %v5775_v63 = vrot.slane %v5773_v35, 7  ;;  %v5780_v42 = vshrl.u32 %v6520_v30, 16  ;;  %v5783_v22 = vshll.u32 %v6520_v30, 16 }
 0x3da   : > { %v5467_v29 = vpop.f32.mrb[244].mxu1  ;;  %v5652_v34 = vmax.f32 %v5639_v25, 0.0  ;;  %v5640_v4 = vadd.f32 %v5613_v20, %v5575_v53 }
 0x3db   : > { %v5504_v2 = vadd.f32 %v5467_v29, %v9479_v44  ;;  %v7612_v43 = vpop.f32.mrb[245].mxu1  ;;  %v5776_v13 = vor.u32 %v5775_v63, %v5772_v6  ;;  %v5782_v9 = vrot.slane %v5780_v42, 6  ;;  %v5785_v0 = vrot.slane %v5783_v22, 7 }
 0x3dc   : > { %v5470_v49 = vpop.f32.mrb[246].mxu1  ;;  %v5665_v46 = vmul.f32 %v5652_v34, %v8898_v33  ;;  %v5653_v31 = vmax.f32 %v5640_v4, 0.0 }
 0x3dd   : > { %v5576_v15 = vadd.f32 %v9487_v54, %v5504_v2  ;;  %v5505_v16 = vadd.f32 %v5470_v49, %v9481_v1  ;;  %v7613_v24 = vpop.f32.mrb[247].mxu1  ;;  %v5777_v44 = vsel %vm8833_vm12, %v5768_v27, %v5776_v13  ;;  %v5778_v41 = vrot.slane %v5776_v13, 4 }
 0x3de   : > { %v5786_v61 = vor.u32 %v5785_v0, %v5782_v9  ;;  %5859 = vst [vmem:[%s8473_s12 + $0x1c] sm:$0xf] %v5777_v44  ;;  %v6521_v59 = vpack.c.bf16 %v5665_v46, %v5665_v46  ;;  %v5666_v8 = vmul.f32 %v5653_v31, %v8909_v37 }
 0x3df   : > { %v5641_v62 = vadd.f32 %v5615_v19, %v5576_v15  ;;  %v5577_v33 = vadd.f32 %v9487_v54, %v5505_v16 }
 0x3e0   : > { %v5787_v11 = vsel %vm8833_vm12, %v5778_v41, %v5786_v61  ;;  %v5790_v1 = vshrl.u32 %v6521_v59, 16  ;;  %v5793_v48 = vshll.u32 %v6521_v59, 16  ;;  %v6522_v39 = vpack.c.bf16 %v5666_v8, %v5666_v8  ;;  %v5865_v59 = vld [vmem:[%s8473_s12 + $0x34] sm:$0xf] }
 0x3e1   : > { %5860 = vst [vmem:[%s8473_s12 + $0x20] sm:$0xf] %v5787_v11  ;;  %v5654_v28 = vmax.f32 %v5641_v62, 0.0  ;;  %v5642_v26 = vadd.f32 %v5617_v45, %v5577_v33  ;;  %v5475_v36 = vpop.f32.mrb[248].mxu1  ;;  %v5788_v40 = vrot.slane %v5786_v61, 4 }
 0x3e2   : > { %v5792_v50 = vrot.slane %v5790_v1, 6  ;;  %v5795_v14 = vrot.slane %v5793_v48, 7  ;;  %v5800_v18 = vshrl.u32 %v6522_v39, 16  ;;  %v5803_v57 = vshll.u32 %v6522_v39, 16  ;;  %v7616_v10 = vpop.f32.mrb[249].mxu1 }
 0x3e3   : > { %v5667_v37 = vmul.f32 %v5654_v28, %v8936_v3  ;;  %v5655_v47 = vmax.f32 %v5642_v26, 0.0  ;;  %v5506_v38 = vadd.f32 %v5493_v51, %v5475_v36  ;;  %v5478_v23 = vpop.f32.mrb[250].mxu1 }
 0x3e4   : > { %v5796_v21 = vor.u32 %v5795_v14, %v5792_v50  ;;  %v5802_v55 = vrot.slane %v5800_v18, 6  ;;  %v5805_v20 = vrot.slane %v5803_v57, 7  ;;  %v7617_v32 = vpop.f32.mrb[251].mxu1 }
 0x3e5   : > { %v6523_v7 = vpack.c.bf16 %v5667_v37, %v5667_v37  ;;  %v5668_v35 = vmul.f32 %v5655_v47, %v8943_v17  ;;  %5519 = vst [vmem:[#allocation2 + $0x60] sm:$0xf] %v5506_v38 }
 0x3e6   : > { %v5797_v30 = vsel %vm8833_vm12, %v5788_v40, %v5796_v21  ;;  %v5798_v25 = vrot.slane %v5796_v21, 4  ;;  %v5806_v12 = vor.u32 %v5805_v20, %v5802_v55 }
 0x3e7   : > { %5861 = vst [vmem:[%s8473_s12 + $0x24] sm:$0xf] %v5797_v30  ;;  %v5810_v3 = vshrl.u32 %v6523_v7, 16  ;;  %v5813_v53 = vshll.u32 %v6523_v7, 16  ;;  %v6524_v6 = vpack.c.bf16 %v5668_v35, %v5668_v35 }
 0x3e8   : > { %v5807_v63 = vsel %vm8833_vm12, %v5798_v25, %v5806_v12  ;;  %v5808_v34 = vrot.slane %v5806_v12, 4 }
 0x3e9   : > { %5862 = vst [vmem:[%s8473_s12 + $0x28] sm:$0xf] %v5807_v63  ;;  %v5812_v42 = vrot.slane %v5810_v3, 6  ;;  %v5815_v22 = vrot.slane %v5813_v53, 7  ;;  %v5820_v29 = vshrl.u32 %v6524_v6, 16  ;;  %v5823_v17 = vshll.u32 %v6524_v6, 16 }
 0x3eb   : > { %v5816_v4 = vor.u32 %v5815_v22, %v5812_v42  ;;  %v5822_v2 = vrot.slane %v5820_v29, 6  ;;  %v5825_v19 = vrot.slane %v5823_v17, 7 }
 0x3ec   : > { %v5558_v43 = vld [vmem:[#allocation2 + $0x60] sm:$0xf] }
 0x3ed   : > { %v5817_v27 = vsel %vm8833_vm12, %v5808_v34, %v5816_v4  ;;  %v5818_v13 = vrot.slane %v5816_v4, 4  ;;  %v5826_v9 = vor.u32 %v5825_v19, %v5822_v2  ;;  %v5578_v0 = vadd.f32 %v9487_v54, %v5558_v43 }
 0x3ee   : > { %5863 = vst [vmem:[%s8473_s12 + $0x2c] sm:$0xf] %v5817_v27 }
 0x3ef   : > { %v5827_v49 = vsel %vm8833_vm12, %v5818_v13, %v5826_v9  ;;  %v5643_v46 = vadd.f32 %v9557_v56, %v5578_v0  ;;  %v5828_v45 = vrot.slane %v5826_v9, 4 }
 0x3f0   : > { %5864 = vst [vmem:[%s8473_s12 + $0x30] sm:$0xf] %v5827_v49 }
 0x3f1   : > { %v5656_v31 = vmax.f32 %v5643_v46, 0.0 }
 0x3f3   : > { %v5669_v15 = vmul.f32 %v5656_v31, %v9010_v5 }
 0x3f5   : > { %v6525_v16 = vpack.c.bf16 %v5669_v15, %v5669_v15 }
 0x3f7   : > { %v5830_v24 = vshrl.u32 %v6525_v16, 16  ;;  %v5833_v44 = vshll.u32 %v6525_v16, 16 }
 0x3f9   : > { %v5832_v41 = vrot.slane %v5830_v24, 6  ;;  %v5835_v61 = vrot.slane %v5833_v44, 7 }
 0x3fb   : > { %v5836_v54 = vor.u32 %v5835_v61, %v5832_v41 }
 0x3fd   : > { %v5837_v8 = vsel %vm8833_vm12, %v5828_v45, %v5836_v54 }
 0x3fe   : > { %v5866_v62 = vsel %vm9030_vm8, %v5837_v8, %v5865_v59 }
 0x3ff   : > { %5867 = vst [vmem:[%s8473_s12 + $0x34] sm:$0xf] %v5866_v62 }
 0x406   : > { %v5872_v56 = vld [vmem:[%s8473_s12 + $0x34] sm:$0x8] }
 0x407   : > { %v5873_v33 = vsel %vm9047_vm13, 0, %v5872_v56 }
 0x408   : > { %5874 = vst [vmem:[%s8473_s12 + $0x34] sm:$0x8] %v5873_v33 }
 0x409 PF: > { %s17_s24 = sadd.s32 1, %s7907_s24  }
 0x40a   : > { %p14_p4 = scmp.ge.s32.totalorder %s17_s24, 4  }
 0x40c   :  { %16 = sbr.rel (!%p14_p4) target bundleno = 1 (0x1), region = 94 }

// kernel: _lambda_.2
= control target key start
LH: loop header
LB: loop body
LE: loop exit
PB: predicated region body
PF: predicated region fallthrough
CT: control target
= control target key end

     0   :  { %s8489_s30 = smov 0   ;;  %s10065_s0 = inlined_call_operand.vmem [shape: bf16[2,4,122,128], index: 0, kind: input, shape index: {}]   ;;  %s10066_s1 = inlined_call_operand.vmem [shape: bf16[9,128,128], index: 1, kind: input, shape index: {}]   ;;  %s10067_s2 = inlined_call_operand.vmem [shape: f32[1,128], index: 2, kind: input, shape index: {}, may-alias: {2,5,7}]   ;;  %s10068_s3 = inlined_call_operand.vmem [shape: f32[1,128], index: 3, kind: input, shape index: {}]   ;;  %s10069_s4 = inlined_call_operand.vmem [shape: bf16[9,128,128], index: 4, kind: input, shape index: {}]   ;;  %s10070_s5 = inlined_call_operand.vmem [shape: f32[1,128], index: 5, kind: input, shape index: {}, may-alias: {2,5,7}]   ;;  %s10071_s6 = inlined_call_operand.vmem [shape: bf16[128,128], index: 6, kind: input, shape index: {}]   ;;  %s10072_s7 = inlined_call_operand.vmem [shape: f32[1,128], index: 7, kind: input, shape index: {}, may-alias: {2,5,7}]   ;;  %s10073_s8 = inlined_call_operand.vmem [shape: f32[100,1], index: 8, kind: input, shape index: {}]   ;;  %s10074_s9 = inlined_call_operand.vmem [shape: bf16[2,122,128], index: 9, kind: output, shape index: {}]  }
   0x1 LB: > { %s6071_s10 = sadd.s32 4294967295, %s8434_s30   ;;  %p6075_p0 = scmp.ge.s32.totalorder %s8434_s30, 1  ;;  %s8434_s30 = sphi %s8489_s30, %s19_s30  }
   0x2   : > { %p287_p1 = scmp.lt.s32.totalorder %s8434_s30, 3 }
   0x4   : > { %p288_p2 = pnand %p6075_p0, %p287_p1 }
   0x5   : > { %v8143_v0 = vld [vmem:[%s10066_s1] sm:$0xff] (!%p288_p2)   ;;  %v8436_v1 = vmov (!%p288_p2), 0.0   ;;  %v8144_v2 = vld [vmem:[%s10066_s1 + $0x8] sm:$0xff] (!%p288_p2)   ;;  %vm8437_vm0 = vmmov (!%p288_p2), 0   ;;  %p323_p3 = scmp.lt.s32.totalorder (!%p288_p2), %s6071_s10, 1  ;;  %v8145_v3 = vld [vmem:[%s10066_s1 + $0x10] sm:$0xff] (!%p288_p2)  }
   0x6   : > { %291 = sbr.rel (%p288_p2) target bundleno = 1518 (0x5ee), region = 56  ;;  %7044 = vmatprep.subr.bf16.mxu0 (!%p288_p2), %v8436_v1  ;;  %7880 = vmatprep.subr.bf16.mxu1 (!%p288_p2), %v8436_v1  ;;  %v8146_v4 = vld [vmem:[%s10066_s1 + $0x18] sm:$0xff] (!%p288_p2)   ;;  %v8147_v5 = vld [vmem:[%s10066_s1 + $0x20] sm:$0xff] (!%p288_p2)   ;;  %v8148_v6 = vld [vmem:[%s10066_s1 + $0x28] sm:$0xff] (!%p288_p2)   ;;  %vm874_vm1 = vsmask.f32 (!%p288_p2), 7424 }
   0x7   : > { %7045 = vmatpush3.bf16.msra.mxu0 (!%p288_p2), %v8143_v0  ;;  %7060 = vmatprep.mubr.msk.bf16.mxu0 (!%p288_p2), %vm8437_vm0, %v8436_v1  ;;  %v8149_v7 = vld [vmem:[%s10066_s1 + $0x30] sm:$0xff] (!%p288_p2)   ;;  %v8150_v8 = vld [vmem:[%s10066_s1 + $0x38] sm:$0xff] (!%p288_p2)   ;;  %v8152_v10 = vld [vmem:[%s10066_s1 + $0x40] sm:$0xff] (!%p288_p2)   ;;  %vm1967_vm2 = vcmask (!%p288_p2), 1046528   ;;  %vm2484_vm3 = vsmask.f32 (!%p288_p2), 6400 }
   0x8   : > { %7046 = vmatprep.subr.bf16.mxu0 (!%p288_p2), %v8436_v1  ;;  %7468 = vmatprep.mubr.msk.bf16.mxu1 (!%p288_p2), %vm8437_vm0, %v8436_v1  ;;  %v8154_v11 = vld [vmem:[%s10066_s1 + $0x48] sm:$0xff] (!%p288_p2)   ;;  %v8155_v13 = vld [vmem:[%s10066_s1 + $0x50] sm:$0xff] (!%p288_p2)   ;;  %v8157_v14 = vld [vmem:[%s10066_s1 + $0x58] sm:$0xff] (!%p288_p2)   ;;  %vm3057_vm4 = vcmask (!%p288_p2), 1043457   ;;  %vm3058_vm5 = vsmask.f32 (!%p288_p2), 7942 }
   0x9   : > { %v8159_v16 = vld [vmem:[%s10066_s1 + $0x60] sm:$0xff] (!%p288_p2)   ;;  %v8161_v17 = vld [vmem:[%s10066_s1 + $0x68] sm:$0xff] (!%p288_p2)   ;;  %v8163_v19 = vld [vmem:[%s10066_s1 + $0x70] sm:$0xff] (!%p288_p2)   ;;  %vm2913_vm6 = vsmask.f32 (!%p288_p2), 1280  ;;  %vm3081_vm10 = vcmask (!%p288_p2), 1041408  }
   0xa   : > { %v8165_v20 = vld [vmem:[%s10066_s1 + $0x78] sm:$0xff] (!%p288_p2)   ;;  %v8167_v25 = vld [vmem:[%s10066_s1 + $0x80] sm:$0xff] (!%p288_p2)   ;;  %v8169_v26 = vld [vmem:[%s10066_s1 + $0x88] sm:$0xff] (!%p288_p2)   ;;  %vm2914_vm7 = vsmask.f32 (!%p288_p2), 5392  ;;  %vm3074_vm12 = vcmask (!%p288_p2), 1043456  }
   0xb   : > { %7047 = vmatpush3.bf16.msra.mxu0 (!%p288_p2), %v8144_v2  ;;  %v8170_v28 = vld [vmem:[%s10066_s1 + $0x90] sm:$0xff] (!%p288_p2)   ;;  %v8172_v29 = vld [vmem:[%s10066_s1 + $0x98] sm:$0xff] (!%p288_p2)   ;;  %v8174_v31 = vld [vmem:[%s10066_s1 + $0xa0] sm:$0xff] (!%p288_p2)   ;;  %vm3075_vm13 = vsmask.f32 (!%p288_p2), 3328  ;;  %vm3086_vm15 = vcmask (!%p288_p2), 1043459  }
   0xc   : > { %7048 = vmatprep.subr.bf16.mxu0 (!%p288_p2), %v8436_v1  ;;  %v8176_v32 = vld [vmem:[%s10066_s1 + $0xa8] sm:$0xff] (!%p288_p2)   ;;  %v8178_v34 = vld [vmem:[%s10066_s1 + $0xb0] sm:$0xff] (!%p288_p2)   ;;  %v8180_v35 = vld [vmem:[%s10066_s1 + $0xb8] sm:$0xff] (!%p288_p2)  }
   0xd   : > { %s10086_s10 = smov (!%p323_p3, %s6071_s10), 1  ;;  %v8183_v51 = vld [vmem:[%s10066_s1 + $0xc0] sm:$0xff]   ;;  %v8185_v56 = vld [vmem:[%s10066_s1 + $0xc8] sm:$0xff]   ;;  %v8186_v59 = vld [vmem:[%s10066_s1 + $0xd0] sm:$0xff]  }
   0xe   : > { %s6731_s17 = sshll.u32 %s10086_s10, 8  ;;  %v8188_v0 = vld [vmem:[%s10066_s1 + $0xd8] sm:$0xff]   ;;  %s6732_s16 = sshll.u32 %s10086_s10, 6  ;;  %vm9369_vm8 = vmand %vm3057_vm4, %vm3058_vm5  ;;  %vm3087_vm4 = vsmask.f32 7950 }
   0xf   : > { %s8520_s20 = scalar_lea.vmem %s10065_s0, %s6731_s17  ;;  %7049 = vmatpush3.bf16.msra.mxu0 %v8145_v3  ;;  %s9095_s19 = scalar_lea.vmem %s10074_s9, %s6732_s16  ;;  %vm9379_vm9 = vmor %vm2913_vm6, %vm2914_vm7 }
  0x10   : > { %7050 = vmatprep.subr.bf16.mxu0 %v8436_v1  ;;  %v8151_v9 = vld [vmem:[%s8520_s20] sm:$0xff]   ;;  %v8153_v12 = vld [vmem:[%s8520_s20 + $0x8] sm:$0xff]   ;;  %v8156_v15 = vld [vmem:[%s8520_s20 + $0x10] sm:$0xff]  }
  0x11   : > { %v8158_v18 = vld [vmem:[%s8520_s20 + $0x18] sm:$0xff]   ;;  %v8160_v21 = vld [vmem:[%s8520_s20 + $0x20] sm:$0xff]   ;;  %v8162_v22 = vld [vmem:[%s8520_s20 + $0x28] sm:$0xff]  }
  0x12   : > { %v8164_v23 = vld [vmem:[%s8520_s20 + $0x30] ss:$0 sps:$4 sm:$0x33]   ;;  %v8166_v24 = vld [vmem:[%s8520_s20 + $0x40] sm:$0xff]   ;;  %v8168_v27 = vld [vmem:[%s8520_s20 + $0x48] sm:$0xff]  }
  0x13   : > { %7051 = vmatpush3.bf16.msra.mxu0 %v8146_v4  ;;  %v8171_v30 = vld [vmem:[%s8520_s20 + $0x50] sm:$0xff]   ;;  %v8173_v33 = vld [vmem:[%s8520_s20 + $0x58] sm:$0xff]   ;;  %v8175_v36 = vld [vmem:[%s8520_s20 + $0x60] sm:$0xff]  }
  0x14   : > { %7052 = vmatprep.subr.bf16.mxu0 %v8436_v1  ;;  %v8181_v37 = vld [vmem:[%s8520_s20] sm:$0xff]   ;;  %v8177_v39 = vld [vmem:[%s8520_s20 + $0x68] sm:$0xff]   ;;  %v8179_v44 = vld [vmem:[%s8520_s20 + $0x70] ss:$0 sps:$4 sm:$0x33]  }
  0x15   : > { %v878_v38 = vshll.u32 %v8181_v37, 16  ;;  %v8182_v40 = vld [vmem:[%s8520_s20 + $0x8] sm:$0xff]   ;;  %v876_v41 = vshrl.u32 %v8181_v37, 16  ;;  %v8184_v45 = vld [vmem:[%s8520_s20 + $0x10] sm:$0xff]   ;;  %v8187_v49 = vld [vmem:[%s8520_s20 + $0x18] sm:$0xff]  }
  0x16   : > { %v883_v43 = vshll.u32 %v8182_v40, 16  ;;  %v887_v47 = vshrl.u32 %v8182_v40, 16  ;;  %v891_v48 = vshll.u32 %v8184_v45, 16  ;;  %v895_v54 = vshrl.u32 %v8184_v45, 16  ;;  %v8189_v57 = vld [vmem:[%s8520_s20 + $0x20] sm:$0xff]   ;;  %v8191_v2 = vld [vmem:[%s8520_s20 + $0x28] sm:$0xff]   ;;  %vm9395_vm11 = vmand %vm3081_vm10, %vm2913_vm6 }
  0x17   : > { %7053 = vmatpush3.bf16.msra.mxu0 %v8147_v5  ;;  %v880_v42 = vrot.slane %v878_v38, 1  ;;  %v899_v55 = vshll.u32 %v8187_v49, 16  ;;  %v903_v62 = vshrl.u32 %v8187_v49, 16  ;;  %v907_v63 = vshll.u32 %v8189_v57, 16  ;;  %v8190_v5 = vld [vmem:[%s10066_s1 + $0xe0] sm:$0xff]   ;;  %v8207_v38 = vld [vmem:[%s8520_s20 + $0xa8] sm:$0xff]   ;;  %vm9499_vm14 = vmand %vm3074_vm12, %vm3075_vm13 }
  0x18   : > { %7054 = vmatprep.subr.bf16.mxu0 %v8436_v1  ;;  %v885_v46 = vrot.slane %v883_v43, 1  ;;  %v893_v53 = vrot.slane %v891_v48, 1  ;;  %v8205_v37 = vld [vmem:[%s8520_s20 + $0xa0] sm:$0xff]   ;;  %vm9519_vm5 = vmand %vm3086_vm15, %vm3087_vm4 }
  0x19   : > { %v881_v50 = vor.u32 %v880_v42, %v876_v41  ;;  %v901_v61 = vrot.slane %v899_v55, 1  ;;  %v8209_v41 = vld [vmem:[%s8520_s20 + $0xb0] ss:$0 sps:$4 sm:$0x33]   ;;  %v8212_v48 = vld [vmem:[%s10066_s1 + $0x140] sm:$0xff]  }
  0x1a   : > { %v889_v58 = vor.u32 %v887_v47, %v885_v46  ;;  %v897_v3 = vor.u32 %v895_v54, %v893_v53  ;;  %v8215_v55 = vld [vmem:[%s10066_s1 + $0x150] sm:$0xff]  }
  0x1b   : > { %7055 = vmatpush3.bf16.msra.mxu0 %v8148_v6  ;;  %v886_v52 = vsel %vm874_vm1, %v881_v50, %v885_v46  ;;  %v911_v6 = vshrl.u32 %v8189_v57, 16  ;;  %v8211_v46 = vld [vmem:[%s8520_s20 + $0xc0] sm:$0xff]   ;;  %v8214_v50 = vld [vmem:[%s10066_s1 + $0x148] sm:$0xff]   ;;  %v8217_v57 = vld [vmem:[%s10066_s1 + $0x158] sm:$0xff]  }
  0x1c   : > { %7056 = vmatprep.subr.bf16.mxu0 %v8436_v1  ;;  %v894_v60 = vsel %vm874_vm1, %v889_v58, %v893_v53  ;;  %v902_v4 = vsel %vm874_vm1, %v897_v3, %v901_v61  ;;  %v8213_v53 = vld [vmem:[%s8520_s20 + $0xc8] sm:$0xff]  }
  0x1f   : > { %7057 = vmatpush3.bf16.msra.mxu0 %v8149_v7  ;;  %v909_v7 = vrot.slane %v907_v63, 1 }
  0x20   : > { %7058 = vmatprep.subr.bf16.mxu0 %v8436_v1 }
  0x23   : > { %7059 = vmatpush3.bf16.msra.mxu0 %v8150_v8  ;;  %v915_v8 = vshll.u32 %v8191_v2, 16 }
  0x24   : > { %7088 = vmatprep.subr.bf16.mxu0 %v8436_v1 }
  0x26   : > { %7061 = vmatmul.mubr.bf16.vlgmr.msra.gmra.mrb[0].mxu0 %v8151_v9  ;;  %v8192_v9 = vld [vmem:[%s10066_s1 + $0xe8] sm:$0xff]  }
  0x27   : > { %7089 = vmatpush3.bf16.msra.mxu0 %v8152_v10  ;;  %7064 = vmatprep.mubr.msk.bf16.mxu0 %vm8437_vm0, %v8436_v1  ;;  %v905_v10 = vor.u32 %v903_v62, %v901_v61  ;;  %v8219_v62 = vld [vmem:[%s10066_s1 + $0x160] sm:$0xff]  }
  0x28   : > { %7090 = vmatprep.subr.bf16.mxu0 %v8436_v1 }
  0x2b   : > { %7091 = vmatpush3.bf16.msra.mxu0 %v8154_v11  ;;  %v8194_v11 = vld [vmem:[%s10066_s1 + $0xf0] sm:$0xff]  }
  0x2c   : > { %7092 = vmatprep.subr.bf16.mxu0 %v8436_v1 }
  0x2e   : > { %7065 = vmatmul.mubr.bf16.gmra.mrb[4].mxu0 %v8153_v12  ;;  %v910_v12 = vsel %vm874_vm1, %v905_v10, %v909_v7 }
  0x2f   : > { %7068 = vmatprep.mubr.msk.bf16.mxu0 %vm8437_vm0, %v8436_v1  ;;  %7093 = vmatpush3.bf16.msra.mxu0 %v8155_v13  ;;  %v917_v13 = vrot.slane %v915_v8, 1  ;;  %v8225_v8 = vld [vmem:[%s10066_s1 + $0x178] sm:$0xff]  }
  0x30   : > { %7094 = vmatprep.subr.bf16.mxu0 %v8436_v1 }
  0x33   : > { %7095 = vmatpush3.bf16.msra.mxu0 %v8157_v14  ;;  %v8193_v14 = vld [vmem:[%s8520_s20 + $0x30] ss:$0 sps:$4 sm:$0x77]  }
  0x34   : > { %7096 = vmatprep.subr.bf16.mxu0 %v8436_v1 }
  0x36   : > { %7069 = vmatmul.mubr.bf16.gmra.mrb[8].mxu0 %v8156_v15  ;;  %v8195_v15 = vld [vmem:[%s10066_s1 + $0xf8] sm:$0xff]  }
  0x37   : > { %7072 = vmatprep.mubr.msk.bf16.mxu0 %vm8437_vm0, %v8436_v1  ;;  %7097 = vmatpush3.bf16.msra.mxu0 %v8159_v16  ;;  %v913_v16 = vor.u32 %v911_v6, %v909_v7  ;;  %v8223_v6 = vld [vmem:[%s10066_s1 + $0x170] sm:$0xff]  }
  0x38   : > { %7098 = vmatprep.subr.bf16.mxu0 %v8436_v1 }
  0x3b   : > { %7099 = vmatpush3.bf16.msra.mxu0 %v8161_v17  ;;  %v918_v17 = vsel %vm874_vm1, %v913_v16, %v917_v13  ;;  %v8222_v16 = vld [vmem:[%s8520_s20 + $0xe8] sm:$0xff]  }
  0x3c   : > { %7100 = vmatprep.subr.bf16.mxu0 %v8436_v1 }
  0x3e   : > { %7073 = vmatmul.mubr.bf16.gmra.mrb[12].mxu0 %v8158_v18  ;;  %v919_v18 = vshrl.u32 %v8191_v2, 16 }
  0x3f   : > { %7076 = vmatprep.mubr.msk.bf16.mxu0 %vm8437_vm0, %v8436_v1  ;;  %7101 = vmatpush3.bf16.msra.mxu0 %v8163_v19  ;;  %v923_v19 = vshll.u32 %v8193_v14, 16 }
  0x40   : > { %7102 = vmatprep.subr.bf16.mxu0 %v8436_v1 }
  0x43   : > { %7103 = vmatpush3.bf16.msra.mxu0 %v8165_v20  ;;  %v921_v20 = vor.u32 %v919_v18, %v917_v13  ;;  %v8226_v18 = vld [vmem:[%s8520_s20 + $0x80] sm:$0xff]  }
  0x44   : > { %7132 = vmatprep.subr.bf16.mxu0 %v8436_v1 }
  0x46   : > { %7077 = vmatmul.mubr.bf16.gmra.mrb[16].mxu0 %v8160_v21  ;;  %v925_v21 = vrot.slane %v923_v19, 1 }
  0x47   : > { %7080 = vmatprep.mubr.msk.bf16.mxu0 %vm8437_vm0, %v8436_v1 }
  0x4e   : > { %7081 = vmatmul.mubr.bf16.gmra.mrb[20].mxu0 %v8162_v22  ;;  %v926_v22 = vsel %vm874_vm1, %v921_v20, %v925_v21  ;;  %v8227_v20 = vld [vmem:[%s8520_s20 + $0x88] sm:$0xff]  }
  0x4f   : > { %7084 = vmatprep.mubr.msk.bf16.mxu0 %vm8437_vm0, %v8436_v1 }
  0x56   : > { %7085 = vmatmul.mubr.bf16.gmra.mrb[24].mxu0 %v8164_v23  ;;  %v927_v23 = vshrl.u32 %v8193_v14, 16 }
  0x57   : > { %7104 = vmatprep.mubr.msk.bf16.mxu0 %vm8437_vm0, %v8436_v1 }
  0x5e   : > { %7105 = vmatmul.mubr.bf16.vlgmr.msra.gmra.mrb[28].mxu0 %v8166_v24  ;;  %v929_v24 = vor.u32 %v927_v23, %v925_v21  ;;  %v1670_v21 = vshll.u32 %v8226_v18, 16 }
  0x5f   : > { %7133 = vmatpush3.bf16.msra.mxu0 %v8167_v25  ;;  %7108 = vmatprep.mubr.msk.bf16.mxu0 %vm8437_vm0, %v8436_v1  ;;  %v8196_v25 = vld [vmem:[%s8520_s20 + $0x80] sm:$0xff]  }
  0x60   : > { %7134 = vmatprep.subr.bf16.mxu0 %v8436_v1 }
  0x63   : > { %7135 = vmatpush3.bf16.msra.mxu0 %v8169_v26  ;;  %v8197_v26 = vld [vmem:[%s10066_s1 + $0x100] sm:$0xff]  }
  0x64   : > { %7136 = vmatprep.subr.bf16.mxu0 %v8436_v1 }
  0x66   : > { %7109 = vmatmul.mubr.bf16.gmra.mrb[32].mxu0 %v8168_v27  ;;  %v8199_v27 = vld [vmem:[%s10066_s1 + $0x108] sm:$0xff]  }
  0x67   : > { %7112 = vmatprep.mubr.msk.bf16.mxu0 %vm8437_vm0, %v8436_v1  ;;  %7137 = vmatpush3.bf16.msra.mxu0 %v8170_v28  ;;  %v8198_v28 = vld [vmem:[%s8520_s20 + $0x88] sm:$0xff]  }
  0x68   : > { %7138 = vmatprep.subr.bf16.mxu0 %v8436_v1 }
  0x6b   : > { %7139 = vmatpush3.bf16.msra.mxu0 %v8172_v29  ;;  %v8200_v29 = vld [vmem:[%s10066_s1 + $0x110] sm:$0xff]  }
  0x6c   : > { %7140 = vmatprep.subr.bf16.mxu0 %v8436_v1 }
  0x6e   : > { %7113 = vmatmul.mubr.bf16.gmra.mrb[36].mxu0 %v8171_v30  ;;  %v8202_v30 = vld [vmem:[%s10066_s1 + $0x118] sm:$0xff]  }
  0x6f   : > { %7116 = vmatprep.mubr.msk.bf16.mxu0 %vm8437_vm0, %v8436_v1  ;;  %7141 = vmatpush3.bf16.msra.mxu0 %v8174_v31  ;;  %v8201_v31 = vld [vmem:[%s8520_s20 + $0x90] sm:$0xff]  }
  0x70   : > { %7142 = vmatprep.subr.bf16.mxu0 %v8436_v1 }
  0x73   : > { %7143 = vmatpush3.bf16.msra.mxu0 %v8176_v32  ;;  %v8204_v32 = vld [vmem:[%s10066_s1 + $0x120] sm:$0xff]  }
  0x74   : > { %7144 = vmatprep.subr.bf16.mxu0 %v8436_v1 }
  0x76   : > { %7117 = vmatmul.mubr.bf16.gmra.mrb[40].mxu0 %v8173_v33  ;;  %v8206_v33 = vld [vmem:[%s10066_s1 + $0x128] sm:$0xff]  }
  0x77   : > { %7120 = vmatprep.mubr.msk.bf16.mxu0 %vm8437_vm0, %v8436_v1  ;;  %7145 = vmatpush3.bf16.msra.mxu0 %v8178_v34  ;;  %v8203_v34 = vld [vmem:[%s8520_s20 + $0x98] sm:$0xff]  }
  0x78   : > { %7146 = vmatprep.subr.bf16.mxu0 %v8436_v1 }
  0x7b   : > { %7147 = vmatpush3.bf16.msra.mxu0 %v8180_v35  ;;  %v8208_v35 = vld [vmem:[%s10066_s1 + $0x130] sm:$0xff]  }
  0x7c   : > { %7176 = vmatprep.subr.bf16.mxu0 %v8436_v1 }
  0x7e   : > { %7121 = vmatmul.mubr.bf16.gmra.mrb[44].mxu0 %v8175_v36  ;;  %v8210_v36 = vld [vmem:[%s10066_s1 + $0x138] sm:$0xff]  }
  0x7f   : > { %7124 = vmatprep.mubr.msk.bf16.mxu0 %vm8437_vm0, %v8436_v1 }
  0x86   : > { %7125 = vmatmul.mubr.bf16.gmra.mrb[48].mxu0 %v8177_v39 }
  0x87   : > { %7128 = vmatprep.mubr.msk.bf16.mxu0 %vm8437_vm0, %v8436_v1 }
  0x8e   : > { %7129 = vmatmul.mubr.bf16.gmra.mrb[52].mxu0 %v8179_v44 }
  0x8f   : > { %7148 = vmatprep.mubr.msk.bf16.mxu0 %vm8437_vm0, %v8436_v1 }
  0x96   : > { %7149 = vmatmul.mubr.bf16.vlgmr.msra.gmra.mrb[56].mxu0 %v886_v52 }
  0x97   : > { %7177 = vmatpush3.bf16.msra.mxu0 %v8183_v51  ;;  %7152 = vmatprep.mubr.msk.bf16.mxu0 %vm8437_vm0, %v8436_v1 }
  0x98   : > { %7178 = vmatprep.subr.bf16.mxu0 %v8436_v1 }
  0x9b   : > { %7179 = vmatpush3.bf16.msra.mxu0 %v8185_v56 }
  0x9c   : > { %7180 = vmatprep.subr.bf16.mxu0 %v8436_v1 }
  0x9e   : > { %7153 = vmatmul.mubr.bf16.gmra.mrb[60].mxu0 %v894_v60  ;;  %v8216_v60 = vld [vmem:[%s8520_s20 + $0xd0] sm:$0xff]  }
  0x9f   : > { %7156 = vmatprep.mubr.msk.bf16.mxu0 %vm8437_vm0, %v8436_v1  ;;  %7181 = vmatpush3.bf16.msra.mxu0 %v8186_v59 }
  0xa0   : > { %7182 = vmatprep.subr.bf16.mxu0 %v8436_v1 }
  0xa3   : > { %7183 = vmatpush3.bf16.msra.mxu0 %v8188_v0  ;;  %v8221_v0 = vld [vmem:[%s10066_s1 + $0x168] sm:$0xff]  }
  0xa4   : > { %7184 = vmatprep.subr.bf16.mxu0 %v8436_v1 }
  0xa6   : > { %7157 = vmatmul.mubr.bf16.gmra.mrb[64].mxu0 %v902_v4  ;;  %v8218_v4 = vld [vmem:[%s8520_s20 + $0xd8] sm:$0xff]  }
  0xa7   : > { %7160 = vmatprep.mubr.msk.bf16.mxu0 %vm8437_vm0, %v8436_v1  ;;  %7185 = vmatpush3.bf16.msra.mxu0 %v8190_v5 }
  0xa8   : > { %7186 = vmatprep.subr.bf16.mxu0 %v8436_v1 }
  0xab   : > { %7187 = vmatpush3.bf16.msra.mxu0 %v8192_v9 }
  0xac   : > { %7188 = vmatprep.subr.bf16.mxu0 %v8436_v1 }
  0xae   : > { %7161 = vmatmul.mubr.bf16.gmra.mrb[68].mxu0 %v910_v12 }
  0xaf   : > { %7164 = vmatprep.mubr.msk.bf16.mxu0 %vm8437_vm0, %v8436_v1  ;;  %7189 = vmatpush3.bf16.msra.mxu0 %v8194_v11  ;;  %v8220_v11 = vld [vmem:[%s8520_s20 + $0xe0] sm:$0xff]  }
  0xb0   : > { %7190 = vmatprep.subr.bf16.mxu0 %v8436_v1 }
  0xb3   : > { %7191 = vmatpush3.bf16.msra.mxu0 %v8195_v15 }
  0xb4   : > { %7220 = vmatprep.subr.bf16.mxu0 %v8436_v1 }
  0xb6   : > { %7165 = vmatmul.mubr.bf16.gmra.mrb[72].mxu0 %v918_v17 }
  0xb7   : > { %7168 = vmatprep.mubr.msk.bf16.mxu0 %vm8437_vm0, %v8436_v1 }
  0xbe   : > { %7169 = vmatmul.mubr.bf16.gmra.mrb[76].mxu0 %v926_v22 }
  0xbf   : > { %7172 = vmatprep.mubr.msk.bf16.mxu0 %vm8437_vm0, %v8436_v1 }
  0xc6   : > { %7173 = vmatmul.mubr.bf16.gmra.mrb[80].mxu0 %v929_v24 }
  0xc7   : > { %7192 = vmatprep.mubr.msk.bf16.mxu0 %vm8437_vm0, %v8436_v1 }
  0xce   : > { %7193 = vmatmul.mubr.bf16.vlgmr.msra.gmra.mrb[84].mxu0 %v8196_v25  ;;  %v8224_v25 = vld [vmem:[%s8520_s20 + $0xf0] ss:$0 sps:$4 sm:$0x33]  }
  0xcf   : > { %7221 = vmatpush3.bf16.msra.mxu0 %v8197_v26  ;;  %7196 = vmatprep.mubr.msk.bf16.mxu0 %vm8437_vm0, %v8436_v1 }
  0xd0   : > { %7222 = vmatprep.subr.bf16.mxu0 %v8436_v1 }
  0xd3   : > { %7223 = vmatpush3.bf16.msra.mxu0 %v8199_v27  ;;  %v1668_v27 = vshrl.u32 %v8226_v18, 16  ;;  %v8237_v18 = vld [vmem:[%s10066_s1 + $0x1a8] sm:$0xff]  }
  0xd4   : > { %7224 = vmatprep.subr.bf16.mxu0 %v8436_v1 }
  0xd6   : > { %7197 = vmatmul.mubr.bf16.gmra.mrb[88].mxu0 %v8198_v28  ;;  %v1672_v28 = vrot.slane %v1670_v21, 1 }
  0xd7   : > { %7200 = vmatprep.mubr.msk.bf16.mxu0 %vm8437_vm0, %v8436_v1  ;;  %7225 = vmatpush3.bf16.msra.mxu0 %v8200_v29  ;;  %v1675_v29 = vshll.u32 %v8227_v20, 16 }
  0xd8   : > { %7226 = vmatprep.subr.bf16.mxu0 %v8436_v1 }
  0xdb   : > { %7227 = vmatpush3.bf16.msra.mxu0 %v8202_v30 }
  0xdc   : > { %7228 = vmatprep.subr.bf16.mxu0 %v8436_v1 }
  0xde   : > { %7201 = vmatmul.mubr.bf16.gmra.mrb[92].mxu0 %v8201_v31 }
  0xdf   : > { %7204 = vmatprep.mubr.msk.bf16.mxu0 %vm8437_vm0, %v8436_v1  ;;  %7229 = vmatpush3.bf16.msra.mxu0 %v8204_v32  ;;  %v1673_v32 = vor.u32 %v1672_v28, %v1668_v27 }
  0xe0   : > { %7230 = vmatprep.subr.bf16.mxu0 %v8436_v1 }
  0xe3   : > { %7231 = vmatpush3.bf16.msra.mxu0 %v8206_v33  ;;  %v1677_v33 = vrot.slane %v1675_v29, 1 }
  0xe4   : > { %7232 = vmatprep.subr.bf16.mxu0 %v8436_v1 }
  0xe6   : > { %7205 = vmatmul.mubr.bf16.gmra.mrb[96].mxu0 %v8203_v34  ;;  %v8229_v34 = vld [vmem:[%s8520_s20 + $0x90] sm:$0xff]  }
  0xe7   : > { %7208 = vmatprep.mubr.msk.bf16.mxu0 %vm8437_vm0, %v8436_v1  ;;  %7233 = vmatpush3.bf16.msra.mxu0 %v8208_v35 }
  0xe8   : > { %7234 = vmatprep.subr.bf16.mxu0 %v8436_v1 }
  0xeb   : > { %7235 = vmatpush3.bf16.msra.mxu0 %v8210_v36 }
  0xec   : > { %7264 = vmatprep.subr.bf16.mxu0 %v8436_v1 }
  0xee   : > { %7209 = vmatmul.mubr.bf16.gmra.mrb[100].mxu0 %v8205_v37 }
  0xef   : > { %7212 = vmatprep.mubr.msk.bf16.mxu0 %vm8437_vm0, %v8436_v1 }
  0xf6   : > { %7213 = vmatmul.mubr.bf16.gmra.mrb[104].mxu0 %v8207_v38 }
  0xf7   : > { %7216 = vmatprep.mubr.msk.bf16.mxu0 %vm8437_vm0, %v8436_v1 }
  0xf9   : > { %v8758_v39 = vpop.f32.mrb[0].mxu0 }
  0xfa   : > { %v7062_v40 = vpop.f32.mrb[1].mxu0 }
  0xfb   : > { %v8761_v42 = vpop.f32.mrb[2].mxu0  ;;  %v8228_v40 = vld [vmem:[%s10066_s1 + $0x180] sm:$0xff]  }
  0xfc   : > { %v7063_v43 = vpop.f32.mrb[3].mxu0 }
  0xfe   : > { %7217 = vmatmul.mubr.bf16.gmra.mrb[108].mxu0 %v8209_v41  ;;  %v1679_v41 = vshrl.u32 %v8227_v20, 16 }
  0xff   : > { %7236 = vmatprep.mubr.msk.bf16.mxu0 %vm8437_vm0, %v8436_v1 }
 0x101   : > { %v8765_v44 = vpop.f32.mrb[4].mxu0 }
 0x102   : > { %v7066_v45 = vpop.f32.mrb[5].mxu0 }
 0x103   : > { %v8768_v47 = vpop.f32.mrb[6].mxu0 }
 0x104   : > { %v7067_v49 = vpop.f32.mrb[7].mxu0 }
 0x105   : > { %v8232_v49 = vld [vmem:[%s8520_s20 + $0x98] sm:$0xff]  }
 0x106   : > { %7237 = vmatmul.mubr.bf16.vlgmr.msra.gmra.mrb[112].mxu0 %v8211_v46 }
 0x107   : > { %7265 = vmatpush3.bf16.msra.mxu0 %v8212_v48  ;;  %7240 = vmatprep.mubr.msk.bf16.mxu0 %vm8437_vm0, %v8436_v1  ;;  %v8230_v48 = vld [vmem:[%s10066_s1 + $0x188] sm:$0xff]  }
 0x108   : > { %7266 = vmatprep.subr.bf16.mxu0 %v8436_v1 }
 0x109   : > { %v8779_v51 = vpop.f32.mrb[8].mxu0 }
 0x10a   : > { %v7070_v52 = vpop.f32.mrb[9].mxu0 }
 0x10b   : > { %v8782_v54 = vpop.f32.mrb[10].mxu0  ;;  %7267 = vmatpush3.bf16.msra.mxu0 %v8214_v50 }
 0x10c   : > { %v7071_v56 = vpop.f32.mrb[11].mxu0  ;;  %7268 = vmatprep.subr.bf16.mxu0 %v8436_v1 }
 0x10d   : > { %v8231_v56 = vld [vmem:[%s10066_s1 + $0x190] sm:$0xff]  }
 0x10e   : > { %7241 = vmatmul.mubr.bf16.gmra.mrb[116].mxu0 %v8213_v53 }
 0x10f   : > { %7244 = vmatprep.mubr.msk.bf16.mxu0 %vm8437_vm0, %v8436_v1  ;;  %7269 = vmatpush3.bf16.msra.mxu0 %v8215_v55 }
 0x110   : > { %7270 = vmatprep.subr.bf16.mxu0 %v8436_v1 }
 0x111   : > { %v8794_v58 = vpop.f32.mrb[12].mxu0 }
 0x112   : > { %v7074_v59 = vpop.f32.mrb[13].mxu0 }
 0x113   : > { %v8797_v61 = vpop.f32.mrb[14].mxu0  ;;  %7271 = vmatpush3.bf16.msra.mxu0 %v8217_v57  ;;  %v1687_v57 = vshrl.u32 %v8229_v34, 16  ;;  %v1691_v59 = vshll.u32 %v8232_v49, 16 }
 0x114   : > { %v7075_v63 = vpop.f32.mrb[15].mxu0  ;;  %7272 = vmatprep.subr.bf16.mxu0 %v8436_v1 }
 0x115   : > { %v1693_v63 = vrot.slane %v1691_v59, 1 }
 0x116   : > { %7245 = vmatmul.mubr.bf16.gmra.mrb[120].mxu0 %v8216_v60 }
 0x117   : > { %7248 = vmatprep.mubr.msk.bf16.mxu0 %vm8437_vm0, %v8436_v1  ;;  %7273 = vmatpush3.bf16.msra.mxu0 %v8219_v62 }
 0x118   : > { %7274 = vmatprep.subr.bf16.mxu0 %v8436_v1 }
 0x119   : > { %v8809_v2 = vpop.f32.mrb[16].mxu0 }
 0x11a   : > { %v7078_v3 = vpop.f32.mrb[17].mxu0 }
 0x11b   : > { %v8812_v5 = vpop.f32.mrb[18].mxu0  ;;  %7275 = vmatpush3.bf16.msra.mxu0 %v8221_v0  ;;  %v8233_v0 = vld [vmem:[%s10066_s1 + $0x198] sm:$0xff]   ;;  %v8234_v3 = vld [vmem:[%s8520_s20 + $0xa0] sm:$0xff]  }
 0x11c   : > { %v7079_v7 = vpop.f32.mrb[19].mxu0  ;;  %7276 = vmatprep.subr.bf16.mxu0 %v8436_v1 }
 0x11e   : > { %7249 = vmatmul.mubr.bf16.gmra.mrb[124].mxu0 %v8218_v4 }
 0x11f   : > { %7252 = vmatprep.mubr.msk.bf16.mxu0 %vm8437_vm0, %v8436_v1  ;;  %7277 = vmatpush3.bf16.msra.mxu0 %v8223_v6 }
 0x120   : > { %7278 = vmatprep.subr.bf16.mxu0 %v8436_v1 }
 0x121   : > { %v8824_v9 = vpop.f32.mrb[20].mxu0 }
 0x122   : > { %v7082_v10 = vpop.f32.mrb[21].mxu0 }
 0x123   : > { %v8827_v12 = vpop.f32.mrb[22].mxu0  ;;  %7279 = vmatpush3.bf16.msra.mxu0 %v8225_v8  ;;  %v1695_v10 = vshrl.u32 %v8232_v49, 16 }
 0x124   : > { %v7083_v13 = vpop.f32.mrb[23].mxu0  ;;  %7308 = vmatprep.subr.bf16.mxu0 %v8436_v1 }
 0x125   : > { %v8235_v13 = vld [vmem:[%s10066_s1 + $0x1a0] sm:$0xff]  }
 0x126   : > { %7253 = vmatmul.mubr.bf16.gmra.mrb[128].mxu0 %v8220_v11  ;;  %v1699_v11 = vshll.u32 %v8234_v3, 16 }
 0x127   : > { %7256 = vmatprep.mubr.msk.bf16.mxu0 %vm8437_vm0, %v8436_v1 }
 0x129   : > { %v546_v14 = vpop.f32.mrb[24].mxu0 }
 0x12a   : > { %564 = vst [vmem:[#allocation2 + $0x60] sm:$0xf] %v546_v14  ;;  %v7086_v15 = vpop.f32.mrb[25].mxu0 }
 0x12b   : > { %v549_v17 = vpop.f32.mrb[26].mxu0 }
 0x12c   : > { %v7087_v19 = vpop.f32.mrb[27].mxu0  ;;  %v8236_v17 = vld [vmem:[%s8520_s20 + $0xa8] sm:$0xff]  }
 0x12e   : > { %7257 = vmatmul.mubr.bf16.gmra.mrb[132].mxu0 %v8222_v16  ;;  %v1701_v16 = vrot.slane %v1699_v11, 1  ;;  %v8244_v11 = vld [vmem:[%s8520_s20 + $0x14] sm:$0xff]  }
 0x12f   : > { %7260 = vmatprep.mubr.msk.bf16.mxu0 %vm8437_vm0, %v8436_v1 }
 0x131   : > { %v718_v22 = vpop.f32.mrb[28].mxu0 }
 0x132   : > { %v8838_v23 = vadd.f32 %v718_v22, %v8758_v39  ;;  %v7106_v24 = vpop.f32.mrb[29].mxu0  ;;  %v1678_v39 = vsel %vm874_vm1, %v1673_v32, %v1677_v33  ;;  %v8240_v32 = vld [vmem:[%s10066_s1 + $0x1b8] sm:$0xff]  }
 0x133   : > { %v721_v26 = vpop.f32.mrb[30].mxu0  ;;  %v1703_v24 = vshrl.u32 %v8234_v3, 16 }
 0x134   : > { %v8842_v30 = vadd.f32 %v721_v26, %v8761_v42  ;;  %v7107_v31 = vpop.f32.mrb[31].mxu0  ;;  %v1683_v42 = vshll.u32 %v8229_v34, 16  ;;  %v8239_v26 = vld [vmem:[%s10066_s1 + $0x1b0] sm:$0xff]  }
 0x135   : > { %v8238_v31 = vld [vmem:[%s8520_s20 + $0xb0] ss:$0 sps:$4 sm:$0x77]  }
 0x136   : > { %7261 = vmatmul.mubr.bf16.gmra.mrb[136].mxu0 %v8224_v25  ;;  %v1685_v46 = vrot.slane %v1683_v42, 1  ;;  %v1707_v25 = vshll.u32 %v8236_v17, 16 }
 0x137   : > { %7280 = vmatprep.mubr.msk.bf16.mxu0 %vm8437_vm0, %v8436_v1 }
 0x138   : > { %v1709_v29 = vrot.slane %v1707_v25, 1  ;;  %v8248_v25 = vld [vmem:[%s10066_s1 + $0x1d8] sm:$0xff]  }
 0x139   : > { %v726_v35 = vpop.f32.mrb[32].mxu0 }
 0x13a   : > { %v8848_v36 = vadd.f32 %v726_v35, %v8765_v44  ;;  %v7110_v37 = vpop.f32.mrb[33].mxu0  ;;  %v1681_v44 = vor.u32 %v1679_v41, %v1677_v33 }
 0x13b   : > { %v729_v38 = vpop.f32.mrb[34].mxu0 }
 0x13c   : > { %v8855_v43 = vadd.f32 %v729_v38, %v8768_v47  ;;  %v7111_v45 = vpop.f32.mrb[35].mxu0  ;;  %v1686_v55 = vsel %vm874_vm1, %v1681_v44, %v1685_v46  ;;  %v1711_v38 = vshrl.u32 %v8236_v17, 16 }
 0x13d   : > { %v784_v45 = vld [vmem:[#allocation2 + $0x60] sm:$0xf] }
 0x13e   : > { %7281 = vmatmul.mubr.bf16.vlgmr.msra.gmra.mrb[140].mxu0 %v1678_v39  ;;  %v1715_v39 = vshll.u32 %v8238_v31, 16  ;;  %v1713_v42 = vor.u32 %v1711_v38, %v1709_v29 }
 0x13f   : > { %7309 = vmatpush3.bf16.msra.mxu0 %v8228_v40  ;;  %7284 = vmatprep.mubr.msk.bf16.mxu0 %vm8437_vm0, %v8436_v1 }
 0x140   : > { %7310 = vmatprep.subr.bf16.mxu0 %v8436_v1 }
 0x141   : > { %v734_v50 = vpop.f32.mrb[36].mxu0 }
 0x142   : > { %v8865_v52 = vadd.f32 %v734_v50, %v8779_v51  ;;  %v7114_v47 = vpop.f32.mrb[37].mxu0  ;;  %v1689_v51 = vor.u32 %v1687_v57, %v1685_v46 }
 0x143   : > { %v737_v53 = vpop.f32.mrb[38].mxu0  ;;  %7311 = vmatpush3.bf16.msra.mxu0 %v8230_v48  ;;  %v1719_v47 = vshrl.u32 %v8238_v31, 16  ;;  %v8249_v31 = vld [vmem:[%s8520_s20 + $0x24] sm:$0xff]  }
 0x144   : > { %v8872_v60 = vadd.f32 %v737_v53, %v8782_v54  ;;  %v7115_v62 = vpop.f32.mrb[39].mxu0  ;;  %7312 = vmatprep.subr.bf16.mxu0 %v8436_v1  ;;  %v1694_v8 = vsel %vm874_vm1, %v1689_v51, %v1693_v63  ;;  %v8242_v51 = vld [vmem:[%s8520_s20 + $0xc] sm:$0xff]  }
 0x145   : > { %v8241_v62 = vld [vmem:[%s8520_s20 + $0x4] sm:$0xfe]  }
 0x146   : > { %7285 = vmatmul.mubr.bf16.gmra.mrb[144].mxu0 %v1686_v55  ;;  %v1968_v3 = vrot.slane %v8241_v62, 1 }
 0x147   : > { %7288 = vmatprep.mubr.msk.bf16.mxu0 %vm8437_vm0, %v8436_v1  ;;  %7313 = vmatpush3.bf16.msra.mxu0 %v8231_v56 }
 0x148   : > { %7314 = vmatprep.subr.bf16.mxu0 %v8436_v1 }
 0x149   : > { %v742_v4 = vpop.f32.mrb[40].mxu0 }
 0x14a   : > { %v8883_v54 = vadd.f32 %v742_v4, %v8794_v58  ;;  %v7118_v6 = vpop.f32.mrb[41].mxu0  ;;  %v1697_v58 = vor.u32 %v1695_v10, %v1693_v63  ;;  %v1969_v4 = vrot.slane %v8242_v51, 1 }
 0x14b   : > { %v745_v7 = vpop.f32.mrb[42].mxu0  ;;  %7315 = vmatpush3.bf16.msra.mxu0 %v8233_v0 }
 0x14c   : > { %v8890_v14 = vadd.f32 %v745_v7, %v8797_v61  ;;  %v7119_v15 = vpop.f32.mrb[43].mxu0  ;;  %7316 = vmatprep.subr.bf16.mxu0 %v8436_v1  ;;  %v1702_v22 = vsel %vm874_vm1, %v1697_v58, %v1701_v16  ;;  %v1970_v10 = vsel %vm1967_vm2, %v1968_v3, %v1969_v4  ;;  %v8245_v58 = vld [vmem:[%s10066_s1 + $0x1c8] sm:$0xff]  }
 0x14e   : > { %7289 = vmatmul.mubr.bf16.gmra.mrb[148].mxu0 %v1694_v8 }
 0x14f   : > { %7292 = vmatprep.mubr.msk.bf16.mxu0 %vm8437_vm0, %v8436_v1  ;;  %7317 = vmatpush3.bf16.msra.mxu0 %v8235_v13 }
 0x150   : > { %7318 = vmatprep.subr.bf16.mxu0 %v8436_v1 }
 0x151   : > { %v750_v19 = vpop.f32.mrb[44].mxu0 }
 0x152   : > { %v8901_v61 = vadd.f32 %v750_v19, %v8809_v2  ;;  %v7122_v20 = vpop.f32.mrb[45].mxu0  ;;  %v1705_v2 = vor.u32 %v1703_v24, %v1701_v16 }
 0x153   : > { %v753_v21 = vpop.f32.mrb[46].mxu0  ;;  %7319 = vmatpush3.bf16.msra.mxu0 %v8237_v18  ;;  %v8246_v20 = vld [vmem:[%s10066_s1 + $0x1d0] sm:$0xff]  }
 0x154   : > { %v8908_v27 = vadd.f32 %v753_v21, %v8812_v5  ;;  %v7123_v28 = vpop.f32.mrb[47].mxu0  ;;  %7320 = vmatprep.subr.bf16.mxu0 %v8436_v1  ;;  %v1710_v37 = vsel %vm874_vm1, %v1705_v2, %v1709_v29  ;;  %v8247_v21 = vld [vmem:[%s8520_s20 + $0x1c] sm:$0xff]  }
 0x156   : > { %7293 = vmatmul.mubr.bf16.gmra.mrb[152].mxu0 %v1702_v22 }
 0x157   : > { %7296 = vmatprep.mubr.msk.bf16.mxu0 %vm8437_vm0, %v8436_v1  ;;  %7321 = vmatpush3.bf16.msra.mxu0 %v8239_v26 }
 0x158   : > { %7322 = vmatprep.subr.bf16.mxu0 %v8436_v1 }
 0x159   : > { %v758_v33 = vpop.f32.mrb[48].mxu0 }
 0x15a   : > { %v8919_v5 = vadd.f32 %v758_v33, %v8824_v9  ;;  %v7126_v34 = vpop.f32.mrb[49].mxu0  ;;  %v1717_v9 = vrot.slane %v1715_v39, 1 }
 0x15b   : > { %v761_v35 = vpop.f32.mrb[50].mxu0  ;;  %7323 = vmatpush3.bf16.msra.mxu0 %v8240_v32  ;;  %v8250_v32 = vld [vmem:[%s10066_s1 + $0x1e0] sm:$0xff]  }
 0x15c   : > { %v8923_v40 = vadd.f32 %v761_v35, %v8827_v12  ;;  %v7127_v41 = vpop.f32.mrb[51].mxu0  ;;  %7352 = vmatprep.subr.bf16.mxu0 %v8436_v1  ;;  %v1718_v50 = vsel %vm874_vm1, %v1713_v42, %v1717_v9  ;;  %v1721_v57 = vor.u32 %v1719_v47, %v1717_v9  ;;  %v8252_v35 = vld [vmem:[%s10066_s1 + $0x1e8] sm:$0xff]   ;;  %v8254_v9 = vld [vmem:[%s10066_s1 + $0x1f0] sm:$0xff]  }
 0x15d   : > { %v8251_v42 = vld [vmem:[%s8520_s20 + $0x2c] sm:$0xff]   ;;  %v8253_v47 = vld [vmem:[%s8520_s20 + $0x34] ss:$0 sps:$4 sm:$0x77]  }
 0x15e   : > { %7297 = vmatmul.mubr.bf16.gmra.mrb[156].mxu0 %v1710_v37 }
 0x15f   : > { %7300 = vmatprep.mubr.msk.bf16.mxu0 %vm8437_vm0, %v8436_v1 }
 0x161   : > { %v766_v44 = vpop.f32.mrb[52].mxu0 }
 0x162   : > { %v797_v46 = vadd.f32 %v784_v45, %v766_v44  ;;  %v7130_v48 = vpop.f32.mrb[53].mxu0 }
 0x163   : > { %v769_v49 = vpop.f32.mrb[54].mxu0 }
 0x164   : > { %810 = vst [vmem:[#allocation2 + $0x60] sm:$0xf] %v797_v46  ;;  %v7131_v12 = vpop.f32.mrb[55].mxu0  ;;  %v8255_v46 = vld [vmem:[%s10066_s1 + $0x1f8] sm:$0xff]  }
 0x166   : > { %7301 = vmatmul.mubr.bf16.gmra.mrb[160].mxu0 %v1718_v50 }
 0x167   : > { %7304 = vmatprep.mubr.msk.bf16.mxu0 %vm8437_vm0, %v8436_v1 }
 0x169   : > { %v1019_v53 = vpop.f32.mrb[56].mxu0 }
 0x16a   : > { %v8932_v55 = vadd.f32 %v1019_v53, %v8838_v23  ;;  %v7150_v56 = vpop.f32.mrb[57].mxu0 }
 0x16b   : > { %v1022_v59 = vpop.f32.mrb[58].mxu0 }
 0x16c   : > { %v8937_v63 = vadd.f32 %v1022_v59, %v8842_v30  ;;  %v7151_v0 = vpop.f32.mrb[59].mxu0  ;;  %v8243_v30 = vld [vmem:[%s10066_s1 + $0x1c0] sm:$0xff]  }
 0x16e   : > { %7305 = vmatmul.mubr.bf16.gmra.mrb[164].mxu0 %v1721_v57  ;;  %v1979_v57 = vrot.slane %v8253_v47, 1 }
 0x16f   : > { %7324 = vmatprep.mubr.msk.bf16.mxu0 %vm8437_vm0, %v8436_v1 }
 0x171   : > { %v1027_v6 = vpop.f32.mrb[60].mxu0 }
 0x172   : > { %v8942_v23 = vadd.f32 %v1027_v6, %v8848_v36  ;;  %v7154_v7 = vpop.f32.mrb[61].mxu0  ;;  %v1971_v36 = vrot.slane %v8244_v11, 1 }
 0x173   : > { %v1030_v8 = vpop.f32.mrb[62].mxu0 }
 0x174   : > { %v8950_v13 = vadd.f32 %v1030_v8, %v8855_v43  ;;  %v7155_v15 = vpop.f32.mrb[63].mxu0  ;;  %v1972_v19 = vsel %vm1967_vm2, %v1969_v4, %v1971_v36 }
 0x176   : > { %7325 = vmatmul.mubr.bf16.vlgmr.msra.gmra.mrb[168].mxu0 %v1970_v10  ;;  %v8256_v10 = vld [vmem:[%s8520_s20 + $0x44] sm:$0xfe]  }
 0x177   : > { %7353 = vmatpush3.bf16.msra.mxu0 %v8243_v30  ;;  %7328 = vmatprep.mubr.msk.bf16.mxu0 %vm8437_vm0, %v8436_v1  ;;  %v8257_v30 = vld [vmem:[%s8520_s20 + $0x4c] sm:$0xff]  }
 0x178   : > { %7354 = vmatprep.subr.bf16.mxu0 %v8436_v1 }
 0x179   : > { %v1035_v16 = vpop.f32.mrb[64].mxu0 }
 0x17a   : > { %v8959_v17 = vadd.f32 %v1035_v16, %v8865_v52  ;;  %v7158_v18 = vpop.f32.mrb[65].mxu0  ;;  %v1973_v52 = vrot.slane %v8247_v21, 1 }
 0x17b   : > { %v1038_v43 = vpop.f32.mrb[66].mxu0  ;;  %7355 = vmatpush3.bf16.msra.mxu0 %v8245_v58  ;;  %v2227_v58 = vrot.slane %v8257_v30, 1 }
 0x17c   : > { %v8967_v22 = vadd.f32 %v1038_v43, %v8872_v60  ;;  %v7159_v24 = vpop.f32.mrb[67].mxu0  ;;  %7356 = vmatprep.subr.bf16.mxu0 %v8436_v1  ;;  %v1974_v29 = vsel %vm1967_vm2, %v1971_v36, %v1973_v52  ;;  %v2226_v36 = vrot.slane %v8256_v10, 1 }
 0x17e   : > { %7329 = vmatmul.mubr.bf16.gmra.mrb[172].mxu0 %v1972_v19  ;;  %v2228_v19 = vsel %vm1967_vm2, %v2226_v36, %v2227_v58 }
 0x17f   : > { %7332 = vmatprep.mubr.msk.bf16.mxu0 %vm8437_vm0, %v8436_v1  ;;  %7357 = vmatpush3.bf16.msra.mxu0 %v8246_v20  ;;  %v8259_v20 = vld [vmem:[%s8520_s20 + $0x54] sm:$0xff]  }
 0x180   : > { %7358 = vmatprep.subr.bf16.mxu0 %v8436_v1 }
 0x181   : > { %v1043_v26 = vpop.f32.mrb[68].mxu0 }
 0x182   : > { %v8977_v28 = vadd.f32 %v1043_v26, %v8883_v54  ;;  %v7162_v60 = vpop.f32.mrb[69].mxu0  ;;  %v1975_v54 = vrot.slane %v8249_v31, 1  ;;  %v8262_v31 = vld [vmem:[%s8520_s20 + $0x5c] sm:$0xff]  }
 0x183   : > { %v1046_v2 = vpop.f32.mrb[70].mxu0  ;;  %7359 = vmatpush3.bf16.msra.mxu0 %v8248_v25 }
 0x184   : > { %v8985_v33 = vadd.f32 %v1046_v2, %v8890_v14  ;;  %v7163_v34 = vpop.f32.mrb[71].mxu0  ;;  %7360 = vmatprep.subr.bf16.mxu0 %v8436_v1  ;;  %v1976_v41 = vsel %vm1967_vm2, %v1973_v52, %v1975_v54  ;;  %v8260_v52 = vld [vmem:[%s10066_s1 + $0x208] sm:$0xff]  }
 0x186   : > { %7333 = vmatmul.mubr.bf16.gmra.mrb[176].mxu0 %v1974_v29  ;;  %v8261_v29 = vld [vmem:[%s10066_s1 + $0x210] sm:$0xff]  }
 0x187   : > { %7336 = vmatprep.mubr.msk.bf16.mxu0 %vm8437_vm0, %v8436_v1  ;;  %7361 = vmatpush3.bf16.msra.mxu0 %v8250_v32  ;;  %v8438_v32 = vmov 0  }
 0x188   : > { %7362 = vmatprep.subr.bf16.mxu0 %v8436_v1  ;;  %8142 = vset.pattern.permute.xlu1 %v8438_v32  ;;  %3080 = vst [vmem:[#allocation3] sm:$0xf] %v8438_v32  ;;  %3092 = vst [vmem:[#allocation3 + $0x38] sm:$0xf] %v8438_v32 }
 0x189   : > { %v1051_v37 = vpop.f32.mrb[72].mxu0  ;;  %3093 = vst [vmem:[#allocation3 + $0x3c] sm:$0x1] %v8438_v32  ;;  %8141 = vset.pattern.permute.xlu0 %v8438_v32  ;;  %6007 = vst [vmem:[%s9095_s19] sm:$0xf] %v8438_v32 }
 0x18a   : > { %v8995_v38 = vadd.f32 %v1051_v37, %v8901_v61  ;;  %v7166_v14 = vpop.f32.mrb[73].mxu0  ;;  %v1977_v61 = vrot.slane %v8251_v42, 1  ;;  %v2231_v37 = vrot.slane %v8262_v31, 1  ;;  %v8265_v42 = vld [vmem:[%s10066_s1 + $0x220] sm:$0xff]   ;;  %6014 = vst [vmem:[%s9095_s19 + $0x38] sm:$0xf] %v8438_v32 }
 0x18b   : > { %v1054_v39 = vpop.f32.mrb[74].mxu0  ;;  %7363 = vmatpush3.bf16.msra.mxu0 %v8252_v35  ;;  %v338_v35 = vld [vmem:[%s10073_s8 + $0x20] sm:$0xff]  ;;  %v341_v14 = vld [vmem:[%s10073_s8 + $0x38] sm:$0xff]  ;;  %6015 = vst [vmem:[%s9095_s19 + $0x3c] sm:$0x1] %v8438_v32 }
 0x18c   : > { %v9003_v45 = vadd.f32 %v1054_v39, %v8908_v27  ;;  %v7167_v44 = vpop.f32.mrb[75].mxu0  ;;  %7364 = vmatprep.subr.bf16.mxu0 %v8436_v1  ;;  %v1978_v12 = vsel %vm1967_vm2, %v1975_v54, %v1977_v61  ;;  %v1980_v3 = vsel %vm1967_vm2, %v1977_v61, %v1979_v57  ;;  %2817 = vperm.xlu0 %8141, %v338_v35  }
 0x18e   : > { %7337 = vmatmul.mubr.bf16.gmra.mrb[180].mxu0 %v1976_v41  ;;  %v8264_v41 = vld [vmem:[%s8520_s20 + $0x64] sm:$0xff]  }
 0x18f   : > { %7340 = vmatprep.mubr.msk.bf16.mxu0 %vm8437_vm0, %v8436_v1  ;;  %7365 = vmatpush3.bf16.msra.mxu0 %v8254_v9  ;;  %v339_v9 = vld [vmem:[%s10073_s8 + $0x28] sm:$0xff]  ;;  %v2233_v47 = vrot.slane %v8264_v41, 1 }
 0x190   : > { %7366 = vmatprep.subr.bf16.mxu0 %v8436_v1  ;;  %2822 = vperm.xlu0 %8141, %v339_v9  }
 0x191   : > { %v1059_v48 = vpop.f32.mrb[76].mxu0 }
 0x192   : > { %v9013_v49 = vadd.f32 %v1059_v48, %v8919_v5  ;;  %v7170_v27 = vpop.f32.mrb[77].mxu0  ;;  %v1085_v5 = vld [vmem:[#allocation2 + $0x60] sm:$0xf] }
 0x193   : > { %v1062_v50 = vpop.f32.mrb[78].mxu0  ;;  %7367 = vmatpush3.bf16.msra.mxu0 %v8255_v46 }
 0x194   : > { %v9018_v53 = vadd.f32 %v1062_v50, %v8923_v40  ;;  %v7171_v56 = vpop.f32.mrb[79].mxu0  ;;  %7396 = vmatprep.subr.bf16.mxu0 %v8436_v1 }
 0x195   : > { %v344_v56 = vld [vmem:[%s10073_s8 + $0x50] sm:$0xff] }
 0x196   : > { %7341 = vmatmul.mubr.bf16.gmra.mrb[184].mxu0 %v1978_v12  ;;  %v342_v12 = vld [vmem:[%s10073_s8 + $0x40] sm:$0xff] }
 0x197   : > { %7344 = vmatprep.mubr.msk.bf16.mxu0 %vm8437_vm0, %v8436_v1  ;;  %2837 = vperm.xlu0 %8141, %v342_v12  }
 0x199   : > { %v1067_v59 = vpop.f32.mrb[80].mxu0 }
 0x19a   : > { %v1098_v62 = vadd.f32 %v1085_v5, %v1067_v59  ;;  %v7174_v51 = vpop.f32.mrb[81].mxu0  ;;  %v334_v5 = vld [vmem:[%s10073_s8] sm:$0xff] }
 0x19b   : > { %v1070_v0 = vpop.f32.mrb[82].mxu0  ;;  %2797 = vperm.xlu0 %8141, %v334_v5  }
 0x19c   : > { %1111 = vst [vmem:[#allocation2 + $0x60] sm:$0xf] %v1098_v62  ;;  %v7175_v40 = vpop.f32.mrb[83].mxu0  ;;  %v2234_v0 = vsel %vm1967_vm2, %v2231_v37, %v2233_v47 }
 0x19d   : > { %v8269_v40 = vld [vmem:[%s10066_s1 + $0x230] sm:$0xff]  }
 0x19e   : > { %7345 = vmatmul.mubr.bf16.gmra.mrb[188].mxu0 %v1980_v3  ;;  %v8266_v3 = vld [vmem:[%s8520_s20 + $0x6c] sm:$0xff]  }
 0x19f   : > { %7348 = vmatprep.mubr.msk.bf16.mxu0 %vm8437_vm0, %v8436_v1  ;;  %v2235_v10 = vrot.slane %v8266_v3, 1 }
 0x1a1   : > { %v1265_v4 = vpop.f32.mrb[84].mxu0 }
 0x1a2   : > { %v9027_v6 = vadd.f32 %v1265_v4, %v8932_v55  ;;  %v7194_v7 = vpop.f32.mrb[85].mxu0  ;;  %v335_v4 = vld [vmem:[%s10073_s8 + $0x8] sm:$0xff] }
 0x1a3   : > { %v1268_v8 = vpop.f32.mrb[86].mxu0 }
 0x1a4   : > { %v9032_v11 = vadd.f32 %v1268_v8, %v8937_v63  ;;  %v7195_v15 = vpop.f32.mrb[87].mxu0  ;;  %v8258_v63 = vld [vmem:[%s10066_s1 + $0x200] sm:$0xff]   ;;  %v345_v8 = vld [vmem:[%s10073_s8 + $0x58] sm:$0xff] }
 0x1a5   : > { %2852 = vperm.xlu0 %8141, %v345_v8   ;;  %v336_v15 = vld [vmem:[%s10073_s8 + $0x10] sm:$0xff] }
 0x1a6   : > { %7349 = vmatmul.mubr.bf16.gmra.mrb[192].mxu0 %v1979_v57 }
 0x1a7   : > { %7368 = vmatprep.mubr.msk.bf16.mxu0 %vm8437_vm0, %v8436_v1 }
 0x1a9   : > { %v1273_v16 = vpop.f32.mrb[88].mxu0  ;;  %2807 = vperm.xlu0 %8141, %v336_v15  }
 0x1aa   : > { %v9037_v18 = vadd.f32 %v1273_v16, %v8942_v23  ;;  %v7198_v55 = vpop.f32.mrb[89].mxu0  ;;  %v2229_v23 = vrot.slane %v8259_v20, 1 }
 0x1ab   : > { %v1276_v43 = vpop.f32.mrb[90].mxu0  ;;  %v2236_v55 = vsel %vm1967_vm2, %v2233_v47, %v2235_v10 }
 0x1ac   : > { %v9045_v21 = vadd.f32 %v1276_v43, %v8950_v13  ;;  %v7199_v24 = vpop.f32.mrb[91].mxu0  ;;  %v2230_v2 = vsel %vm1967_vm2, %v2227_v58, %v2229_v23  ;;  %v2232_v48 = vsel %vm1967_vm2, %v2229_v23, %v2231_v37  ;;  %v8268_v43 = vld [vmem:[%s8520_s20 + $0x74] ss:$0 sps:$4 sm:$0x77]  }
 0x1ad   : > { %v1331_v24 = vld [vmem:[#allocation2 + $0x60] sm:$0xf] }
 0x1ae   : > { %7369 = vmatmul.mubr.bf16.vlgmr.msra.gmra.mrb[196].mxu0 %v2228_v19  ;;  %v337_v19 = vld [vmem:[%s10073_s8 + $0x18] sm:$0xff] }
 0x1af   : > { %7397 = vmatpush3.bf16.msra.mxu0 %v8258_v63  ;;  %7372 = vmatprep.mubr.msk.bf16.mxu0 %vm8437_vm0, %v8436_v1 }
 0x1b0   : > { %7398 = vmatprep.subr.bf16.mxu0 %v8436_v1 }
 0x1b1   : > { %v1281_v25 = vpop.f32.mrb[92].mxu0 }
 0x1b2   : > { %v9054_v26 = vadd.f32 %v1281_v25, %v8959_v17  ;;  %v7202_v60 = vpop.f32.mrb[93].mxu0  ;;  %v340_v17 = vld [vmem:[%s10073_s8 + $0x30] sm:$0xff] }
 0x1b3   : > { %v1284_v13 = vpop.f32.mrb[94].mxu0  ;;  %7399 = vmatpush3.bf16.msra.mxu0 %v8260_v52  ;;  %2827 = vperm.xlu1 %8142, %v340_v17  }
 0x1b4   : > { %v9065_v34 = vadd.f32 %v1284_v13, %v8967_v22  ;;  %v7203_v54 = vpop.f32.mrb[95].mxu0  ;;  %7400 = vmatprep.subr.bf16.mxu0 %v8436_v1  ;;  %v8263_v22 = vld [vmem:[%s10066_s1 + $0x218] sm:$0xff]  }
 0x1b6   : > { %7373 = vmatmul.mubr.bf16.gmra.mrb[200].mxu0 %v2230_v2  ;;  %v8271_v2 = vld [vmem:[%s8520_s20 + $0x4] sm:$0xfe]  }
 0x1b7   : > { %7376 = vmatprep.mubr.msk.bf16.mxu0 %vm8437_vm0, %v8436_v1  ;;  %7401 = vmatpush3.bf16.msra.mxu0 %v8261_v29  ;;  %v8272_v29 = vld [vmem:[%s8520_s20 + $0xc] sm:$0xff]   ;;  %v2486_v32 = vshrl.u32 %v8271_v2, 16  ;;  %v2489_v17 = vshll.u32 %v8271_v2, 16 }
 0x1b8   : > { %7402 = vmatprep.subr.bf16.mxu0 %v8436_v1  ;;  %2832 = vperm.xlu1 %8142, %v341_v14   ;;  %v2494_v54 = vshrl.u32 %v8272_v29, 16  ;;  %v2497_v35 = vshll.u32 %v8272_v29, 16 }
 0x1b9   : > { %v1289_v39 = vpop.f32.mrb[96].mxu0  ;;  %v2488_v41 = vrot.slane %v2486_v32, 1 }
 0x1ba   : > { %v9088_v44 = vadd.f32 %v1289_v39, %v8977_v28  ;;  %v7206_v61 = vpop.f32.mrb[97].mxu0  ;;  %v343_v28 = vld [vmem:[%s10073_s8 + $0x48] sm:$0xff]  ;;  %v2496_v9 = vrot.slane %v2494_v54, 1 }
 0x1bb   : > { %v1292_v46 = vpop.f32.mrb[98].mxu0  ;;  %7403 = vmatpush3.bf16.msra.mxu0 %v8263_v22  ;;  %v2499_v61 = vrot.slane %v2497_v35, 2 }
 0x1bc   : > { %v9101_v27 = vadd.f32 %v1292_v46, %v8985_v33  ;;  %v7207_v50 = vpop.f32.mrb[99].mxu0  ;;  %7404 = vmatprep.subr.bf16.mxu0 %v8436_v1  ;;  %2842 = vperm.xlu1 %8142, %v343_v28   ;;  %v8267_v33 = vld [vmem:[%s10066_s1 + $0x228] sm:$0xff]   ;;  %v8273_v46 = vld [vmem:[%s8520_s20 + $0x14] sm:$0xff]  }
 0x1bd   : > { %v2500_v12 = vor.u32 %v2499_v61, %v2496_v9  ;;  %v2506_v47 = vshll.u32 %v8273_v46, 16 }
 0x1be   : > { %7377 = vmatmul.mubr.bf16.gmra.mrb[204].mxu0 %v2232_v48 }
 0x1bf   : > { %7380 = vmatprep.mubr.msk.bf16.mxu0 %vm8437_vm0, %v8436_v1  ;;  %7405 = vmatpush3.bf16.msra.mxu0 %v8265_v42  ;;  %v2491_v42 = vrot.slane %v2489_v17, 2 }
 0x1c0   : > { %7406 = vmatprep.subr.bf16.mxu0 %v8436_v1  ;;  %2847 = vperm.xlu1 %8142, %v344_v56  }
 0x1c1   : > { %v1297_v57 = vpop.f32.mrb[100].mxu0  ;;  %v2492_v50 = vor.u32 %v2491_v42, %v2488_v41 }
 0x1c2   : > { %v9123_v59 = vadd.f32 %v1297_v57, %v8995_v38  ;;  %v7210_v62 = vpop.f32.mrb[101].mxu0 }
 0x1c3   : > { %v1300_v51 = vpop.f32.mrb[102].mxu0  ;;  %7407 = vmatpush3.bf16.msra.mxu0 %v8267_v33 }
 0x1c4   : > { %v9134_v7 = vadd.f32 %v1300_v51, %v9003_v45  ;;  %v7211_v38 = vpop.f32.mrb[103].mxu0  ;;  %7408 = vmatprep.subr.bf16.mxu0 %v8436_v1  ;;  %2802 = vperm.xlu1 %8142, %v335_v4   ;;  %v8270_v45 = vld [vmem:[%s10066_s1 + $0x238] sm:$0xff]   ;;  %v2508_v51 = vrot.slane %v2506_v47, 2 }
 0x1c6   : > { %7381 = vmatmul.mubr.bf16.gmra.mrb[208].mxu0 %v2234_v0  ;;  %v8274_v0 = vld [vmem:[%s8520_s20 + $0x1c] sm:$0xff]  }
 0x1c7   : > { %7384 = vmatprep.mubr.msk.bf16.mxu0 %vm8437_vm0, %v8436_v1  ;;  %7409 = vmatpush3.bf16.msra.mxu0 %v8269_v40  ;;  %v2512_v38 = vshrl.u32 %v8274_v0, 16 }
 0x1c8   : > { %7410 = vmatprep.subr.bf16.mxu0 %v8436_v1  ;;  %2812 = vperm.xlu1 %8142, %v337_v19  }
 0x1c9   : > { %v1305_v30 = vpop.f32.mrb[104].mxu0 }
 0x1ca   : > { %v9150_v36 = vadd.f32 %v1305_v30, %v9013_v49  ;;  %v7214_v58 = vpop.f32.mrb[105].mxu0  ;;  %v2237_v49 = vrot.slane %v8268_v43, 1 }
 0x1cb   : > { %v1308_v16 = vpop.f32.mrb[106].mxu0  ;;  %7411 = vmatpush3.bf16.msra.mxu0 %v8270_v45  ;;  %v2514_v58 = vrot.slane %v2512_v38, 1 }
 0x1cc   : > { %v9158_v63 = vadd.f32 %v1308_v16, %v9018_v53  ;;  %v7215_v20 = vpop.f32.mrb[107].mxu0  ;;  %7440 = vmatprep.subr.bf16.mxu0 %v8436_v1  ;;  %v2238_v13 = vsel %vm1967_vm2, %v2235_v10, %v2237_v49  ;;  %v346_v53 = vld [vmem:[%s10073_s8 + $0x60] sm:$0xf] }
 0x1cd   : > { %2857 = vperm.xlu0 %8141, %v346_v53  }
 0x1ce   : > { %7385 = vmatmul.mubr.bf16.gmra.mrb[212].mxu0 %v2236_v55 }
 0x1cf   : > { %7388 = vmatprep.mubr.msk.bf16.mxu0 %vm8437_vm0, %v8436_v1 }
 0x1d1   : > { %v1313_v23 = vpop.f32.mrb[108].mxu0 }
 0x1d2   : > { %v1344_v52 = vadd.f32 %v1331_v24, %v1313_v23  ;;  %v7218_v25 = vpop.f32.mrb[109].mxu0 }
 0x1d3   : > { %v1316_v60 = vpop.f32.mrb[110].mxu0 }
 0x1d4   : > { %1357 = vst [vmem:[#allocation2 + $0x60] sm:$0xf] %v1344_v52  ;;  %v7219_v31 = vpop.f32.mrb[111].mxu0 }
 0x1d6   : > { %7389 = vmatmul.mubr.bf16.gmra.mrb[216].mxu0 %v2238_v13 }
 0x1d7   : > { %7392 = vmatprep.mubr.msk.bf16.mxu0 %vm8437_vm0, %v8436_v1 }
 0x1d9   : > { %v1511_v37 = vpop.f32.mrb[112].mxu0 }
 0x1da   : > { %v9172_v22 = vadd.f32 %v1511_v37, %v9027_v6  ;;  %v7238_v14 = vpop.f32.mrb[113].mxu0  ;;  %v2503_v6 = vshrl.u32 %v8273_v46, 16 }
 0x1db   : > { %v1514_v39 = vpop.f32.mrb[114].mxu0 }
 0x1dc   : > { %v9176_v48 = vadd.f32 %v1514_v39, %v9032_v11  ;;  %v7239_v28 = vpop.f32.mrb[115].mxu0  ;;  %v2501_v11 = vsel %vm2484_vm3, %v2492_v50, %v2500_v12  ;;  %v2505_v62 = vrot.slane %v2503_v6, 1 }
 0x1de   : > { %7393 = vmatmul.mubr.bf16.gmra.mrb[220].mxu0 %v2237_v49  ;;  %v2509_v4 = vor.u32 %v2508_v51, %v2505_v62 }
 0x1df   : > { %7412 = vmatprep.mubr.msk.bf16.mxu0 %vm8437_vm0, %v8436_v1 }
 0x1e0   : > { %v2510_v15 = vsel %vm2484_vm3, %v2500_v12, %v2509_v4 }
 0x1e1   : > { %v1519_v33 = vpop.f32.mrb[116].mxu0 }
 0x1e2   : > { %v9181_v56 = vadd.f32 %v1519_v33, %v9037_v18  ;;  %v7242_v57 = vpop.f32.mrb[117].mxu0  ;;  %v2515_v18 = vshll.u32 %v8274_v0, 16 }
 0x1e3   : > { %v1522_v5 = vpop.f32.mrb[118].mxu0 }
 0x1e4   : > { %v9186_v3 = vadd.f32 %v1522_v5, %v9045_v21  ;;  %v7243_v40 = vpop.f32.mrb[119].mxu0  ;;  %v2517_v16 = vrot.slane %v2515_v18, 2  ;;  %v8275_v21 = vld [vmem:[%s8520_s20 + $0x24] sm:$0xff]  }
 0x1e5   : > { %v2521_v20 = vshrl.u32 %v8275_v21, 16 }
 0x1e6   : > { %7413 = vmatmul.mubr.bf16.vlgmr.msra.gmra.mrb[224].mxu0 %v2501_v11  ;;  %v2518_v19 = vor.u32 %v2517_v16, %v2514_v58  ;;  %v1577_v11 = vld [vmem:[#allocation2 + $0x60] sm:$0xf] }
 0x1e7   : > { %7416 = vmatprep.mubr.msk.bf16.mxu0 %vm8437_vm0, %v8436_v1  ;;  %v2523_v60 = vrot.slane %v2521_v20, 1 }
 0x1e8   : > { %v2519_v25 = vsel %vm2484_vm3, %v2509_v4, %v2518_v19 }
 0x1e9   : > { %v1527_v8 = vpop.f32.mrb[120].mxu0 }
 0x1ea   : > { %v9191_v10 = vadd.f32 %v1527_v8, %v9054_v26  ;;  %v7246_v45 = vpop.f32.mrb[121].mxu0  ;;  %v2524_v26 = vshll.u32 %v8275_v21, 16 }
 0x1eb   : > { %v1530_v30 = vpop.f32.mrb[122].mxu0 }
 0x1ec   : > { %v9196_v55 = vadd.f32 %v1530_v30, %v9065_v34  ;;  %v7247_v43 = vpop.f32.mrb[123].mxu0  ;;  %v2526_v13 = vrot.slane %v2524_v26, 2  ;;  %v8276_v34 = vld [vmem:[%s8520_s20 + $0x2c] sm:$0xff]  }
 0x1ed   : > { %v2530_v31 = vshrl.u32 %v8276_v34, 16 }
 0x1ee   : > { %7417 = vmatmul.mubr.bf16.gmra.mrb[228].mxu0 %v2510_v15  ;;  %v2527_v53 = vor.u32 %v2526_v13, %v2523_v60 }
 0x1ef   : > { %7420 = vmatprep.mubr.msk.bf16.mxu0 %vm8437_vm0, %v8436_v1  ;;  %v2532_v14 = vrot.slane %v2530_v31, 1 }
 0x1f0   : > { %v2528_v37 = vsel %vm2484_vm3, %v2518_v19, %v2527_v53 }
 0x1f1   : > { %v1535_v49 = vpop.f32.mrb[124].mxu0 }
 0x1f2   : > { %v9201_v24 = vadd.f32 %v1535_v49, %v9088_v44  ;;  %v7250_v23 = vpop.f32.mrb[125].mxu0  ;;  %v2533_v44 = vshll.u32 %v8276_v34, 16 }
 0x1f3   : > { %v1538_v52 = vpop.f32.mrb[126].mxu0 }
 0x1f4   : > { %v9206_v2 = vadd.f32 %v1538_v52, %v9101_v27  ;;  %v7251_v29 = vpop.f32.mrb[127].mxu0  ;;  %v2535_v39 = vrot.slane %v2533_v44, 2  ;;  %v8277_v27 = vld [vmem:[%s8520_s20 + $0x34] ss:$0 sps:$4 sm:$0xff]  }
 0x1f5   : > { %v2539_v61 = vshrl.u32 %v8277_v27, 16  ;;  %v2542_v46 = vshll.u32 %v8277_v27, 16 }
 0x1f6   : > { %7421 = vmatmul.mubr.bf16.gmra.mrb[232].mxu0 %v2519_v25  ;;  %v2536_v9 = vor.u32 %v2535_v39, %v2532_v14 }
 0x1f7   : > { %7424 = vmatprep.mubr.msk.bf16.mxu0 %vm8437_vm0, %v8436_v1  ;;  %v2541_v47 = vrot.slane %v2539_v61, 1  ;;  %v2544_v33 = vrot.slane %v2542_v46, 2  ;;  %v8280_v61 = vld [vmem:[%s10069_s4 + $0x10] sm:$0xff]  }
 0x1f8   : > { %v2537_v6 = vsel %vm2484_vm3, %v2527_v53, %v2536_v9 }
 0x1f9   : > { %v1543_v32 = vpop.f32.mrb[128].mxu0  ;;  %v2545_v5 = vor.u32 %v2544_v33, %v2541_v47  ;;  %v8281_v47 = vld [vmem:[%s10069_s4 + $0x18] sm:$0xff]   ;;  %v8282_v33 = vld [vmem:[%s10069_s4 + $0x20] sm:$0xff]  }
 0x1fa   : > { %v9211_v17 = vadd.f32 %v1543_v32, %v9123_v59  ;;  %v7254_v54 = vpop.f32.mrb[129].mxu0 }
 0x1fb   : > { %v1546_v35 = vpop.f32.mrb[130].mxu0 }
 0x1fc   : > { %v1587_v41 = vadd.f32 %v1546_v35, %v9134_v7  ;;  %v7255_v42 = vpop.f32.mrb[131].mxu0 }
 0x1fe   : > { %7425 = vmatmul.mubr.bf16.gmra.mrb[236].mxu0 %v2528_v37 }
 0x1ff   : > { %7428 = vmatprep.mubr.msk.bf16.mxu0 %vm8437_vm0, %v8436_v1 }
 0x201   : > { %v1551_v28 = vpop.f32.mrb[132].mxu0 }
 0x202   : > { %v1588_v59 = vadd.f32 %v1551_v28, %v9150_v36  ;;  %v7258_v50 = vpop.f32.mrb[133].mxu0  ;;  %v2546_v36 = vsel %vm2484_vm3, %v2536_v9, %v2545_v5 }
 0x203   : > { %v1554_v12 = vpop.f32.mrb[134].mxu0 }
 0x204   : > { %v1589_v57 = vadd.f32 %v1554_v12, %v9158_v63  ;;  %v7259_v7 = vpop.f32.mrb[135].mxu0 }
 0x206   : > { %7429 = vmatmul.mubr.bf16.gmra.mrb[240].mxu0 %v2537_v6 }
 0x207   : > { %7432 = vmatprep.mubr.msk.bf16.mxu0 %vm8437_vm0, %v8436_v1 }
 0x209   : > { %v1559_v62 = vpop.f32.mrb[136].mxu0 }
 0x20a   : > { %v1590_v51 = vadd.f32 %v1577_v11, %v1559_v62  ;;  %v7262_v0 = vpop.f32.mrb[137].mxu0 }
 0x20b   : > { %v1562_v40 = vpop.f32.mrb[138].mxu0  ;;  %v8283_v0 = vld [vmem:[%s10069_s4 + $0x28] sm:$0xff]  }
 0x20c   : > { %1603 = vst [vmem:[#allocation2 + $0x60] sm:$0xf] %v1590_v51  ;;  %v7263_v4 = vpop.f32.mrb[139].mxu0  ;;  %v8284_v40 = vld [vmem:[%s10069_s4 + $0x30] sm:$0xff]  }
 0x20e   : > { %7433 = vmatmul.mubr.bf16.gmra.mrb[244].mxu0 %v2546_v36 }
 0x20f   : > { %7436 = vmatprep.mubr.msk.bf16.mxu0 %vm8437_vm0, %v8436_v1 }
 0x211   : > { %v1811_v63 = vpop.f32.mrb[140].mxu0 }
 0x212   : > { %v1878_v38 = vadd.f32 %v1811_v63, %v9172_v22  ;;  %v7282_v18 = vpop.f32.mrb[141].mxu0 }
 0x213   : > { %v1814_v8 = vpop.f32.mrb[142].mxu0  ;;  %v1877_v14 = vld [vmem:[#allocation2 + $0x60] sm:$0xf] }
 0x214   : > { %v1879_v45 = vadd.f32 %v1814_v8, %v9176_v48  ;;  %v7283_v30 = vpop.f32.mrb[143].mxu0 }
 0x216   : > { %7437 = vmatmul.mubr.bf16.gmra.mrb[248].mxu0 %v2545_v5 }
 0x217   : > { %7456 = vmatprep.mubr.msk.bf16.mxu0 %vm8437_vm0, %v8436_v1 }
 0x219   : > { %v1819_v15 = vpop.f32.mrb[144].mxu0 }
 0x21a   : > { %v9231_v58 = vadd.f32 %v1819_v15, %v9181_v56  ;;  %v7286_v16 = vpop.f32.mrb[145].mxu0 }
 0x21b   : > { %v1822_v21 = vpop.f32.mrb[146].mxu0 }
 0x21c   : > { %v9234_v43 = vadd.f32 %v1822_v21, %v9186_v3  ;;  %v7287_v19 = vpop.f32.mrb[147].mxu0 }
 0x221   : > { %v1827_v22 = vpop.f32.mrb[148].mxu0 }
 0x222   : > { %v9237_v20 = vadd.f32 %v1827_v22, %v9191_v10  ;;  %v7290_v48 = vpop.f32.mrb[149].mxu0 }
 0x223   : > { %v1830_v26 = vpop.f32.mrb[150].mxu0 }
 0x224   : > { %v9240_v49 = vadd.f32 %v1830_v26, %v9196_v55  ;;  %v7291_v23 = vpop.f32.mrb[151].mxu0 }
 0x229   : > { %v1835_v52 = vpop.f32.mrb[152].mxu0 }
 0x22a   : > { %v9243_v56 = vadd.f32 %v1835_v52, %v9201_v24  ;;  %v7294_v25 = vpop.f32.mrb[153].mxu0 }
 0x22b   : > { %v1838_v60 = vpop.f32.mrb[154].mxu0 }
 0x22c   : > { %v9246_v3 = vadd.f32 %v1838_v60, %v9206_v2  ;;  %v7295_v13 = vpop.f32.mrb[155].mxu0  ;;  %v8278_v2 = vld [vmem:[%s10069_s4] sm:$0xff]  }
 0x22d   : > { %7441 = vmatpush3.bf16.msra.mxu0 %v8278_v2  ;;  %7888 = vmatpush3.bf16.msra.mxu1 %v8278_v2 }
 0x22e   : > { %7442 = vmatprep.subr.bf16.mxu0 %v8436_v1  ;;  %7881 = vmatprep.subr.bf16.mxu1 %v8436_v1 }
 0x231   : > { %v1843_v34 = vpop.f32.mrb[156].mxu0 }
 0x232   : > { %v9249_v10 = vadd.f32 %v1843_v34, %v9211_v17  ;;  %v7298_v29 = vpop.f32.mrb[157].mxu0 }
 0x233   : > { %v1846_v53 = vpop.f32.mrb[158].mxu0 }
 0x234   : > { %v9251_v31 = vadd.f32 %v1846_v53, %v1587_v41  ;;  %v7299_v55 = vpop.f32.mrb[159].mxu0  ;;  %v8279_v41 = vld [vmem:[%s10069_s4 + $0x8] sm:$0xff]  }
 0x235   : > { %7443 = vmatpush3.bf16.msra.mxu0 %v8279_v41  ;;  %7889 = vmatpush3.bf16.msra.mxu1 %v8279_v41 }
 0x236   : > { %7444 = vmatprep.subr.bf16.mxu0 %v8436_v1  ;;  %7882 = vmatprep.subr.bf16.mxu1 %v8436_v1 }
 0x239   : > { %v1851_v44 = vpop.f32.mrb[160].mxu0  ;;  %7445 = vmatpush3.bf16.msra.mxu0 %v8280_v61  ;;  %7890 = vmatpush3.bf16.msra.mxu1 %v8280_v61 }
 0x23a   : > { %v9253_v32 = vadd.f32 %v1851_v44, %v1588_v59  ;;  %v7302_v24 = vpop.f32.mrb[161].mxu0  ;;  %7446 = vmatprep.subr.bf16.mxu0 %v8436_v1  ;;  %7883 = vmatprep.subr.bf16.mxu1 %v8436_v1 }
 0x23b   : > { %v1854_v54 = vpop.f32.mrb[162].mxu0 }
 0x23c   : > { %v9255_v35 = vadd.f32 %v1854_v54, %v1589_v57  ;;  %v7303_v37 = vpop.f32.mrb[163].mxu0 }
 0x23d   : > { %7447 = vmatpush3.bf16.msra.mxu0 %v8281_v47  ;;  %7891 = vmatpush3.bf16.msra.mxu1 %v8281_v47 }
 0x23e   : > { %7448 = vmatprep.subr.bf16.mxu0 %v8436_v1  ;;  %7884 = vmatprep.subr.bf16.mxu1 %v8436_v1 }
 0x241   : > { %v1859_v17 = vpop.f32.mrb[164].mxu0  ;;  %7449 = vmatpush3.bf16.msra.mxu0 %v8282_v33  ;;  %7892 = vmatpush3.bf16.msra.mxu1 %v8282_v33 }
 0x242   : > { %v1890_v39 = vadd.f32 %v1877_v14, %v1859_v17  ;;  %v7306_v27 = vpop.f32.mrb[165].mxu0  ;;  %7450 = vmatprep.subr.bf16.mxu0 %v8436_v1  ;;  %7885 = vmatprep.subr.bf16.mxu1 %v8436_v1 }
 0x243   : > { %v1862_v42 = vpop.f32.mrb[166].mxu0 }
 0x244   : > { %1903 = vst [vmem:[#allocation2 + $0x60] sm:$0xf] %v1890_v39  ;;  %v7307_v9 = vpop.f32.mrb[167].mxu0 }
 0x245   : > { %7451 = vmatpush3.bf16.msra.mxu0 %v8283_v0  ;;  %7893 = vmatpush3.bf16.msra.mxu1 %v8283_v0 }
 0x246   : > { %7452 = vmatprep.subr.bf16.mxu0 %v8436_v1  ;;  %7886 = vmatprep.subr.bf16.mxu1 %v8436_v1 }
 0x249   : > { %v2070_v46 = vpop.f32.mrb[168].mxu0  ;;  %7453 = vmatpush3.bf16.msra.mxu0 %v8284_v40  ;;  %7894 = vmatpush3.bf16.msra.mxu1 %v8284_v40  ;;  %v9324_v40 = vpop.permute.xlu1 %2827 }
 0x24a   : > { %v9270_v28 = vadd.f32 %v2070_v46, %v1878_v38  ;;  %v7326_v59 = vpop.f32.mrb[169].mxu0  ;;  %7454 = vmatprep.subr.bf16.mxu0 %v8436_v1  ;;  %7887 = vmatprep.subr.bf16.mxu1 %v8436_v1 }
 0x24b   : > { %v2073_v50 = vpop.f32.mrb[170].mxu0  ;;  %v2136_v29 = vld [vmem:[#allocation2 + $0x60] sm:$0xf] }
 0x24c   : > { %v9274_v12 = vadd.f32 %v2073_v50, %v1879_v45  ;;  %v7327_v6 = vpop.f32.mrb[171].mxu0  ;;  %v8285_v45 = vld [vmem:[%s10069_s4 + $0x38] sm:$0xff]  }
 0x24d   : > { %7455 = vmatpush3.bf16.msra.mxu0 %v8285_v45  ;;  %7895 = vmatpush3.bf16.msra.mxu1 %v8285_v45  ;;  %v9332_v45 = vpop.permute.xlu1 %2832 }
 0x24e   : > { %7484 = vmatprep.subr.bf16.mxu1 %v8436_v1 }
 0x251   : > { %v2078_v57 = vpop.f32.mrb[172].mxu0 }
 0x252   : > { %v2139_v7 = vadd.f32 %v2078_v57, %v9231_v58  ;;  %v7330_v5 = vpop.f32.mrb[173].mxu0 }
 0x253   : > { %v2081_v11 = vpop.f32.mrb[174].mxu0 }
 0x254   : > { %v2140_v62 = vadd.f32 %v2081_v11, %v9234_v43  ;;  %v7331_v51 = vpop.f32.mrb[175].mxu0 }
 0x259   : > { %v2086_v36 = vpop.f32.mrb[176].mxu0 }
 0x25a   : > { %v2141_v4 = vadd.f32 %v2086_v36, %v9237_v20  ;;  %v7334_v63 = vpop.f32.mrb[177].mxu0 }
 0x25b   : > { %v2089_v38 = vpop.f32.mrb[178].mxu0  ;;  %v9328_v63 = vpop.permute.xlu0 %2817 }
 0x25c   : > { %v2142_v18 = vadd.f32 %v2089_v38, %v9240_v49  ;;  %v7335_v8 = vpop.f32.mrb[179].mxu0 }
 0x261   : > { %v2094_v30 = vpop.f32.mrb[180].mxu0 }
 0x262   : > { %v2143_v15 = vadd.f32 %v2094_v30, %v9243_v56  ;;  %v7338_v58 = vpop.f32.mrb[181].mxu0  ;;  %v9334_v30 = vpop.permute.xlu0 %2822 }
 0x263   : > { %v2097_v16 = vpop.f32.mrb[182].mxu0 }
 0x264   : > { %v2144_v21 = vadd.f32 %v2097_v16, %v9246_v3  ;;  %v7339_v43 = vpop.f32.mrb[183].mxu0 }
 0x269   : > { %v2102_v19 = vpop.f32.mrb[184].mxu0 }
 0x26a   : > { %v2145_v22 = vadd.f32 %v2102_v19, %v9249_v10  ;;  %v7342_v20 = vpop.f32.mrb[185].mxu0 }
 0x26b   : > { %v2105_v48 = vpop.f32.mrb[186].mxu0  ;;  %v9338_v20 = vpop.permute.xlu0 %2837 }
 0x26c   : > { %v2146_v26 = vadd.f32 %v2105_v48, %v9251_v31  ;;  %v7343_v49 = vpop.f32.mrb[187].mxu0 }
 0x271   : > { %v2110_v23 = vpop.f32.mrb[188].mxu0 }
 0x272   : > { %v2147_v52 = vadd.f32 %v2110_v23, %v9253_v32  ;;  %v7346_v25 = vpop.f32.mrb[189].mxu0 }
 0x273   : > { %v2113_v60 = vpop.f32.mrb[190].mxu0 }
 0x274   : > { %v2148_v56 = vadd.f32 %v2113_v60, %v9255_v35  ;;  %v7347_v13 = vpop.f32.mrb[191].mxu0  ;;  %v9350_v60 = vld [vmem:[%s10068_s3] ss:$0 sm:$0xff] }
 0x279   : > { %v2118_v34 = vpop.f32.mrb[192].mxu0 }
 0x27a   : > { %v2149_v3 = vadd.f32 %v2136_v29, %v2118_v34  ;;  %v7350_v53 = vpop.f32.mrb[193].mxu0  ;;  %v9352_v34 = vpop.permute.xlu0 %2797 }
 0x27b   : > { %v2121_v55 = vpop.f32.mrb[194].mxu0 }
 0x27c   : > { %2162 = vst [vmem:[#allocation2 + $0x60] sm:$0xf] %v2149_v3  ;;  %v7351_v10 = vpop.f32.mrb[195].mxu0 }
 0x281   : > { %v2328_v44 = vpop.f32.mrb[196].mxu0 }
 0x282   : > { %v2395_v24 = vadd.f32 %v2328_v44, %v9270_v28  ;;  %v7370_v31 = vpop.f32.mrb[197].mxu0 }
 0x283   : > { %v2331_v54 = vpop.f32.mrb[198].mxu0  ;;  %v2394_v58 = vld [vmem:[#allocation2 + $0x60] sm:$0xf] }
 0x284   : > { %v2396_v37 = vadd.f32 %v2331_v54, %v9274_v12  ;;  %v7371_v32 = vpop.f32.mrb[199].mxu0 }
 0x289   : > { %v2336_v2 = vpop.f32.mrb[200].mxu0 }
 0x28a   : > { %v2397_v17 = vadd.f32 %v2336_v2, %v2139_v7  ;;  %v7374_v14 = vpop.f32.mrb[201].mxu0  ;;  %v9361_v2 = vpop.permute.xlu0 %2852 }
 0x28b   : > { %v2339_v35 = vpop.f32.mrb[202].mxu0 }
 0x28c   : > { %v2398_v39 = vadd.f32 %v2339_v35, %v2140_v62  ;;  %v7375_v27 = vpop.f32.mrb[203].mxu0 }
 0x291   : > { %v2344_v41 = vpop.f32.mrb[204].mxu0 }
 0x292   : > { %v9312_v42 = vadd.f32 %v2344_v41, %v2141_v4  ;;  %v7378_v9 = vpop.f32.mrb[205].mxu0 }
 0x293   : > { %v2347_v61 = vpop.f32.mrb[206].mxu0 }
 0x294   : > { %v9314_v46 = vadd.f32 %v2347_v61, %v2142_v18  ;;  %v7379_v59 = vpop.f32.mrb[207].mxu0 }
 0x299   : > { %v2352_v28 = vpop.f32.mrb[208].mxu0 }
 0x29a   : > { %v9316_v50 = vadd.f32 %v2352_v28, %v2143_v15  ;;  %v7382_v6 = vpop.f32.mrb[209].mxu0 }
 0x29b   : > { %v2355_v12 = vpop.f32.mrb[210].mxu0 }
 0x29c   : > { %v9318_v47 = vadd.f32 %v2355_v12, %v2144_v21  ;;  %v7383_v33 = vpop.f32.mrb[211].mxu0 }
 0x2a1   : > { %v2360_v57 = vpop.f32.mrb[212].mxu0 }
 0x2a2   : > { %v9320_v7 = vadd.f32 %v2360_v57, %v2145_v22  ;;  %v7386_v5 = vpop.f32.mrb[213].mxu0  ;;  %v9336_v22 = vpop.permute.xlu1 %2842 }
 0x2a3   : > { %v2363_v11 = vpop.f32.mrb[214].mxu0 }
 0x2a4   : > { %v9322_v62 = vadd.f32 %v2363_v11, %v2146_v26  ;;  %v7387_v51 = vpop.f32.mrb[215].mxu0  ;;  %v9343_v26 = vld [vmem:[%s10067_s2] ss:$0 sm:$0xff]  ;;  %v9367_v11 = vpop.permute.xlu0 %2807 }
 0x2a6   : > { %v9345_v25 = vpop.permute.xlu1 %2847 }
 0x2a9   : > { %v2368_v0 = vpop.f32.mrb[216].mxu0 }
 0x2aa   : > { %v9326_v36 = vadd.f32 %v2368_v0, %v2147_v52  ;;  %v7390_v4 = vpop.f32.mrb[217].mxu0  ;;  %v3060_v0 = vld [vmem:[#allocation3 + $0x4] sm:$0xe] }
 0x2ab   : > { %v2371_v38 = vpop.f32.mrb[218].mxu0 }
 0x2ac   : > { %v9330_v18 = vadd.f32 %v2371_v38, %v2148_v56  ;;  %v7391_v8 = vpop.f32.mrb[219].mxu0 }
 0x2b1   : > { %v2376_v15 = vpop.f32.mrb[220].mxu0 }
 0x2b2   : > { %v2407_v16 = vadd.f32 %v2394_v58, %v2376_v15  ;;  %v7394_v21 = vpop.f32.mrb[221].mxu0 }
 0x2b3   : > { %v2379_v43 = vpop.f32.mrb[222].mxu0 }
 0x2b4   : > { %2420 = vst [vmem:[#allocation2 + $0x60] sm:$0xf] %v2407_v16  ;;  %v7395_v19 = vpop.f32.mrb[223].mxu0 }
 0x2b9   : > { %v2636_v48 = vpop.f32.mrb[224].mxu0 }
 0x2ba   : > { %v2703_v49 = vadd.f32 %v2636_v48, %v2395_v24  ;;  %v7414_v23 = vpop.f32.mrb[225].mxu0  ;;  %v9358_v24 = vpop.permute.xlu1 %2802 }
 0x2bb   : > { %v2639_v52 = vpop.f32.mrb[226].mxu0 }
 0x2bc   : > { %v2704_v56 = vadd.f32 %v2639_v52, %v2396_v37  ;;  %v7415_v13 = vpop.f32.mrb[227].mxu0  ;;  %v2749_v29 = vadd.f32 %v9343_v26, %v2703_v49 }
 0x2be   : > { %v2769_v3 = vmul.f32 %v9350_v60, %v2749_v29  ;;  %v2750_v53 = vadd.f32 %v9343_v26, %v2704_v56  ;;  %v9375_v19 = vpop.permute.xlu1 %2812 }
 0x2c0   : > { %v2782_v55 = vmax.f32 %v2769_v3, 0.0  ;;  %v2770_v10 = vmul.f32 %v9350_v60, %v2750_v53 }
 0x2c1   : > { %v2644_v44 = vpop.f32.mrb[228].mxu0 }
 0x2c2   : > { %v2705_v31 = vadd.f32 %v2644_v44, %v2397_v17  ;;  %v7418_v54 = vpop.f32.mrb[229].mxu0  ;;  %v2860_v32 = vmul.f32 %v9352_v34, %v2782_v55  ;;  %v2783_v37 = vmax.f32 %v2770_v10, 0.0 }
 0x2c3   : > { %v2647_v14 = vpop.f32.mrb[230].mxu0 }
 0x2c4   : > { %v2706_v35 = vadd.f32 %v2647_v14, %v2398_v39  ;;  %v7419_v27 = vpop.f32.mrb[231].mxu0  ;;  %v6733_v41 = vpack.c.bf16 %v2860_v32, %v2860_v32  ;;  %v2861_v9 = vmul.f32 %v9358_v24, %v2783_v37  ;;  %v2751_v61 = vadd.f32 %v9343_v26, %v2705_v31 }
 0x2c6   : > { %v2917_v59 = vshrl.u32 %v6733_v41, 16  ;;  %v2920_v28 = vshll.u32 %v6733_v41, 16  ;;  %v6734_v6 = vpack.c.bf16 %v2861_v9, %v2861_v9  ;;  %v2771_v17 = vmul.f32 %v9350_v60, %v2751_v61 }
 0x2c7   : > { %v2752_v12 = vadd.f32 %v9343_v26, %v2706_v35 }
 0x2c8   : > { %v2919_v33 = vrot.slane %v2917_v59, 6  ;;  %v2922_v57 = vrot.slane %v2920_v28, 7  ;;  %v2926_v39 = vshrl.u32 %v6734_v6, 16  ;;  %v2929_v5 = vshll.u32 %v6734_v6, 16 }
 0x2c9   : > { %v2652_v4 = vpop.f32.mrb[232].mxu0  ;;  %v2784_v38 = vmax.f32 %v2771_v17, 0.0  ;;  %v2772_v8 = vmul.f32 %v9350_v60, %v2752_v12 }
 0x2ca   : > { %v2923_v15 = vor.u32 %v2922_v57, %v2919_v33  ;;  %v2707_v58 = vadd.f32 %v2652_v4, %v9312_v42  ;;  %v7422_v16 = vpop.f32.mrb[233].mxu0  ;;  %v2928_v21 = vrot.slane %v2926_v39, 6  ;;  %v2931_v43 = vrot.slane %v2929_v5, 7 }
 0x2cb   : > { %v2655_v49 = vpop.f32.mrb[234].mxu0  ;;  %v2862_v23 = vmul.f32 %v9367_v11, %v2784_v38  ;;  %v2785_v52 = vmax.f32 %v2772_v8, 0.0 }
 0x2cc   : > { %v2924_v56 = vrot.slane %v2923_v15, 4  ;;  %v3061_v13 = vsel %vm9369_vm8, %v2923_v15, %v3060_v0  ;;  %v2932_v42 = vor.u32 %v2931_v43, %v2928_v21  ;;  %v2708_v29 = vadd.f32 %v2655_v49, %v9314_v46  ;;  %v7423_v3 = vpop.f32.mrb[235].mxu0 }
 0x2cd   : > { %3062 = vst [vmem:[#allocation3 + $0x4] sm:$0xe] %v3061_v13  ;;  %v6735_v53 = vpack.c.bf16 %v2862_v23, %v2862_v23  ;;  %v2753_v55 = vadd.f32 %v9343_v26, %v2707_v58  ;;  %v2863_v10 = vmul.f32 %v9375_v19, %v2785_v52 }
 0x2ce   : > { %v2933_v44 = vsel %vm9379_vm9, %v2924_v56, %v2932_v42  ;;  %v2754_v31 = vadd.f32 %v9343_v26, %v2708_v29  ;;  %v2934_v33 = vrot.slane %v2932_v42, 4 }
 0x2cf   : > { %3063 = vst [vmem:[#allocation3 + $0x8] sm:$0xf] %v2933_v44  ;;  %v2936_v54 = vshrl.u32 %v6735_v53, 16  ;;  %v2939_v32 = vshll.u32 %v6735_v53, 16  ;;  %v2773_v37 = vmul.f32 %v9350_v60, %v2753_v55  ;;  %v6736_v14 = vpack.c.bf16 %v2863_v10, %v2863_v10 }
 0x2d0   : > { %v2774_v46 = vmul.f32 %v9350_v60, %v2754_v31 }
 0x2d1   : > { %v2938_v35 = vrot.slane %v2936_v54, 6  ;;  %v2941_v27 = vrot.slane %v2939_v32, 7  ;;  %v2660_v41 = vpop.f32.mrb[236].mxu0  ;;  %v2786_v9 = vmax.f32 %v2773_v37, 0.0  ;;  %v2946_v61 = vshrl.u32 %v6736_v14, 16 }
 0x2d2   : > { %v2709_v28 = vadd.f32 %v2660_v41, %v9316_v50  ;;  %v7426_v6 = vpop.f32.mrb[237].mxu0  ;;  %v2787_v17 = vmax.f32 %v2774_v46, 0.0  ;;  %v2949_v12 = vshll.u32 %v6736_v14, 16 }
 0x2d3   : > { %v2942_v57 = vor.u32 %v2941_v27, %v2938_v35  ;;  %v2864_v39 = vmul.f32 %v9328_v63, %v2786_v9  ;;  %v2948_v5 = vrot.slane %v2946_v61, 6  ;;  %v2663_v0 = vpop.f32.mrb[238].mxu0 }
 0x2d4   : > { %v3083_v4 = vld [vmem:[#allocation3 + $0x4] sm:$0x3]  ;;  %v2755_v38 = vadd.f32 %v9343_v26, %v2709_v28  ;;  %v2865_v8 = vmul.f32 %v9334_v30, %v2787_v17  ;;  %v2951_v15 = vrot.slane %v2949_v12, 7  ;;  %v2710_v58 = vadd.f32 %v2663_v0, %v9318_v47  ;;  %v7427_v16 = vpop.f32.mrb[239].mxu0 }
 0x2d5   : > { %v3084_v50 = vsel %vm9395_vm11, 0, %v3083_v4  ;;  %v2943_v21 = vsel %vm9379_vm9, %v2934_v33, %v2942_v57  ;;  %v2944_v43 = vrot.slane %v2942_v57, 4  ;;  %v6737_v49 = vpack.c.bf16 %v2864_v39, %v2864_v39 }
 0x2d6   : > { %3085 = vst [vmem:[#allocation3 + $0x4] sm:$0x3] %v3084_v50  ;;  %3064 = vst [vmem:[#allocation3 + $0xc] sm:$0xf] %v2943_v21  ;;  %v2775_v23 = vmul.f32 %v9350_v60, %v2755_v38  ;;  %v6738_v52 = vpack.c.bf16 %v2865_v8, %v2865_v8  ;;  %v2952_v56 = vor.u32 %v2951_v15, %v2948_v5 }
 0x2d7   : > { %v2756_v13 = vadd.f32 %v9343_v26, %v2710_v58  ;;  %v2956_v42 = vshrl.u32 %v6737_v49, 16  ;;  %v2959_v29 = vshll.u32 %v6737_v49, 16 }
 0x2d8   : > { %v2788_v47 = vmax.f32 %v2775_v23, 0.0  ;;  %v2953_v3 = vsel %vm9379_vm9, %v2944_v43, %v2952_v56  ;;  %v2966_v53 = vshrl.u32 %v6738_v52, 16  ;;  %v2969_v44 = vshll.u32 %v6738_v52, 16 }
 0x2d9   : > { %v2958_v55 = vrot.slane %v2956_v42, 6  ;;  %v2961_v10 = vrot.slane %v2959_v29, 7  ;;  %3065 = vst [vmem:[#allocation3 + $0x10] sm:$0xf] %v2953_v3  ;;  %v2776_v31 = vmul.f32 %v9350_v60, %v2756_v13  ;;  %v2668_v54 = vpop.f32.mrb[240].mxu0  ;;  %v2954_v35 = vrot.slane %v2952_v56, 4 }
 0x2da   : > { %v2866_v32 = vmul.f32 %v9324_v40, %v2788_v47  ;;  %v2968_v37 = vrot.slane %v2966_v53, 6  ;;  %v2711_v14 = vadd.f32 %v2668_v54, %v9320_v7  ;;  %v7430_v46 = vpop.f32.mrb[241].mxu0  ;;  %v2971_v41 = vrot.slane %v2969_v44, 7 }
 0x2db   : > { %v2962_v27 = vor.u32 %v2961_v10, %v2958_v55  ;;  %v2789_v9 = vmax.f32 %v2776_v31, 0.0  ;;  %v2671_v61 = vpop.f32.mrb[242].mxu0 }
 0x2dc   : > { %v6739_v28 = vpack.c.bf16 %v2866_v32, %v2866_v32  ;;  %v2757_v6 = vadd.f32 %v9343_v26, %v2711_v14  ;;  %v2712_v17 = vadd.f32 %v2671_v61, %v9322_v62  ;;  %v7431_v12 = vpop.f32.mrb[243].mxu0  ;;  %v2972_v39 = vor.u32 %v2971_v41, %v2968_v37 }
 0x2dd   : > { %v2963_v33 = vsel %vm9379_vm9, %v2954_v35, %v2962_v27  ;;  %v2964_v57 = vrot.slane %v2962_v27, 4  ;;  %v2867_v5 = vmul.f32 %v9332_v45, %v2789_v9  ;;  %v8286_v7 = vld [vmem:[#allocation3] sm:$0xff]   ;;  %v8287_v46 = vld [vmem:[#allocation3 + $0x8] sm:$0xff]  }
 0x2de   : > { %v2976_v0 = vshrl.u32 %v6739_v28, 16  ;;  %v2979_v4 = vshll.u32 %v6739_v28, 16  ;;  %3066 = vst [vmem:[#allocation3 + $0x14] sm:$0xf] %v2963_v33  ;;  %v2777_v38 = vmul.f32 %v9350_v60, %v2757_v6  ;;  %v2758_v8 = vadd.f32 %v9343_v26, %v2712_v17  ;;  %7457 = vmatmul.mubr.bf16.vlgmr.msra.gmra.mrb[252].mxu0 %v8286_v7  ;;  %v2702_v28 = vld [vmem:[#allocation2 + $0x60] sm:$0xf] }
 0x2df   : > { %v2973_v15 = vsel %vm9379_vm9, %v2964_v57, %v2972_v39  ;;  %v6740_v62 = vpack.c.bf16 %v2867_v5, %v2867_v5  ;;  %7460 = vmatprep.mubr.msk.bf16.mxu0 %vm8437_vm0, %v8436_v1  ;;  %v2974_v43 = vrot.slane %v2972_v39, 4 }
 0x2e0   : > { %v2978_v58 = vrot.slane %v2976_v0, 6  ;;  %v2981_v16 = vrot.slane %v2979_v4, 7  ;;  %3067 = vst [vmem:[#allocation3 + $0x18] sm:$0xf] %v2973_v15  ;;  %v2790_v50 = vmax.f32 %v2777_v38, 0.0  ;;  %v2778_v21 = vmul.f32 %v9350_v60, %v2758_v8 }
 0x2e1   : > { %v2986_v49 = vshrl.u32 %v6740_v62, 16  ;;  %v2989_v23 = vshll.u32 %v6740_v62, 16  ;;  %v2676_v52 = vpop.f32.mrb[244].mxu0 }
 0x2e2   : > { %v2982_v56 = vor.u32 %v2981_v16, %v2978_v58  ;;  %v2868_v13 = vmul.f32 %v9338_v20, %v2790_v50  ;;  %v2791_v42 = vmax.f32 %v2778_v21, 0.0  ;;  %v2713_v29 = vadd.f32 %v2676_v52, %v9326_v36  ;;  %v7434_v47 = vpop.f32.mrb[245].mxu0  ;;  %v8290_v16 = vld [vmem:[%s10069_s4 + $0x40] sm:$0xff]  }
 0x2e3   : > { %v2679_v3 = vpop.f32.mrb[246].mxu0  ;;  %v2988_v53 = vrot.slane %v2986_v49, 6  ;;  %v2991_v55 = vrot.slane %v2989_v23, 7 }
 0x2e4   : > { %v2983_v10 = vsel %vm9379_vm9, %v2974_v43, %v2982_v56  ;;  %v2984_v44 = vrot.slane %v2982_v56, 4  ;;  %v6741_v31 = vpack.c.bf16 %v2868_v13, %v2868_v13  ;;  %v2869_v54 = vmul.f32 %v9336_v22, %v2791_v42  ;;  %v7435_v32 = vpop.f32.mrb[247].mxu0  ;;  %v8291_v42 = vld [vmem:[%s10069_s4 + $0x48] sm:$0xff]  }
 0x2e5   : > { %3068 = vst [vmem:[#allocation3 + $0x1c] sm:$0xf] %v2983_v10  ;;  %v2759_v37 = vadd.f32 %v9343_v26, %v2713_v29  ;;  %v2714_v14 = vadd.f32 %v2679_v3, %v9330_v18  ;;  %v2992_v35 = vor.u32 %v2991_v55, %v2988_v53  ;;  %v8289_v13 = vld [vmem:[#allocation3 + $0x10] sm:$0xff]   ;;  %v8293_v32 = vld [vmem:[%s10069_s4 + $0x50] sm:$0xff]  }
 0x2e6   : > { %v2996_v36 = vshrl.u32 %v6741_v31, 16  ;;  %v2999_v27 = vshll.u32 %v6741_v31, 16  ;;  %v6742_v41 = vpack.c.bf16 %v2869_v54, %v2869_v54  ;;  %7461 = vmatmul.mubr.bf16.gmra.mrb[0].mxu0 %v8287_v46 }
 0x2e7   : > { %v2779_v9 = vmul.f32 %v9350_v60, %v2759_v37  ;;  %v2760_v61 = vadd.f32 %v9343_v26, %v2714_v14  ;;  %v2993_v6 = vsel %vm9379_vm9, %v2984_v44, %v2992_v35  ;;  %7464 = vmatprep.mubr.msk.bf16.mxu0 %vm8437_vm0, %v8436_v1  ;;  %v2994_v7 = vrot.slane %v2992_v35, 4 }
 0x2e8   : > { %v3006_v17 = vshrl.u32 %v6742_v41, 16  ;;  %v3009_v12 = vshll.u32 %v6742_v41, 16  ;;  %v2998_v18 = vrot.slane %v2996_v36, 6  ;;  %v3001_v33 = vrot.slane %v2999_v27, 7  ;;  %3069 = vst [vmem:[#allocation3 + $0x20] sm:$0xf] %v2993_v6 }
 0x2e9   : > { %v2792_v57 = vmax.f32 %v2779_v9, 0.0  ;;  %v2780_v39 = vmul.f32 %v9350_v60, %v2760_v61  ;;  %v2684_v5 = vpop.f32.mrb[248].mxu0  ;;  %v8294_v61 = vld [vmem:[%s10069_s4 + $0x58] sm:$0xff]  }
 0x2ea   : > { %v2715_v0 = vadd.f32 %v2702_v28, %v2684_v5  ;;  %v3002_v4 = vor.u32 %v3001_v33, %v2998_v18  ;;  %v3008_v38 = vrot.slane %v3006_v17, 6  ;;  %v3011_v8 = vrot.slane %v3009_v12, 7  ;;  %v7438_v15 = vpop.f32.mrb[249].mxu0  ;;  %v8296_v12 = vld [vmem:[%s10069_s4 + $0x60] sm:$0xff]  }
 0x2eb   : > { %v2870_v62 = vmul.f32 %v9345_v25, %v2792_v57  ;;  %v2793_v58 = vmax.f32 %v2780_v39, 0.0  ;;  %v2687_v50 = vpop.f32.mrb[250].mxu0  ;;  %v8301_v57 = vld [vmem:[#allocation3] sm:$0xff]  }
 0x2ec   : > { %2728 = vst [vmem:[#allocation2 + $0x60] sm:$0xf] %v2715_v0  ;;  %v8288_v21 = vld [vmem:[#allocation3 + $0x18] sm:$0xff]   ;;  %v3003_v43 = vsel %vm9379_vm9, %v2994_v7, %v3002_v4  ;;  %v3004_v49 = vrot.slane %v3002_v4, 4  ;;  %v3012_v23 = vor.u32 %v3011_v8, %v3008_v38  ;;  %v7439_v47 = vpop.f32.mrb[251].mxu0  ;;  %v8297_v39 = vld [vmem:[%s10069_s4 + $0x68] sm:$0xff]  }
 0x2ed   : > { %v6743_v52 = vpack.c.bf16 %v2870_v62, %v2870_v62  ;;  %v2871_v56 = vmul.f32 %v9361_v2, %v2793_v58  ;;  %3070 = vst [vmem:[#allocation3 + $0x24] sm:$0xf] %v3003_v43  ;;  %7469 = vmatmul.mubr.bf16.vlgmr.msra.gmra.mrb[0].mxu1 %v8288_v21  ;;  %v3378_v5 = vshll.u32 %v8301_v57, 16  ;;  %v8302_v4 = vld [vmem:[#allocation3 + $0x8] sm:$0xff]   ;;  %v8300_v62 = vld [vmem:[%s10069_s4 + $0x78] sm:$0xff]   ;;  %v3376_v58 = vshrl.u32 %v8301_v57, 16 }
 0x2ee   : > { %v3013_v29 = vsel %vm9379_vm9, %v3004_v49, %v3012_v23  ;;  %7465 = vmatmul.mubr.bf16.gmra.mrb[4].mxu0 %v8289_v13  ;;  %7485 = vmatpush3.bf16.msra.mxu1 %v8290_v16  ;;  %v3014_v37 = vrot.slane %v3012_v23, 4  ;;  %v3383_v16 = vshll.u32 %v8302_v4, 16  ;;  %v8304_v49 = vld [vmem:[#allocation3 + $0x10] sm:$0xff]   ;;  %v8303_v13 = vld [vmem:[%s10069_s4 + $0x80] sm:$0xff]  }
 0x2ef   : > { %v3016_v3 = vshrl.u32 %v6743_v52, 16  ;;  %v3019_v53 = vshll.u32 %v6743_v52, 16  ;;  %v6744_v55 = vpack.c.bf16 %v2871_v56, %v2871_v56  ;;  %3071 = vst [vmem:[#allocation3 + $0x28] sm:$0xf] %v3013_v29  ;;  %7486 = vmatprep.subr.bf16.mxu1 %v8436_v1  ;;  %7472 = vmatprep.mubr.msk.bf16.mxu1 %vm8437_vm0, %v8436_v1  ;;  %v3380_v8 = vrot.slane %v3378_v5, 1 }
 0x2f0   : > { %v3385_v56 = vrot.slane %v3383_v16, 1 }
 0x2f1   : > { %v3018_v10 = vrot.slane %v3016_v3, 6  ;;  %v3021_v44 = vrot.slane %v3019_v53, 7  ;;  %v3026_v31 = vshrl.u32 %v6744_v55, 16  ;;  %v3029_v54 = vshll.u32 %v6744_v55, 16  ;;  %v3077_v3 = vld [vmem:[#allocation3 + $0x34] sm:$0xf] }
 0x2f2   : > { %7487 = vmatpush3.bf16.msra.mxu1 %v8291_v42  ;;  %v3381_v43 = vor.u32 %v3380_v8, %v3376_v58  ;;  %v3391_v55 = vshll.u32 %v8304_v49, 16 }
 0x2f3   : > { %v3022_v14 = vor.u32 %v3021_v44, %v3018_v10  ;;  %v3028_v46 = vrot.slane %v3026_v31, 6  ;;  %v3031_v35 = vrot.slane %v3029_v54, 7  ;;  %7488 = vmatprep.subr.bf16.mxu1 %v8436_v1  ;;  %v2741_v6 = vld [vmem:[#allocation2 + $0x60] sm:$0xf]  ;;  %v8305_v44 = vld [vmem:[%s10069_s4 + $0x88] sm:$0xff]   ;;  %v3387_v54 = vshrl.u32 %v8302_v4, 16 }
 0x2f4   : > { %v8292_v36 = vld [vmem:[#allocation3 + $0x20] sm:$0xff]   ;;  %v2761_v17 = vadd.f32 %v9343_v26, %v2741_v6  ;;  %v8299_v26 = vld [vmem:[%s10069_s4 + $0x70] sm:$0xff]   ;;  %v3386_v53 = vsel %vm874_vm1, %v3381_v43, %v3385_v56 }
 0x2f5   : > { %v3023_v27 = vsel %vm9379_vm9, %v3014_v37, %v3022_v14  ;;  %v3024_v41 = vrot.slane %v3022_v14, 4  ;;  %v3032_v9 = vor.u32 %v3031_v35, %v3028_v46  ;;  %7473 = vmatmul.mubr.bf16.gmra.mrb[4].mxu1 %v8292_v36  ;;  %v8307_v37 = vld [vmem:[#allocation3 + $0x18] sm:$0xff]   ;;  %v8306_v14 = vld [vmem:[%s10069_s4 + $0x90] sm:$0xff]   ;;  %v3389_v46 = vor.u32 %v3387_v54, %v3385_v56  ;;  %v8309_v6 = vld [vmem:[#allocation3 + $0x20] sm:$0xff]  }
 0x2f6   : > { %3072 = vst [vmem:[#allocation3 + $0x2c] sm:$0xf] %v3023_v27  ;;  %7489 = vmatpush3.bf16.msra.mxu1 %v8293_v32  ;;  %7476 = vmatprep.mubr.msk.bf16.mxu1 %vm8437_vm0, %v8436_v1  ;;  %v2781_v33 = vmul.f32 %v9350_v60, %v2761_v17  ;;  %v9485_v60 = vpop.permute.xlu0 %2857  ;;  %v3393_v32 = vrot.slane %v3391_v55, 1  ;;  %v3399_v36 = vshll.u32 %v8307_v37, 16  ;;  %v3407_v57 = vshll.u32 %v8309_v6, 16  ;;  %v8314_v4 = vld [vmem:[%s10069_s4 + $0xb0] sm:$0xff]  }
 0x2f7   : > { %v3033_v28 = vsel %vm9379_vm9, %v3024_v41, %v3032_v9  ;;  %7490 = vmatprep.subr.bf16.mxu1 %v8436_v1  ;;  %v3034_v42 = vrot.slane %v3032_v9, 4  ;;  %v8308_v41 = vld [vmem:[%s10069_s4 + $0x98] sm:$0xff]   ;;  %v8320_v54 = vld [vmem:[%s10069_s4 + $0xc8] sm:$0xff]  }
 0x2f8   : > { %3073 = vst [vmem:[#allocation3 + $0x30] sm:$0xf] %v3033_v28  ;;  %v2794_v0 = vmax.f32 %v2781_v33, 0.0  ;;  %v3394_v35 = vsel %vm874_vm1, %v3389_v46, %v3393_v32  ;;  %v3401_v28 = vrot.slane %v3399_v36, 1  ;;  %v3409_v5 = vrot.slane %v3407_v57, 1  ;;  %v8322_v46 = vld [vmem:[#allocation3 + $0x18] sm:$0xff]  }
 0x2f9   : > { %v3680_v36 = vrot.slane %v8322_v46, 1  ;;  %v8346_v46 = vld [vmem:[#allocation3 + $0x4] sm:$0xfe]  }
 0x2fa   : > { %7491 = vmatpush3.bf16.msra.mxu1 %v8294_v61  ;;  %v2872_v38 = vmul.f32 %v9485_v60, %v2794_v0  ;;  %v3395_v61 = vshrl.u32 %v8304_v49, 16 }
 0x2fb   : > { %7492 = vmatprep.subr.bf16.mxu1 %v8436_v1 }
 0x2fc   : > { %v6745_v15 = vpack.c.bf16 %v2872_v38, %v2872_v38 }
 0x2fd   : > { %v8295_v18 = vld [vmem:[#allocation3 + $0x28] sm:$0xff]  }
 0x2fe   : > { %7477 = vmatmul.mubr.bf16.gmra.mrb[8].mxu1 %v8295_v18  ;;  %v3036_v50 = vshrl.u32 %v6745_v15, 16  ;;  %v3039_v21 = vshll.u32 %v6745_v15, 16  ;;  %v3397_v18 = vor.u32 %v3395_v61, %v3393_v32  ;;  %v8315_v15 = vld [vmem:[%s10069_s4 + $0xb8] sm:$0xff]   ;;  %v8324_v61 = vld [vmem:[#allocation3 + $0x20] sm:$0xff]  }
 0x2ff   : > { %7493 = vmatpush3.bf16.msra.mxu1 %v8296_v12  ;;  %7480 = vmatprep.mubr.msk.bf16.mxu1 %vm8437_vm0, %v8436_v1  ;;  %v8298_v7 = vld [vmem:[#allocation3 + $0x30] ss:$0 sps:$4 sm:$0x33]   ;;  %v8310_v12 = vld [vmem:[%s10069_s4 + $0xa0] sm:$0xff]  }
 0x300   : > { %7494 = vmatprep.subr.bf16.mxu1 %v8436_v1  ;;  %v3038_v23 = vrot.slane %v3036_v50, 6  ;;  %v3041_v52 = vrot.slane %v3039_v21, 7  ;;  %v3402_v33 = vsel %vm874_vm1, %v3397_v18, %v3401_v28  ;;  %v8313_v16 = vld [vmem:[#allocation3 + $0x30] ss:$0 sps:$4 sm:$0x77]   ;;  %v8326_v18 = vld [vmem:[#allocation3 + $0x28] sm:$0xff]  }
 0x301   : > { %v3423_v43 = vshll.u32 %v8313_v16, 16  ;;  %v3684_v57 = vrot.slane %v8326_v18, 1  ;;  %v8349_v18 = vld [vmem:[#allocation3 + $0x14] sm:$0xff]  }
 0x302   : > { %v3042_v29 = vor.u32 %v3041_v52, %v3038_v23 }
 0x303   : > { %7495 = vmatpush3.bf16.msra.mxu1 %v8297_v39  ;;  %v8312_v39 = vld [vmem:[%s10069_s4 + $0xa8] sm:$0xff]   ;;  %v3425_v52 = vrot.slane %v3423_v43, 1 }
 0x304   : > { %7496 = vmatprep.subr.bf16.mxu1 %v8436_v1  ;;  %v3043_v10 = vsel %vm9379_vm9, %v3034_v42, %v3042_v29  ;;  %v8316_v29 = vld [vmem:[#allocation3] sm:$0xfe]  }
 0x305   : > { %v3078_v31 = vsel %vm9499_vm14, %v3043_v10, %v3077_v3  ;;  %v8317_v3 = vld [vmem:[#allocation3 + $0x8] sm:$0xff]   ;;  %v8318_v10 = vld [vmem:[%s10069_s4 + $0xc0] sm:$0xff]  }
 0x306   : > { %7481 = vmatmul.mubr.bf16.gmra.mrb[12].mxu1 %v8298_v7  ;;  %3079 = vst [vmem:[#allocation3 + $0x34] sm:$0xf] %v3078_v31  ;;  %v8311_v7 = vld [vmem:[#allocation3 + $0x28] sm:$0xff]   ;;  %v3676_v55 = vrot.slane %v8317_v3, 1  ;;  %v8319_v31 = vld [vmem:[#allocation3 + $0x10] sm:$0xff]  }
 0x307   : > { %7497 = vmatpush3.bf16.msra.mxu1 %v8299_v26  ;;  %7500 = vmatprep.mubr.msk.bf16.mxu1 %vm8437_vm0, %v8436_v1  ;;  %v3403_v26 = vshrl.u32 %v8307_v37, 16  ;;  %v3415_v8 = vshll.u32 %v8311_v7, 16  ;;  %v3419_v49 = vshrl.u32 %v8311_v7, 16  ;;  %v3678_v32 = vrot.slane %v8319_v31, 1  ;;  %v8321_v37 = vld [vmem:[%s10069_s4 + $0xd0] sm:$0xff]  }
 0x308   : > { %7498 = vmatprep.subr.bf16.mxu1 %v8436_v1 }
 0x309   : > { %v3405_v0 = vor.u32 %v3403_v26, %v3401_v28  ;;  %v3417_v58 = vrot.slane %v3415_v8, 1  ;;  %v8327_v28 = vld [vmem:[%s10069_s4 + $0xe8] sm:$0xff]   ;;  %v8328_v26 = vld [vmem:[#allocation3 + $0x30] ss:$0 sps:$4 sm:$0x77]  }
 0x30b   : > { %7499 = vmatpush3.bf16.msra.mxu1 %v8300_v62  ;;  %v3410_v38 = vsel %vm874_vm1, %v3405_v0, %v3409_v5  ;;  %v3411_v62 = vshrl.u32 %v8309_v6, 16  ;;  %v3421_v23 = vor.u32 %v3419_v49, %v3417_v58  ;;  %v3682_v6 = vrot.slane %v8324_v61, 1  ;;  %v8331_v0 = vld [vmem:[#allocation3 + $0x4] sm:$0xfe]   ;;  %v8337_v49 = vld [vmem:[#allocation3 + $0x1c] sm:$0xff]  }
 0x30c   : > { %7528 = vmatprep.subr.bf16.mxu1 %v8436_v1 }
 0x30d   : > { %v3089_v9 = vld [vmem:[#allocation3 + $0x34] sm:$0x8]  ;;  %v3413_v50 = vor.u32 %v3411_v62, %v3409_v5  ;;  %v3426_v56 = vsel %vm874_vm1, %v3421_v23, %v3425_v52  ;;  %v3686_v5 = vrot.slane %v8328_v26, 1  ;;  %v4209_v26 = vshrl.u32 %v8349_v18, 16 }
 0x30e   : > { %7501 = vmatmul.mubr.bf16.vlgmr.msra.gmra.mrb[16].mxu1 %v3386_v53  ;;  %v3090_v17 = vsel %vm9519_vm5, 0, %v3089_v9  ;;  %v3675_v53 = vrot.slane %v8316_v29, 1  ;;  %v3681_v9 = vsel %vm1967_vm2, %v3678_v32, %v3680_v36  ;;  %v8338_v23 = vld [vmem:[%s10069_s4 + $0x118] sm:$0xff]   ;;  %v8342_v29 = vld [vmem:[%s10069_s4 + $0x128] sm:$0xff]  }
 0x30f   : > { %7529 = vmatpush3.bf16.msra.mxu1 %v8303_v13  ;;  %7504 = vmatprep.mubr.msk.bf16.mxu1 %vm8437_vm0, %v8436_v1  ;;  %3091 = vst [vmem:[#allocation3 + $0x34] sm:$0x8] %v3090_v17  ;;  %v3418_v21 = vsel %vm874_vm1, %v3413_v50, %v3417_v58  ;;  %v3427_v13 = vshrl.u32 %v8313_v16, 16  ;;  %v8329_v17 = vld [vmem:[%s10069_s4 + $0xf0] sm:$0xff]   ;;  %v3687_v7 = vsel %vm1967_vm2, %v3684_v57, %v3686_v5  ;;  %v8334_v58 = vld [vmem:[#allocation3 + $0x14] sm:$0xff]   ;;  %v8335_v16 = vld [vmem:[%s10069_s4 + $0x108] sm:$0xff]  }
 0x310   : > { %7530 = vmatprep.subr.bf16.mxu1 %v8436_v1  ;;  %v3936_v50 = vrot.slane %v8334_v58, 1  ;;  %v8352_v58 = vld [vmem:[#allocation3 + $0x1c] sm:$0xff]   ;;  %vm4498_vm1 = vcmask 1045504  }
 0x311   : > { %v3429_v42 = vor.u32 %v3427_v13, %v3425_v52  ;;  %v3938_v52 = vrot.slane %v8337_v49, 1  ;;  %v4221_v49 = vshll.u32 %v8352_v58, 16 }
 0x313   : > { %7531 = vmatpush3.bf16.msra.mxu1 %v8305_v44  ;;  %v3677_v44 = vsel %vm1967_vm2, %v3675_v53, %v3676_v55  ;;  %v3939_v13 = vsel %vm1967_vm2, %v3936_v50, %v3938_v52  ;;  %v8344_v53 = vld [vmem:[%s10069_s4 + $0x130] sm:$0xff]  }
 0x314   : > { %7532 = vmatprep.subr.bf16.mxu1 %v8436_v1 }
 0x316   : > { %7505 = vmatmul.mubr.bf16.gmra.mrb[20].mxu1 %v3394_v35  ;;  %v8323_v35 = vld [vmem:[%s10069_s4 + $0xd8] sm:$0xff]  }
 0x317   : > { %7508 = vmatprep.mubr.msk.bf16.mxu1 %vm8437_vm0, %v8436_v1  ;;  %7533 = vmatpush3.bf16.msra.mxu1 %v8306_v14  ;;  %v3679_v14 = vsel %vm1967_vm2, %v3676_v55, %v3678_v32  ;;  %v8343_v32 = vld [vmem:[#allocation3 + $0x34] ss:$0 sps:$4 sm:$0x77]  }
 0x318   : > { %7534 = vmatprep.subr.bf16.mxu1 %v8436_v1 }
 0x31b   : > { %7535 = vmatpush3.bf16.msra.mxu1 %v8308_v41  ;;  %v8325_v41 = vld [vmem:[%s10069_s4 + $0xe0] sm:$0xff]  }
 0x31c   : > { %7536 = vmatprep.subr.bf16.mxu1 %v8436_v1 }
 0x31e   : > { %7509 = vmatmul.mubr.bf16.gmra.mrb[24].mxu1 %v3402_v33  ;;  %v8330_v33 = vld [vmem:[%s10069_s4 + $0xf8] sm:$0xff]  }
 0x31f   : > { %7512 = vmatprep.mubr.msk.bf16.mxu1 %vm8437_vm0, %v8436_v1  ;;  %7537 = vmatpush3.bf16.msra.mxu1 %v8310_v12  ;;  %v3683_v12 = vsel %vm1967_vm2, %v3680_v36, %v3682_v6  ;;  %v4192_v36 = vshrl.u32 %v8346_v46, 16 }
 0x320   : > { %7538 = vmatprep.subr.bf16.mxu1 %v8436_v1 }
 0x323   : > { %7539 = vmatpush3.bf16.msra.mxu1 %v8312_v39  ;;  %v3685_v39 = vsel %vm1967_vm2, %v3682_v6, %v3684_v57 }
 0x324   : > { %7540 = vmatprep.subr.bf16.mxu1 %v8436_v1 }
 0x326   : > { %7513 = vmatmul.mubr.bf16.gmra.mrb[0].mxu1 %v3410_v38  ;;  %v3933_v38 = vrot.slane %v8331_v0, 1 }
 0x327   : > { %7516 = vmatprep.mubr.msk.bf16.mxu1 %vm8437_vm0, %v8436_v1  ;;  %7541 = vmatpush3.bf16.msra.mxu1 %v8314_v4  ;;  %v8332_v4 = vld [vmem:[#allocation3 + $0xc] sm:$0xff]  }
 0x328   : > { %7542 = vmatprep.subr.bf16.mxu1 %v8436_v1  ;;  %v3934_v8 = vrot.slane %v8332_v4, 1  ;;  %v8348_v4 = vld [vmem:[%s10069_s4 + $0x140] sm:$0xff]  }
 0x32a   : > { %v3935_v62 = vsel %vm1967_vm2, %v3933_v38, %v3934_v8  ;;  %v3937_v43 = vsel %vm1967_vm2, %v3934_v8, %v3936_v50 }
 0x32b   : > { %7543 = vmatpush3.bf16.msra.mxu1 %v8315_v15  ;;  %v8333_v15 = vld [vmem:[%s10069_s4 + $0x100] sm:$0xff]  }
 0x32c   : > { %7572 = vmatprep.subr.bf16.mxu1 %v8436_v1 }
 0x32e   : > { %7517 = vmatmul.mubr.bf16.gmra.mrb[4].mxu1 %v3418_v21  ;;  %v8336_v21 = vld [vmem:[%s10069_s4 + $0x110] sm:$0xff]  }
 0x32f   : > { %7520 = vmatprep.mubr.msk.bf16.mxu1 %vm8437_vm0, %v8436_v1 }
 0x336   : > { %7521 = vmatmul.mubr.bf16.gmra.mrb[8].mxu1 %v3426_v56  ;;  %v8340_v56 = vld [vmem:[%s10069_s4 + $0x120] sm:$0xff]  }
 0x337   : > { %7524 = vmatprep.mubr.msk.bf16.mxu1 %vm8437_vm0, %v8436_v1 }
 0x33e   : > { %7525 = vmatmul.mubr.bf16.gmra.mrb[28].mxu1 %v3429_v42  ;;  %v8339_v42 = vld [vmem:[#allocation3 + $0x24] sm:$0xff]  }
 0x33f   : > { %7544 = vmatprep.mubr.msk.bf16.mxu1 %vm8437_vm0, %v8436_v1  ;;  %v3940_v3 = vrot.slane %v8339_v42, 1 }
 0x341   : > { %v3941_v55 = vsel %vm1967_vm2, %v3938_v52, %v3940_v3 }
 0x346   : > { %7545 = vmatmul.mubr.bf16.vlgmr.msra.gmra.mrb[16].mxu1 %v3677_v44  ;;  %v8345_v44 = vld [vmem:[%s10069_s4 + $0x138] sm:$0xff]  }
 0x347   : > { %7573 = vmatpush3.bf16.msra.mxu1 %v8318_v10  ;;  %7548 = vmatprep.mubr.msk.bf16.mxu1 %vm8437_vm0, %v8436_v1  ;;  %v8341_v10 = vld [vmem:[#allocation3 + $0x2c] sm:$0xff]  }
 0x348   : > { %7574 = vmatprep.subr.bf16.mxu1 %v8436_v1  ;;  %v3942_v31 = vrot.slane %v8341_v10, 1 }
 0x34b   : > { %7575 = vmatpush3.bf16.msra.mxu1 %v8320_v54  ;;  %v3943_v54 = vsel %vm1967_vm2, %v3940_v3, %v3942_v31  ;;  %v4223_v3 = vrot.slane %v4221_v49, 2 }
 0x34c   : > { %7576 = vmatprep.subr.bf16.mxu1 %v8436_v1 }
 0x34e   : > { %7549 = vmatmul.mubr.bf16.gmra.mrb[20].mxu1 %v3679_v14 }
 0x34f   : > { %7552 = vmatprep.mubr.msk.bf16.mxu1 %vm8437_vm0, %v8436_v1  ;;  %7577 = vmatpush3.bf16.msra.mxu1 %v8321_v37  ;;  %v3944_v37 = vrot.slane %v8343_v32, 1 }
 0x350   : > { %7578 = vmatprep.subr.bf16.mxu1 %v8436_v1 }
 0x351   : > { %v3945_v14 = vsel %vm1967_vm2, %v3942_v31, %v3944_v37  ;;  %vm5018_vm2 = vsmask.f32 5376 }
 0x353   : > { %7579 = vmatpush3.bf16.msra.mxu1 %v8323_v35  ;;  %v8347_v35 = vld [vmem:[#allocation3 + $0xc] sm:$0xff]  }
 0x354   : > { %7580 = vmatprep.subr.bf16.mxu1 %v8436_v1  ;;  %v4203_v61 = vshll.u32 %v8347_v35, 16 }
 0x356   : > { %7553 = vmatmul.mubr.bf16.gmra.mrb[24].mxu1 %v3681_v9  ;;  %v4200_v9 = vshrl.u32 %v8347_v35, 16 }
 0x357   : > { %7556 = vmatprep.mubr.msk.bf16.mxu1 %vm8437_vm0, %v8436_v1  ;;  %7581 = vmatpush3.bf16.msra.mxu1 %v8325_v41  ;;  %v4195_v41 = vshll.u32 %v8346_v46, 16 }
 0x358   : > { %7582 = vmatprep.subr.bf16.mxu1 %v8436_v1 }
 0x359   : > { %v4197_v6 = vrot.slane %v4195_v41, 2 }
 0x35b   : > { %7583 = vmatpush3.bf16.msra.mxu1 %v8327_v28  ;;  %v4194_v28 = vrot.slane %v4192_v36, 1 }
 0x35c   : > { %7584 = vmatprep.subr.bf16.mxu1 %v8436_v1 }
 0x35d   : > { %v4198_v57 = vor.u32 %v4197_v6, %v4194_v28 }
 0x35e   : > { %7557 = vmatmul.mubr.bf16.gmra.mrb[0].mxu1 %v3683_v12  ;;  %v4205_v12 = vrot.slane %v4203_v61, 2  ;;  %v8357_v61 = vld [vmem:[%s10069_s4 + $0x168] sm:$0xff]  }
 0x35f   : > { %7560 = vmatprep.mubr.msk.bf16.mxu1 %vm8437_vm0, %v8436_v1  ;;  %7585 = vmatpush3.bf16.msra.mxu1 %v8329_v17  ;;  %v4202_v17 = vrot.slane %v4200_v9, 1  ;;  %v8356_v9 = vld [vmem:[#allocation3 + $0x2c] sm:$0xff]  }
 0x360   : > { %7586 = vmatprep.subr.bf16.mxu1 %v8436_v1  ;;  %v4236_v6 = vshrl.u32 %v8356_v9, 16 }
 0x363   : > { %7587 = vmatpush3.bf16.msra.mxu1 %v8330_v33 }
 0x364   : > { %7616 = vmatprep.subr.bf16.mxu1 %v8436_v1 }
 0x366   : > { %7561 = vmatmul.mubr.bf16.gmra.mrb[4].mxu1 %v3685_v39  ;;  %v4206_v39 = vor.u32 %v4205_v12, %v4202_v17  ;;  %v4239_v17 = vshll.u32 %v8356_v9, 16  ;;  %v8359_v12 = vld [vmem:[%s10069_s4 + $0x170] sm:$0xff]  }
 0x367   : > { %7564 = vmatprep.mubr.msk.bf16.mxu1 %vm8437_vm0, %v8436_v1  ;;  %v8369_v9 = vld [vmem:[#allocation3 + $0x24] sm:$0xff]  }
 0x368   : > { %v4207_v8 = vsel %vm2484_vm3, %v4198_v57, %v4206_v39  ;;  %v4238_v57 = vrot.slane %v4236_v6, 1  ;;  %v8374_v6 = vld [vmem:[%s10069_s4 + $0x1b0] sm:$0xff]  }
 0x36e   : > { %7565 = vmatmul.mubr.bf16.gmra.mrb[8].mxu1 %v3687_v7 }
 0x36f   : > { %7568 = vmatprep.mubr.msk.bf16.mxu1 %vm8437_vm0, %v8436_v1 }
 0x376   : > { %7569 = vmatmul.mubr.bf16.gmra.mrb[32].mxu1 %v3686_v5  ;;  %v4212_v5 = vshll.u32 %v8349_v18, 16 }
 0x377   : > { %7588 = vmatprep.mubr.msk.bf16.mxu1 %vm8437_vm0, %v8436_v1 }
 0x37e   : > { %7589 = vmatmul.mubr.bf16.vlgmr.msra.gmra.mrb[16].mxu1 %v3935_v62  ;;  %v4214_v62 = vrot.slane %v4212_v5, 2  ;;  %v8360_v5 = vld [vmem:[%s10069_s4 + $0x178] sm:$0xff]  }
 0x37f   : > { %7617 = vmatpush3.bf16.msra.mxu1 %v8333_v15  ;;  %7592 = vmatprep.mubr.msk.bf16.mxu1 %vm8437_vm0, %v8436_v1  ;;  %v4211_v15 = vrot.slane %v4209_v26, 1  ;;  %v8358_v26 = vld [vmem:[#allocation3 + $0x34] ss:$0 sps:$4 sm:$0xff]  }
 0x380   : > { %7618 = vmatprep.subr.bf16.mxu1 %v8436_v1 }
 0x383   : > { %7619 = vmatpush3.bf16.msra.mxu1 %v8335_v16  ;;  %v8350_v16 = vld [vmem:[%s10069_s4 + $0x148] sm:$0xff]  }
 0x384   : > { %7620 = vmatprep.subr.bf16.mxu1 %v8436_v1 }
 0x386   : > { %7593 = vmatmul.mubr.bf16.gmra.mrb[20].mxu1 %v3937_v43  ;;  %v4218_v43 = vshrl.u32 %v8352_v58, 16 }
 0x387   : > { %7596 = vmatprep.mubr.msk.bf16.mxu1 %vm8437_vm0, %v8436_v1  ;;  %7621 = vmatpush3.bf16.msra.mxu1 %v8336_v21  ;;  %v4215_v21 = vor.u32 %v4214_v62, %v4211_v15 }
 0x388   : > { %7622 = vmatprep.subr.bf16.mxu1 %v8436_v1 }
 0x389   : > { %v4216_v42 = vsel %vm2484_vm3, %v4206_v39, %v4215_v21  ;;  %v4241_v39 = vrot.slane %v4239_v17, 2 }
 0x38b   : > { %7623 = vmatpush3.bf16.msra.mxu1 %v8338_v23 }
 0x38c   : > { %7624 = vmatprep.subr.bf16.mxu1 %v8436_v1 }
 0x38e   : > { %7597 = vmatmul.mubr.bf16.gmra.mrb[24].mxu1 %v3939_v13 }
 0x38f   : > { %7600 = vmatprep.mubr.msk.bf16.mxu1 %vm8437_vm0, %v8436_v1  ;;  %7625 = vmatpush3.bf16.msra.mxu1 %v8340_v56  ;;  %v8351_v56 = vld [vmem:[%s10069_s4 + $0x150] sm:$0xff]  }
 0x390   : > { %7626 = vmatprep.subr.bf16.mxu1 %v8436_v1 }
 0x393   : > { %7627 = vmatpush3.bf16.msra.mxu1 %v8342_v29  ;;  %v4220_v29 = vrot.slane %v4218_v43, 1 }
 0x394   : > { %7628 = vmatprep.subr.bf16.mxu1 %v8436_v1 }
 0x396   : > { %7601 = vmatmul.mubr.bf16.gmra.mrb[0].mxu1 %v3941_v55  ;;  %v8353_v55 = vld [vmem:[%s10069_s4 + $0x158] sm:$0xff]  }
 0x397   : > { %7604 = vmatprep.mubr.msk.bf16.mxu1 %vm8437_vm0, %v8436_v1  ;;  %7629 = vmatpush3.bf16.msra.mxu1 %v8344_v53  ;;  %v8354_v53 = vld [vmem:[#allocation3 + $0x24] sm:$0xff]  }
 0x398   : > { %7630 = vmatprep.subr.bf16.mxu1 %v8436_v1  ;;  %v4227_v31 = vshrl.u32 %v8354_v53, 16 }
 0x39a   : > { %v4229_v36 = vrot.slane %v4227_v31, 1 }
 0x39b   : > { %7631 = vmatpush3.bf16.msra.mxu1 %v8345_v44  ;;  %v4224_v44 = vor.u32 %v4223_v3, %v4220_v29  ;;  %v8363_v3 = vld [vmem:[%s10069_s4 + $0x180] sm:$0xff]  }
 0x39c   : > { %7660 = vmatprep.subr.bf16.mxu1 %v8436_v1 }
 0x39d   : > { %v4225_v35 = vsel %vm2484_vm3, %v4215_v21, %v4224_v44 }
 0x39e   : > { %7605 = vmatmul.mubr.bf16.gmra.mrb[4].mxu1 %v3943_v54  ;;  %v4230_v54 = vshll.u32 %v8354_v53, 16 }
 0x39f   : > { %7608 = vmatprep.mubr.msk.bf16.mxu1 %vm8437_vm0, %v8436_v1 }
 0x3a0   : > { %v4232_v41 = vrot.slane %v4230_v54, 2  ;;  %v8366_v54 = vld [vmem:[%s10069_s4 + $0x190] sm:$0xff]  }
 0x3a2   : > { %v4233_v28 = vor.u32 %v4232_v41, %v4229_v36  ;;  %v8370_v36 = vld [vmem:[%s10069_s4 + $0x1a0] sm:$0xff]  }
 0x3a4   : > { %v4234_v18 = vsel %vm2484_vm3, %v4224_v44, %v4233_v28  ;;  %v8365_v44 = vld [vmem:[%s10069_s4 + $0x188] sm:$0xff]  }
 0x3a6   : > { %7609 = vmatmul.mubr.bf16.gmra.mrb[8].mxu1 %v3945_v14  ;;  %v8355_v14 = vld [vmem:[%s10069_s4 + $0x160] sm:$0xff]  }
 0x3a7   : > { %7612 = vmatprep.mubr.msk.bf16.mxu1 %vm8437_vm0, %v8436_v1 }
 0x3ae   : > { %7613 = vmatmul.mubr.bf16.gmra.mrb[36].mxu1 %v3944_v37 }
 0x3af   : > { %7632 = vmatprep.mubr.msk.bf16.mxu1 %vm8437_vm0, %v8436_v1 }
 0x3b1   : > { %v9666_v33 = vpop.f32.mrb[252].mxu0 }
 0x3b2   : > { %v7458_v7 = vpop.f32.mrb[253].mxu0 }
 0x3b3   : > { %v9668_v0 = vpop.f32.mrb[254].mxu0  ;;  %v4242_v7 = vor.u32 %v4241_v39, %v4238_v57 }
 0x3b4   : > { %v7459_v38 = vpop.f32.mrb[255].mxu0 }
 0x3b5   : > { %v4248_v38 = vshll.u32 %v8358_v26, 16 }
 0x3b6   : > { %7633 = vmatmul.mubr.bf16.vlgmr.msra.gmra.mrb[16].mxu1 %v4207_v8  ;;  %v4243_v8 = vsel %vm2484_vm3, %v4233_v28, %v4242_v7  ;;  %v4506_v28 = vrot.slane %v8369_v9, 2  ;;  %v8386_v9 = vld [vmem:[#allocation3 + $0x30] sm:$0xff]  }
 0x3b7   : > { %7661 = vmatpush3.bf16.msra.mxu1 %v8348_v4  ;;  %7636 = vmatprep.mubr.msk.bf16.mxu1 %vm8437_vm0, %v8436_v1  ;;  %v4245_v4 = vshrl.u32 %v8358_v26, 16  ;;  %v4250_v62 = vrot.slane %v4248_v38, 2  ;;  %v8373_v26 = vld [vmem:[#allocation3 + $0x34] ss:$0 sps:$4 sm:$0xff]  }
 0x3b8   : > { %7662 = vmatprep.subr.bf16.mxu1 %v8436_v1 }
 0x3b9   : > { %v9680_v50 = vpop.f32.mrb[0].mxu0  ;;  %v4247_v15 = vrot.slane %v4245_v4, 1  ;;  %v4510_v4 = vrot.slane %v8373_v26, 2 }
 0x3ba   : > { %v7462_v23 = vpop.f32.mrb[1].mxu0 }
 0x3bb   : > { %v9682_v52 = vpop.f32.mrb[2].mxu0  ;;  %7663 = vmatpush3.bf16.msra.mxu1 %v8350_v16  ;;  %v4251_v16 = vor.u32 %v4250_v62, %v4247_v15 }
 0x3bc   : > { %v7463_v13 = vpop.f32.mrb[3].mxu0  ;;  %7664 = vmatprep.subr.bf16.mxu1 %v8436_v1 }
 0x3bd   : > { %v4252_v23 = vsel %vm2484_vm3, %v4242_v7, %v4251_v16  ;;  %v8361_v13 = vld [vmem:[#allocation3 + $0x4] sm:$0xfc]   ;;  %vm5329_vm3 = vcmask 1044480  }
 0x3be   : > { %7637 = vmatmul.mubr.bf16.gmra.mrb[20].mxu1 %v4216_v42  ;;  %v4499_v29 = vrot.slane %v8361_v13, 2  ;;  %v8379_v13 = vld [vmem:[#allocation3 + $0x18] sm:$0xff]  }
 0x3bf   : > { %7640 = vmatprep.mubr.msk.bf16.mxu1 %vm8437_vm0, %v8436_v1  ;;  %7665 = vmatpush3.bf16.msra.mxu1 %v8351_v56  ;;  %v8362_v56 = vld [vmem:[#allocation3 + $0xc] sm:$0xff]  }
 0x3c0   : > { %7666 = vmatprep.subr.bf16.mxu1 %v8436_v1  ;;  %v4500_v42 = vrot.slane %v8362_v56, 2 }
 0x3c1   : > { %v9695_v10 = vpop.f32.mrb[4].mxu0 }
 0x3c2   : > { %v7466_v32 = vpop.f32.mrb[5].mxu0  ;;  %v4501_v53 = vsel %vm4498_vm1, %v4499_v29, %v4500_v42  ;;  %v4760_v29 = vrot.slane %v8379_v13, 2 }
 0x3c3   : > { %v9697_v37 = vpop.f32.mrb[6].mxu0  ;;  %7667 = vmatpush3.bf16.msra.mxu1 %v8353_v55  ;;  %v8364_v55 = vld [vmem:[#allocation3 + $0x14] sm:$0xff]  }
 0x3c4   : > { %v7467_v46 = vpop.f32.mrb[7].mxu0  ;;  %7668 = vmatprep.subr.bf16.mxu1 %v8436_v1  ;;  %v4502_v31 = vrot.slane %v8364_v55, 2  ;;  %v8382_v55 = vld [vmem:[#allocation3 + $0x20] sm:$0xff]  }
 0x3c5   : > { %v8368_v46 = vld [vmem:[%s10069_s4 + $0x198] sm:$0xff]  }
 0x3c6   : > { %7641 = vmatmul.mubr.bf16.gmra.mrb[24].mxu1 %v4225_v35  ;;  %v4503_v32 = vsel %vm4498_vm1, %v4500_v42, %v4502_v31  ;;  %v8380_v42 = vld [vmem:[%s10069_s4 + $0x1c8] sm:$0xff]  }
 0x3c7   : > { %7644 = vmatprep.mubr.msk.bf16.mxu1 %vm8437_vm0, %v8436_v1  ;;  %7669 = vmatpush3.bf16.msra.mxu1 %v8355_v14  ;;  %v8367_v14 = vld [vmem:[#allocation3 + $0x1c] sm:$0xff]  }
 0x3c8   : > { %7670 = vmatprep.subr.bf16.mxu1 %v8436_v1  ;;  %v4504_v35 = vrot.slane %v8367_v14, 2  ;;  %v8384_v14 = vld [vmem:[#allocation3 + $0x28] sm:$0xff]  }
 0x3ca   : > { %v4505_v41 = vsel %vm4498_vm1, %v4502_v31, %v4504_v35  ;;  %v4507_v17 = vsel %vm4498_vm1, %v4504_v35, %v4506_v28  ;;  %v4762_v31 = vrot.slane %v8382_v55, 2  ;;  %v4764_v35 = vrot.slane %v8384_v14, 2 }
 0x3cb   : > { %7671 = vmatpush3.bf16.msra.mxu1 %v8357_v61  ;;  %v8372_v61 = vld [vmem:[%s10069_s4 + $0x1a8] sm:$0xff]  }
 0x3cc   : > { %7672 = vmatprep.subr.bf16.mxu1 %v8436_v1 }
 0x3ce   : > { %7645 = vmatmul.mubr.bf16.gmra.mrb[0].mxu1 %v4234_v18  ;;  %v8375_v18 = vld [vmem:[%s10069_s4 + $0x1b8] sm:$0xff]  }
 0x3cf   : > { %7648 = vmatprep.mubr.msk.bf16.mxu1 %vm8437_vm0, %v8436_v1  ;;  %7673 = vmatpush3.bf16.msra.mxu1 %v8359_v12  ;;  %v8371_v12 = vld [vmem:[#allocation3 + $0x2c] sm:$0xff]  }
 0x3d0   : > { %7674 = vmatprep.subr.bf16.mxu1 %v8436_v1  ;;  %v4508_v57 = vrot.slane %v8371_v12, 2 }
 0x3d2   : > { %v4509_v39 = vsel %vm4498_vm1, %v4506_v28, %v4508_v57  ;;  %v4766_v28 = vrot.slane %v8386_v9, 2 }
 0x3d3   : > { %7675 = vmatpush3.bf16.msra.mxu1 %v8360_v5 }
 0x3d4   : > { %7704 = vmatprep.subr.bf16.mxu1 %v8436_v1 }
 0x3d6   : > { %7649 = vmatmul.mubr.bf16.gmra.mrb[4].mxu1 %v4243_v8 }
 0x3d7   : > { %7652 = vmatprep.mubr.msk.bf16.mxu1 %vm8437_vm0, %v8436_v1 }
 0x3d9   : > { %v3293_v58 = vpop.f32.mrb[12].mxu1 }
 0x3da   : > { %3311 = vst [vmem:[#allocation2 + $0x60] sm:$0xf] %v3293_v58  ;;  %v7482_v21 = vpop.f32.mrb[13].mxu1  ;;  %v4511_v58 = vsel %vm4498_vm1, %v4508_v57, %v4510_v4 }
 0x3db   : > { %v3296_v43 = vpop.f32.mrb[14].mxu1  ;;  %v8376_v21 = vld [vmem:[#allocation3 + $0x8] sm:$0xfc]  }
 0x3dc   : > { %v7483_v49 = vpop.f32.mrb[15].mxu1 }
 0x3dd   : > { %v4757_v49 = vrot.slane %v8376_v21, 2 }
 0x3de   : > { %7653 = vmatmul.mubr.bf16.gmra.mrb[8].mxu1 %v4252_v23  ;;  %v8378_v23 = vld [vmem:[%s10069_s4 + $0x1c0] sm:$0xff]  }
 0x3df   : > { %7656 = vmatprep.mubr.msk.bf16.mxu1 %vm8437_vm0, %v8436_v1 }
 0x3e1   : > { %v3585_v7 = vld [vmem:[#allocation2 + $0x60] sm:$0xf] }
 0x3e6   : > { %7657 = vmatmul.mubr.bf16.gmra.mrb[40].mxu1 %v4251_v16  ;;  %v8377_v16 = vld [vmem:[#allocation3 + $0x10] sm:$0xff]  }
 0x3e7   : > { %7676 = vmatprep.mubr.msk.bf16.mxu1 %vm8437_vm0, %v8436_v1  ;;  %v4758_v43 = vrot.slane %v8377_v16, 2 }
 0x3e9   : > { %v4759_v56 = vsel %vm4498_vm1, %v4757_v49, %v4758_v43  ;;  %v8394_v49 = vld [vmem:[#allocation3 + $0x18] sm:$0xff]  }
 0x3ee   : > { %7677 = vmatmul.mubr.bf16.vlgmr.msra.gmra.mrb[16].mxu1 %v4501_v53  ;;  %v4761_v53 = vsel %vm4498_vm1, %v4758_v43, %v4760_v29 }
 0x3ef   : > { %7705 = vmatpush3.bf16.msra.mxu1 %v8363_v3  ;;  %7680 = vmatprep.mubr.msk.bf16.mxu1 %vm8437_vm0, %v8436_v1  ;;  %v8381_v3 = vld [vmem:[%s10069_s4 + $0x1d0] sm:$0xff]  }
 0x3f0   : > { %7706 = vmatprep.subr.bf16.mxu1 %v8436_v1 }
 0x3f3   : > { %7707 = vmatpush3.bf16.msra.mxu1 %v8365_v44  ;;  %v8383_v44 = vld [vmem:[%s10069_s4 + $0x1d8] sm:$0xff]  }
 0x3f4   : > { %7708 = vmatprep.subr.bf16.mxu1 %v8436_v1 }
 0x3f6   : > { %7681 = vmatmul.mubr.bf16.gmra.mrb[20].mxu1 %v4503_v32  ;;  %v4763_v32 = vsel %vm4498_vm1, %v4760_v29, %v4762_v31  ;;  %v5040_v29 = vshll.u32 %v8394_v49, 16 }
 0x3f7   : > { %7684 = vmatprep.mubr.msk.bf16.mxu1 %vm8437_vm0, %v8436_v1  ;;  %7709 = vmatpush3.bf16.msra.mxu1 %v8366_v54  ;;  %v8385_v54 = vld [vmem:[%s10069_s4 + $0x1e0] sm:$0xff]  }
 0x3f8   : > { %7710 = vmatprep.subr.bf16.mxu1 %v8436_v1 }
 0x3fb   : > { %7711 = vmatpush3.bf16.msra.mxu1 %v8368_v46  ;;  %v8387_v46 = vld [vmem:[%s10069_s4 + $0x1e8] sm:$0xff]  }
 0x3fc   : > { %7712 = vmatprep.subr.bf16.mxu1 %v8436_v1 }
 0x3fe   : > { %7685 = vmatmul.mubr.bf16.gmra.mrb[24].mxu1 %v4505_v41  ;;  %v4765_v41 = vsel %vm4498_vm1, %v4762_v31, %v4764_v35  ;;  %v5042_v31 = vrot.slane %v5040_v29, 3 }
 0x3ff   : > { %7688 = vmatprep.mubr.msk.bf16.mxu1 %vm8437_vm0, %v8436_v1  ;;  %7713 = vmatpush3.bf16.msra.mxu1 %v8370_v36  ;;  %v8389_v36 = vld [vmem:[%s10069_s4 + $0x1f0] sm:$0xff]  }
 0x400   : > { %7714 = vmatprep.subr.bf16.mxu1 %v8436_v1 }
 0x403   : > { %7715 = vmatpush3.bf16.msra.mxu1 %v8372_v61  ;;  %v8390_v61 = vld [vmem:[%s10069_s4 + $0x1f8] sm:$0xff]  }
 0x404   : > { %7716 = vmatprep.subr.bf16.mxu1 %v8436_v1 }
 0x406   : > { %7689 = vmatmul.mubr.bf16.gmra.mrb[0].mxu1 %v4507_v17  ;;  %v8388_v17 = vld [vmem:[#allocation3 + $0x38] ss:$0 sps:$4 sm:$0xff]  }
 0x407   : > { %7692 = vmatprep.mubr.msk.bf16.mxu1 %vm8437_vm0, %v8436_v1  ;;  %7717 = vmatpush3.bf16.msra.mxu1 %v8374_v6  ;;  %v4767_v6 = vsel %vm4498_vm1, %v4764_v35, %v4766_v28  ;;  %v4768_v57 = vrot.slane %v8388_v17, 2 }
 0x408   : > { %7718 = vmatprep.subr.bf16.mxu1 %v8436_v1 }
 0x40b   : > { %7719 = vmatpush3.bf16.msra.mxu1 %v8375_v18 }
 0x40c   : > { %7748 = vmatprep.subr.bf16.mxu1 %v8436_v1 }
 0x40e   : > { %7693 = vmatmul.mubr.bf16.gmra.mrb[4].mxu1 %v4509_v39 }
 0x40f   : > { %7696 = vmatprep.mubr.msk.bf16.mxu1 %vm8437_vm0, %v8436_v1 }
 0x411   : > { %v3567_v5 = vpop.f32.mrb[28].mxu1 }
 0x412   : > { %v3598_v38 = vadd.f32 %v3585_v7, %v3567_v5  ;;  %v7526_v8 = vpop.f32.mrb[29].mxu1 }
 0x413   : > { %v3570_v15 = vpop.f32.mrb[30].mxu1  ;;  %v8391_v8 = vld [vmem:[#allocation3 + $0x8] sm:$0xfc]  }
 0x414   : > { %3611 = vst [vmem:[#allocation2 + $0x60] sm:$0xf] %v3598_v38  ;;  %v7527_v62 = vpop.f32.mrb[31].mxu1  ;;  %v8392_v38 = vld [vmem:[#allocation3 + $0x10] sm:$0xff]   ;;  %v5023_v16 = vshll.u32 %v8391_v8, 16 }
 0x415   : > { %v5028_v15 = vshrl.u32 %v8392_v38, 16  ;;  %v5031_v62 = vshll.u32 %v8392_v38, 16 }
 0x416   : > { %7697 = vmatmul.mubr.bf16.gmra.mrb[8].mxu1 %v4511_v58  ;;  %v5020_v58 = vshrl.u32 %v8391_v8, 16 }
 0x417   : > { %7700 = vmatprep.mubr.msk.bf16.mxu1 %vm8437_vm0, %v8436_v1  ;;  %v5030_v21 = vrot.slane %v5028_v15, 2  ;;  %v5033_v43 = vrot.slane %v5031_v62, 3  ;;  %v8404_v62 = vld [vmem:[%s10069_s4 + $0x230] sm:$0xff]  }
 0x419   : > { %v5034_v13 = vor.u32 %v5033_v43, %v5030_v21  ;;  %v8403_v43 = vld [vmem:[#allocation3 + $0x38] sm:$0x1f]  }
 0x41b   : > { %v3843_v18 = vld [vmem:[#allocation2 + $0x60] sm:$0xf] }
 0x41e   : > { %7701 = vmatmul.mubr.bf16.gmra.mrb[44].mxu1 %v4510_v4  ;;  %v4769_v4 = vsel %vm4498_vm1, %v4766_v28, %v4768_v57  ;;  %v8399_v28 = vld [vmem:[#allocation3 + $0x28] sm:$0xff]  }
 0x41f   : > { %7720 = vmatprep.mubr.msk.bf16.mxu1 %vm8437_vm0, %v8436_v1 }
 0x426   : > { %7721 = vmatmul.mubr.bf16.vlgmr.msra.gmra.mrb[16].mxu1 %v4759_v56  ;;  %v5025_v56 = vrot.slane %v5023_v16, 3 }
 0x427   : > { %7749 = vmatpush3.bf16.msra.mxu1 %v8378_v23  ;;  %7724 = vmatprep.mubr.msk.bf16.mxu1 %vm8437_vm0, %v8436_v1  ;;  %v5022_v23 = vrot.slane %v5020_v58, 2 }
 0x428   : > { %7750 = vmatprep.subr.bf16.mxu1 %v8436_v1 }
 0x42b   : > { %7751 = vmatpush3.bf16.msra.mxu1 %v8380_v42  ;;  %v5037_v42 = vshrl.u32 %v8394_v49, 16  ;;  %v8405_v49 = vld [vmem:[%s10069_s4 + $0x238] sm:$0xff]  }
 0x42c   : > { %7752 = vmatprep.subr.bf16.mxu1 %v8436_v1 }
 0x42e   : > { %7725 = vmatmul.mubr.bf16.gmra.mrb[20].mxu1 %v4761_v53  ;;  %v8393_v53 = vld [vmem:[%s10069_s4 + $0x200] sm:$0xff]  }
 0x42f   : > { %7728 = vmatprep.mubr.msk.bf16.mxu1 %vm8437_vm0, %v8436_v1  ;;  %7753 = vmatpush3.bf16.msra.mxu1 %v8381_v3  ;;  %v5026_v3 = vor.u32 %v5025_v56, %v5022_v23  ;;  %v5073_v56 = vshrl.u32 %v8403_v43, 16 }
 0x430   : > { %7754 = vmatprep.subr.bf16.mxu1 %v8436_v1 }
 0x431   : > { %v5035_v55 = vsel %vm5018_vm2, %v5026_v3, %v5034_v13  ;;  %v5075_v29 = vrot.slane %v5073_v56, 2 }
 0x433   : > { %7755 = vmatpush3.bf16.msra.mxu1 %v8383_v44  ;;  %v5039_v44 = vrot.slane %v5037_v42, 2 }
 0x434   : > { %7756 = vmatprep.subr.bf16.mxu1 %v8436_v1 }
 0x435   : > { %v5043_v14 = vor.u32 %v5042_v31, %v5039_v44 }
 0x436   : > { %7729 = vmatmul.mubr.bf16.gmra.mrb[24].mxu1 %v4763_v32  ;;  %v8395_v32 = vld [vmem:[%s10069_s4 + $0x208] sm:$0xff]  }
 0x437   : > { %7732 = vmatprep.mubr.msk.bf16.mxu1 %vm8437_vm0, %v8436_v1  ;;  %7757 = vmatpush3.bf16.msra.mxu1 %v8385_v54  ;;  %v8397_v54 = vld [vmem:[#allocation3 + $0x20] sm:$0xff]  }
 0x438   : > { %7758 = vmatprep.subr.bf16.mxu1 %v8436_v1  ;;  %v5049_v35 = vshll.u32 %v8397_v54, 16 }
 0x43b   : > { %7759 = vmatpush3.bf16.msra.mxu1 %v8387_v46  ;;  %v5046_v46 = vshrl.u32 %v8397_v54, 16 }
 0x43c   : > { %7760 = vmatprep.subr.bf16.mxu1 %v8436_v1 }
 0x43d   : > { %v5048_v9 = vrot.slane %v5046_v46, 2 }
 0x43e   : > { %7733 = vmatmul.mubr.bf16.gmra.mrb[0].mxu1 %v4765_v41  ;;  %v5044_v41 = vsel %vm5018_vm2, %v5034_v13, %v5043_v14  ;;  %v5076_v13 = vshll.u32 %v8403_v43, 16 }
 0x43f   : > { %7736 = vmatprep.mubr.msk.bf16.mxu1 %vm8437_vm0, %v8436_v1  ;;  %7761 = vmatpush3.bf16.msra.mxu1 %v8389_v36  ;;  %v8396_v36 = vld [vmem:[%s10069_s4 + $0x210] sm:$0xff]  }
 0x440   : > { %7762 = vmatprep.subr.bf16.mxu1 %v8436_v1  ;;  %v5078_v3 = vrot.slane %v5076_v13, 3 }
 0x442   : > { %v5079_v44 = vor.u32 %v5078_v3, %v5075_v29 }
 0x443   : > { %7763 = vmatpush3.bf16.msra.mxu1 %v8390_v61  ;;  %v5051_v61 = vrot.slane %v5049_v35, 3  ;;  %v8407_v35 = vld [vmem:[#allocation3 + $0x10] sm:$0xff]  }
 0x444   : > { %7792 = vmatprep.subr.bf16.mxu1 %v8436_v1 }
 0x445   : > { %v5052_v17 = vor.u32 %v5051_v61, %v5048_v9  ;;  %v8408_v61 = vld [vmem:[%s10071_s6] sm:$0xff]  }
 0x446   : > { %7737 = vmatmul.mubr.bf16.gmra.mrb[4].mxu1 %v4767_v6  ;;  %v8398_v6 = vld [vmem:[%s10069_s4 + $0x218] sm:$0xff]  }
 0x447   : > { %7740 = vmatprep.mubr.msk.bf16.mxu1 %vm8437_vm0, %v8436_v1 }
 0x449   : > { %v3825_v12 = vpop.f32.mrb[32].mxu1 }
 0x44a   : > { %v3856_v39 = vadd.f32 %v3843_v18, %v3825_v12  ;;  %v7570_v26 = vpop.f32.mrb[33].mxu1  ;;  %v5055_v12 = vshrl.u32 %v8399_v28, 16  ;;  %v5058_v18 = vshll.u32 %v8399_v28, 16 }
 0x44b   : > { %v3828_v5 = vpop.f32.mrb[34].mxu1 }
 0x44c   : > { %3869 = vst [vmem:[#allocation2 + $0x60] sm:$0xf] %v3856_v39  ;;  %v7571_v7 = vpop.f32.mrb[35].mxu1  ;;  %v5053_v39 = vsel %vm5018_vm2, %v5043_v14, %v5052_v17  ;;  %v5057_v26 = vrot.slane %v5055_v12, 2  ;;  %v5060_v5 = vrot.slane %v5058_v18, 3  ;;  %v8411_v18 = vld [vmem:[%s10071_s6 + $0x10] sm:$0xff]  }
 0x44d   : > { %v8401_v7 = vld [vmem:[#allocation3 + $0x30] sm:$0xff]  }
 0x44e   : > { %7741 = vmatmul.mubr.bf16.gmra.mrb[8].mxu1 %v4769_v4  ;;  %v8402_v4 = vld [vmem:[%s10069_s4 + $0x228] sm:$0xff]   ;;  %v5061_v38 = vor.u32 %v5060_v5, %v5057_v26  ;;  %v5064_v8 = vshrl.u32 %v8401_v7, 16  ;;  %v5067_v15 = vshll.u32 %v8401_v7, 16  ;;  %v8413_v26 = vld [vmem:[%s10071_s6 + $0x18] sm:$0xff]   ;;  %v8415_v7 = vld [vmem:[%s10071_s6 + $0x20] sm:$0xff]  }
 0x44f   : > { %7744 = vmatprep.mubr.msk.bf16.mxu1 %vm8437_vm0, %v8436_v1 }
 0x450   : > { %v5062_v58 = vsel %vm5018_vm2, %v5052_v17, %v5061_v38  ;;  %v5066_v16 = vrot.slane %v5064_v8, 2  ;;  %v5069_v21 = vrot.slane %v5067_v15, 3  ;;  %v8410_v17 = vld [vmem:[%s10071_s6 + $0x8] sm:$0xff]  }
 0x451   : > { %v8417_v8 = vld [vmem:[%s10071_s6 + $0x28] sm:$0xff]  }
 0x452   : > { %v5070_v23 = vor.u32 %v5069_v21, %v5066_v16  ;;  %v8416_v16 = vld [vmem:[#allocation3 + $0x30] sm:$0xff]  }
 0x453   : > { %v8420_v21 = vld [vmem:[%s10071_s6 + $0x38] sm:$0xff]   ;;  %v5339_v43 = vrot.slane %v8416_v16, 3 }
 0x454   : > { %v5071_v42 = vsel %vm5018_vm2, %v5061_v38, %v5070_v23  ;;  %v5080_v46 = vsel %vm5018_vm2, %v5070_v23, %v5079_v44  ;;  %v8414_v38 = vld [vmem:[#allocation3 + $0x28] sm:$0xff]   ;;  %v8418_v23 = vld [vmem:[#allocation3 + $0x38] sm:$0x1f]  }
 0x455   : > { %v5337_v15 = vrot.slane %v8414_v38, 3 }
 0x456   : > { %7745 = vmatmul.mubr.bf16.gmra.mrb[48].mxu1 %v4768_v57  ;;  %v8400_v57 = vld [vmem:[%s10069_s4 + $0x220] sm:$0xff]  }
 0x457   : > { %7764 = vmatprep.mubr.msk.bf16.mxu1 %vm8437_vm0, %v8436_v1 }
 0x45e   : > { %7765 = vmatmul.mubr.bf16.vlgmr.msra.gmra.mrb[16].mxu1 %v5035_v55  ;;  %v4101_v55 = vld [vmem:[#allocation2 + $0x60] sm:$0xf] }
 0x45f   : > { %7793 = vmatpush3.bf16.msra.mxu1 %v8393_v53  ;;  %7768 = vmatprep.mubr.msk.bf16.mxu1 %vm8437_vm0, %v8436_v1 }
 0x460   : > { %7794 = vmatprep.subr.bf16.mxu1 %v8436_v1 }
 0x463   : > { %7795 = vmatpush3.bf16.msra.mxu1 %v8395_v32 }
 0x464   : > { %7796 = vmatprep.subr.bf16.mxu1 %v8436_v1 }
 0x466   : > { %7769 = vmatmul.mubr.bf16.gmra.mrb[20].mxu1 %v5044_v41  ;;  %v5331_v41 = vrot.slane %v8407_v35, 3 }
 0x467   : > { %7772 = vmatprep.mubr.msk.bf16.mxu1 %vm8437_vm0, %v8436_v1  ;;  %7797 = vmatpush3.bf16.msra.mxu1 %v8396_v36  ;;  %v8406_v36 = vld [vmem:[#allocation3 + $0x8] sm:$0xf8]  }
 0x468   : > { %7798 = vmatprep.subr.bf16.mxu1 %v8436_v1  ;;  %v5330_v9 = vrot.slane %v8406_v36, 3 }
 0x46a   : > { %v5332_v28 = vsel %vm5329_vm3, %v5330_v9, %v5331_v41 }
 0x46b   : > { %7799 = vmatpush3.bf16.msra.mxu1 %v8398_v6  ;;  %v8409_v6 = vld [vmem:[#allocation3 + $0x18] sm:$0xff]  }
 0x46c   : > { %7800 = vmatprep.subr.bf16.mxu1 %v8436_v1  ;;  %v5333_v12 = vrot.slane %v8409_v6, 3 }
 0x46e   : > { %7773 = vmatmul.mubr.bf16.gmra.mrb[24].mxu1 %v5053_v39  ;;  %v8412_v39 = vld [vmem:[#allocation3 + $0x20] sm:$0xff]  }
 0x46f   : > { %7776 = vmatprep.mubr.msk.bf16.mxu1 %vm8437_vm0, %v8436_v1  ;;  %7801 = vmatpush3.bf16.msra.mxu1 %v8400_v57  ;;  %v5334_v57 = vsel %vm5329_vm3, %v5331_v41, %v5333_v12  ;;  %v5335_v5 = vrot.slane %v8412_v39, 3 }
 0x470   : > { %7802 = vmatprep.subr.bf16.mxu1 %v8436_v1 }
 0x473   : > { %7803 = vmatpush3.bf16.msra.mxu1 %v8402_v4  ;;  %v5336_v4 = vsel %vm5329_vm3, %v5333_v12, %v5335_v5 }
 0x474   : > { %7804 = vmatprep.subr.bf16.mxu1 %v8436_v1 }
 0x476   : > { %7777 = vmatmul.mubr.bf16.gmra.mrb[0].mxu1 %v5062_v58  ;;  %v5338_v58 = vsel %vm5329_vm3, %v5335_v5, %v5337_v15 }
 0x477   : > { %7780 = vmatprep.mubr.msk.bf16.mxu1 %vm8437_vm0, %v8436_v1  ;;  %7805 = vmatpush3.bf16.msra.mxu1 %v8404_v62  ;;  %v8419_v62 = vld [vmem:[%s10071_s6 + $0x30] sm:$0xff]  }
 0x478   : > { %7806 = vmatprep.subr.bf16.mxu1 %v8436_v1 }
 0x47b   : > { %7807 = vmatpush3.bf16.msra.mxu1 %v8405_v49  ;;  %v5340_v49 = vsel %vm5329_vm3, %v5337_v15, %v5339_v43 }
 0x47c   : > { %7836 = vmatprep.subr.bf16.mxu1 %v8436_v1 }
 0x47e   : > { %7781 = vmatmul.mubr.bf16.gmra.mrb[4].mxu1 %v5071_v42  ;;  %v5341_v42 = vrot.slane %v8418_v23, 3  ;;  %v9959_v23 = vld [vmem:[%s10072_s7] ss:$0 sm:$0xff] }
 0x47f   : > { %7784 = vmatprep.mubr.msk.bf16.mxu1 %vm8437_vm0, %v8436_v1 }
 0x481   : > { %v4083_v53 = vpop.f32.mrb[36].mxu1 }
 0x482   : > { %v4114_v31 = vadd.f32 %v4101_v55, %v4083_v53  ;;  %v7614_v54 = vpop.f32.mrb[37].mxu1 }
 0x483   : > { %v4086_v32 = vpop.f32.mrb[38].mxu1  ;;  %v8422_v54 = vld [vmem:[%s8520_s20 + $0xc8] sm:$0xff]  }
 0x484   : > { %4127 = vst [vmem:[#allocation2 + $0x60] sm:$0xf] %v4114_v31  ;;  %v7615_v14 = vpop.f32.mrb[39].mxu1  ;;  %v8421_v31 = vld [vmem:[%s8520_s20 + $0xc0] sm:$0xff]   ;;  %v8423_v32 = vld [vmem:[%s8520_s20 + $0xd0] sm:$0xff]  }
 0x485   : > { %v8424_v14 = vld [vmem:[%s8520_s20 + $0xd8] sm:$0xff]  }
 0x486   : > { %7785 = vmatmul.mubr.bf16.gmra.mrb[8].mxu1 %v5080_v46  ;;  %v8425_v46 = vld [vmem:[%s8520_s20 + $0xe0] sm:$0xff]  }
 0x487   : > { %7788 = vmatprep.mubr.msk.bf16.mxu1 %vm8437_vm0, %v8436_v1 }
 0x48b   : > { %v4408_v13 = vld [vmem:[#allocation2 + $0x60] sm:$0xf] }
 0x48e   : > { %7789 = vmatmul.mubr.bf16.gmra.mrb[52].mxu1 %v5079_v44  ;;  %v5342_v44 = vsel %vm5329_vm3, %v5339_v43, %v5341_v42 }
 0x48f   : > { %7808 = vmatprep.mubr.msk.bf16.mxu1 %vm8437_vm0, %v8436_v1 }
 0x496   : > { %7809 = vmatmul.mubr.bf16.vlgmr.msra.gmra.mrb[16].mxu1 %v5332_v28 }
 0x497   : > { %7837 = vmatpush3.bf16.msra.mxu1 %v8408_v61  ;;  %7812 = vmatprep.mubr.msk.bf16.mxu1 %vm8437_vm0, %v8436_v1  ;;  %v8426_v61 = vld [vmem:[%s8520_s20 + $0xe8] sm:$0xff]  }
 0x498   : > { %7838 = vmatprep.subr.bf16.mxu1 %v8436_v1 }
 0x49b   : > { %7839 = vmatpush3.bf16.msra.mxu1 %v8410_v17  ;;  %v8427_v17 = vld [vmem:[%s8520_s20 + $0xf0] ss:$0 sps:$4 sm:$0x33]  }
 0x49c   : > { %7840 = vmatprep.subr.bf16.mxu1 %v8436_v1 }
 0x49e   : > { %7813 = vmatmul.mubr.bf16.gmra.mrb[20].mxu1 %v5334_v57 }
 0x49f   : > { %7816 = vmatprep.mubr.msk.bf16.mxu1 %vm8437_vm0, %v8436_v1  ;;  %7841 = vmatpush3.bf16.msra.mxu1 %v8411_v18 }
 0x4a0   : > { %7842 = vmatprep.subr.bf16.mxu1 %v8436_v1 }
 0x4a3   : > { %7843 = vmatpush3.bf16.msra.mxu1 %v8413_v26 }
 0x4a4   : > { %7844 = vmatprep.subr.bf16.mxu1 %v8436_v1 }
 0x4a6   : > { %7817 = vmatmul.mubr.bf16.gmra.mrb[24].mxu1 %v5336_v4 }
 0x4a7   : > { %7820 = vmatprep.mubr.msk.bf16.mxu1 %vm8437_vm0, %v8436_v1  ;;  %7845 = vmatpush3.bf16.msra.mxu1 %v8415_v7 }
 0x4a8   : > { %7846 = vmatprep.subr.bf16.mxu1 %v8436_v1 }
 0x4ab   : > { %7847 = vmatpush3.bf16.msra.mxu1 %v8417_v8 }
 0x4ac   : > { %7848 = vmatprep.subr.bf16.mxu1 %v8436_v1 }
 0x4ae   : > { %7821 = vmatmul.mubr.bf16.gmra.mrb[0].mxu1 %v5338_v58 }
 0x4af   : > { %7824 = vmatprep.mubr.msk.bf16.mxu1 %vm8437_vm0, %v8436_v1  ;;  %7849 = vmatpush3.bf16.msra.mxu1 %v8419_v62 }
 0x4b0   : > { %7850 = vmatprep.subr.bf16.mxu1 %v8436_v1 }
 0x4b3   : > { %7851 = vmatpush3.bf16.msra.mxu1 %v8420_v21 }
 0x4b6   : > { %7825 = vmatmul.mubr.bf16.gmra.mrb[4].mxu1 %v5340_v49 }
 0x4b7   : > { %7828 = vmatprep.mubr.msk.bf16.mxu1 %vm8437_vm0, %v8436_v1 }
 0x4b9   : > { %v4390_v56 = vpop.f32.mrb[40].mxu1 }
 0x4ba   : > { %v4421_v29 = vadd.f32 %v4408_v13, %v4390_v56  ;;  %v7658_v3 = vpop.f32.mrb[41].mxu1  ;;  %v7896_v56 = vadd.f32 %v9959_v23, %v9666_v33  ;;  %v7902_v33 = vadd.f32 %v9959_v23, %v9680_v50 }
 0x4bb   : > { %v4393_v53 = vpop.f32.mrb[42].mxu1 }
 0x4bc   : > { %4434 = vst [vmem:[#allocation2 + $0x60] sm:$0xf] %v4421_v29  ;;  %v7659_v55 = vpop.f32.mrb[43].mxu1  ;;  %v7899_v29 = vadd.f32 %v9959_v23, %v9668_v0 }
 0x4be   : > { %7829 = vmatmul.mubr.bf16.gmra.mrb[8].mxu1 %v5342_v44 }
 0x4bf   : > { %7832 = vmatprep.mubr.msk.bf16.mxu1 %vm8437_vm0, %v8436_v1 }
 0x4c3   : > { %v4667_v36 = vld [vmem:[#allocation2 + $0x60] sm:$0xf] }
 0x4c6   : > { %7833 = vmatmul.mubr.bf16.gmra.mrb[56].mxu1 %v5341_v42  ;;  %v9966_v42 = vld [vmem:[%s10070_s5] ss:$0 sm:$0xff] }
 0x4c7   : > { %7852 = vmatprep.mubr.msk.bf16.mxu1 %vm8437_vm0, %v8436_v1 }
 0x4ce   : > { %7853 = vmatmul.mubr.bf16.vlgmr.msra.gmra.mrb[16].mxu1 %v8421_v31 }
 0x4cf   : > { %7856 = vmatprep.mubr.msk.bf16.mxu1 %vm8437_vm0, %v8436_v1 }
 0x4d6   : > { %7857 = vmatmul.mubr.bf16.gmra.mrb[20].mxu1 %v8422_v54 }
 0x4d7   : > { %7860 = vmatprep.mubr.msk.bf16.mxu1 %vm8437_vm0, %v8436_v1 }
 0x4de   : > { %7861 = vmatmul.mubr.bf16.gmra.mrb[24].mxu1 %v8423_v32 }
 0x4df   : > { %7864 = vmatprep.mubr.msk.bf16.mxu1 %vm8437_vm0, %v8436_v1 }
 0x4e6   : > { %7865 = vmatmul.mubr.bf16.gmra.mrb[0].mxu1 %v8424_v14 }
 0x4e7   : > { %7868 = vmatprep.mubr.msk.bf16.mxu1 %vm8437_vm0, %v8436_v1 }
 0x4ee   : > { %7869 = vmatmul.mubr.bf16.gmra.mrb[4].mxu1 %v8425_v46 }
 0x4ef   : > { %7872 = vmatprep.mubr.msk.bf16.mxu1 %vm8437_vm0, %v8436_v1 }
 0x4f1   : > { %v4649_v35 = vpop.f32.mrb[44].mxu1 }
 0x4f2   : > { %v4680_v41 = vadd.f32 %v4667_v36, %v4649_v35  ;;  %v7702_v9 = vpop.f32.mrb[45].mxu1 }
 0x4f3   : > { %v4652_v28 = vpop.f32.mrb[46].mxu1 }
 0x4f4   : > { %4693 = vst [vmem:[#allocation2 + $0x60] sm:$0xf] %v4680_v41  ;;  %v7703_v6 = vpop.f32.mrb[47].mxu1  ;;  %v7905_v28 = vadd.f32 %v9959_v23, %v9682_v52  ;;  %v7908_v52 = vadd.f32 %v9959_v23, %v9695_v10 }
 0x4f6   : > { %7873 = vmatmul.mubr.bf16.gmra.mrb[8].mxu1 %v8426_v61 }
 0x4f7   : > { %7876 = vmatprep.mubr.msk.bf16.mxu1 %vm8437_vm0, %v8436_v1 }
 0x4fb   : > { %v4925_v18 = vld [vmem:[#allocation2 + $0x60] sm:$0xf] }
 0x4fe   : > { %7877 = vmatmul.mubr.bf16.gmra.mrb[60].mxu1 %v8427_v17 }
 0x529   : > { %v4907_v12 = vpop.f32.mrb[48].mxu1 }
 0x52a   : > { %v4938_v57 = vadd.f32 %v4925_v18, %v4907_v12  ;;  %v7746_v39 = vpop.f32.mrb[49].mxu1 }
 0x52b   : > { %v4910_v26 = vpop.f32.mrb[50].mxu1 }
 0x52c   : > { %4951 = vst [vmem:[#allocation2 + $0x60] sm:$0xf] %v4938_v57  ;;  %v7747_v5 = vpop.f32.mrb[51].mxu1 }
 0x533   : > { %v5236_v4 = vld [vmem:[#allocation2 + $0x60] sm:$0xf] }
 0x561   : > { %v5218_v7 = vpop.f32.mrb[52].mxu1 }
 0x562   : > { %v5249_v38 = vadd.f32 %v5236_v4, %v5218_v7  ;;  %v7790_v8 = vpop.f32.mrb[53].mxu1  ;;  %v5990_v4 = vld [vmem:[%s9095_s19 + $0x4] sm:$0xe] }
 0x563   : > { %v5221_v15 = vpop.f32.mrb[54].mxu1 }
 0x564   : > { %5262 = vst [vmem:[#allocation2 + $0x60] sm:$0xf] %v5249_v38  ;;  %v7791_v62 = vpop.f32.mrb[55].mxu1 }
 0x56b   : > { %v5498_v16 = vld [vmem:[#allocation2 + $0x60] sm:$0xf] }
 0x599   : > { %v5480_v58 = vpop.f32.mrb[56].mxu1 }
 0x59a   : > { %v5511_v21 = vadd.f32 %v5498_v16, %v5480_v58  ;;  %v7834_v1 = vpop.f32.mrb[57].mxu1  ;;  %v7911_v58 = vadd.f32 %v9959_v23, %v9697_v37 }
 0x59b   : > { %v5483_v43 = vpop.f32.mrb[58].mxu1 }
 0x59c   : > { %5524 = vst [vmem:[#allocation2 + $0x60] sm:$0xf] %v5511_v21  ;;  %v7835_v49 = vpop.f32.mrb[59].mxu1 }
 0x5a1   : > { %v5683_v13 = vpop.f32.mrb[16].mxu1 }
 0x5a2   : > { %v7897_v3 = vadd.f32 %v7896_v56, %v5683_v13  ;;  %v7854_v53 = vpop.f32.mrb[17].mxu1 }
 0x5a3   : > { %v5686_v55 = vpop.f32.mrb[18].mxu1 }
 0x5a4   : > { %v7898_v44 = vadd.f32 %v7897_v3, %v9966_v42  ;;  %v7900_v31 = vadd.f32 %v7899_v29, %v5686_v55  ;;  %v7855_v54 = vpop.f32.mrb[19].mxu1 }
 0x5a6   : > { %v5783_v32 = vmax.f32 %v7898_v44, 0.0  ;;  %v7901_v14 = vadd.f32 %v7900_v31, %v9966_v42 }
 0x5a8   : > { %v5796_v46 = vmul.f32 %v5783_v32, %v9352_v34  ;;  %v5784_v35 = vmax.f32 %v7901_v14, 0.0 }
 0x5a9   : > { %v5691_v36 = vpop.f32.mrb[20].mxu1 }
 0x5aa   : > { %v6746_v41 = vpack.c.bf16 %v5796_v46, %v5796_v46  ;;  %v5797_v0 = vmul.f32 %v5784_v35, %v9358_v24  ;;  %v7903_v9 = vadd.f32 %v7902_v33, %v5691_v36  ;;  %v7858_v61 = vpop.f32.mrb[21].mxu1 }
 0x5ab   : > { %v5694_v6 = vpop.f32.mrb[22].mxu1 }
 0x5ac   : > { %v5850_v17 = vshrl.u32 %v6746_v41, 16  ;;  %v5853_v12 = vshll.u32 %v6746_v41, 16  ;;  %v6747_v18 = vpack.c.bf16 %v5797_v0, %v5797_v0  ;;  %v7904_v57 = vadd.f32 %v7903_v9, %v9966_v42  ;;  %v7859_v50 = vpop.f32.mrb[23].mxu1 }
 0x5ad   : > { %v7906_v39 = vadd.f32 %v7905_v28, %v5694_v6 }
 0x5ae   : > { %v5852_v34 = vrot.slane %v5850_v17, 6  ;;  %v5855_v26 = vrot.slane %v5853_v12, 7  ;;  %v5859_v5 = vshrl.u32 %v6747_v18, 16  ;;  %v5862_v7 = vshll.u32 %v6747_v18, 16 }
 0x5af   : > { %v5785_v24 = vmax.f32 %v7904_v57, 0.0  ;;  %v7907_v38 = vadd.f32 %v7906_v39, %v9966_v42 }
 0x5b0   : > { %v5856_v8 = vor.u32 %v5855_v26, %v5852_v34  ;;  %v5861_v15 = vrot.slane %v5859_v5, 6  ;;  %v5864_v62 = vrot.slane %v5862_v7, 7 }
 0x5b1   : > { %v5798_v16 = vmul.f32 %v5785_v24, %v9367_v11  ;;  %v5786_v21 = vmax.f32 %v7907_v38, 0.0  ;;  %v5699_v1 = vpop.f32.mrb[24].mxu1 }
 0x5b2   : > { %v5857_v43 = vrot.slane %v5856_v8, 4  ;;  %v5991_v49 = vsel %vm9369_vm8, %v5856_v8, %v5990_v4  ;;  %v5865_v56 = vor.u32 %v5864_v62, %v5861_v15  ;;  %v7909_v13 = vadd.f32 %v7908_v52, %v5699_v1  ;;  %v7862_v29 = vpop.f32.mrb[25].mxu1 }
 0x5b3   : > { %5992 = vst [vmem:[%s9095_s19 + $0x4] sm:$0xe] %v5991_v49  ;;  %v6748_v10 = vpack.c.bf16 %v5798_v16, %v5798_v16  ;;  %v5799_v3 = vmul.f32 %v5786_v21, %v9375_v19  ;;  %v5702_v53 = vpop.f32.mrb[26].mxu1 }
 0x5b4   : > { %v5866_v37 = vsel %vm9379_vm9, %v5857_v43, %v5865_v56  ;;  %v7910_v11 = vadd.f32 %v7909_v13, %v9966_v42  ;;  %v7912_v55 = vadd.f32 %v7911_v58, %v5702_v53  ;;  %v7863_v44 = vpop.f32.mrb[27].mxu1  ;;  %v5867_v0 = vrot.slane %v5865_v56, 4 }
 0x5b5   : > { %5993 = vst [vmem:[%s9095_s19 + $0x8] sm:$0xf] %v5866_v37  ;;  %v5869_v31 = vshrl.u32 %v6748_v10, 16  ;;  %v5872_v51 = vshll.u32 %v6748_v10, 16  ;;  %v6749_v54 = vpack.c.bf16 %v5799_v3, %v5799_v3 }
 0x5b6   : > { %v5787_v32 = vmax.f32 %v7910_v11, 0.0  ;;  %v7913_v14 = vadd.f32 %v7912_v55, %v9966_v42 }
 0x5b7   : > { %v5871_v33 = vrot.slane %v5869_v31, 6  ;;  %v5874_v46 = vrot.slane %v5872_v51, 7  ;;  %v5879_v35 = vshrl.u32 %v6749_v54, 16  ;;  %v5882_v19 = vshll.u32 %v6749_v54, 16 }
 0x5b8   : > { %v5800_v36 = vmul.f32 %v5787_v32, %v9328_v63  ;;  %v5788_v41 = vmax.f32 %v7913_v14, 0.0 }
 0x5b9   : > { %v5875_v9 = vor.u32 %v5874_v46, %v5871_v33  ;;  %v5881_v61 = vrot.slane %v5879_v35, 6  ;;  %v5884_v28 = vrot.slane %v5882_v19, 7  ;;  %v5707_v6 = vpop.f32.mrb[0].mxu1 }
 0x5ba   : > { %v6008_v17 = vld [vmem:[%s9095_s19 + $0x4] sm:$0x3]  ;;  %v6750_v12 = vpack.c.bf16 %v5800_v36, %v5800_v36  ;;  %v5801_v18 = vmul.f32 %v5788_v41, %v9334_v30  ;;  %v5708_v57 = vadd.f32 %v9959_v23, %v5707_v6  ;;  %v7866_v50 = vpop.f32.mrb[1].mxu1 }
 0x5bb   : > { %v6009_v39 = vsel %vm9395_vm11, 0, %v6008_v17  ;;  %v5876_v63 = vsel %vm9379_vm9, %v5867_v0, %v5875_v9  ;;  %v5877_v34 = vrot.slane %v5875_v9, 4  ;;  %v5885_v26 = vor.u32 %v5884_v28, %v5881_v61  ;;  %v5710_v5 = vpop.f32.mrb[2].mxu1 }
 0x5bc   : > { %6010 = vst [vmem:[%s9095_s19 + $0x4] sm:$0x3] %v6009_v39  ;;  %5994 = vst [vmem:[%s9095_s19 + $0xc] sm:$0xf] %v5876_v63  ;;  %v5889_v7 = vshrl.u32 %v6750_v12, 16  ;;  %v5892_v4 = vshll.u32 %v6750_v12, 16  ;;  %v6751_v24 = vpack.c.bf16 %v5801_v18, %v5801_v18  ;;  %v7915_v30 = vadd.f32 %v9966_v42, %v5708_v57 }
 0x5bd   : > { %v7867_v38 = vpop.f32.mrb[3].mxu1  ;;  %v5886_v52 = vsel %vm9379_vm9, %v5877_v34, %v5885_v26  ;;  %v5711_v59 = vadd.f32 %v9959_v23, %v5710_v5  ;;  %v5887_v1 = vrot.slane %v5885_v26, 4 }
 0x5be   : > { %5995 = vst [vmem:[%s9095_s19 + $0x10] sm:$0xf] %v5886_v52  ;;  %v5891_v8 = vrot.slane %v5889_v7, 6  ;;  %v5894_v15 = vrot.slane %v5892_v4, 7  ;;  %v5899_v62 = vshrl.u32 %v6751_v24, 16  ;;  %v5902_v58 = vshll.u32 %v6751_v24, 16 }
 0x5bf   : > { %v5789_v16 = vmax.f32 %v7915_v30, 0.0  ;;  %v7917_v21 = vadd.f32 %v9966_v42, %v5711_v59 }
 0x5c0   : > { %v5895_v43 = vor.u32 %v5894_v15, %v5891_v8  ;;  %v5901_v49 = vrot.slane %v5899_v62, 6  ;;  %v5904_v56 = vrot.slane %v5902_v58, 7 }
 0x5c1   : > { %v5802_v13 = vmul.f32 %v5789_v16, %v9324_v40  ;;  %v5790_v29 = vmax.f32 %v7917_v21, 0.0  ;;  %v5715_v10 = vpop.f32.mrb[4].mxu1  ;;  %v5749_v16 = vld [vmem:[#allocation2 + $0x60] sm:$0xf] }
 0x5c2   : > { %v5896_v3 = vsel %vm9379_vm9, %v5887_v1, %v5895_v43  ;;  %v5897_v53 = vrot.slane %v5895_v43, 4  ;;  %v5905_v37 = vor.u32 %v5904_v56, %v5901_v49  ;;  %v5716_v11 = vadd.f32 %v9959_v23, %v5715_v10  ;;  %v7870_v55 = vpop.f32.mrb[5].mxu1 }
 0x5c3   : > { %5996 = vst [vmem:[%s9095_s19 + $0x14] sm:$0xf] %v5896_v3  ;;  %v6752_v44 = vpack.c.bf16 %v5802_v13, %v5802_v13  ;;  %v5803_v31 = vmul.f32 %v5790_v29, %v9332_v45  ;;  %v5718_v51 = vpop.f32.mrb[6].mxu1 }
 0x5c4   : > { %v5906_v54 = vsel %vm9379_vm9, %v5897_v53, %v5905_v37  ;;  %v7919_v40 = vadd.f32 %v9966_v42, %v5716_v11  ;;  %v5719_v32 = vadd.f32 %v9959_v23, %v5718_v51  ;;  %v7871_v14 = vpop.f32.mrb[7].mxu1  ;;  %v5907_v6 = vrot.slane %v5905_v37, 4 }
 0x5c5   : > { %5997 = vst [vmem:[%s9095_s19 + $0x18] sm:$0xf] %v5906_v54  ;;  %v5909_v33 = vshrl.u32 %v6752_v44, 16  ;;  %v5912_v46 = vshll.u32 %v6752_v44, 16  ;;  %v6753_v35 = vpack.c.bf16 %v5803_v31, %v5803_v31  ;;  %v5769_v53 = vadd.f32 %v9966_v42, %v5749_v16 }
 0x5c6   : > { %v5791_v19 = vmax.f32 %v7919_v40, 0.0  ;;  %v7921_v36 = vadd.f32 %v9966_v42, %v5719_v32 }
 0x5c7   : > { %v5911_v41 = vrot.slane %v5909_v33, 6  ;;  %v5914_v0 = vrot.slane %v5912_v46, 7  ;;  %v5919_v9 = vshrl.u32 %v6753_v35, 16  ;;  %v5922_v45 = vshll.u32 %v6753_v35, 16 }
 0x5c8   : > { %v5804_v61 = vmul.f32 %v5791_v19, %v9338_v20  ;;  %v5792_v28 = vmax.f32 %v7921_v36, 0.0 }
 0x5c9   : > { %v5915_v17 = vor.u32 %v5914_v0, %v5911_v41  ;;  %v5921_v12 = vrot.slane %v5919_v9, 6  ;;  %v5924_v18 = vrot.slane %v5922_v45, 7  ;;  %v5723_v57 = vpop.f32.mrb[8].mxu1 }
 0x5ca   : > { %v6754_v50 = vpack.c.bf16 %v5804_v61, %v5804_v61  ;;  %v5805_v39 = vmul.f32 %v5792_v28, %v9336_v22  ;;  %v5724_v63 = vadd.f32 %v9959_v23, %v5723_v57  ;;  %v7874_v34 = vpop.f32.mrb[9].mxu1 }
 0x5cb   : > { %v5916_v26 = vsel %vm9379_vm9, %v5907_v6, %v5915_v17  ;;  %v5917_v5 = vrot.slane %v5915_v17, 4  ;;  %v5925_v7 = vor.u32 %v5924_v18, %v5921_v12  ;;  %v5726_v4 = vpop.f32.mrb[10].mxu1 }
 0x5cc   : > { %5998 = vst [vmem:[%s9095_s19 + $0x1c] sm:$0xf] %v5916_v26  ;;  %v5929_v20 = vshrl.u32 %v6754_v50, 16  ;;  %v5932_v24 = vshll.u32 %v6754_v50, 16  ;;  %v6755_v30 = vpack.c.bf16 %v5805_v39, %v5805_v39  ;;  %v7923_v38 = vadd.f32 %v9966_v42, %v5724_v63  ;;  %v7875_v52 = vpop.f32.mrb[11].mxu1 }
 0x5cd   : > { %v5926_v59 = vsel %vm9379_vm9, %v5917_v5, %v5925_v7  ;;  %v5727_v22 = vadd.f32 %v9959_v23, %v5726_v4  ;;  %v5927_v43 = vrot.slane %v5925_v7, 4  ;;  %v6004_v26 = vld [vmem:[%s9095_s19 + $0x34] sm:$0xf] }
 0x5ce   : > { %5999 = vst [vmem:[%s9095_s19 + $0x20] sm:$0xf] %v5926_v59  ;;  %v5931_v8 = vrot.slane %v5929_v20, 6  ;;  %v5934_v15 = vrot.slane %v5932_v24, 7  ;;  %v5939_v62 = vshrl.u32 %v6755_v30, 16  ;;  %v5942_v58 = vshll.u32 %v6755_v30, 16 }
 0x5cf   : > { %v5793_v21 = vmax.f32 %v7923_v38, 0.0  ;;  %v7925_v1 = vadd.f32 %v9966_v42, %v5727_v22 }
 0x5d0   : > { %v5935_v49 = vor.u32 %v5934_v15, %v5931_v8  ;;  %v5941_v56 = vrot.slane %v5939_v62, 6  ;;  %v5944_v13 = vrot.slane %v5942_v58, 7 }
 0x5d1   : > { %v5806_v29 = vmul.f32 %v5793_v21, %v9345_v25  ;;  %v5794_v10 = vmax.f32 %v7925_v1, 0.0  ;;  %v5731_v3 = vpop.f32.mrb[60].mxu1 }
 0x5d2   : > { %v5936_v37 = vsel %vm9379_vm9, %v5927_v43, %v5935_v49  ;;  %v5937_v11 = vrot.slane %v5935_v49, 4  ;;  %v5945_v55 = vor.u32 %v5944_v13, %v5941_v56  ;;  %v5732_v44 = vadd.f32 %v9959_v23, %v5731_v3  ;;  %v7878_v31 = vpop.f32.mrb[61].mxu1 }
 0x5d3   : > { %6000 = vst [vmem:[%s9095_s19 + $0x24] sm:$0xf] %v5936_v37  ;;  %v6756_v51 = vpack.c.bf16 %v5806_v29, %v5806_v29  ;;  %v5807_v54 = vmul.f32 %v5794_v10, %v9361_v2  ;;  %v5734_v40 = vpop.f32.mrb[62].mxu1 }
 0x5d4   : > { %v5946_v25 = vsel %vm9379_vm9, %v5937_v11, %v5945_v55  ;;  %v5782_v32 = vadd.f32 %v5769_v53, %v5732_v44  ;;  %v7879_v14 = vpop.f32.mrb[63].mxu1  ;;  %v5947_v2 = vrot.slane %v5945_v55, 4 }
 0x5d5   : > { %6001 = vst [vmem:[%s9095_s19 + $0x28] sm:$0xf] %v5946_v25  ;;  %v5949_v42 = vshrl.u32 %v6756_v51, 16  ;;  %v5952_v33 = vshll.u32 %v6756_v51, 16  ;;  %v6757_v46 = vpack.c.bf16 %v5807_v54, %v5807_v54 }
 0x5d6   : > { %v5795_v35 = vmax.f32 %v5782_v32, 0.0 }
 0x5d7   : > { %v5951_v19 = vrot.slane %v5949_v42, 6  ;;  %v5954_v36 = vrot.slane %v5952_v33, 7  ;;  %v5959_v23 = vshrl.u32 %v6757_v46, 16  ;;  %v5962_v41 = vshll.u32 %v6757_v46, 16 }
 0x5d8   : > { %v5808_v0 = vmul.f32 %v5795_v35, %v9485_v60 }
 0x5d9   : > { %v5955_v9 = vor.u32 %v5954_v36, %v5951_v19  ;;  %v5961_v45 = vrot.slane %v5959_v23, 6  ;;  %v5964_v61 = vrot.slane %v5962_v41, 7 }
 0x5da   : > { %v6758_v28 = vpack.c.bf16 %v5808_v0, %v5808_v0 }
 0x5db   : > { %v5956_v6 = vsel %vm9379_vm9, %v5947_v2, %v5955_v9  ;;  %v5957_v17 = vrot.slane %v5955_v9, 4  ;;  %v5965_v12 = vor.u32 %v5964_v61, %v5961_v45 }
 0x5dc   : > { %6002 = vst [vmem:[%s9095_s19 + $0x2c] sm:$0xf] %v5956_v6  ;;  %v5969_v18 = vshrl.u32 %v6758_v28, 16  ;;  %v5972_v57 = vshll.u32 %v6758_v28, 16 }
 0x5dd   : > { %v5966_v60 = vsel %vm9379_vm9, %v5957_v17, %v5965_v12  ;;  %v5967_v63 = vrot.slane %v5965_v12, 4 }
 0x5de   : > { %6003 = vst [vmem:[%s9095_s19 + $0x30] sm:$0xf] %v5966_v60  ;;  %v5971_v50 = vrot.slane %v5969_v18, 6  ;;  %v5974_v39 = vrot.slane %v5972_v57, 7 }
 0x5e0   : > { %v5975_v34 = vor.u32 %v5974_v39, %v5971_v50 }
 0x5e2   : > { %v5976_v5 = vsel %vm9379_vm9, %v5967_v63, %v5975_v34 }
 0x5e3   : > { %v6005_v7 = vsel %vm9499_vm14, %v5976_v5, %v6004_v26 }
 0x5e4   : > { %6006 = vst [vmem:[%s9095_s19 + $0x34] sm:$0xf] %v6005_v7 }
 0x5eb   : > { %v6011_v4 = vld [vmem:[%s9095_s19 + $0x34] sm:$0x8] }
 0x5ec   : > { %v6012_v20 = vsel %vm9519_vm5, 0, %v6011_v4 }
 0x5ed   : > { %6013 = vst [vmem:[%s9095_s19 + $0x34] sm:$0x8] %v6012_v20 }
 0x5ee PF: > { %s19_s30 = sadd.s32 1, %s8434_s30  }
 0x5ef   : > { %p16_p4 = scmp.ge.s32.totalorder %s19_s30, 4  }
 0x5f1   :  { %18 = sbr.rel (!%p16_p4) target bundleno = 1 (0x1), region = 105 }

</bundles_post_ra>
